<compile_context>
chip_gen: v7x
topology: tpu7x:2x2x1
jax: 0.10.0
libtpu: 0.0.40
codegen_flags: <defaults>
</compile_context>

<pallas_src>
import jax
import jax.numpy as jnp
from jax import lax
from jax.experimental import pallas as pl
from jax.experimental.pallas import tpu as pltpu


LANE = 128   # channel dims padded to a multiple of the TPU lane width
COL0 = 8     # sublane-aligned column offset of the image inside the halo scratch


def _round_up(x, m):
    return (x + m - 1) // m * m


# ------------------------------ fused kernel ------------------------------- #

def _make_kernel(*, H, W, CP, half, slope, eps, use_hin, downsample, col0):
    HW = H * W
    Ho, Wo = H // 2, W // 2
    bf16 = jnp.bfloat16

    def _leaky(v):
        return jnp.where(v >= 0, v, slope * v)

    def _im2col(src, k, pbuf):
        # src: (rows, WB, CP) f32 zero-haloed image, top-left pixel at (1, col0).
        # Writes tap t = ky*k + kx into lane slot t of the bf16 patch scratch.
        for ky in range(k):
            for kx in range(k):
                t = ky * k + kx
                tap = src[ky:ky + H, col0 - 1 + kx:col0 - 1 + kx + W, :]
                pbuf[:, t * CP:(t + 1) * CP] = tap.reshape(HW, CP).astype(bf16)

    def kernel(*refs):
        if downsample:
            (x_ref, w1_ref, b1_ref, g_ref, be_ref, w2_ref, b2_ref,
             wid_ref, bid_ref, wd_ref, sel_ref, o_ref, od_ref, hbuf, pbuf) = refs
        else:
            (x_ref, w1_ref, b1_ref, g_ref, be_ref, w2_ref, b2_ref,
             wid_ref, bid_ref, o_ref, hbuf, pbuf) = refs

        # ---- in-kernel halo: zero the scratch once, place x's interior -----
        hbuf[...] = jnp.zeros(hbuf.shape, jnp.float32)
        hbuf[1:H + 1, col0:col0 + W, :] = x_ref[0]

        # ---- conv_1: one im2col + one MXU matmul (K = 9*CP, bf16 operands) --
        _im2col(hbuf[...], 3, pbuf)
        acc1 = jnp.dot(pbuf[:, :9 * CP], w1_ref[...],
                       preferred_element_type=jnp.float32) + b1_ref[...]

        # ---- Half-Instance-Norm on first `half` channels (one-pass stats) ---
        if use_hin:
            m1 = jnp.mean(acc1, axis=0, keepdims=True)            # E[x]
            m2 = jnp.mean(acc1 * acc1, axis=0, keepdims=True)     # E[x^2]
            inv = lax.rsqrt(jnp.maximum(m2 - m1 * m1, 0.0) + eps)
            ch = lax.broadcasted_iota(jnp.int32, (1, CP), 1)
            scl = jnp.where(ch < half, g_ref[...] * inv, 1.0)
            sft = jnp.where(ch < half, be_ref[...] - m1 * g_ref[...] * inv, 0.0)
            acc1 = acc1 * scl + sft                               # one traversal

        y1 = _leaky(acc1)                                         # relu_1

        # ---- conv_2 + LeakyReLU + identity (1x1) ----------------------------
        hbuf[1:H + 1, col0:col0 + W, :] = y1.reshape(H, W, CP)    # reuse halo scratch
        _im2col(hbuf[...], 3, pbuf)
        acc2 = jnp.dot(pbuf[:, :9 * CP], w2_ref[...],
                       preferred_element_type=jnp.float32) + b2_ref[...]
        iden = jnp.dot(x_ref[0].reshape(HW, CP).astype(bf16), wid_ref[...],
                       preferred_element_type=jnp.float32) + bid_ref[...]
        out = _leaky(acc2) + iden
        o_ref[...] = out.reshape(1, H, W, CP)

        # ---- conv_down (4x4, stride 2, pad 1, no bias), fused ----------------
        if downsample:
            hbuf[1:H + 1, col0:col0 + W, :] = out.reshape(H, W, CP)
            _im2col(hbuf[...], 4, pbuf)                           # dense 4x4 taps
            dense = jnp.dot(pbuf[...], wd_ref[...],
                            preferred_element_type=jnp.float32)   # (H*W, CP)
            down = jnp.dot(sel_ref[...], dense,                   # exact stride-2 pick
                           preferred_element_type=jnp.float32)    # (Ho*Wo, CP)
            od_ref[...] = down.reshape(1, Ho, Wo, CP)

    return kernel


# ------------------------------ JAX wrapper -------------------------------- #

def unet_conv_block(x, params, *, relu_slope, downsample, use_hin):
    """Pallas implementation of UNetConvBlock.forward(x) (enc=dec=None)."""
    f32, bf16 = jnp.float32, jnp.bfloat16
    N, H, W, Cin = x.shape
    Cout = params["w1"].shape[-1]
    CP = _round_up(max(Cin, Cout), LANE)
    half = Cout // 2
    Ho, Wo = H // 2, W // 2
    WB = _round_up(COL0 + W + 2, 8)          # halo scratch width (tile aligned)

    # ---- wrapper-side weight fusion + channel padding (lane-dense) ---------
    x_p = jnp.pad(x.astype(f32), ((0, 0), (0, 0), (0, 0), (0, CP - Cin)))
    w1f = jnp.pad(params["w1"], ((0, 0), (0, 0), (0, CP - Cin), (0, CP - Cout))
                  ).reshape(9 * CP, CP).astype(bf16)
    w2f = jnp.pad(params["w2"], ((0, 0), (0, 0), (0, CP - Cout), (0, CP - Cout))
                  ).reshape(9 * CP, CP).astype(bf16)
    widf = jnp.pad(params["wid"], ((0, CP - Cin), (0, CP - Cout))).astype(bf16)
    b1f = jnp.pad(params["b1"].astype(f32), ((0, 0), (0, CP - Cout)))
    b2f = jnp.pad(params["b2"].astype(f32), ((0, 0), (0, CP - Cout)))
    bidf = jnp.pad(params["bid"].astype(f32), ((0, 0), (0, CP - Cout)))
    if use_hin:
        gam = jnp.concatenate([params["gamma"].astype(f32),
                               jnp.ones((1, CP - half), f32)], axis=1)
        bet = jnp.concatenate([params["beta"].astype(f32),
                               jnp.zeros((1, CP - half), f32)], axis=1)
    else:
        gam = jnp.ones((1, CP), f32)
        bet = jnp.zeros((1, CP), f32)

    in_specs = [
        pl.BlockSpec((1, H, W, CP), lambda n: (n, 0, 0, 0)),   # x
        pl.BlockSpec((9 * CP, CP), lambda n: (0, 0)),          # conv_1 fused weight
        pl.BlockSpec((1, CP), lambda n: (0, 0)),               # conv_1 bias
        pl.BlockSpec((1, CP), lambda n: (0, 0)),               # HIN gamma
        pl.BlockSpec((1, CP), lambda n: (0, 0)),               # HIN beta
        pl.BlockSpec((9 * CP, CP), lambda n: (0, 0)),          # conv_2 fused weight
        pl.BlockSpec((1, CP), lambda n: (0, 0)),               # conv_2 bias
        pl.BlockSpec((CP, CP), lambda n: (0, 0)),              # identity weight
        pl.BlockSpec((1, CP), lambda n: (0, 0)),               # identity bias
    ]
    inputs = [x_p, w1f, b1f, gam, bet, w2f, b2f, widf, bidf]

    if downsample:
        wdf = jnp.pad(params["wdown"],
                      ((0, 0), (0, 0), (0, CP - Cout), (0, CP - Cout))
                      ).reshape(16 * CP, CP).astype(bf16)
        # 0/1 selection matrix picking the stride-2 positions of the dense 4x4 conv.
        rows = jnp.arange(Ho * Wo)
        cols = 2 * (rows // Wo) * W + 2 * (rows % Wo)
        sel = (cols[:, None] == jnp.arange(H * W)[None, :]).astype(f32)
        in_specs += [pl.BlockSpec((16 * CP, CP), lambda n: (0, 0)),
                     pl.BlockSpec((Ho * Wo, H * W), lambda n: (0, 0))]
        inputs += [wdf, sel]
        out_shape = (jax.ShapeDtypeStruct((N, H, W, CP), f32),
                     jax.ShapeDtypeStruct((N, Ho, Wo, CP), f32))
        out_specs = (pl.BlockSpec((1, H, W, CP), lambda n: (n, 0, 0, 0)),
                     pl.BlockSpec((1, Ho, Wo, CP), lambda n: (n, 0, 0, 0)))
        ntaps = 16
    else:
        out_shape = jax.ShapeDtypeStruct((N, H, W, CP), f32)
        out_specs = pl.BlockSpec((1, H, W, CP), lambda n: (n, 0, 0, 0))
        ntaps = 9

    scratch_shapes = [
        pltpu.VMEM((H + 4, WB, CP), f32),          # zero-haloed x / y1 / out (reused)
        pltpu.VMEM((H * W, ntaps * CP), bf16),     # im2col patch matrix (reused)
    ]

    kernel = _make_kernel(H=H, W=W, CP=CP, half=half, slope=relu_slope,
                          eps=1e-5, use_hin=use_hin, downsample=downsample,
                          col0=COL0)

    outs = pl.pallas_call(
        kernel,
        out_shape=out_shape,
        grid=(N,),
        in_specs=in_specs,
        out_specs=out_specs,
        scratch_shapes=scratch_shapes,
        compiler_params=pltpu.CompilerParams(
            dimension_semantics=("parallel",),
            vmem_limit_bytes=32 * 1024 * 1024),
    )(*inputs)

    if downsample:
        out_full, od_full = outs
        return od_full[..., :Cout], out_full[..., :Cout]
    return outs[..., :Cout]


# ------------------------- pure-JAX reference check ------------------------ #

def _leaky_ref(x, slope):
    return jnp.where(x >= 0, x, slope * x)


def _conv_ref(x, w, stride, pad):
    dn = lax.conv_dimension_numbers(x.shape, w.shape, ("NHWC", "HWIO", "NHWC"))
    return lax.conv_general_dilated(x, w, (stride, stride),
                                    [(pad, pad), (pad, pad)],
                                    dimension_numbers=dn)


def reference(x, params, *, relu_slope, downsample, use_hin):
    out = _conv_ref(x, params["w1"], 1, 1) + params["b1"].reshape(1, 1, 1, -1)
    if use_hin:
        half = out.shape[-1] // 2
        o1, o2 = out[..., :half], out[..., half:]
        mean = o1.mean(axis=(1, 2), keepdims=True)
        var = ((o1 - mean) ** 2).mean(axis=(1, 2), keepdims=True)
        o1 = ((o1 - mean) / jnp.sqrt(var + 1e-5)
              * params["gamma"].reshape(1, 1, 1, -1)
              + params["beta"].reshape(1, 1, 1, -1))
        out = jnp.concatenate([o1, o2], axis=-1)
    out = _leaky_ref(out, relu_slope)
    out = _leaky_ref(_conv_ref(out, params["w2"], 1, 1)
                     + params["b2"].reshape(1, 1, 1, -1), relu_slope)
    out = out + (jnp.einsum("nhwc,cd->nhwd", x, params["wid"])
                 + params["bid"].reshape(1, 1, 1, -1))
    if downsample:
        out_down = _conv_ref(out, params["wdown"], 2, 1)
        return out_down, out
    return out


# ----------------------------------- main ---------------------------------- #

if __name__ == "__main__":
    N, H, W = 2, 16, 16
    in_size, out_size = 4, 8          # out_size even so the HIN split is clean
    relu_slope = 0.2

    keys = jax.random.split(jax.random.PRNGKey(0), 10)
    x = jax.random.normal(keys[0], (N, H, W, in_size), jnp.float32)
    params = dict(
        w1=0.1 * jax.random.normal(keys[1], (3, 3, in_size, out_size), jnp.float32),
        b1=0.1 * jax.random.normal(keys[2], (1, out_size), jnp.float32),
        gamma=1.0 + 0.1 * jax.random.normal(keys[3], (1, out_size // 2), jnp.float32),
        beta=0.1 * jax.random.normal(keys[4], (1, out_size // 2), jnp.float32),
        w2=0.1 * jax.random.normal(keys[5], (3, 3, out_size, out_size), jnp.float32),
        b2=0.1 * jax.random.normal(keys[6], (1, out_size), jnp.float32),
        wid=0.1 * jax.random.normal(keys[7], (in_size, out_size), jnp.float32),
        bid=0.1 * jax.random.normal(keys[8], (1, out_size), jnp.float32),
        wdown=0.1 * jax.random.normal(keys[9], (4, 4, out_size, out_size), jnp.float32),
    )

    out_down, out = unet_conv_block(x, params, relu_slope=relu_slope,
                                    downsample=True, use_hin=True)
    jax.block_until_ready((out_down, out))

    ref_down, ref_out = reference(x, params, relu_slope=relu_slope,
                                  downsample=True, use_hin=True)
    assert out.shape == (N, H, W, out_size)
    assert out_down.shape == (N, H // 2, W // 2, out_size)
    # bf16 MXU operands (f32 accumulation) => slightly looser tolerance than pure f32.
    assert jnp.allclose(out, ref_out, atol=2e-2, rtol=2e-2)
    assert jnp.allclose(out_down, ref_down, atol=2e-2, rtol=2e-2)
    print("KERNEL_OK")
</pallas_src>

<mosaic_0001>
module attributes {stable_mosaic.version = 11 : i64} {
  func.func @kernel(%arg0: i32, %arg1: memref<1x16x16x128xf32, #tpu.memory_space<vmem>>, %arg2: memref<1152x128xbf16, #tpu.memory_space<vmem>>, %arg3: memref<1x128xf32, #tpu.memory_space<vmem>>, %arg4: memref<1x128xf32, #tpu.memory_space<vmem>>, %arg5: memref<1x128xf32, #tpu.memory_space<vmem>>, %arg6: memref<1152x128xbf16, #tpu.memory_space<vmem>>, %arg7: memref<1x128xf32, #tpu.memory_space<vmem>>, %arg8: memref<128x128xbf16, #tpu.memory_space<vmem>>, %arg9: memref<1x128xf32, #tpu.memory_space<vmem>>, %arg10: memref<2048x128xbf16, #tpu.memory_space<vmem>>, %arg11: memref<64x256xf32, #tpu.memory_space<vmem>>, %arg12: memref<1x16x16x128xf32, #tpu.memory_space<vmem>>, %arg13: memref<1x8x8x128xf32, #tpu.memory_space<vmem>>, %arg14: memref<20x32x128xf32, #tpu.memory_space<vmem>>, %arg15: memref<256x2048xbf16, #tpu.memory_space<vmem>>) attributes {dimension_semantics = [#tpu.dimension_semantics<parallel>], iteration_bounds = array<i64: 2>, scalar_prefetch = 0 : i64, scratch_operands = 2 : i64, tpu.core_type = #tpu.core_type<tc>, window_params = [{transform_indices = @transform_0, window_bounds = array<i64: 1, 16, 16, 128>}, {pipeline_mode = #tpu.pipeline_mode<synchronous>, transform_indices = @transform_1, window_bounds = array<i64: 1152, 128>}, {pipeline_mode = #tpu.pipeline_mode<synchronous>, transform_indices = @transform_2, window_bounds = array<i64: 1, 128>}, {pipeline_mode = #tpu.pipeline_mode<synchronous>, transform_indices = @transform_3, window_bounds = array<i64: 1, 128>}, {pipeline_mode = #tpu.pipeline_mode<synchronous>, transform_indices = @transform_4, window_bounds = array<i64: 1, 128>}, {pipeline_mode = #tpu.pipeline_mode<synchronous>, transform_indices = @transform_5, window_bounds = array<i64: 1152, 128>}, {pipeline_mode = #tpu.pipeline_mode<synchronous>, transform_indices = @transform_6, window_bounds = array<i64: 1, 128>}, {pipeline_mode = #tpu.pipeline_mode<synchronous>, transform_indices = @transform_7, window_bounds = array<i64: 128, 128>}, {pipeline_mode = #tpu.pipeline_mode<synchronous>, transform_indices = @transform_8, window_bounds = array<i64: 1, 128>}, {pipeline_mode = #tpu.pipeline_mode<synchronous>, transform_indices = @transform_9, window_bounds = array<i64: 2048, 128>}, {pipeline_mode = #tpu.pipeline_mode<synchronous>, transform_indices = @transform_10, window_bounds = array<i64: 64, 256>}, {transform_indices = @transform_11, window_bounds = array<i64: 1, 16, 16, 128>}, {transform_indices = @transform_12, window_bounds = array<i64: 1, 8, 8, 128>}]} {
    %cst = arith.constant 0.000000e+00 : f32
    %0 = vector.broadcast %cst : f32 to vector<20x32x128xf32>
    %c0 = arith.constant 0 : index
    %c0_0 = arith.constant 0 : index
    %c0_1 = arith.constant 0 : index
    %1 = vector.load %arg14[%c0, %c0_0, %c0_1] : memref<20x32x128xf32, #tpu.memory_space<vmem>>, vector<20x32x128xf32>
    tpu.vector_store %arg14[%c0, %c0_0, %c0_1], %0 {strides = array<i32>} : memref<20x32x128xf32, #tpu.memory_space<vmem>>, vector<20x32x128xf32>,
    %c0_2 = arith.constant 0 : index
    %c0_3 = arith.constant 0 : index
    %c0_4 = arith.constant 0 : index
    %c0_5 = arith.constant 0 : index
    %2 = vector.load %arg1[%c0_2, %c0_3, %c0_4, %c0_5] : memref<1x16x16x128xf32, #tpu.memory_space<vmem>>, vector<1x16x16x128xf32>
    %3 = vector.shape_cast %2 : vector<1x16x16x128xf32> to vector<16x16x128xf32>
    %c1 = arith.constant 1 : index
    %c8 = arith.constant 8 : index
    %c0_6 = arith.constant 0 : index
    %4 = vector.load %arg14[%c1, %c8, %c0_6] : memref<20x32x128xf32, #tpu.memory_space<vmem>>, vector<16x16x128xf32>
    tpu.vector_store %arg14[%c1, %c8, %c0_6], %3 {strides = array<i32>} : memref<20x32x128xf32, #tpu.memory_space<vmem>>, vector<16x16x128xf32>,
    %c0_7 = arith.constant 0 : index
    %c0_8 = arith.constant 0 : index
    %c0_9 = arith.constant 0 : index
    %5 = vector.load %arg14[%c0_7, %c0_8, %c0_9] : memref<20x32x128xf32, #tpu.memory_space<vmem>>, vector<20x32x128xf32>
    %6 = vector.extract_strided_slice %5 {offsets = [0, 7, 0], sizes = [16, 16, 128], strides = [1, 1, 1]} : vector<20x32x128xf32> to vector<16x16x128xf32>
    %7 = vector.shape_cast %6 : vector<16x16x128xf32> to vector<256x128xf32>
    %8 = arith.truncf %7 : vector<256x128xf32> to vector<256x128xbf16>
    %c0_10 = arith.constant 0 : index
    %c0_11 = arith.constant 0 : index
    %9 = vector.load %arg15[%c0_10, %c0_11] : memref<256x2048xbf16, #tpu.memory_space<vmem>>, vector<256x128xbf16>
    tpu.vector_store %arg15[%c0_10, %c0_11], %8 {strides = array<i32>} : memref<256x2048xbf16, #tpu.memory_space<vmem>>, vector<256x128xbf16>,
    %10 = vector.extract_strided_slice %5 {offsets = [0, 8, 0], sizes = [16, 16, 128], strides = [1, 1, 1]} : vector<20x32x128xf32> to vector<16x16x128xf32>
    %11 = vector.shape_cast %10 : vector<16x16x128xf32> to vector<256x128xf32>
    %12 = arith.truncf %11 : vector<256x128xf32> to vector<256x128xbf16>
    %c0_12 = arith.constant 0 : index
    %c128 = arith.constant 128 : index
    %13 = vector.load %arg15[%c0_12, %c128] : memref<256x2048xbf16, #tpu.memory_space<vmem>>, vector<256x128xbf16>
    tpu.vector_store %arg15[%c0_12, %c128], %12 {strides = array<i32>} : memref<256x2048xbf16, #tpu.memory_space<vmem>>, vector<256x128xbf16>,
    %14 = vector.extract_strided_slice %5 {offsets = [0, 9, 0], sizes = [16, 16, 128], strides = [1, 1, 1]} : vector<20x32x128xf32> to vector<16x16x128xf32>
    %15 = vector.shape_cast %14 : vector<16x16x128xf32> to vector<256x128xf32>
    %16 = arith.truncf %15 : vector<256x128xf32> to vector<256x128xbf16>
    %c0_13 = arith.constant 0 : index
    %c256 = arith.constant 256 : index
    %17 = vector.load %arg15[%c0_13, %c256] : memref<256x2048xbf16, #tpu.memory_space<vmem>>, vector<256x128xbf16>
    tpu.vector_store %arg15[%c0_13, %c256], %16 {strides = array<i32>} : memref<256x2048xbf16, #tpu.memory_space<vmem>>, vector<256x128xbf16>,
    %18 = vector.extract_strided_slice %5 {offsets = [1, 7, 0], sizes = [16, 16, 128], strides = [1, 1, 1]} : vector<20x32x128xf32> to vector<16x16x128xf32>
    %19 = vector.shape_cast %18 : vector<16x16x128xf32> to vector<256x128xf32>
    %20 = arith.truncf %19 : vector<256x128xf32> to vector<256x128xbf16>
    %c0_14 = arith.constant 0 : index
    %c384 = arith.constant 384 : index
    %21 = vector.load %arg15[%c0_14, %c384] : memref<256x2048xbf16, #tpu.memory_space<vmem>>, vector<256x128xbf16>
    tpu.vector_store %arg15[%c0_14, %c384], %20 {strides = array<i32>} : memref<256x2048xbf16, #tpu.memory_space<vmem>>, vector<256x128xbf16>,
    %22 = vector.extract_strided_slice %5 {offsets = [1, 8, 0], sizes = [16, 16, 128], strides = [1, 1, 1]} : vector<20x32x128xf32> to vector<16x16x128xf32>
    %23 = vector.shape_cast %22 : vector<16x16x128xf32> to vector<256x128xf32>
    %24 = arith.truncf %23 : vector<256x128xf32> to vector<256x128xbf16>
    %c0_15 = arith.constant 0 : index
    %c512 = arith.constant 512 : index
    %25 = vector.load %arg15[%c0_15, %c512] : memref<256x2048xbf16, #tpu.memory_space<vmem>>, vector<256x128xbf16>
    tpu.vector_store %arg15[%c0_15, %c512], %24 {strides = array<i32>} : memref<256x2048xbf16, #tpu.memory_space<vmem>>, vector<256x128xbf16>,
    %26 = vector.extract_strided_slice %5 {offsets = [1, 9, 0], sizes = [16, 16, 128], strides = [1, 1, 1]} : vector<20x32x128xf32> to vector<16x16x128xf32>
    %27 = vector.shape_cast %26 : vector<16x16x128xf32> to vector<256x128xf32>
    %28 = arith.truncf %27 : vector<256x128xf32> to vector<256x128xbf16>
    %c0_16 = arith.constant 0 : index
    %c640 = arith.constant 640 : index
    %29 = vector.load %arg15[%c0_16, %c640] : memref<256x2048xbf16, #tpu.memory_space<vmem>>, vector<256x128xbf16>
    tpu.vector_store %arg15[%c0_16, %c640], %28 {strides = array<i32>} : memref<256x2048xbf16, #tpu.memory_space<vmem>>, vector<256x128xbf16>,
    %30 = vector.extract_strided_slice %5 {offsets = [2, 7, 0], sizes = [16, 16, 128], strides = [1, 1, 1]} : vector<20x32x128xf32> to vector<16x16x128xf32>
    %31 = vector.shape_cast %30 : vector<16x16x128xf32> to vector<256x128xf32>
    %32 = arith.truncf %31 : vector<256x128xf32> to vector<256x128xbf16>
    %c0_17 = arith.constant 0 : index
    %c768 = arith.constant 768 : index
    %33 = vector.load %arg15[%c0_17, %c768] : memref<256x2048xbf16, #tpu.memory_space<vmem>>, vector<256x128xbf16>
    tpu.vector_store %arg15[%c0_17, %c768], %32 {strides = array<i32>} : memref<256x2048xbf16, #tpu.memory_space<vmem>>, vector<256x128xbf16>,
    %34 = vector.extract_strided_slice %5 {offsets = [2, 8, 0], sizes = [16, 16, 128], strides = [1, 1, 1]} : vector<20x32x128xf32> to vector<16x16x128xf32>
    %35 = vector.shape_cast %34 : vector<16x16x128xf32> to vector<256x128xf32>
    %36 = arith.truncf %35 : vector<256x128xf32> to vector<256x128xbf16>
    %c0_18 = arith.constant 0 : index
    %c896 = arith.constant 896 : index
    %37 = vector.load %arg15[%c0_18, %c896] : memref<256x2048xbf16, #tpu.memory_space<vmem>>, vector<256x128xbf16>
    tpu.vector_store %arg15[%c0_18, %c896], %36 {strides = array<i32>} : memref<256x2048xbf16, #tpu.memory_space<vmem>>, vector<256x128xbf16>,
    %38 = vector.extract_strided_slice %5 {offsets = [2, 9, 0], sizes = [16, 16, 128], strides = [1, 1, 1]} : vector<20x32x128xf32> to vector<16x16x128xf32>
    %39 = vector.shape_cast %38 : vector<16x16x128xf32> to vector<256x128xf32>
    %40 = arith.truncf %39 : vector<256x128xf32> to vector<256x128xbf16>
    %c0_19 = arith.constant 0 : index
    %c1024 = arith.constant 1024 : index
    %41 = vector.load %arg15[%c0_19, %c1024] : memref<256x2048xbf16, #tpu.memory_space<vmem>>, vector<256x128xbf16>
    tpu.vector_store %arg15[%c0_19, %c1024], %40 {strides = array<i32>} : memref<256x2048xbf16, #tpu.memory_space<vmem>>, vector<256x128xbf16>,
    %c0_20 = arith.constant 0 : index
    %c0_21 = arith.constant 0 : index
    %42 = vector.load %arg15[%c0_20, %c0_21] : memref<256x2048xbf16, #tpu.memory_space<vmem>>, vector<256x1152xbf16>
    %c0_22 = arith.constant 0 : index
    %c0_23 = arith.constant 0 : index
    %43 = vector.load %arg2[%c0_22, %c0_23] : memref<1152x128xbf16, #tpu.memory_space<vmem>>, vector<1152x128xbf16>
    %cst_24 = arith.constant dense<0.000000e+00> : vector<256x128xf32>
    %44 = tpu.matmul %42, %43, %cst_24 {dimension_numbers = #tpu.dot_dimension_numbers<[1], [0], [0], [1], [0, 0, 1, 1], [], []>} : vector<256x1152xbf16>, vector<1152x128xbf16>, vector<256x128xf32> -> vector<256x128xf32>
    %c0_25 = arith.constant 0 : index
    %c0_26 = arith.constant 0 : index
    %45 = vector.load %arg3[%c0_25, %c0_26] : memref<1x128xf32, #tpu.memory_space<vmem>>, vector<1x128xf32>
    %46 = vector.broadcast %45 : vector<1x128xf32> to vector<256x128xf32>
    %47 = arith.addf %44, %46 : vector<256x128xf32>
    %cst_27 = arith.constant dense<0.000000e+00> : vector<128xf32>
    %48 = vector.multi_reduction <add>, %47, %cst_27 [0] : vector<256x128xf32> to vector<128xf32>
    %49 = vector.shape_cast %48 : vector<128xf32> to vector<1x128xf32>
    %cst_28 = arith.constant 2.560000e+02 : f32
    %50 = vector.broadcast %cst_28 : f32 to vector<1x128xf32>
    %51 = arith.divf %49, %50 : vector<1x128xf32>
    %52 = arith.mulf %47, %47 : vector<256x128xf32>
    %cst_29 = arith.constant dense<0.000000e+00> : vector<128xf32>
    %53 = vector.multi_reduction <add>, %52, %cst_29 [0] : vector<256x128xf32> to vector<128xf32>
    %54 = vector.shape_cast %53 : vector<128xf32> to vector<1x128xf32>
    %cst_30 = arith.constant 2.560000e+02 : f32
    %55 = vector.broadcast %cst_30 : f32 to vector<1x128xf32>
    %56 = arith.divf %54, %55 : vector<1x128xf32>
    %57 = arith.mulf %51, %51 : vector<1x128xf32>
    %58 = arith.subf %56, %57 : vector<1x128xf32>
    %cst_31 = arith.constant 0.000000e+00 : f32
    %59 = vector.broadcast %cst_31 : f32 to vector<1x128xf32>
    %60 = arith.maximumf %58, %59 : vector<1x128xf32>
    %cst_32 = arith.constant 9.99999974E-6 : f32
    %61 = vector.broadcast %cst_32 : f32 to vector<1x128xf32>
    %62 = arith.addf %60, %61 : vector<1x128xf32>
    %63 = math.rsqrt %62 : vector<1x128xf32>
    %64 = tpu.iota {dimensions = array<i32: 1>} : vector<1x128xi32>
    %c4_i32 = arith.constant 4 : i32
    %65 = vector.broadcast %c4_i32 : i32 to vector<1x128xi32>
    %66 = arith.cmpi slt, %64, %65 : vector<1x128xi32>
    %c0_33 = arith.constant 0 : index
    %c0_34 = arith.constant 0 : index
    %67 = vector.load %arg4[%c0_33, %c0_34] : memref<1x128xf32, #tpu.memory_space<vmem>>, vector<1x128xf32>
    %68 = arith.mulf %67, %63 : vector<1x128xf32>
    %cst_35 = arith.constant 1.000000e+00 : f32
    %69 = vector.broadcast %cst_35 : f32 to vector<1x128xf32>
    %70 = arith.select %66, %68, %69 : vector<1x128xi1>, vector<1x128xf32>
    %c4_i32_36 = arith.constant 4 : i32
    %71 = vector.broadcast %c4_i32_36 : i32 to vector<1x128xi32>
    %72 = arith.cmpi slt, %64, %71 : vector<1x128xi32>
    %c0_37 = arith.constant 0 : index
    %c0_38 = arith.constant 0 : index
    %73 = vector.load %arg5[%c0_37, %c0_38] : memref<1x128xf32, #tpu.memory_space<vmem>>, vector<1x128xf32>
    %c0_39 = arith.constant 0 : index
    %c0_40 = arith.constant 0 : index
    %74 = vector.load %arg4[%c0_39, %c0_40] : memref<1x128xf32, #tpu.memory_space<vmem>>, vector<1x128xf32>
    %75 = arith.mulf %51, %74 : vector<1x128xf32>
    %76 = arith.mulf %75, %63 : vector<1x128xf32>
    %77 = arith.subf %73, %76 : vector<1x128xf32>
    %cst_41 = arith.constant 0.000000e+00 : f32
    %78 = vector.broadcast %cst_41 : f32 to vector<1x128xf32>
    %79 = arith.select %72, %77, %78 : vector<1x128xi1>, vector<1x128xf32>
    %80 = vector.broadcast %70 : vector<1x128xf32> to vector<256x128xf32>
    %81 = arith.mulf %47, %80 : vector<256x128xf32>
    %82 = vector.broadcast %79 : vector<1x128xf32> to vector<256x128xf32>
    %83 = arith.addf %81, %82 : vector<256x128xf32>
    %cst_42 = arith.constant 0.000000e+00 : f32
    %84 = vector.broadcast %cst_42 : f32 to vector<256x128xf32>
    %85 = arith.cmpf oge, %83, %84 : vector<256x128xf32>
    %cst_43 = arith.constant 2.000000e-01 : f32
    %86 = vector.broadcast %cst_43 : f32 to vector<256x128xf32>
    %87 = arith.mulf %86, %83 : vector<256x128xf32>
    %88 = arith.select %85, %83, %87 : vector<256x128xi1>, vector<256x128xf32>
    %89 = vector.shape_cast %88 : vector<256x128xf32> to vector<16x16x128xf32>
    %c1_44 = arith.constant 1 : index
    %c8_45 = arith.constant 8 : index
    %c0_46 = arith.constant 0 : index
    %90 = vector.load %arg14[%c1_44, %c8_45, %c0_46] : memref<20x32x128xf32, #tpu.memory_space<vmem>>, vector<16x16x128xf32>
    tpu.vector_store %arg14[%c1_44, %c8_45, %c0_46], %89 {strides = array<i32>} : memref<20x32x128xf32, #tpu.memory_space<vmem>>, vector<16x16x128xf32>,
    %c0_47 = arith.constant 0 : index
    %c0_48 = arith.constant 0 : index
    %c0_49 = arith.constant 0 : index
    %91 = vector.load %arg14[%c0_47, %c0_48, %c0_49] : memref<20x32x128xf32, #tpu.memory_space<vmem>>, vector<20x32x128xf32>
    %92 = vector.extract_strided_slice %91 {offsets = [0, 7, 0], sizes = [16, 16, 128], strides = [1, 1, 1]} : vector<20x32x128xf32> to vector<16x16x128xf32>
    %93 = vector.shape_cast %92 : vector<16x16x128xf32> to vector<256x128xf32>
    %94 = arith.truncf %93 : vector<256x128xf32> to vector<256x128xbf16>
    %c0_50 = arith.constant 0 : index
    %c0_51 = arith.constant 0 : index
    %95 = vector.load %arg15[%c0_50, %c0_51] : memref<256x2048xbf16, #tpu.memory_space<vmem>>, vector<256x128xbf16>
    tpu.vector_store %arg15[%c0_50, %c0_51], %94 {strides = array<i32>} : memref<256x2048xbf16, #tpu.memory_space<vmem>>, vector<256x128xbf16>,
    %96 = vector.extract_strided_slice %91 {offsets = [0, 8, 0], sizes = [16, 16, 128], strides = [1, 1, 1]} : vector<20x32x128xf32> to vector<16x16x128xf32>
    %97 = vector.shape_cast %96 : vector<16x16x128xf32> to vector<256x128xf32>
    %98 = arith.truncf %97 : vector<256x128xf32> to vector<256x128xbf16>
    %c0_52 = arith.constant 0 : index
    %c128_53 = arith.constant 128 : index
    %99 = vector.load %arg15[%c0_52, %c128_53] : memref<256x2048xbf16, #tpu.memory_space<vmem>>, vector<256x128xbf16>
    tpu.vector_store %arg15[%c0_52, %c128_53], %98 {strides = array<i32>} : memref<256x2048xbf16, #tpu.memory_space<vmem>>, vector<256x128xbf16>,
    %100 = vector.extract_strided_slice %91 {offsets = [0, 9, 0], sizes = [16, 16, 128], strides = [1, 1, 1]} : vector<20x32x128xf32> to vector<16x16x128xf32>
    %101 = vector.shape_cast %100 : vector<16x16x128xf32> to vector<256x128xf32>
    %102 = arith.truncf %101 : vector<256x128xf32> to vector<256x128xbf16>
    %c0_54 = arith.constant 0 : index
    %c256_55 = arith.constant 256 : index
    %103 = vector.load %arg15[%c0_54, %c256_55] : memref<256x2048xbf16, #tpu.memory_space<vmem>>, vector<256x128xbf16>
    tpu.vector_store %arg15[%c0_54, %c256_55], %102 {strides = array<i32>} : memref<256x2048xbf16, #tpu.memory_space<vmem>>, vector<256x128xbf16>,
    %104 = vector.extract_strided_slice %91 {offsets = [1, 7, 0], sizes = [16, 16, 128], strides = [1, 1, 1]} : vector<20x32x128xf32> to vector<16x16x128xf32>
    %105 = vector.shape_cast %104 : vector<16x16x128xf32> to vector<256x128xf32>
    %106 = arith.truncf %105 : vector<256x128xf32> to vector<256x128xbf16>
    %c0_56 = arith.constant 0 : index
    %c384_57 = arith.constant 384 : index
    %107 = vector.load %arg15[%c0_56, %c384_57] : memref<256x2048xbf16, #tpu.memory_space<vmem>>, vector<256x128xbf16>
    tpu.vector_store %arg15[%c0_56, %c384_57], %106 {strides = array<i32>} : memref<256x2048xbf16, #tpu.memory_space<vmem>>, vector<256x128xbf16>,
    %108 = vector.extract_strided_slice %91 {offsets = [1, 8, 0], sizes = [16, 16, 128], strides = [1, 1, 1]} : vector<20x32x128xf32> to vector<16x16x128xf32>
    %109 = vector.shape_cast %108 : vector<16x16x128xf32> to vector<256x128xf32>
    %110 = arith.truncf %109 : vector<256x128xf32> to vector<256x128xbf16>
    %c0_58 = arith.constant 0 : index
    %c512_59 = arith.constant 512 : index
    %111 = vector.load %arg15[%c0_58, %c512_59] : memref<256x2048xbf16, #tpu.memory_space<vmem>>, vector<256x128xbf16>
    tpu.vector_store %arg15[%c0_58, %c512_59], %110 {strides = array<i32>} : memref<256x2048xbf16, #tpu.memory_space<vmem>>, vector<256x128xbf16>,
    %112 = vector.extract_strided_slice %91 {offsets = [1, 9, 0], sizes = [16, 16, 128], strides = [1, 1, 1]} : vector<20x32x128xf32> to vector<16x16x128xf32>
    %113 = vector.shape_cast %112 : vector<16x16x128xf32> to vector<256x128xf32>
    %114 = arith.truncf %113 : vector<256x128xf32> to vector<256x128xbf16>
    %c0_60 = arith.constant 0 : index
    %c640_61 = arith.constant 640 : index
    %115 = vector.load %arg15[%c0_60, %c640_61] : memref<256x2048xbf16, #tpu.memory_space<vmem>>, vector<256x128xbf16>
    tpu.vector_store %arg15[%c0_60, %c640_61], %114 {strides = array<i32>} : memref<256x2048xbf16, #tpu.memory_space<vmem>>, vector<256x128xbf16>,
    %116 = vector.extract_strided_slice %91 {offsets = [2, 7, 0], sizes = [16, 16, 128], strides = [1, 1, 1]} : vector<20x32x128xf32> to vector<16x16x128xf32>
    %117 = vector.shape_cast %116 : vector<16x16x128xf32> to vector<256x128xf32>
    %118 = arith.truncf %117 : vector<256x128xf32> to vector<256x128xbf16>
    %c0_62 = arith.constant 0 : index
    %c768_63 = arith.constant 768 : index
    %119 = vector.load %arg15[%c0_62, %c768_63] : memref<256x2048xbf16, #tpu.memory_space<vmem>>, vector<256x128xbf16>
    tpu.vector_store %arg15[%c0_62, %c768_63], %118 {strides = array<i32>} : memref<256x2048xbf16, #tpu.memory_space<vmem>>, vector<256x128xbf16>,
    %120 = vector.extract_strided_slice %91 {offsets = [2, 8, 0], sizes = [16, 16, 128], strides = [1, 1, 1]} : vector<20x32x128xf32> to vector<16x16x128xf32>
    %121 = vector.shape_cast %120 : vector<16x16x128xf32> to vector<256x128xf32>
    %122 = arith.truncf %121 : vector<256x128xf32> to vector<256x128xbf16>
    %c0_64 = arith.constant 0 : index
    %c896_65 = arith.constant 896 : index
    %123 = vector.load %arg15[%c0_64, %c896_65] : memref<256x2048xbf16, #tpu.memory_space<vmem>>, vector<256x128xbf16>
    tpu.vector_store %arg15[%c0_64, %c896_65], %122 {strides = array<i32>} : memref<256x2048xbf16, #tpu.memory_space<vmem>>, vector<256x128xbf16>,
    %124 = vector.extract_strided_slice %91 {offsets = [2, 9, 0], sizes = [16, 16, 128], strides = [1, 1, 1]} : vector<20x32x128xf32> to vector<16x16x128xf32>
    %125 = vector.shape_cast %124 : vector<16x16x128xf32> to vector<256x128xf32>
    %126 = arith.truncf %125 : vector<256x128xf32> to vector<256x128xbf16>
    %c0_66 = arith.constant 0 : index
    %c1024_67 = arith.constant 1024 : index
    %127 = vector.load %arg15[%c0_66, %c1024_67] : memref<256x2048xbf16, #tpu.memory_space<vmem>>, vector<256x128xbf16>
    tpu.vector_store %arg15[%c0_66, %c1024_67], %126 {strides = array<i32>} : memref<256x2048xbf16, #tpu.memory_space<vmem>>, vector<256x128xbf16>,
    %c0_68 = arith.constant 0 : index
    %c0_69 = arith.constant 0 : index
    %128 = vector.load %arg15[%c0_68, %c0_69] : memref<256x2048xbf16, #tpu.memory_space<vmem>>, vector<256x1152xbf16>
    %c0_70 = arith.constant 0 : index
    %c0_71 = arith.constant 0 : index
    %129 = vector.load %arg6[%c0_70, %c0_71] : memref<1152x128xbf16, #tpu.memory_space<vmem>>, vector<1152x128xbf16>
    %cst_72 = arith.constant dense<0.000000e+00> : vector<256x128xf32>
    %130 = tpu.matmul %128, %129, %cst_72 {dimension_numbers = #tpu.dot_dimension_numbers<[1], [0], [0], [1], [0, 0, 1, 1], [], []>} : vector<256x1152xbf16>, vector<1152x128xbf16>, vector<256x128xf32> -> vector<256x128xf32>
    %c0_73 = arith.constant 0 : index
    %c0_74 = arith.constant 0 : index
    %131 = vector.load %arg7[%c0_73, %c0_74] : memref<1x128xf32, #tpu.memory_space<vmem>>, vector<1x128xf32>
    %132 = vector.broadcast %131 : vector<1x128xf32> to vector<256x128xf32>
    %133 = arith.addf %130, %132 : vector<256x128xf32>
    %c0_75 = arith.constant 0 : index
    %c0_76 = arith.constant 0 : index
    %c0_77 = arith.constant 0 : index
    %c0_78 = arith.constant 0 : index
    %134 = vector.load %arg1[%c0_75, %c0_76, %c0_77, %c0_78] : memref<1x16x16x128xf32, #tpu.memory_space<vmem>>, vector<1x16x16x128xf32>
    %135 = vector.shape_cast %134 : vector<1x16x16x128xf32> to vector<16x16x128xf32>
    %136 = vector.shape_cast %135 : vector<16x16x128xf32> to vector<256x128xf32>
    %137 = arith.truncf %136 : vector<256x128xf32> to vector<256x128xbf16>
    %c0_79 = arith.constant 0 : index
    %c0_80 = arith.constant 0 : index
    %138 = vector.load %arg8[%c0_79, %c0_80] : memref<128x128xbf16, #tpu.memory_space<vmem>>, vector<128x128xbf16>
    %cst_81 = arith.constant dense<0.000000e+00> : vector<256x128xf32>
    %139 = tpu.matmul %137, %138, %cst_81 {dimension_numbers = #tpu.dot_dimension_numbers<[1], [0], [0], [1], [0, 0, 1, 1], [], []>} : vector<256x128xbf16>, vector<128x128xbf16>, vector<256x128xf32> -> vector<256x128xf32>
    %c0_82 = arith.constant 0 : index
    %c0_83 = arith.constant 0 : index
    %140 = vector.load %arg9[%c0_82, %c0_83] : memref<1x128xf32, #tpu.memory_space<vmem>>, vector<1x128xf32>
    %141 = vector.broadcast %140 : vector<1x128xf32> to vector<256x128xf32>
    %142 = arith.addf %139, %141 : vector<256x128xf32>
    %cst_84 = arith.constant 0.000000e+00 : f32
    %143 = vector.broadcast %cst_84 : f32 to vector<256x128xf32>
    %144 = arith.cmpf oge, %133, %143 : vector<256x128xf32>
    %cst_85 = arith.constant 2.000000e-01 : f32
    %145 = vector.broadcast %cst_85 : f32 to vector<256x128xf32>
    %146 = arith.mulf %145, %133 : vector<256x128xf32>
    %147 = arith.select %144, %133, %146 : vector<256x128xi1>, vector<256x128xf32>
    %148 = arith.addf %147, %142 : vector<256x128xf32>
    %149 = vector.shape_cast %148 : vector<256x128xf32> to vector<1x16x16x128xf32>
    %c0_86 = arith.constant 0 : index
    %c0_87 = arith.constant 0 : index
    %c0_88 = arith.constant 0 : index
    %c0_89 = arith.constant 0 : index
    %150 = vector.load %arg12[%c0_86, %c0_87, %c0_88, %c0_89] : memref<1x16x16x128xf32, #tpu.memory_space<vmem>>, vector<1x16x16x128xf32>
    tpu.vector_store %arg12[%c0_86, %c0_87, %c0_88, %c0_89], %149 {strides = array<i32>} : memref<1x16x16x128xf32, #tpu.memory_space<vmem>>, vector<1x16x16x128xf32>,
    %151 = vector.shape_cast %148 : vector<256x128xf32> to vector<16x16x128xf32>
    %c1_90 = arith.constant 1 : index
    %c8_91 = arith.constant 8 : index
    %c0_92 = arith.constant 0 : index
    %152 = vector.load %arg14[%c1_90, %c8_91, %c0_92] : memref<20x32x128xf32, #tpu.memory_space<vmem>>, vector<16x16x128xf32>
    tpu.vector_store %arg14[%c1_90, %c8_91, %c0_92], %151 {strides = array<i32>} : memref<20x32x128xf32, #tpu.memory_space<vmem>>, vector<16x16x128xf32>,
    %c0_93 = arith.constant 0 : index
    %c0_94 = arith.constant 0 : index
    %c0_95 = arith.constant 0 : index
    %153 = vector.load %arg14[%c0_93, %c0_94, %c0_95] : memref<20x32x128xf32, #tpu.memory_space<vmem>>, vector<20x32x128xf32>
    %154 = vector.extract_strided_slice %153 {offsets = [0, 7, 0], sizes = [16, 16, 128], strides = [1, 1, 1]} : vector<20x32x128xf32> to vector<16x16x128xf32>
    %155 = vector.shape_cast %154 : vector<16x16x128xf32> to vector<256x128xf32>
    %156 = arith.truncf %155 : vector<256x128xf32> to vector<256x128xbf16>
    %c0_96 = arith.constant 0 : index
    %c0_97 = arith.constant 0 : index
    %157 = vector.load %arg15[%c0_96, %c0_97] : memref<256x2048xbf16, #tpu.memory_space<vmem>>, vector<256x128xbf16>
    tpu.vector_store %arg15[%c0_96, %c0_97], %156 {strides = array<i32>} : memref<256x2048xbf16, #tpu.memory_space<vmem>>, vector<256x128xbf16>,
    %158 = vector.extract_strided_slice %153 {offsets = [0, 8, 0], sizes = [16, 16, 128], strides = [1, 1, 1]} : vector<20x32x128xf32> to vector<16x16x128xf32>
    %159 = vector.shape_cast %158 : vector<16x16x128xf32> to vector<256x128xf32>
    %160 = arith.truncf %159 : vector<256x128xf32> to vector<256x128xbf16>
    %c0_98 = arith.constant 0 : index
    %c128_99 = arith.constant 128 : index
    %161 = vector.load %arg15[%c0_98, %c128_99] : memref<256x2048xbf16, #tpu.memory_space<vmem>>, vector<256x128xbf16>
    tpu.vector_store %arg15[%c0_98, %c128_99], %160 {strides = array<i32>} : memref<256x2048xbf16, #tpu.memory_space<vmem>>, vector<256x128xbf16>,
    %162 = vector.extract_strided_slice %153 {offsets = [0, 9, 0], sizes = [16, 16, 128], strides = [1, 1, 1]} : vector<20x32x128xf32> to vector<16x16x128xf32>
    %163 = vector.shape_cast %162 : vector<16x16x128xf32> to vector<256x128xf32>
    %164 = arith.truncf %163 : vector<256x128xf32> to vector<256x128xbf16>
    %c0_100 = arith.constant 0 : index
    %c256_101 = arith.constant 256 : index
    %165 = vector.load %arg15[%c0_100, %c256_101] : memref<256x2048xbf16, #tpu.memory_space<vmem>>, vector<256x128xbf16>
    tpu.vector_store %arg15[%c0_100, %c256_101], %164 {strides = array<i32>} : memref<256x2048xbf16, #tpu.memory_space<vmem>>, vector<256x128xbf16>,
    %166 = vector.extract_strided_slice %153 {offsets = [0, 10, 0], sizes = [16, 16, 128], strides = [1, 1, 1]} : vector<20x32x128xf32> to vector<16x16x128xf32>
    %167 = vector.shape_cast %166 : vector<16x16x128xf32> to vector<256x128xf32>
    %168 = arith.truncf %167 : vector<256x128xf32> to vector<256x128xbf16>
    %c0_102 = arith.constant 0 : index
    %c384_103 = arith.constant 384 : index
    %169 = vector.load %arg15[%c0_102, %c384_103] : memref<256x2048xbf16, #tpu.memory_space<vmem>>, vector<256x128xbf16>
    tpu.vector_store %arg15[%c0_102, %c384_103], %168 {strides = array<i32>} : memref<256x2048xbf16, #tpu.memory_space<vmem>>, vector<256x128xbf16>,
    %170 = vector.extract_strided_slice %153 {offsets = [1, 7, 0], sizes = [16, 16, 128], strides = [1, 1, 1]} : vector<20x32x128xf32> to vector<16x16x128xf32>
    %171 = vector.shape_cast %170 : vector<16x16x128xf32> to vector<256x128xf32>
    %172 = arith.truncf %171 : vector<256x128xf32> to vector<256x128xbf16>
    %c0_104 = arith.constant 0 : index
    %c512_105 = arith.constant 512 : index
    %173 = vector.load %arg15[%c0_104, %c512_105] : memref<256x2048xbf16, #tpu.memory_space<vmem>>, vector<256x128xbf16>
    tpu.vector_store %arg15[%c0_104, %c512_105], %172 {strides = array<i32>} : memref<256x2048xbf16, #tpu.memory_space<vmem>>, vector<256x128xbf16>,
    %174 = vector.extract_strided_slice %153 {offsets = [1, 8, 0], sizes = [16, 16, 128], strides = [1, 1, 1]} : vector<20x32x128xf32> to vector<16x16x128xf32>
    %175 = vector.shape_cast %174 : vector<16x16x128xf32> to vector<256x128xf32>
    %176 = arith.truncf %175 : vector<256x128xf32> to vector<256x128xbf16>
    %c0_106 = arith.constant 0 : index
    %c640_107 = arith.constant 640 : index
    %177 = vector.load %arg15[%c0_106, %c640_107] : memref<256x2048xbf16, #tpu.memory_space<vmem>>, vector<256x128xbf16>
    tpu.vector_store %arg15[%c0_106, %c640_107], %176 {strides = array<i32>} : memref<256x2048xbf16, #tpu.memory_space<vmem>>, vector<256x128xbf16>,
    %178 = vector.extract_strided_slice %153 {offsets = [1, 9, 0], sizes = [16, 16, 128], strides = [1, 1, 1]} : vector<20x32x128xf32> to vector<16x16x128xf32>
    %179 = vector.shape_cast %178 : vector<16x16x128xf32> to vector<256x128xf32>
    %180 = arith.truncf %179 : vector<256x128xf32> to vector<256x128xbf16>
    %c0_108 = arith.constant 0 : index
    %c768_109 = arith.constant 768 : index
    %181 = vector.load %arg15[%c0_108, %c768_109] : memref<256x2048xbf16, #tpu.memory_space<vmem>>, vector<256x128xbf16>
    tpu.vector_store %arg15[%c0_108, %c768_109], %180 {strides = array<i32>} : memref<256x2048xbf16, #tpu.memory_space<vmem>>, vector<256x128xbf16>,
    %182 = vector.extract_strided_slice %153 {offsets = [1, 10, 0], sizes = [16, 16, 128], strides = [1, 1, 1]} : vector<20x32x128xf32> to vector<16x16x128xf32>
    %183 = vector.shape_cast %182 : vector<16x16x128xf32> to vector<256x128xf32>
    %184 = arith.truncf %183 : vector<256x128xf32> to vector<256x128xbf16>
    %c0_110 = arith.constant 0 : index
    %c896_111 = arith.constant 896 : index
    %185 = vector.load %arg15[%c0_110, %c896_111] : memref<256x2048xbf16, #tpu.memory_space<vmem>>, vector<256x128xbf16>
    tpu.vector_store %arg15[%c0_110, %c896_111], %184 {strides = array<i32>} : memref<256x2048xbf16, #tpu.memory_space<vmem>>, vector<256x128xbf16>,
    %186 = vector.extract_strided_slice %153 {offsets = [2, 7, 0], sizes = [16, 16, 128], strides = [1, 1, 1]} : vector<20x32x128xf32> to vector<16x16x128xf32>
    %187 = vector.shape_cast %186 : vector<16x16x128xf32> to vector<256x128xf32>
    %188 = arith.truncf %187 : vector<256x128xf32> to vector<256x128xbf16>
    %c0_112 = arith.constant 0 : index
    %c1024_113 = arith.constant 1024 : index
    %189 = vector.load %arg15[%c0_112, %c1024_113] : memref<256x2048xbf16, #tpu.memory_space<vmem>>, vector<256x128xbf16>
    tpu.vector_store %arg15[%c0_112, %c1024_113], %188 {strides = array<i32>} : memref<256x2048xbf16, #tpu.memory_space<vmem>>, vector<256x128xbf16>,
    %190 = vector.extract_strided_slice %153 {offsets = [2, 8, 0], sizes = [16, 16, 128], strides = [1, 1, 1]} : vector<20x32x128xf32> to vector<16x16x128xf32>
    %191 = vector.shape_cast %190 : vector<16x16x128xf32> to vector<256x128xf32>
    %192 = arith.truncf %191 : vector<256x128xf32> to vector<256x128xbf16>
    %c0_114 = arith.constant 0 : index
    %c1152 = arith.constant 1152 : index
    %193 = vector.load %arg15[%c0_114, %c1152] : memref<256x2048xbf16, #tpu.memory_space<vmem>>, vector<256x128xbf16>
    tpu.vector_store %arg15[%c0_114, %c1152], %192 {strides = array<i32>} : memref<256x2048xbf16, #tpu.memory_space<vmem>>, vector<256x128xbf16>,
    %194 = vector.extract_strided_slice %153 {offsets = [2, 9, 0], sizes = [16, 16, 128], strides = [1, 1, 1]} : vector<20x32x128xf32> to vector<16x16x128xf32>
    %195 = vector.shape_cast %194 : vector<16x16x128xf32> to vector<256x128xf32>
    %196 = arith.truncf %195 : vector<256x128xf32> to vector<256x128xbf16>
    %c0_115 = arith.constant 0 : index
    %c1280 = arith.constant 1280 : index
    %197 = vector.load %arg15[%c0_115, %c1280] : memref<256x2048xbf16, #tpu.memory_space<vmem>>, vector<256x128xbf16>
    tpu.vector_store %arg15[%c0_115, %c1280], %196 {strides = array<i32>} : memref<256x2048xbf16, #tpu.memory_space<vmem>>, vector<256x128xbf16>,
    %198 = vector.extract_strided_slice %153 {offsets = [2, 10, 0], sizes = [16, 16, 128], strides = [1, 1, 1]} : vector<20x32x128xf32> to vector<16x16x128xf32>
    %199 = vector.shape_cast %198 : vector<16x16x128xf32> to vector<256x128xf32>
    %200 = arith.truncf %199 : vector<256x128xf32> to vector<256x128xbf16>
    %c0_116 = arith.constant 0 : index
    %c1408 = arith.constant 1408 : index
    %201 = vector.load %arg15[%c0_116, %c1408] : memref<256x2048xbf16, #tpu.memory_space<vmem>>, vector<256x128xbf16>
    tpu.vector_store %arg15[%c0_116, %c1408], %200 {strides = array<i32>} : memref<256x2048xbf16, #tpu.memory_space<vmem>>, vector<256x128xbf16>,
    %202 = vector.extract_strided_slice %153 {offsets = [3, 7, 0], sizes = [16, 16, 128], strides = [1, 1, 1]} : vector<20x32x128xf32> to vector<16x16x128xf32>
    %203 = vector.shape_cast %202 : vector<16x16x128xf32> to vector<256x128xf32>
    %204 = arith.truncf %203 : vector<256x128xf32> to vector<256x128xbf16>
    %c0_117 = arith.constant 0 : index
    %c1536 = arith.constant 1536 : index
    %205 = vector.load %arg15[%c0_117, %c1536] : memref<256x2048xbf16, #tpu.memory_space<vmem>>, vector<256x128xbf16>
    tpu.vector_store %arg15[%c0_117, %c1536], %204 {strides = array<i32>} : memref<256x2048xbf16, #tpu.memory_space<vmem>>, vector<256x128xbf16>,
    %206 = vector.extract_strided_slice %153 {offsets = [3, 8, 0], sizes = [16, 16, 128], strides = [1, 1, 1]} : vector<20x32x128xf32> to vector<16x16x128xf32>
    %207 = vector.shape_cast %206 : vector<16x16x128xf32> to vector<256x128xf32>
    %208 = arith.truncf %207 : vector<256x128xf32> to vector<256x128xbf16>
    %c0_118 = arith.constant 0 : index
    %c1664 = arith.constant 1664 : index
    %209 = vector.load %arg15[%c0_118, %c1664] : memref<256x2048xbf16, #tpu.memory_space<vmem>>, vector<256x128xbf16>
    tpu.vector_store %arg15[%c0_118, %c1664], %208 {strides = array<i32>} : memref<256x2048xbf16, #tpu.memory_space<vmem>>, vector<256x128xbf16>,
    %210 = vector.extract_strided_slice %153 {offsets = [3, 9, 0], sizes = [16, 16, 128], strides = [1, 1, 1]} : vector<20x32x128xf32> to vector<16x16x128xf32>
    %211 = vector.shape_cast %210 : vector<16x16x128xf32> to vector<256x128xf32>
    %212 = arith.truncf %211 : vector<256x128xf32> to vector<256x128xbf16>
    %c0_119 = arith.constant 0 : index
    %c1792 = arith.constant 1792 : index
    %213 = vector.load %arg15[%c0_119, %c1792] : memref<256x2048xbf16, #tpu.memory_space<vmem>>, vector<256x128xbf16>
    tpu.vector_store %arg15[%c0_119, %c1792], %212 {strides = array<i32>} : memref<256x2048xbf16, #tpu.memory_space<vmem>>, vector<256x128xbf16>,
    %214 = vector.extract_strided_slice %153 {offsets = [3, 10, 0], sizes = [16, 16, 128], strides = [1, 1, 1]} : vector<20x32x128xf32> to vector<16x16x128xf32>
    %215 = vector.shape_cast %214 : vector<16x16x128xf32> to vector<256x128xf32>
    %216 = arith.truncf %215 : vector<256x128xf32> to vector<256x128xbf16>
    %c0_120 = arith.constant 0 : index
    %c1920 = arith.constant 1920 : index
    %217 = vector.load %arg15[%c0_120, %c1920] : memref<256x2048xbf16, #tpu.memory_space<vmem>>, vector<256x128xbf16>
    tpu.vector_store %arg15[%c0_120, %c1920], %216 {strides = array<i32>} : memref<256x2048xbf16, #tpu.memory_space<vmem>>, vector<256x128xbf16>,
    %c0_121 = arith.constant 0 : index
    %c0_122 = arith.constant 0 : index
    %218 = vector.load %arg15[%c0_121, %c0_122] : memref<256x2048xbf16, #tpu.memory_space<vmem>>, vector<256x2048xbf16>
    %c0_123 = arith.constant 0 : index
    %c0_124 = arith.constant 0 : index
    %219 = vector.load %arg10[%c0_123, %c0_124] : memref<2048x128xbf16, #tpu.memory_space<vmem>>, vector<2048x128xbf16>
    %cst_125 = arith.constant dense<0.000000e+00> : vector<256x128xf32>
    %220 = tpu.matmul %218, %219, %cst_125 {dimension_numbers = #tpu.dot_dimension_numbers<[1], [0], [0], [1], [0, 0, 1, 1], [], []>} : vector<256x2048xbf16>, vector<2048x128xbf16>, vector<256x128xf32> -> vector<256x128xf32>
    %c0_126 = arith.constant 0 : index
    %c0_127 = arith.constant 0 : index
    %221 = vector.load %arg11[%c0_126, %c0_127] : memref<64x256xf32, #tpu.memory_space<vmem>>, vector<64x256xf32>
    %cst_128 = arith.constant dense<0.000000e+00> : vector<64x128xf32>
    %222 = tpu.matmul %221, %220, %cst_128 {dimension_numbers = #tpu.dot_dimension_numbers<[1], [0], [0], [1], [0, 0, 1, 1], [], []>} : vector<64x256xf32>, vector<256x128xf32>, vector<64x128xf32> -> vector<64x128xf32>
    %223 = vector.shape_cast %222 : vector<64x128xf32> to vector<1x8x8x128xf32>
    %c0_129 = arith.constant 0 : index
    %c0_130 = arith.constant 0 : index
    %c0_131 = arith.constant 0 : index
    %c0_132 = arith.constant 0 : index
    %224 = vector.load %arg13[%c0_129, %c0_130, %c0_131, %c0_132] : memref<1x8x8x128xf32, #tpu.memory_space<vmem>>, vector<1x8x8x128xf32>
    tpu.vector_store %arg13[%c0_129, %c0_130, %c0_131, %c0_132], %223 {strides = array<i32>} : memref<1x8x8x128xf32, #tpu.memory_space<vmem>>, vector<1x8x8x128xf32>,
    return
  }
  func.func @transform_0(%arg0: i32) -> (i32, i32, i32, i32) {
    %c0_i32 = arith.constant 0 : i32
    %c0_i32_0 = arith.constant 0 : i32
    %c0_i32_1 = arith.constant 0 : i32
    %c0_i32_2 = arith.constant 0 : i32
    return %arg0, %c0_i32, %c0_i32_0, %c0_i32_1 : i32, i32, i32, i32
  }
  func.func @transform_1(%arg0: i32) -> (i32, i32) {
    %c0_i32 = arith.constant 0 : i32
    %c0_i32_0 = arith.constant 0 : i32
    %c0_i32_1 = arith.constant 0 : i32
    return %c0_i32, %c0_i32_0 : i32, i32
  }
  func.func @transform_2(%arg0: i32) -> (i32, i32) {
    %c0_i32 = arith.constant 0 : i32
    %c0_i32_0 = arith.constant 0 : i32
    %c0_i32_1 = arith.constant 0 : i32
    return %c0_i32, %c0_i32_0 : i32, i32
  }
  func.func @transform_3(%arg0: i32) -> (i32, i32) {
    %c0_i32 = arith.constant 0 : i32
    %c0_i32_0 = arith.constant 0 : i32
    %c0_i32_1 = arith.constant 0 : i32
    return %c0_i32, %c0_i32_0 : i32, i32
  }
  func.func @transform_4(%arg0: i32) -> (i32, i32) {
    %c0_i32 = arith.constant 0 : i32
    %c0_i32_0 = arith.constant 0 : i32
    %c0_i32_1 = arith.constant 0 : i32
    return %c0_i32, %c0_i32_0 : i32, i32
  }
  func.func @transform_5(%arg0: i32) -> (i32, i32) {
    %c0_i32 = arith.constant 0 : i32
    %c0_i32_0 = arith.constant 0 : i32
    %c0_i32_1 = arith.constant 0 : i32
    return %c0_i32, %c0_i32_0 : i32, i32
  }
  func.func @transform_6(%arg0: i32) -> (i32, i32) {
    %c0_i32 = arith.constant 0 : i32
    %c0_i32_0 = arith.constant 0 : i32
    %c0_i32_1 = arith.constant 0 : i32
    return %c0_i32, %c0_i32_0 : i32, i32
  }
  func.func @transform_7(%arg0: i32) -> (i32, i32) {
    %c0_i32 = arith.constant 0 : i32
    %c0_i32_0 = arith.constant 0 : i32
    %c0_i32_1 = arith.constant 0 : i32
    return %c0_i32, %c0_i32_0 : i32, i32
  }
  func.func @transform_8(%arg0: i32) -> (i32, i32) {
    %c0_i32 = arith.constant 0 : i32
    %c0_i32_0 = arith.constant 0 : i32
    %c0_i32_1 = arith.constant 0 : i32
    return %c0_i32, %c0_i32_0 : i32, i32
  }
  func.func @transform_9(%arg0: i32) -> (i32, i32) {
    %c0_i32 = arith.constant 0 : i32
    %c0_i32_0 = arith.constant 0 : i32
    %c0_i32_1 = arith.constant 0 : i32
    return %c0_i32, %c0_i32_0 : i32, i32
  }
  func.func @transform_10(%arg0: i32) -> (i32, i32) {
    %c0_i32 = arith.constant 0 : i32
    %c0_i32_0 = arith.constant 0 : i32
    %c0_i32_1 = arith.constant 0 : i32
    return %c0_i32, %c0_i32_0 : i32, i32
  }
  func.func @transform_11(%arg0: i32) -> (i32, i32, i32, i32) {
    %c0_i32 = arith.constant 0 : i32
    %c0_i32_0 = arith.constant 0 : i32
    %c0_i32_1 = arith.constant 0 : i32
    %c0_i32_2 = arith.constant 0 : i32
    return %arg0, %c0_i32, %c0_i32_0, %c0_i32_1 : i32, i32, i32, i32
  }
  func.func @transform_12(%arg0: i32) -> (i32, i32, i32, i32) {
    %c0_i32 = arith.constant 0 : i32
    %c0_i32_0 = arith.constant 0 : i32
    %c0_i32_1 = arith.constant 0 : i32
    %c0_i32_2 = arith.constant 0 : i32
    return %arg0, %c0_i32, %c0_i32_0, %c0_i32_1 : i32, i32, i32, i32
  }
}

</mosaic_0001>

<bundles_post_ra>
// kernel: tpu_custom_call.1
= control target key start
LH: loop header
LB: loop body
LE: loop exit
PB: predicated region body
PF: predicated region fallthrough
CT: control target
= control target key end

     0   :  { %s16401_s0 = inlined_call_operand.hbm [shape: f32[2,16,16,128], index: 0, kind: input, shape index: {}]   ;;  %s16402_s1 = inlined_call_operand.hbm [shape: bf16[1152,128], index: 1, kind: input, shape index: {}]   ;;  %s16403_s2 = inlined_call_operand.vmem [shape: f32[1,128], index: 2, kind: input, shape index: {}]   ;;  %s16404_s3 = inlined_call_operand.vmem [shape: f32[1,128], index: 3, kind: input, shape index: {}]   ;;  %s16405_s4 = inlined_call_operand.vmem [shape: f32[1,128], index: 4, kind: input, shape index: {}]   ;;  %s16406_s5 = inlined_call_operand.hbm [shape: bf16[1152,128], index: 5, kind: input, shape index: {}]   ;;  %s16407_s6 = inlined_call_operand.vmem [shape: f32[1,128], index: 6, kind: input, shape index: {}]   ;;  %s16408_s7 = inlined_call_operand.hbm [shape: bf16[128,128], index: 7, kind: input, shape index: {}]   ;;  %s16409_s8 = inlined_call_operand.vmem [shape: f32[1,128], index: 8, kind: input, shape index: {}]   ;;  %s16410_s9 = inlined_call_operand.hbm [shape: bf16[2048,128], index: 9, kind: input, shape index: {}]   ;;  %s16411_s10 = inlined_call_operand.hbm [shape: f32[64,256], index: 10, kind: input, shape index: {}]   ;;  %s16412_s11 = inlined_call_operand.hbm [shape: f32[2,16,16,128], index: 11, kind: output, shape index: {0}]   ;;  %s16413_s12 = inlined_call_operand.hbm [shape: f32[2,8,8,128], index: 12, kind: output, shape index: {1}]  }
   0x1   :  { %16515 = sst [smem:[#allocation73_spill]] %s16402_s1 }
   0x2   :  { %16516 = sst [smem:[#allocation74_spill]] %s16407_s6 }
   0x3   :  { %16517 = sst [smem:[#allocation75_spill]] %s16409_s8 }
   0x4   :  { %16518 = sst [smem:[#allocation76_spill]] %s16412_s11 }
   0x5   :  { %16519 = sst [smem:[#allocation77_spill]] %s16413_s12 }
   0x6   :  { %18 = vsyncpa [#allocation5], 0 }
   0x7   :  { %20 = vsyncpa [#allocation5 + $0x1], 0 }
   0x8   :  { %21 = vsyncpa [#allocation8], 0 }
   0x9   :  { %22 = vsyncpa [#allocation11], 0 }
   0xa   :  { %23 = vsyncpa [#allocation14], 0 }
   0xb   :  { %24 = vsyncpa [#allocation6], 0 }
   0xc   :  { %26 = vsyncpa [#allocation6 + $0x1], 0 }
   0xd   :  { %27 = vsyncpa [#allocation17], 0 }
   0xe   :  { %29 = vsyncpa [#allocation17 + $0x1], 0  ;;  %s12652_s21 = smov 0   ;;  %s12654_s22 = smov 0  }
   0xf   :  { %s12656_s23 = smov 0   ;;  %s12658_s24 = smov 0  }
  0x10 LB: > { %s12569_s25 = smov [#allocation7]   ;;  %s12673_s27 = sadd.s32 4294967295, %s12567_s24   ;;  %s12567_s24 = sphi %s12658_s24, %s16765_s24   ;;  %s12563_s23 = sphi %s12656_s23, %s16764_s23   ;;  %s12559_s22 = sphi %s12654_s22, %s16763_s22   ;;  %s12555_s21 = sphi %s12652_s21, %s16762_s21  }
  0x11   : > { %s340_s26 = sshll.u32 %s12569_s25, 4  ;;  %p9483_p0 = scmp.ge.s32.totalorder %s12567_s24, 1  ;;  %s12678_s26 = int_to_ptr.vmem [resolvable:$true] %s340_s26 }
  0x12   : > { %p16417_p1 = scmp.eq.s32.totalorder %s12673_s27, 0  ;;  %p328_p2 = scmp.lt.s32.totalorder %s12567_s24, 3 }
  0x13   : > { %s12570_s29 = smov [#allocation10]   ;;  %s12571_s14 = smov [#allocation9]  }
  0x14   : > { %p12680_p3 = pnand %p9483_p0, %p328_p2  ;;  %s378_s30 = sshll.u32 %s12570_s29, 4  ;;  %s12693_s30 = int_to_ptr.vmem [resolvable:$true] %s378_s30 }
  0x15   : > { %s362_s15 = sshll.u32 %s12571_s14, 4  ;;  %s16522_s1 = sld [smem:[#allocation73_spill]]  ;;  %s12695_s15 = int_to_ptr.vmem [resolvable:$true] %s362_s15 }
  0x16   : > { %s16520_s28 = scalar_select %p12680_p3, 1, 0 }
  0x17   : > { %p11918_p5 = pneg %p12680_p3 }
  0x19   : > { %p12689_p6 = pnand %p11918_p5, %p16417_p1 }
  0x1b   : > { %s12287_s18 = scalar_lea.hbm %s16522_s1, 9216  ;;  %p12705_p8 = pneg %p12689_p6 }
  0x1c   : > { %p12288_p7 = scmp.ne.s32.totalorder %s16522_s1, %s12287_s18  ;;  %p12294_p11 = scmp.lt.u32.totalorder %s12287_s18, %s16522_s1 }
  0x1e   : > { %p12290_p9 = pnand %p12705_p8, %p12288_p7 }
  0x20   : > { %p12291_p10 = pneg %p12290_p9 }
  0x22   : > { %p12296_p12 = pnand %p12294_p11, %p12291_p10 }
  0x24   : > { %12299 = shalt.err (!%p12296_p12)
}
  0x25   : > { %s12300_s16 = scalar_lea.vmem %s12678_s26, 9216  ;;  %p12308_p5 = scmp.lt.s32.totalorder %s12678_s26, %s12678_s26 }
  0x26   : > { %p12301_p13 = scmp.ne.s32.totalorder %s12678_s26, %s12300_s16  ;;  %p12309_p4 = scmp.lt.s32.totalorder %s12300_s16, %s12300_s16 }
  0x28   : > { %p12303_p0 = pnand %p12301_p13, %p12705_p8  ;;  %p12310_p7 = por %p12309_p4, %p12308_p5 }
  0x2a   : > { %p12304_p2 = pneg %p12303_p0 }
  0x2c   : > { %p12311_p9 = pnand %p12310_p7, %p12304_p2 }
  0x2e   : > { %12314 = shalt.err (!%p12311_p9)
}
  0x2f   : > { %s12572_s17 = smov 64   ;;  %s12573_s18 = smov 4  }
  0x30   : > { %11921 = dma.hbm_to_vmem [thread:$0]  (!%p12689_p6), %s16522_s1, 9216, %s12678_s26, [#allocation8], %s12572_s17, %s12572_s17, %s12573_s18  }
  0x31   : > { %s12315_s16 = scalar_lea.hbm %s16408_s7, 1024 }
  0x32   : > { %p12316_p4 = scmp.ne.s32.totalorder %s16408_s7, %s12315_s16  ;;  %p12322_p12 = scmp.lt.u32.totalorder %s12315_s16, %s16408_s7 }
  0x34   : > { %p12318_p10 = pnand %p12316_p4, %p12705_p8 }
  0x36   : > { %p12319_p11 = pneg %p12318_p10 }
  0x38   : > { %p12324_p13 = pnand %p12322_p12, %p12319_p11 }
  0x3a   : > { %12327 = shalt.err (!%p12324_p13)
}
  0x3b   : > { %s12328_s26 = scalar_lea.vmem %s12693_s30, 1024  ;;  %p12336_p7 = scmp.lt.s32.totalorder %s12693_s30, %s12693_s30 }
  0x3c   : > { %p12329_p0 = scmp.ne.s32.totalorder %s12693_s30, %s12328_s26  ;;  %p12337_p9 = scmp.lt.s32.totalorder %s12328_s26, %s12328_s26 }
  0x3e   : > { %p12331_p2 = pnand %p12329_p0, %p12705_p8  ;;  %p12338_p4 = por %p12337_p9, %p12336_p7 }
  0x40   : > { %p12332_p5 = pneg %p12331_p2 }
  0x42   : > { %p12339_p10 = pnand %p12338_p4, %p12332_p5 }
  0x44   : > { %12342 = shalt.err (!%p12339_p10)
}
  0x45   : > { %11927 = dma.hbm_to_vmem [thread:$0]  (!%p12689_p6), %s16408_s7, 1024, %s12693_s30, [#allocation11], %s12572_s17, %s12572_s17, %s12573_s18  }
  0x46   : > { %s12343_s19 = scalar_lea.hbm %s16406_s5, 9216 }
  0x47   : > { %p12344_p11 = scmp.ne.s32.totalorder %s16406_s5, %s12343_s19  ;;  %p12350_p0 = scmp.lt.u32.totalorder %s12343_s19, %s16406_s5 }
  0x49   : > { %p12346_p12 = pnand %p12344_p11, %p12705_p8 }
  0x4b   : > { %p12347_p13 = pneg %p12346_p12 }
  0x4d   : > { %p12352_p2 = pnand %p12350_p0, %p12347_p13 }
  0x4f   : > { %12355 = shalt.err (!%p12352_p2)
}
  0x50   : > { %s12356_s30 = scalar_lea.vmem %s12695_s15, 9216  ;;  %p12364_p4 = scmp.lt.s32.totalorder %s12695_s15, %s12695_s15 }
  0x51   : > { %p12357_p5 = scmp.ne.s32.totalorder %s12695_s15, %s12356_s30  ;;  %p12365_p10 = scmp.lt.s32.totalorder %s12356_s30, %s12356_s30 }
  0x53   : > { %p12359_p7 = pnand %p12357_p5, %p12705_p8  ;;  %p12366_p11 = por %p12365_p10, %p12364_p4 }
  0x55   : > { %p12360_p9 = pneg %p12359_p7 }
  0x57   : > { %p12367_p12 = pnand %p12366_p11, %p12360_p9 }
  0x59   : > { %12370 = shalt.err (!%p12367_p12)
}
  0x5a   : > { %11924 = dma.hbm_to_vmem [thread:$0]  (!%p12689_p6), %s16406_s5, 9216, %s12695_s15, [#allocation8], %s12572_s17, %s12572_s17, %s12573_s18  }
  0x5b   : > { %s12574_s8 = smov [#allocation12]   ;;  %s12575_s12 = smov [#allocation13]  }
  0x5c   : > { %s394_s11 = sshll.u32 %s12574_s8, 4  ;;  %s407_s19 = sshll.u32 %s12575_s12, 4  ;;  %s395_s11 = int_to_ptr.vmem [resolvable:$true] %s394_s11  ;;  %s408_s19 = int_to_ptr.vmem [resolvable:$true] %s407_s19 }
  0x5d   : > { %s12371_s14 = scalar_lea.hbm %s16410_s9, 16384 }
  0x5e   : > { %p12372_p13 = scmp.ne.s32.totalorder %s16410_s9, %s12371_s14  ;;  %p12378_p5 = scmp.lt.u32.totalorder %s12371_s14, %s16410_s9 }
  0x60   : > { %p12374_p0 = pnand %p12372_p13, %p12705_p8 }
  0x62   : > { %p12375_p2 = pneg %p12374_p0 }
  0x64   : > { %p12380_p7 = pnand %p12378_p5, %p12375_p2 }
  0x66   : > { %12383 = shalt.err (!%p12380_p7)
}
  0x67   : > { %s12384_s15 = scalar_lea.vmem %s395_s11, 16384  ;;  %p12392_p11 = scmp.lt.s32.totalorder %s395_s11, %s395_s11 }
  0x68   : > { %p12385_p9 = scmp.ne.s32.totalorder %s395_s11, %s12384_s15  ;;  %p12393_p12 = scmp.lt.s32.totalorder %s12384_s15, %s12384_s15 }
  0x6a   : > { %p12387_p4 = pnand %p12385_p9, %p12705_p8  ;;  %p12394_p1 = por %p12393_p12, %p12392_p11 }
  0x6c   : > { %p12388_p10 = pneg %p12387_p4 }
  0x6e   : > { %p12395_p3 = pnand %p12394_p1, %p12388_p10 }
  0x70   : > { %12398 = shalt.err (!%p12395_p3)
}
  0x71   : > { %11930 = dma.hbm_to_vmem [thread:$0]  (!%p12689_p6), %s16410_s9, 16384, %s395_s11, [#allocation11], %s12572_s17, %s12572_s17, %s12573_s18  }
  0x72   : > { %s12399_s20 = scalar_lea.hbm %s16411_s10, 2048 }
  0x73   : > { %p12400_p1 = scmp.ne.s32.totalorder %s16411_s10, %s12399_s20  ;;  %p12406_p0 = scmp.lt.u32.totalorder %s12399_s20, %s16411_s10 }
  0x75   : > { %p12402_p3 = pnand %p12400_p1, %p12705_p8 }
  0x77   : > { %p12403_p13 = pneg %p12402_p3 }
  0x79   : > { %p12408_p2 = pnand %p12406_p0, %p12403_p13 }
  0x7b   : > { %12411 = shalt.err (!%p12408_p2)
}
  0x7c   : > { %s12412_s26 = scalar_lea.vmem %s408_s19, 2048  ;;  %p12420_p4 = scmp.lt.s32.totalorder %s408_s19, %s408_s19 }
  0x7d   : > { %p12413_p5 = scmp.ne.s32.totalorder %s408_s19, %s12412_s26  ;;  %p12421_p10 = scmp.lt.s32.totalorder %s12412_s26, %s12412_s26 }
  0x7f   : > { %p12415_p7 = pnand %p12413_p5, %p12705_p8  ;;  %p12422_p11 = por %p12421_p10, %p12420_p4 }
  0x81   : > { %p12416_p9 = pneg %p12415_p7 }
  0x83   : > { %p12423_p12 = pnand %p12422_p11, %p12416_p9 }
  0x85   : > { %12426 = shalt.err (!%p12423_p12)
}
  0x86   : > { %s12576_s17 = smov 256   ;;  %s12577_s25 = smov 16  }
  0x87   : > { %11933 = dma.hbm_to_vmem [thread:$0]  (!%p12689_p6), %s16411_s10, 2048, %s408_s19, [#allocation14], %s12576_s17, %s12576_s17, %s12577_s25  }
  0x88   : > { %s9482_s15 = sadd.s32 4294967294, %s12567_s24   ;;  %s12822_s1 = sadd.s32 1, %s12567_s24  }
  0x89   : > { %s42_s6 = sadd.s32 1, %s12563_s23  ;;  %s39_s8 = ssub.s32 %s12567_s24, %s12822_s1 }
  0x8a   : > { %p49_p8 = scmp.ne.s32.totalorder %s12563_s23, %s12559_s22  ;;  %p40_p1 = scmp.eq.s32.totalorder %s39_s8, 0 }
  0x8b   : > { %p50_p3 = scmp.eq.s32.totalorder %s12567_s24, 0  ;;  %p55_p13 = scmp.ne.s32.totalorder %s12559_s22, %s12555_s21 }
  0x8c   : > { %p289_p0 = scmp.eq.s32.totalorder %s12673_s27, 1  ;;  %p16524_p5 = scmp.eq.s32.totalorder %s12673_s27, 0 }
  0x8d   : > { %s12834_s12 = scalar_select %p40_p1, %s12563_s23, %s42_s6  }
  0x8e   : > { %p51_p2 = por %p50_p3, %p49_p8  ;;  %p12838_p7 = por %p16524_p5, %p55_p13 }
  0x8f   : > { %p12842_p6 = por %p289_p0, %p49_p8  ;;  %p295_p9 = scmp.eq.s32.totalorder %s9482_s15, 1 }
  0x90   : > { %p11950_p4 = scmp.lt.s32.totalorder %s12567_s24, 2  ;;  %s421_s20 = sand.u32 1, %s12563_s23  }
  0x91   : > { %s16526_s19 = scalar_select %p12842_p6, 1, 0 }
  0x92   : > { %p12848_p10 = por %p295_p9, %p55_p13  ;;  %s9490_s14 = sshll.u32 %s421_s20, 8 }
  0x93   : > { %s9793_s16 = sshll.u32 %s12567_s24, 12  ;;  %s425_s25 = scalar_lea.vmem [#allocation4], %s9490_s14 }
  0x94   : > { %s16527_s29 = scalar_select %p12848_p10, 1, 0 }
  0x95   : > { %s12856_s17 = scalar_lea.hbm %s16401_s0, %s9793_s16  ;;  %s432_s18 = sshll.u32 %s425_s25, 4  ;;  %s12862_s18 = int_to_ptr.vmem [resolvable:$true] %s432_s18 }
  0x96   : > { %p12858_p11 = pnand %p11950_p4, %p51_p2  ;;  %s12864_s15 = scalar_lea.sflag [#allocation5], %s421_s20 }
  0x97   : > { %s12427_s6 = scalar_lea.hbm %s12856_s17, 4096  ;;  %s12432_s16 = scalar_lea.hbm %s16401_s0, 8192 }
  0x98   : > { %p12428_p12 = scmp.ne.s32.totalorder %s12856_s17, %s12427_s6  ;;  %p12429_p8 = pneg %p12858_p11 }
  0x99   : > { %p12433_p13 = scmp.lt.u32.totalorder %s12856_s17, %s16401_s0  ;;  %p12434_p0 = scmp.lt.u32.totalorder %s12432_s16, %s12427_s6 }
  0x9a   : > { %p12430_p1 = pnand %p12429_p8, %p12428_p12  ;;  %p12436_p5 = scmp.lt.u32.totalorder %s12427_s6, %s12856_s17 }
  0x9b   : > { %p12435_p2 = por %p12434_p0, %p12433_p13 }
  0x9c   : > { %p12431_p3 = pneg %p12430_p1 }
  0x9d   : > { %p12437_p9 = por %p12436_p5, %p12435_p2 }
  0x9f   : > { %p12438_p4 = pnand %p12437_p9, %p12431_p3 }
  0xa1   : > { %12441 = shalt.err (!%p12438_p4)
}
  0xa2   : > { %s12442_s20 = scalar_lea.vmem %s12862_s18, 4096  ;;  %s12578_s25 = smov [#allocation4]  }
  0xa3   : > { %p12443_p12 = scmp.ne.s32.totalorder %s12862_s18, %s12442_s20  ;;  %s12447_s8 = sshll.u32 %s12578_s25, 4  ;;  %s12448_s8 = int_to_ptr.vmem [resolvable:$false] %s12447_s8 }
  0xa4   : > { %s12449_s14 = scalar_lea.vmem %s12448_s8, 8192  ;;  %p12450_p6 = scmp.lt.s32.totalorder %s12862_s18, %s12448_s8 }
  0xa5   : > { %p12445_p1 = pnand %p12443_p12, %p12429_p8  ;;  %p12451_p13 = scmp.lt.s32.totalorder %s12449_s14, %s12442_s20 }
  0xa7   : > { %p12446_p10 = pneg %p12445_p1  ;;  %p12452_p0 = por %p12451_p13, %p12450_p6 }
  0xa9   : > { %p12453_p2 = pnand %p12452_p0, %p12446_p10 }
  0xab   : > { %12456 = shalt.err (!%p12453_p2)
}
  0xac   : > { %s12579_s6 = smov 128   ;;  %s12580_s16 = smov 8  }
  0xad   : > { %11937 = dma.hbm_to_vmem [thread:$0]  (!%p12858_p11), %s12856_s17, 4096, %s12862_s18, %s12864_s15, %s12579_s6, %s12579_s6, %s12580_s16  }
  0xae   : > { %p16529_p8 = scmp.ne.s32.totalorder %s16520_s28, 0 }
  0xb0   : > { %444 = sbr.rel (%p16529_p8) target bundleno = 2320 (0x910), region = 64 }
  0xb7   : > { %s12895_s30 = sand.u32 1, %s12559_s22  }
  0xb8   : > { %s9494_s26 = sshll.u32 %s12895_s30, 8  ;;  %s447_s20 = scalar_lea.sflag [#allocation5], %s12895_s30 }
  0xb9   : > { %s12901_s25 = scalar_lea.vmem [#allocation4], %s9494_s26 }
  0xba   : > { %12530 = dma.done.wait (%p12838_p7), %s447_s20, 4096  }
  0xbb   : > { %12532 = vsyncadd (%p12838_p7), %s447_s20, 4294963200  ;;  %p16530_p6 = scmp.eq.s32.totalorder %s12673_s27, 0 }
  0xbd   : > { %12534 = dma.done.wait (%p16530_p6), [#allocation8], 18432   ;;  %p16531_p10 = pmov %p16530_p6 }
  0xbe   : > { %p16532_p11 = pmov %p16530_p6 }
  0xbf   : > { %12536 = vsyncadd (%p16531_p10), [#allocation8], 4294948864 }
  0xc0   : > { %12538 = dma.done.wait (%p16532_p11), [#allocation11], 17408   ;;  %p16533_p3 = pmov %p16530_p6 }
  0xc2   : > { %12540 = vsyncadd (%p16533_p3), [#allocation11], 4294949888  ;;  %p16534_p5 = pmov %p16533_p3 }
  0xc3   : > { %p16535_p9 = pmov %p16533_p3 }
  0xc4   : > { %12542 = dma.done.wait (%p16534_p5), [#allocation14], 2048  }
  0xc5   : > { %12544 = vsyncadd (%p16535_p9), [#allocation14], 4294965248  ;;  %v16421_v0 = vmov 0.0|0.0   ;;  %v12004_v1 = vld [vmem:[#allocation7 + $0x40] sm:$0xff]   ;;  %v12008_v5 = vld [vmem:[#allocation7 + $0x48] sm:$0xff]   ;;  %v16420_v28 = vmov 0.0  }
  0xc6   : > { %2017 = vmatprep.mubr.bf16.mxu0 %v16421_v0  ;;  %v12005_v2 = vld [vmem:[#allocation7] sm:$0xff]   ;;  %9796 = vmatprep.subr.bf16.mxu0 %v12004_v1  ;;  %v12009_v6 = vld [vmem:[#allocation7 + $0x8] sm:$0xff]   ;;  %v12012_v9 = vld [vmem:[#allocation7 + $0x50] sm:$0xff]   ;;  %v12921_v29 = vrot.slane %v16420_v28, 7  ;;  %v12928_v36 = vrot.slane %v16420_v28, 1  ;;  %vm782_vm0 = vcmask 1040384  }
  0xc7   : > { %v12006_v3 = vld [vmem:[#allocation7 + $0xc0] sm:$0xff]   ;;  %9797 = vmatpush3.bf16.msra.mxu0 %v12005_v2  ;;  %v12010_v7 = vld [vmem:[#allocation7 + $0xc8] sm:$0xff]   ;;  %v12013_v10 = vld [vmem:[#allocation7 + $0x10] sm:$0xff]   ;;  %vm975_vm1 = vcmask 1046528   ;;  %s16561_s6 = sld [smem:[#allocation74_spill]]  ;;  %s14786_s28 = scalar_lea.vmem [#allocation15], %s9494_s26 }
  0xc8   : > { %v12007_v4 = vld [vmem:[#allocation7 + $0x80] sm:$0xff]   ;;  %9908 = vmatprep.subr.bf16.mxu1 %v12006_v3  ;;  %9798 = vmatprep.subr.bf16.mxu0 %v12008_v5  ;;  %v12011_v8 = vld [vmem:[#allocation7 + $0x88] sm:$0xff]   ;;  %v12014_v11 = vld [vmem:[#allocation7 + $0xd0] sm:$0xff]   ;;  %v12925_v34 = vpack.c.bf16 %v12921_v29, %v12921_v29  ;;  %v12948_v50 = vpack.c.bf16 %v12928_v36, %v12928_v36  ;;  %s9794_s17 = sshll.u32 %s12673_s27, 12  ;;  %s16755_s15 = sld [smem:[#allocation76_spill]] }
  0xc9   : > { %9909 = vmatpush3.bf16.msra.mxu1 %v12007_v4  ;;  %v12015_v12 = vld [vmem:[#allocation7 + $0x90] sm:$0xff]   ;;  %v12016_v13 = vld [vmem:[#allocation7 + $0x58] sm:$0xff]   ;;  %v12020_v17 = vld [vmem:[#allocation7 + $0x60] sm:$0xff]   ;;  %s9313_s14 = sshll.u32 %s14786_s28, 4  ;;  %p16756_p4 = scmp.ne.s32.totalorder %s16526_s19, 0  ;;  %s16307_s14 = int_to_ptr.vmem [resolvable:$true] %s9313_s14 }
  0xca   : > { %9910 = vmatprep.subr.bf16.mxu1 %v12010_v7  ;;  %v12017_v14 = vld [vmem:[#allocation7 + $0x18] sm:$0xff]   ;;  %v12021_v18 = vld [vmem:[#allocation7 + $0x20] sm:$0xff]   ;;  %v12024_v21 = vld [vmem:[#allocation7 + $0x68] sm:$0xff]   ;;  %16536 = vst [vmem:[#allocation24_spill] sm:$0xff] %v12925_v34  ;;  %s12457_s16 = scalar_lea.vmem %s16307_s14, 4096  ;;  %s12583_s20 = smov [#allocation15]  }
  0xcb   : > { %9799 = vmatpush3.bf16.msra.mxu0 %v12009_v6  ;;  %v12018_v15 = vld [vmem:[#allocation7 + $0xd8] sm:$0xff]   ;;  %v12022_v19 = vld [vmem:[#allocation7 + $0xe0] sm:$0xff]   ;;  %v12025_v22 = vld [vmem:[#allocation7 + $0x28] sm:$0xff]   ;;  %16537 = vst [vmem:[#allocation25_spill] sm:$0xff] %v12948_v50  ;;  %p12458_p7 = scmp.ne.s32.totalorder %s16307_s14, %s12457_s16  ;;  %s12461_s26 = sshll.u32 %s12583_s20, 4  ;;  %s12462_s26 = int_to_ptr.vmem [resolvable:$false] %s12461_s26 }
  0xcc   : > { %9800 = vmatprep.subr.bf16.mxu0 %v12012_v9  ;;  %v12019_v16 = vld [vmem:[#allocation7 + $0x98] sm:$0xff]   ;;  %v12023_v20 = vld [vmem:[#allocation7 + $0xa0] sm:$0xff]   ;;  %v12026_v23 = vld [vmem:[#allocation7 + $0xe8] sm:$0xff]   ;;  %s12463_s13 = scalar_lea.vmem %s12462_s26, 8192  ;;  %p12464_p13 = scmp.lt.s32.totalorder %s16307_s14, %s12462_s26 }
  0xcd   : > { %9911 = vmatpush3.bf16.msra.mxu1 %v12011_v8  ;;  %v12027_v24 = vld [vmem:[#allocation7 + $0xa8] sm:$0xff]   ;;  %v12028_v25 = vld [vmem:[#allocation7 + $0x70] sm:$0xff]   ;;  %v12032_v31 = vld [vmem:[#allocation7 + $0x78] sm:$0xff]   ;;  %p12459_p12 = pnand %p12458_p7, %p16756_p4  ;;  %p12465_p0 = scmp.lt.s32.totalorder %s12463_s13, %s12457_s16 }
  0xce   : > { %9912 = vmatprep.subr.bf16.mxu1 %v12014_v11  ;;  %v12029_v26 = vld [vmem:[#allocation7 + $0x30] sm:$0xff]   ;;  %v12033_v32 = vld [vmem:[#allocation7 + $0x38] sm:$0xff]   ;;  %v597_v37 = vld [vmem:[%s12901_s25] sm:$0xff]  ;;  %s16304_s8 = scalar_lea.hbm %s16755_s15, %s9794_s17 }
  0xcf   : > { %9801 = vmatpush3.bf16.msra.mxu0 %v12013_v10  ;;  %v12030_v27 = vld [vmem:[#allocation7 + $0xf0] sm:$0xff]   ;;  %v12034_v33 = vld [vmem:[#allocation7 + $0xf8] sm:$0xff]   ;;  %v598_v38 = vld [vmem:[%s12901_s25 + $0x8] sm:$0xff]  ;;  %v789_v40 = vrot.slane %v597_v37, 7  ;;  %v981_v54 = vrot.slane %v597_v37, 1  ;;  %p12460_p1 = pneg %p12459_p12  ;;  %p12466_p2 = por %p12465_p0, %p12464_p13 }
  0xd0   : > { %9802 = vmatprep.subr.bf16.mxu0 %v12016_v13  ;;  %v12031_v30 = vld [vmem:[#allocation7 + $0xb0] sm:$0xff]   ;;  %v12035_v35 = vld [vmem:[#allocation7 + $0xb8] sm:$0xff]   ;;  %v791_v41 = vrot.slane %v598_v38, 7  ;;  %v12933_v42 = vpack.c.bf16 %v598_v38, %v597_v37  ;;  %v12938_v46 = vld [vmem:[%s12901_s25 + $0x20] sm:$0xff]  ;;  %v982_v55 = vrot.slane %v598_v38, 1 }
  0xd1   : > { %9913 = vmatpush3.bf16.msra.mxu1 %v12015_v12  ;;  %v599_v39 = vld [vmem:[%s12901_s25 + $0x10] sm:$0xff]  ;;  %v600_v43 = vld [vmem:[%s12901_s25 + $0x18] sm:$0xff]  ;;  %v12941_v47 = vld [vmem:[%s12901_s25 + $0x28] sm:$0xff]  ;;  %v790_v48 = vsel %vm782_vm0, %v12921_v29, %v789_v40  ;;  %v799_v57 = vrot.slane %v12938_v46, 7  ;;  %p12467_p8 = pnand %p12466_p2, %p12460_p1 }
  0xd2   : > { %9914 = vmatprep.subr.bf16.mxu1 %v12018_v15  ;;  %v794_v44 = vrot.slane %v599_v39, 7  ;;  %v796_v45 = vrot.slane %v600_v43, 7  ;;  %v792_v49 = vsel %vm782_vm0, %v789_v40, %v791_v41  ;;  %v801_v58 = vrot.slane %v12941_v47, 7  ;;  %v12036_v59 = vld [vmem:[#allocation7 + $0x140] sm:$0xff]   ;;  %v12969_v3 = vld [vmem:[%s12901_s25 + $0x30] sm:$0xff]  ;;  %v12972_v4 = vld [vmem:[%s12901_s25 + $0x38] sm:$0xff] }
  0xd3   : > { %9803 = vmatpush3.bf16.msra.mxu0 %v12017_v14  ;;  %v896_v52 = vpack.c.bf16 %v792_v49, %v790_v48  ;;  %v12959_v60 = vpack.c.bf16 %v600_v43, %v599_v39  ;;  %v12037_v61 = vld [vmem:[#allocation7 + $0x100] sm:$0xff]   ;;  %v983_v62 = vsel %vm975_vm1, %v981_v54, %v982_v55  ;;  %v985_v63 = vsel %vm975_vm1, %v982_v55, %v12928_v36  ;;  %v12038_v5 = vld [vmem:[#allocation7 + $0x148] sm:$0xff]   ;;  %v12046_v37 = vld [vmem:[#allocation7 + $0x1d0] sm:$0xff]  }
  0xd4   : > { %9804 = vmatprep.subr.bf16.mxu0 %v12020_v17  ;;  %v795_v51 = vsel %vm782_vm0, %v12921_v29, %v794_v44  ;;  %v797_v53 = vsel %vm782_vm0, %v794_v44, %v796_v45  ;;  %v800_v1 = vsel %vm782_vm0, %v12921_v29, %v799_v57  ;;  %v802_v2 = vsel %vm782_vm0, %v799_v57, %v801_v58  ;;  %v12039_v10 = vld [vmem:[#allocation7 + $0x108] sm:$0xff]   ;;  %v12040_v13 = vld [vmem:[#allocation7 + $0x1c0] sm:$0xff]   ;;  %v12047_v40 = vld [vmem:[#allocation7 + $0x190] sm:$0xff]  }
  0xd5   : > { %9915 = vmatpush3.bf16.msra.mxu1 %v12019_v16  ;;  %v12954_v56 = vpack.c.bf16 %v797_v53, %v795_v51  ;;  %2178 = vmatprep.mubr.bf16.mxu1 %v896_v52  ;;  %v12974_v6 = vpack.c.bf16 %v985_v63, %v983_v62  ;;  %v12977_v7 = vpack.c.bf16 %v802_v2, %v800_v1  ;;  %v986_v8 = vrot.slane %v599_v39, 1  ;;  %v12041_v15 = vld [vmem:[#allocation7 + $0x180] sm:$0xff]   ;;  %v13018_v39 = vld [vmem:[%s12901_s25 + $0x58] sm:$0xff]  ;;  %v13028_v45 = vld [vmem:[%s12901_s25 + $0x68] sm:$0xff] }
  0xd6   : > { %9916 = vmatprep.subr.bf16.mxu1 %v12022_v19  ;;  %v987_v9 = vrot.slane %v600_v43, 1  ;;  %v804_v11 = vrot.slane %v12969_v3, 7  ;;  %v806_v12 = vrot.slane %v12972_v4, 7  ;;  %v12984_v14 = vpack.c.bf16 %v12941_v47, %v12938_v46  ;;  %v13025_v44 = vld [vmem:[%s12901_s25 + $0x60] sm:$0xff]  ;;  %v13034_v49 = vld [vmem:[%s12901_s25 + $0x70] sm:$0xff]  ;;  %v13037_v51 = vld [vmem:[%s12901_s25 + $0x78] sm:$0xff] }
  0xd7   : > { %9805 = vmatpush3.bf16.msra.mxu0 %v12021_v18  ;;  %v12042_v18 = vld [vmem:[#allocation7 + $0x150] sm:$0xff]   ;;  %v13015_v38 = vpack.c.bf16 %v12972_v4, %v12969_v3  ;;  %v996_v54 = vrot.slane %v12969_v3, 1  ;;  %v997_v55 = vrot.slane %v12972_v4, 1  ;;  %v12050_v58 = vld [vmem:[#allocation7 + $0x1d8] sm:$0xff]   ;;  %v13052_v1 = vld [vmem:[%s12901_s25 + $0x80] sm:$0xff]  ;;  %v819_v4 = vrot.slane %v13025_v44, 7 }
  0xd8   : > { %9806 = vmatprep.subr.bf16.mxu0 %v12024_v21  ;;  %v988_v16 = vsel %vm975_vm1, %v986_v8, %v987_v9  ;;  %v990_v17 = vsel %vm975_vm1, %v987_v9, %v12928_v36  ;;  %v805_v19 = vsel %vm782_vm0, %v12921_v29, %v804_v11  ;;  %v12994_v21 = vld [vmem:[%s12901_s25 + $0x40] sm:$0xff]  ;;  %v13055_v2 = vld [vmem:[%s12901_s25 + $0x88] sm:$0xff]  ;;  %v12051_v3 = vld [vmem:[#allocation7 + $0x198] sm:$0xff]  }
  0xd9   : > { %9917 = vmatpush3.bf16.msra.mxu1 %v12023_v20  ;;  %v807_v20 = vsel %vm782_vm0, %v804_v11, %v806_v12  ;;  %v1001_v62 = vrot.slane %v12994_v21, 1  ;;  %v13060_v8 = vld [vmem:[%s12901_s25 + $0x90] sm:$0xff]  ;;  %v824_v11 = vrot.slane %v13034_v49, 7  ;;  %v826_v12 = vrot.slane %v13037_v51, 7  ;;  %v13146_v0 = vld [vmem:[%s12901_s25 + $0xd8] sm:$0xff] }
  0xda   : > { %9918 = vmatprep.subr.bf16.mxu1 %v12026_v23  ;;  %v12998_v23 = vld [vmem:[%s12901_s25 + $0x48] sm:$0xff]  ;;  %v12060_v28 = vld [vmem:[#allocation7 + $0x170] sm:$0xff]  }
  0xdb   : > { %9807 = vmatpush3.bf16.msra.mxu0 %v12025_v22  ;;  %v12043_v22 = vld [vmem:[#allocation7 + $0x110] sm:$0xff]   ;;  %v1002_v63 = vrot.slane %v12998_v23, 1 }
  0xdc   : > { %9808 = vmatprep.subr.bf16.mxu0 %v12028_v25  ;;  %v991_v25 = vrot.slane %v12938_v46, 1  ;;  %v12048_v46 = vld [vmem:[#allocation7 + $0x158] sm:$0xff]  }
  0xdd   : > { %9919 = vmatpush3.bf16.msra.mxu1 %v12027_v24  ;;  %v13000_v24 = vpack.c.bf16 %v990_v17, %v988_v16  ;;  %v13072_v16 = vpack.c.bf16 %v12998_v23, %v12994_v21  ;;  %v1011_v17 = vrot.slane %v13025_v44, 1 }
  0xde   : > { %9920 = vmatprep.subr.bf16.mxu1 %v12030_v27  ;;  %v13004_v27 = vpack.c.bf16 %v807_v20, %v805_v19  ;;  %v998_v19 = vsel %vm975_vm1, %v996_v54, %v997_v55  ;;  %v1000_v20 = vsel %vm975_vm1, %v997_v55, %v12928_v36  ;;  %v13104_v54 = vld [vmem:[%s12901_s25 + $0xb8] sm:$0xff]  ;;  %v12057_v55 = vld [vmem:[#allocation7 + $0x128] sm:$0xff]  }
  0xdf   : > { %9809 = vmatpush3.bf16.msra.mxu0 %v12029_v26  ;;  %v12044_v26 = vld [vmem:[#allocation7 + $0x1c8] sm:$0xff]  }
  0xe0   : > { %9810 = vmatprep.subr.bf16.mxu0 %v12032_v31  ;;  %v12045_v31 = vld [vmem:[#allocation7 + $0x188] sm:$0xff]  }
  0xe1   : > { %9921 = vmatpush3.bf16.msra.mxu1 %v12031_v30  ;;  %v992_v30 = vrot.slane %v12941_v47, 1 }
  0xe2   : > { %9922 = vmatprep.subr.bf16.mxu1 %v12034_v33  ;;  %v811_v33 = vrot.slane %v12998_v23, 7  ;;  %v829_v23 = vrot.slane %v13052_v1, 7 }
  0xe3   : > { %9811 = vmatpush3.bf16.msra.mxu0 %v12033_v32  ;;  %v809_v32 = vrot.slane %v12994_v21, 7  ;;  %v993_v41 = vsel %vm975_vm1, %v991_v25, %v992_v30  ;;  %v995_v43 = vsel %vm975_vm1, %v992_v30, %v12928_v36  ;;  %v1012_v25 = vrot.slane %v13028_v45, 1 }
  0xe4   : > { %10020 = vmatprep.subr.bf16.mxu0 %v12036_v59  ;;  %v13040_v53 = vpack.c.bf16 %v995_v43, %v993_v41  ;;  %v831_v30 = vrot.slane %v13055_v2, 7  ;;  %v834_v41 = vrot.slane %v13060_v8, 7 }
  0xe5   : > { %9923 = vmatpush3.bf16.msra.mxu1 %v12035_v35  ;;  %v13010_v35 = vld [vmem:[%s12901_s25 + $0x50] sm:$0xff]  ;;  %v810_v47 = vsel %vm782_vm0, %v12921_v29, %v809_v32  ;;  %v812_v48 = vsel %vm782_vm0, %v809_v32, %v811_v33  ;;  %v13087_v32 = vld [vmem:[%s12901_s25 + $0xa0] sm:$0xff]  ;;  %v13090_v33 = vld [vmem:[%s12901_s25 + $0xa8] sm:$0xff] }
  0xe6   : > { %2018 = vmatmul.mubr.bf16.vlgmr.msra.gmra.mrb[0].mxu0 %v12925_v34  ;;  %10132 = vmatprep.subr.bf16.mxu1 %v12040_v13  ;;  %v814_v57 = vrot.slane %v13010_v35, 7  ;;  %v13046_v59 = vpack.c.bf16 %v812_v48, %v810_v47  ;;  %v1006_v9 = vrot.slane %v13010_v35, 1  ;;  %v13067_v13 = vld [vmem:[%s12901_s25 + $0x98] sm:$0xff]  ;;  %v13096_v47 = vpack.c.bf16 %v1000_v20, %v998_v19  ;;  %v13133_v19 = vld [vmem:[%s12901_s25 + $0xd0] sm:$0xff] }
  0xe7   : > { %2025 = vmatprep.mubr.bf16.mxu0 %v12933_v42  ;;  %10021 = vmatpush3.bf16.msra.mxu0 %v12037_v61  ;;  %v816_v61 = vrot.slane %v13018_v39, 7  ;;  %v836_v43 = vrot.slane %v13067_v13, 7  ;;  %v12062_v20 = vld [vmem:[#allocation7 + $0x1f0] sm:$0xff]  }
  0xe8   : > { %2179 = vmatmul.mubr.bf16.vlgmr.msra.gmra.mrb[0].mxu1 %v12948_v50  ;;  %10022 = vmatprep.subr.bf16.mxu0 %v12038_v5  ;;  %v821_v5 = vrot.slane %v13028_v45, 7 }
  0xe9   : > { %2186 = vmatprep.mubr.bf16.mxu1 %v12954_v56  ;;  %10133 = vmatpush3.bf16.msra.mxu1 %v12041_v15  ;;  %v12052_v15 = vld [vmem:[#allocation7 + $0x160] sm:$0xff]   ;;  %v817_v21 = vsel %vm782_vm0, %v814_v57, %v816_v61  ;;  %v12065_v61 = vld [vmem:[#allocation7 + $0x138] sm:$0xff]  }
  0xea   : > { %10134 = vmatprep.subr.bf16.mxu1 %v12044_v26  ;;  %v12054_v26 = vld [vmem:[#allocation7 + $0x1e0] sm:$0xff]  }
  0xeb   : > { %10023 = vmatpush3.bf16.msra.mxu0 %v12039_v10  ;;  %v1007_v10 = vrot.slane %v13018_v39, 1 }
  0xec   : > { %10024 = vmatprep.subr.bf16.mxu0 %v12042_v18  ;;  %v12053_v18 = vld [vmem:[#allocation7 + $0x120] sm:$0xff]  }
  0xed   : > { %10135 = vmatpush3.bf16.msra.mxu1 %v12045_v31  ;;  %v1016_v31 = vrot.slane %v13034_v49, 1 }
  0xee   : > { %2026 = vmatmul.mubr.bf16.gmra.mrb[4].mxu0 %v896_v52  ;;  %10136 = vmatprep.subr.bf16.mxu1 %v12046_v37  ;;  %v12049_v52 = vld [vmem:[#allocation7 + $0x118] sm:$0xff]   ;;  %v12055_v37 = vld [vmem:[#allocation7 + $0x1a0] sm:$0xff]  }
  0xef   : > { %2033 = vmatprep.mubr.bf16.mxu0 %v12959_v60  ;;  %10025 = vmatpush3.bf16.msra.mxu0 %v12043_v22  ;;  %v815_v22 = vsel %vm782_vm0, %v12921_v29, %v814_v57 }
  0xf0   : > { %2187 = vmatmul.mubr.bf16.gmra.mrb[4].mxu1 %v12974_v6  ;;  %10026 = vmatprep.subr.bf16.mxu0 %v12048_v46  ;;  %v12056_v46 = vld [vmem:[#allocation7 + $0x168] sm:$0xff]   ;;  %v13106_v57 = vpack.c.bf16 %v817_v21, %v815_v22  ;;  %v1003_v22 = vsel %vm975_vm1, %v1001_v62, %v1002_v63  ;;  %v1005_v21 = vsel %vm975_vm1, %v1002_v63, %v12928_v36  ;;  %v12061_v62 = vld [vmem:[#allocation7 + $0x130] sm:$0xff]  }
  0xf1   : > { %2194 = vmatprep.mubr.bf16.mxu1 %v12977_v7  ;;  %10137 = vmatpush3.bf16.msra.mxu1 %v12047_v40  ;;  %v1017_v40 = vrot.slane %v13037_v51, 1  ;;  %v820_v63 = vsel %vm782_vm0, %v12921_v29, %v819_v4 }
  0xf2   : > { %10138 = vmatprep.subr.bf16.mxu1 %v12050_v58  ;;  %v13109_v58 = vld [vmem:[%s12901_s25 + $0xc0] sm:$0xff] }
  0xf3   : > { %10027 = vmatpush3.bf16.msra.mxu0 %v12049_v52  ;;  %v13101_v52 = vld [vmem:[%s12901_s25 + $0xb0] sm:$0xff] }
  0xf4   : > { %10028 = vmatprep.subr.bf16.mxu0 %v12052_v15  ;;  %v12058_v15 = vld [vmem:[#allocation7 + $0x1e8] sm:$0xff]   ;;  %v1036_v48 = vrot.slane %v13101_v52, 1 }
  0xf5   : > { %10139 = vmatpush3.bf16.msra.mxu1 %v12051_v3  ;;  %v13113_v3 = vld [vmem:[%s12901_s25 + $0xc8] sm:$0xff] }
  0xf6   : > { %2034 = vmatmul.mubr.bf16.gmra.mrb[8].mxu0 %v12954_v56  ;;  %10140 = vmatprep.subr.bf16.mxu1 %v12054_v26  ;;  %v1037_v26 = vrot.slane %v13104_v54, 1 }
  0xf7   : > { %2041 = vmatprep.mubr.bf16.mxu0 %v12984_v14  ;;  %10029 = vmatpush3.bf16.msra.mxu0 %v12053_v18  ;;  %v12059_v18 = vld [vmem:[#allocation7 + $0x1a8] sm:$0xff]  }
  0xf8   : > { %2195 = vmatmul.mubr.bf16.gmra.mrb[8].mxu1 %v13000_v24  ;;  %10030 = vmatprep.subr.bf16.mxu0 %v12056_v46  ;;  %v13150_v46 = vpack.c.bf16 %v1005_v21, %v1003_v22  ;;  %v12066_v22 = vld [vmem:[#allocation7 + $0x1f8] sm:$0xff]   ;;  %v13162_v21 = vpack.c.bf16 %v13028_v45, %v13025_v44 }
  0xf9   : > { %2202 = vmatprep.mubr.bf16.mxu1 %v13004_v27  ;;  %10141 = vmatpush3.bf16.msra.mxu1 %v12055_v37  ;;  %v13124_v37 = vpack.c.bf16 %v13018_v39, %v13010_v35 }
  0xfa   : > { %10142 = vmatprep.subr.bf16.mxu1 %v12058_v15 }
  0xfb   : > { %10031 = vmatpush3.bf16.msra.mxu0 %v12057_v55  ;;  %v822_v55 = vsel %vm782_vm0, %v819_v4, %v821_v5  ;;  %v12063_v4 = vld [vmem:[#allocation7 + $0x1b0] sm:$0xff]  }
  0xfc   : > { %10032 = vmatprep.subr.bf16.mxu0 %v12060_v28  ;;  %v13154_v5 = vpack.c.bf16 %v822_v55, %v820_v63  ;;  %v12064_v28 = vld [vmem:[#allocation7 + $0x178] sm:$0xff]   ;;  %v1010_v55 = vsel %vm975_vm1, %v1007_v10, %v12928_v36 }
  0xfd   : > { %10143 = vmatpush3.bf16.msra.mxu1 %v12059_v18  ;;  %v854_v18 = vrot.slane %v13133_v19, 7  ;;  %v12067_v63 = vld [vmem:[#allocation7 + $0x1b8] sm:$0xff]  }
  0xfe   : > { %2042 = vmatmul.mubr.bf16.gmra.mrb[12].mxu0 %v12977_v7  ;;  %10144 = vmatprep.subr.bf16.mxu1 %v12062_v20  ;;  %v1008_v20 = vsel %vm975_vm1, %v1006_v9, %v1007_v10  ;;  %v13193_v9 = vpack.c.bf16 %v13037_v51, %v13034_v49  ;;  %v1013_v10 = vsel %vm975_vm1, %v1011_v17, %v1012_v25 }
  0xff   : > { %2049 = vmatprep.mubr.bf16.mxu0 %v13015_v38  ;;  %10033 = vmatpush3.bf16.msra.mxu0 %v12061_v62  ;;  %v13185_v35 = vpack.c.bf16 %v1010_v55, %v1008_v20  ;;  %v13223_v17 = vpack.c.bf16 %v13055_v2, %v13052_v1 }
 0x100   : > { %2203 = vmatmul.mubr.bf16.gmra.mrb[12].mxu1 %v13040_v53  ;;  %10034 = vmatprep.subr.bf16.mxu0 %v12064_v28  ;;  %v832_v28 = vsel %vm782_vm0, %v829_v23, %v831_v30  ;;  %v835_v30 = vsel %vm782_vm0, %v12921_v29, %v834_v41 }
 0x101   : > { %2210 = vmatprep.mubr.bf16.mxu1 %v13046_v59  ;;  %10145 = vmatpush3.bf16.msra.mxu1 %v12063_v4  ;;  %v827_v4 = vsel %vm782_vm0, %v824_v11, %v826_v12  ;;  %v830_v12 = vsel %vm782_vm0, %v12921_v29, %v829_v23  ;;  %v1020_v23 = vsel %vm975_vm1, %v1017_v40, %v12928_v36 }
 0x102   : > { %10146 = vmatprep.subr.bf16.mxu1 %v12066_v22  ;;  %v13218_v45 = vpack.c.bf16 %v832_v28, %v830_v12  ;;  %v837_v22 = vsel %vm782_vm0, %v834_v41, %v836_v43  ;;  %v16538_v41 = vrot.slane %v13055_v2, 1  ;;  %v16539_v43 = vrot.slane %v13052_v1, 1 }
 0x103   : > { %10035 = vmatpush3.bf16.msra.mxu0 %v12065_v61  ;;  %v825_v61 = vsel %vm782_vm0, %v12921_v29, %v824_v11  ;;  %v1015_v11 = vsel %vm975_vm1, %v1012_v25, %v12928_v36  ;;  %v1018_v25 = vsel %vm975_vm1, %v1016_v31, %v1017_v40  ;;  %v13248_v51 = vpack.c.bf16 %v837_v22, %v835_v30 }
 0x104   : > { %v13188_v39 = vpack.c.bf16 %v827_v4, %v825_v61  ;;  %v13215_v44 = vpack.c.bf16 %v1015_v11, %v1013_v10  ;;  %v13245_v49 = vpack.c.bf16 %v1020_v23, %v1018_v25  ;;  %v13253_v31 = vpack.c.bf16 %v13067_v13, %v13060_v8 }
 0x105   : > { %10147 = vmatpush3.bf16.msra.mxu1 %v12067_v63  ;;  %v1042_v40 = vrot.slane %v13113_v3, 1  ;;  %v13256_v63 = vld [vmem:[#allocation7 + $0x200] sm:$0xff]   ;;  %v1023_v20 = vsel %vm975_vm1, %v16539_v43, %v16538_v41  ;;  %v16540_v55 = vmov %v16538_v41  ;;  %v16541_v4 = vrot.slane %v13087_v32, 7 }
 0x106   : > { %2050 = vmatmul.mubr.bf16.gmra.mrb[16].mxu0 %v13004_v27  ;;  %v1025_v61 = vsel %vm975_vm1, %v16540_v55, %v12928_v36  ;;  %v16542_v11 = vrot.slane %v13090_v33, 7  ;;  %11716 = vmatprep.subr.bf16.mxu0 %v13256_v63  ;;  %v13287_v25 = vpack.c.bf16 %v13090_v33, %v13087_v32  ;;  %v16544_v23 = vrot.slane %v13067_v13, 1 }
 0x107   : > { %2057 = vmatprep.mubr.bf16.mxu0 %v13072_v16  ;;  %v840_v10 = vsel %vm782_vm0, %v12921_v29, %v16541_v4  ;;  %v16543_v12 = vmov %v16541_v4  ;;  %v13279_v2 = vpack.c.bf16 %v1025_v61, %v1023_v20  ;;  %v16545_v30 = vrot.slane %v13060_v8, 1  ;;  %v13310_v8 = vld [vmem:[%s12901_s25 + $0xe0] sm:$0xff] }
 0x108   : > { %2211 = vmatmul.mubr.bf16.gmra.mrb[16].mxu1 %v13096_v47  ;;  %v842_v1 = vsel %vm782_vm0, %v16543_v12, %v16542_v11  ;;  %v16546_v41 = vmov %v16544_v23  ;;  %v16547_v20 = vrot.slane %v13101_v52, 7  ;;  %v16548_v61 = vrot.slane %v13104_v54, 7  ;;  %v13313_v11 = vld [vmem:[%s12901_s25 + $0xe8] sm:$0xff] }
 0x109   : > { %2218 = vmatprep.mubr.bf16.mxu1 %v13106_v57  ;;  %v13282_v28 = vpack.c.bf16 %v842_v1, %v840_v10  ;;  %v1028_v22 = vsel %vm975_vm1, %v16545_v30, %v16544_v23  ;;  %v1030_v43 = vsel %vm975_vm1, %v16546_v41, %v12928_v36  ;;  %v13323_v1 = vpack.c.bf16 %v13104_v54, %v13101_v52  ;;  %v13385_v54 = vld [vmem:[%s12901_s25 + $0xf0] sm:$0xff] }
 0x10a   : > { %v845_v55 = vsel %vm782_vm0, %v12921_v29, %v16547_v20  ;;  %v16549_v4 = vmov %v16547_v20  ;;  %v13315_v13 = vpack.c.bf16 %v1030_v43, %v1028_v22  ;;  %v859_v23 = vrot.slane %v13310_v8, 7 }
 0x10b   : > { %v847_v10 = vsel %vm782_vm0, %v16549_v4, %v16548_v61  ;;  %v861_v30 = vrot.slane %v13313_v11, 7  ;;  %v16550_v41 = vrot.slane %v13090_v33, 1  ;;  %v16551_v22 = vrot.slane %v13087_v32, 1 }
 0x10c   : > { %v13318_v12 = vpack.c.bf16 %v847_v10, %v845_v55  ;;  %v16553_v61 = vrot.slane %v13109_v58, 7  ;;  %v16554_v10 = vrot.slane %v13113_v3, 7  ;;  %v1046_v32 = vrot.slane %v13133_v19, 1 }
 0x10d   : > { %v1033_v43 = vsel %vm975_vm1, %v16551_v22, %v16550_v41  ;;  %v16552_v20 = vmov %v16550_v41  ;;  %v1047_v41 = vrot.slane %v13146_v0, 1 }
 0x10e   : > { %2058 = vmatmul.mubr.bf16.gmra.mrb[20].mxu0 %v13046_v59  ;;  %v1035_v55 = vsel %vm975_vm1, %v16552_v20, %v12928_v36  ;;  %v850_v4 = vsel %vm782_vm0, %v12921_v29, %v16553_v61  ;;  %v16555_v62 = vmov %v16553_v61  ;;  %v13357_v20 = vpack.c.bf16 %v13113_v3, %v13109_v58 }
 0x10f   : > { %2065 = vmatprep.mubr.bf16.mxu0 %v13124_v37  ;;  %v852_v15 = vsel %vm782_vm0, %v16555_v62, %v16554_v10  ;;  %v13349_v33 = vpack.c.bf16 %v1035_v55, %v1033_v43  ;;  %v1038_v62 = vsel %vm975_vm1, %v1036_v48, %v1037_v26  ;;  %v855_v43 = vsel %vm782_vm0, %v12921_v29, %v854_v18 }
 0x110   : > { %2219 = vmatmul.mubr.bf16.gmra.mrb[20].mxu1 %v13150_v46  ;;  %v13352_v22 = vpack.c.bf16 %v852_v15, %v850_v4  ;;  %v1040_v15 = vsel %vm975_vm1, %v1037_v26, %v12928_v36  ;;  %v16556_v3 = vrot.slane %v13146_v0, 7  ;;  %v13388_v26 = vld [vmem:[%s12901_s25 + $0xf8] sm:$0xff]  ;;  %v13393_v61 = vpack.c.bf16 %v13146_v0, %v13133_v19 }
 0x111   : > { %2226 = vmatprep.mubr.bf16.mxu1 %v13154_v5  ;;  %v13379_v52 = vpack.c.bf16 %v1040_v15, %v1038_v62  ;;  %v1045_v10 = vsel %vm975_vm1, %v1042_v40, %v12928_v36  ;;  %v860_v62 = vsel %vm782_vm0, %v12921_v29, %v859_v23  ;;  %v862_v15 = vsel %vm782_vm0, %v859_v23, %v861_v30 }
 0x112   : > { %v857_v55 = vsel %vm782_vm0, %v854_v18, %v16556_v3  ;;  %v16557_v18 = vrot.slane %v13109_v58, 1  ;;  %v1126_v3 = vrot.slane %v13388_v26, 7  ;;  %v13410_v58 = vpack.c.bf16 %v862_v15, %v860_v62 }
 0x113   : > { %v13382_v48 = vpack.c.bf16 %v857_v55, %v855_v43  ;;  %v1124_v43 = vrot.slane %v13385_v54, 7  ;;  %v13415_v19 = vpack.c.bf16 %v13313_v11, %v13310_v8  ;;  %v1050_v23 = vsel %vm975_vm1, %v1047_v41, %v12928_v36 }
 0x114   : > { %v1043_v4 = vsel %vm975_vm1, %v16557_v18, %v1042_v40  ;;  %v1048_v40 = vsel %vm975_vm1, %v1046_v32, %v1047_v41 }
 0x115   : > { %v13407_v0 = vpack.c.bf16 %v1045_v10, %v1043_v4  ;;  %v1125_v30 = vsel %vm782_vm0, %v12921_v29, %v1124_v43  ;;  %v1127_v55 = vsel %vm782_vm0, %v1124_v43, %v1126_v3  ;;  %v13425_v18 = vpack.c.bf16 %v1050_v23, %v1048_v40  ;;  %v12071_v43 = vld [vmem:[#allocation7 + $0x218] sm:$0xff]  }
 0x116   : > { %2066 = vmatmul.mubr.bf16.gmra.mrb[24].mxu0 %v13106_v57  ;;  %v1051_v4 = vrot.slane %v13310_v8, 1  ;;  %v1052_v10 = vrot.slane %v13313_v11, 1  ;;  %v13430_v62 = vpack.c.bf16 %v1127_v55, %v1125_v30  ;;  %v12069_v8 = vld [vmem:[#allocation7 + $0x208] sm:$0xff]   ;;  %v12070_v11 = vld [vmem:[#allocation7 + $0x210] sm:$0xff]  }
 0x117   : > { %2073 = vmatprep.mubr.bf16.mxu0 %v13162_v21 }
 0x118   : > { %2227 = vmatmul.mubr.bf16.gmra.mrb[24].mxu1 %v13185_v35  ;;  %v1053_v32 = vsel %vm975_vm1, %v1051_v4, %v1052_v10  ;;  %v1055_v41 = vsel %vm975_vm1, %v1052_v10, %v12928_v36 }
 0x119   : > { %2234 = vmatprep.mubr.bf16.mxu1 %v13188_v39  ;;  %v13438_v15 = vpack.c.bf16 %v1055_v41, %v1053_v32 }
 0x11e   : > { %2074 = vmatmul.mubr.bf16.gmra.mrb[28].mxu0 %v13154_v5 }
 0x11f   : > { %2081 = vmatprep.mubr.bf16.mxu0 %v13193_v9 }
 0x120   : > { %2235 = vmatmul.mubr.bf16.gmra.mrb[28].mxu1 %v13215_v44 }
 0x121   : > { %2242 = vmatprep.mubr.bf16.mxu1 %v13218_v45 }
 0x126   : > { %2082 = vmatmul.mubr.bf16.gmra.mrb[32].mxu0 %v13188_v39 }
 0x127   : > { %2089 = vmatprep.mubr.bf16.mxu0 %v13223_v17 }
 0x128   : > { %2243 = vmatmul.mubr.bf16.gmra.mrb[32].mxu1 %v13245_v49 }
 0x129   : > { %2250 = vmatprep.mubr.bf16.mxu1 %v13248_v51 }
 0x12e   : > { %2090 = vmatmul.mubr.bf16.gmra.mrb[36].mxu0 %v13218_v45 }
 0x12f   : > { %2097 = vmatprep.mubr.bf16.mxu0 %v13253_v31 }
 0x130   : > { %2251 = vmatmul.mubr.bf16.gmra.mrb[36].mxu1 %v13279_v2 }
 0x131   : > { %2258 = vmatprep.mubr.bf16.mxu1 %v13282_v28 }
 0x136   : > { %2098 = vmatmul.mubr.bf16.gmra.mrb[40].mxu0 %v13248_v51 }
 0x137   : > { %2105 = vmatprep.mubr.bf16.mxu0 %v13287_v25 }
 0x138   : > { %2259 = vmatmul.mubr.bf16.gmra.mrb[40].mxu1 %v13315_v13 }
 0x139   : > { %2266 = vmatprep.mubr.bf16.mxu1 %v13318_v12 }
 0x13e   : > { %2106 = vmatmul.mubr.bf16.gmra.mrb[44].mxu0 %v13282_v28 }
 0x13f   : > { %2113 = vmatprep.mubr.bf16.mxu0 %v13323_v1 }
 0x140   : > { %2267 = vmatmul.mubr.bf16.gmra.mrb[44].mxu1 %v13349_v33 }
 0x141   : > { %2274 = vmatprep.mubr.bf16.mxu1 %v13352_v22 }
 0x146   : > { %2114 = vmatmul.mubr.bf16.gmra.mrb[48].mxu0 %v13318_v12 }
 0x147   : > { %2121 = vmatprep.mubr.bf16.mxu0 %v13357_v20 }
 0x148   : > { %2275 = vmatmul.mubr.bf16.gmra.mrb[48].mxu1 %v13379_v52 }
 0x149   : > { %2282 = vmatprep.mubr.bf16.mxu1 %v13382_v48 }
 0x14e   : > { %2122 = vmatmul.mubr.bf16.gmra.mrb[52].mxu0 %v13352_v22 }
 0x14f   : > { %2129 = vmatprep.mubr.bf16.mxu0 %v13393_v61 }
 0x150   : > { %2283 = vmatmul.mubr.bf16.gmra.mrb[52].mxu1 %v13407_v0 }
 0x151   : > { %2290 = vmatprep.mubr.bf16.mxu1 %v13410_v58 }
 0x156   : > { %2130 = vmatmul.mubr.bf16.gmra.mrb[56].mxu0 %v13382_v48 }
 0x157   : > { %2137 = vmatprep.mubr.bf16.mxu0 %v13415_v19 }
 0x158   : > { %2291 = vmatmul.mubr.bf16.gmra.mrb[56].mxu1 %v13425_v18 }
 0x159   : > { %2298 = vmatprep.mubr.bf16.mxu1 %v13430_v62 }
 0x15e   : > { %2138 = vmatmul.mubr.bf16.gmra.mrb[60].mxu0 %v13410_v58 }
 0x15f   : > { %2339 = vmatprep.mubr.bf16.mxu0 %v12974_v6  ;;  %v12072_v6 = vld [vmem:[#allocation7 + $0x220] sm:$0xff]  }
 0x160   : > { %2299 = vmatmul.mubr.bf16.gmra.mrb[60].mxu1 %v13438_v15 }
 0x161   : > { %2500 = vmatprep.mubr.bf16.mxu1 %v12959_v60 }
 0x166   : > { %2340 = vmatmul.mubr.bf16.vlgmr.msra.gmra.mrb[64].mxu0 %v12933_v42  ;;  %v12073_v42 = vld [vmem:[#allocation7 + $0x228] sm:$0xff]  }
 0x167   : > { %2347 = vmatprep.mubr.bf16.mxu0 %v13000_v24  ;;  %11717 = vmatpush3.bf16.msra.mxu0 %v13256_v63 }
 0x168   : > { %11718 = vmatprep.subr.bf16.mxu0 %v12069_v8  ;;  %2501 = vmatmul.mubr.bf16.vlgmr.msra.gmra.mrb[64].mxu1 %v12954_v56  ;;  %v12074_v56 = vld [vmem:[#allocation7 + $0x230] sm:$0xff]  }
 0x169   : > { %2508 = vmatprep.mubr.bf16.mxu1 %v12984_v14 }
 0x16b   : > { %11719 = vmatpush3.bf16.msra.mxu0 %v12069_v8 }
 0x16c   : > { %11720 = vmatprep.subr.bf16.mxu0 %v12070_v11 }
 0x16e   : > { %2348 = vmatmul.mubr.bf16.gmra.mrb[68].mxu0 %v12959_v60  ;;  %v12075_v60 = vld [vmem:[#allocation7 + $0x238] sm:$0xff]  }
 0x16f   : > { %2355 = vmatprep.mubr.bf16.mxu0 %v13040_v53  ;;  %11721 = vmatpush3.bf16.msra.mxu0 %v12070_v11 }
 0x170   : > { %11722 = vmatprep.subr.bf16.mxu0 %v12071_v43  ;;  %2509 = vmatmul.mubr.bf16.gmra.mrb[68].mxu1 %v12977_v7 }
 0x171   : > { %2516 = vmatprep.mubr.bf16.mxu1 %v13015_v38 }
 0x173   : > { %11723 = vmatpush3.bf16.msra.mxu0 %v12071_v43 }
 0x174   : > { %11724 = vmatprep.subr.bf16.mxu0 %v12072_v6 }
 0x176   : > { %2356 = vmatmul.mubr.bf16.gmra.mrb[72].mxu0 %v12984_v14 }
 0x177   : > { %2363 = vmatprep.mubr.bf16.mxu0 %v13096_v47  ;;  %11725 = vmatpush3.bf16.msra.mxu0 %v12072_v6 }
 0x178   : > { %11726 = vmatprep.subr.bf16.mxu0 %v12073_v42  ;;  %2517 = vmatmul.mubr.bf16.gmra.mrb[72].mxu1 %v13004_v27  ;;  %v13490_v27 = vld [vmem:[%s16403_s2] ss:$0 sm:$0xff] }
 0x179   : > { %2524 = vmatprep.mubr.bf16.mxu1 %v13072_v16 }
 0x17b   : > { %11727 = vmatpush3.bf16.msra.mxu0 %v12073_v42 }
 0x17c   : > { %11728 = vmatprep.subr.bf16.mxu0 %v12074_v56 }
 0x17e   : > { %2364 = vmatmul.mubr.bf16.gmra.mrb[76].mxu0 %v13015_v38 }
 0x17f   : > { %2371 = vmatprep.mubr.bf16.mxu0 %v13150_v46  ;;  %11729 = vmatpush3.bf16.msra.mxu0 %v12074_v56 }
 0x180   : > { %11730 = vmatprep.subr.bf16.mxu0 %v12075_v60  ;;  %2525 = vmatmul.mubr.bf16.gmra.mrb[76].mxu1 %v13046_v59 }
 0x181   : > { %2532 = vmatprep.mubr.bf16.mxu1 %v13124_v37 }
 0x183   : > { %11731 = vmatpush3.bf16.msra.mxu0 %v12075_v60  ;;  %v1165_v60 = vrot.slane %v13385_v54, 1 }
 0x186   : > { %2372 = vmatmul.mubr.bf16.gmra.mrb[80].mxu0 %v13072_v16 }
 0x187   : > { %2379 = vmatprep.mubr.bf16.mxu0 %v13185_v35 }
 0x188   : > { %2533 = vmatmul.mubr.bf16.gmra.mrb[80].mxu1 %v13106_v57 }
 0x189   : > { %2540 = vmatprep.mubr.bf16.mxu1 %v13162_v21 }
 0x18e   : > { %2380 = vmatmul.mubr.bf16.gmra.mrb[84].mxu0 %v13124_v37 }
 0x18f   : > { %2387 = vmatprep.mubr.bf16.mxu0 %v13215_v44 }
 0x190   : > { %2541 = vmatmul.mubr.bf16.gmra.mrb[84].mxu1 %v13154_v5 }
 0x191   : > { %2548 = vmatprep.mubr.bf16.mxu1 %v13193_v9 }
 0x196   : > { %2388 = vmatmul.mubr.bf16.gmra.mrb[88].mxu0 %v13162_v21 }
 0x197   : > { %2395 = vmatprep.mubr.bf16.mxu0 %v13245_v49 }
 0x198   : > { %2549 = vmatmul.mubr.bf16.gmra.mrb[88].mxu1 %v13188_v39 }
 0x199   : > { %2556 = vmatprep.mubr.bf16.mxu1 %v13223_v17 }
 0x19e   : > { %2396 = vmatmul.mubr.bf16.gmra.mrb[92].mxu0 %v13193_v9 }
 0x19f   : > { %2403 = vmatprep.mubr.bf16.mxu0 %v13279_v2 }
 0x1a0   : > { %2557 = vmatmul.mubr.bf16.gmra.mrb[92].mxu1 %v13218_v45 }
 0x1a1   : > { %2564 = vmatprep.mubr.bf16.mxu1 %v13253_v31 }
 0x1a6   : > { %2404 = vmatmul.mubr.bf16.gmra.mrb[96].mxu0 %v13223_v17 }
 0x1a7   : > { %2411 = vmatprep.mubr.bf16.mxu0 %v13315_v13 }
 0x1a8   : > { %2565 = vmatmul.mubr.bf16.gmra.mrb[96].mxu1 %v13248_v51 }
 0x1a9   : > { %2572 = vmatprep.mubr.bf16.mxu1 %v13287_v25 }
 0x1ae   : > { %2412 = vmatmul.mubr.bf16.gmra.mrb[100].mxu0 %v13253_v31 }
 0x1af   : > { %2419 = vmatprep.mubr.bf16.mxu0 %v13349_v33 }
 0x1b0   : > { %2573 = vmatmul.mubr.bf16.gmra.mrb[100].mxu1 %v13282_v28 }
 0x1b1   : > { %2580 = vmatprep.mubr.bf16.mxu1 %v13323_v1 }
 0x1b6   : > { %2420 = vmatmul.mubr.bf16.gmra.mrb[104].mxu0 %v13287_v25 }
 0x1b7   : > { %2427 = vmatprep.mubr.bf16.mxu0 %v13379_v52 }
 0x1b8   : > { %2581 = vmatmul.mubr.bf16.gmra.mrb[104].mxu1 %v13318_v12 }
 0x1b9   : > { %v9812_v7 = vpop.f32.mrb[0].mxu0  ;;  %2588 = vmatprep.mubr.bf16.mxu1 %v13357_v20 }
 0x1ba   : > { %v9813_v14 = vpop.f32.mrb[1].mxu0 }
 0x1bb   : > { %v9814_v38 = vadd.f32 %v9813_v14, %v9812_v7  ;;  %v9815_v59 = vpop.f32.mrb[2].mxu0  ;;  %v9924_v5 = vpop.f32.mrb[0].mxu1  ;;  %v1166_v7 = vrot.slane %v13388_v26, 1 }
 0x1bc   : > { %v9816_v16 = vpop.f32.mrb[3].mxu0  ;;  %v9925_v21 = vpop.f32.mrb[1].mxu1 }
 0x1bd   : > { %v9817_v57 = vadd.f32 %v9816_v16, %v9815_v59  ;;  %v2020_v37 = vadd.f32 %v9814_v38, %v13490_v27  ;;  %v9926_v9 = vadd.f32 %v9925_v21, %v9924_v5  ;;  %v9927_v45 = vpop.f32.mrb[2].mxu1  ;;  %v1167_v21 = vsel %vm975_vm1, %v1165_v60, %v1166_v7 }
 0x1be   : > { %2428 = vmatmul.mubr.bf16.gmra.mrb[108].mxu0 %v13323_v1  ;;  %v9928_v17 = vpop.f32.mrb[3].mxu1 }
 0x1bf   : > { %2435 = vmatprep.mubr.bf16.mxu0 %v13407_v0  ;;  %v2023_v39 = vadd.f32 %v9817_v57, %v13490_v27  ;;  %v13497_v31 = vadd.f32 %v9926_v9, %v2020_v37  ;;  %v9929_v63 = vadd.f32 %v9928_v17, %v9927_v45 }
 0x1c0   : > { %2589 = vmatmul.mubr.bf16.gmra.mrb[108].mxu1 %v13352_v22 }
 0x1c1   : > { %v9818_v51 = vpop.f32.mrb[4].mxu0  ;;  %v13500_v3 = vadd.f32 %v9929_v63, %v2023_v39  ;;  %2596 = vmatprep.mubr.bf16.mxu1 %v13393_v61  ;;  %v1169_v39 = vsel %vm975_vm1, %v1166_v7, %v12928_v36 }
 0x1c2   : > { %v9819_v28 = vpop.f32.mrb[5].mxu0 }
 0x1c3   : > { %v9820_v25 = vadd.f32 %v9819_v28, %v9818_v51  ;;  %v9821_v12 = vpop.f32.mrb[6].mxu0  ;;  %v9930_v30 = vpop.f32.mrb[4].mxu1 }
 0x1c4   : > { %v9822_v1 = vpop.f32.mrb[7].mxu0  ;;  %v9931_v55 = vpop.f32.mrb[5].mxu1 }
 0x1c5   : > { %v9823_v40 = vadd.f32 %v9822_v1, %v9821_v12  ;;  %v2028_v23 = vadd.f32 %v9820_v25, %v13490_v27  ;;  %v9932_v10 = vadd.f32 %v9931_v55, %v9930_v30  ;;  %v9933_v22 = vpop.f32.mrb[6].mxu1 }
 0x1c6   : > { %2436 = vmatmul.mubr.bf16.gmra.mrb[112].mxu0 %v13357_v20  ;;  %v9934_v32 = vpop.f32.mrb[7].mxu1 }
 0x1c7   : > { %2443 = vmatprep.mubr.bf16.mxu0 %v13425_v18  ;;  %v2031_v4 = vadd.f32 %v9823_v40, %v13490_v27  ;;  %v13507_v8 = vadd.f32 %v9932_v10, %v2028_v23  ;;  %v9935_v11 = vadd.f32 %v9934_v32, %v9933_v22 }
 0x1c8   : > { %2597 = vmatmul.mubr.bf16.gmra.mrb[112].mxu1 %v13382_v48  ;;  %v1147_v48 = vpack.c.bf16 %v13388_v26, %v13385_v54  ;;  %v13527_v54 = vpack.c.bf16 %v1169_v39, %v1167_v21 }
 0x1c9   : > { %v9824_v41 = vpop.f32.mrb[8].mxu0  ;;  %v13510_v56 = vadd.f32 %v9935_v11, %v2031_v4  ;;  %2604 = vmatprep.mubr.bf16.mxu1 %v13415_v19 }
 0x1ca   : > { %v9825_v43 = vpop.f32.mrb[9].mxu0 }
 0x1cb   : > { %v9826_v6 = vadd.f32 %v9825_v43, %v9824_v41  ;;  %v9827_v42 = vpop.f32.mrb[10].mxu0  ;;  %v9936_v59 = vpop.f32.mrb[8].mxu1 }
 0x1cc   : > { %v9828_v20 = vpop.f32.mrb[11].mxu0  ;;  %v9937_v16 = vpop.f32.mrb[9].mxu1 }
 0x1cd   : > { %v9829_v14 = vadd.f32 %v9828_v20, %v9827_v42  ;;  %v2036_v38 = vadd.f32 %v9826_v6, %v13490_v27  ;;  %v9938_v37 = vadd.f32 %v9937_v16, %v9936_v59  ;;  %v9939_v5 = vpop.f32.mrb[10].mxu1  ;;  %v16558_v42 = vmov 0.0|0.0  }
 0x1ce   : > { %2444 = vmatmul.mubr.bf16.gmra.mrb[116].mxu0 %v13393_v61  ;;  %v9940_v9 = vpop.f32.mrb[11].mxu1 }
 0x1cf   : > { %2451 = vmatprep.mubr.bf16.mxu0 %v13438_v15  ;;  %v2039_v57 = vadd.f32 %v9829_v14, %v13490_v27  ;;  %v13524_v17 = vadd.f32 %v9938_v37, %v2036_v38  ;;  %v9941_v61 = vadd.f32 %v9940_v9, %v9939_v5 }
 0x1d0   : > { %2605 = vmatmul.mubr.bf16.gmra.mrb[116].mxu1 %v13410_v58 }
 0x1d1   : > { %v9830_v45 = vpop.f32.mrb[12].mxu0  ;;  %v13529_v26 = vadd.f32 %v9941_v61, %v2039_v57  ;;  %2612 = vmatprep.mubr.bf16.mxu1 %v1147_v48 }
 0x1d2   : > { %v9831_v51 = vpop.f32.mrb[13].mxu0 }
 0x1d3   : > { %v9832_v63 = vadd.f32 %v9831_v51, %v9830_v45  ;;  %v9833_v28 = vpop.f32.mrb[14].mxu0  ;;  %v9942_v40 = vpop.f32.mrb[12].mxu1 }
 0x1d4   : > { %v9834_v25 = vpop.f32.mrb[15].mxu0  ;;  %v9943_v23 = vpop.f32.mrb[13].mxu1 }
 0x1d5   : > { %v9835_v12 = vadd.f32 %v9834_v25, %v9833_v28  ;;  %v2044_v1 = vadd.f32 %v9832_v63, %v13490_v27  ;;  %v9944_v58 = vadd.f32 %v9943_v23, %v9942_v40  ;;  %v9945_v55 = vpop.f32.mrb[14].mxu1 }
 0x1d6   : > { %2452 = vmatmul.mubr.bf16.gmra.mrb[120].mxu0 %v13415_v19  ;;  %v9946_v4 = vpop.f32.mrb[15].mxu1 }
 0x1d7   : > { %2459 = vmatprep.mubr.bf16.mxu0 %v13527_v54  ;;  %v2047_v30 = vadd.f32 %v9835_v12, %v13490_v27  ;;  %v13535_v22 = vadd.f32 %v9944_v58, %v2044_v1  ;;  %v9947_v32 = vadd.f32 %v9946_v4, %v9945_v55 }
 0x1d8   : > { %2613 = vmatmul.mubr.bf16.gmra.mrb[120].mxu1 %v13430_v62 }
 0x1d9   : > { %v9836_v10 = vpop.f32.mrb[16].mxu0  ;;  %v13538_v6 = vadd.f32 %v9947_v32, %v2047_v30  ;;  %2620 = vmatprep.mubr.bf16.mxu1 %v16558_v42 }
 0x1da   : > { %v9837_v41 = vpop.f32.mrb[17].mxu0 }
 0x1db   : > { %v9838_v11 = vadd.f32 %v9837_v41, %v9836_v10  ;;  %v9839_v43 = vpop.f32.mrb[18].mxu0  ;;  %v9948_v7 = vpop.f32.mrb[16].mxu1 }
 0x1dc   : > { %v9840_v19 = vpop.f32.mrb[19].mxu0  ;;  %v9949_v14 = vpop.f32.mrb[17].mxu1 }
 0x1dd   : > { %v9841_v20 = vadd.f32 %v9840_v19, %v9839_v43  ;;  %v2052_v60 = vadd.f32 %v9838_v11, %v13490_v27  ;;  %v9950_v59 = vadd.f32 %v9949_v14, %v9948_v7  ;;  %v9951_v16 = vpop.f32.mrb[18].mxu1 }
 0x1de   : > { %2460 = vmatmul.mubr.bf16.gmra.mrb[124].mxu0 %v1147_v48  ;;  %v9952_v62 = vpop.f32.mrb[19].mxu1 }
 0x1df   : > { %11732 = vmatprep.mubr.bf16.mxu0 %v13000_v24  ;;  %v2055_v38 = vadd.f32 %v9841_v20, %v13490_v27  ;;  %v13544_v37 = vadd.f32 %v9950_v59, %v2052_v60  ;;  %v9953_v5 = vadd.f32 %v9952_v62, %v9951_v16 }
 0x1e0   : > { %2621 = vmatmul.mubr.bf16.gmra.mrb[124].mxu1 %v12925_v34 }
 0x1e1   : > { %v9842_v57 = vpop.f32.mrb[20].mxu0  ;;  %v13547_v45 = vadd.f32 %v9953_v5, %v2055_v38  ;;  %4468 = vmatprep.mubr.bf16.mxu1 %v16558_v42 }
 0x1e2   : > { %v9843_v21 = vpop.f32.mrb[21].mxu0 }
 0x1e3   : > { %v9844_v39 = vadd.f32 %v9843_v21, %v9842_v57  ;;  %v9845_v9 = vpop.f32.mrb[22].mxu0  ;;  %v9954_v51 = vpop.f32.mrb[20].mxu1 }
 0x1e4   : > { %v9846_v48 = vpop.f32.mrb[23].mxu0  ;;  %v9955_v63 = vpop.f32.mrb[21].mxu1 }
 0x1e5   : > { %v9847_v24 = vadd.f32 %v9846_v48, %v9845_v9  ;;  %v2060_v61 = vadd.f32 %v9844_v39, %v13490_v27  ;;  %v9956_v25 = vadd.f32 %v9955_v63, %v9954_v51  ;;  %v9957_v12 = vpop.f32.mrb[22].mxu1 }
 0x1e6   : > { %11733 = vmatmul.mubr.bf16.vlgmr.msra.gmra.mrb[128].mxu0 %v13040_v53  ;;  %v9958_v1 = vpop.f32.mrb[23].mxu1 }
 0x1e7   : > { %11736 = vmatprep.mubr.bf16.mxu0 %v13096_v47  ;;  %v2063_v28 = vadd.f32 %v9847_v24, %v13490_v27  ;;  %v13554_v23 = vadd.f32 %v9956_v25, %v2060_v61  ;;  %v9959_v30 = vadd.f32 %v9958_v1, %v9957_v12 }
 0x1e9   : > { %v9848_v40 = vpop.f32.mrb[24].mxu0  ;;  %v13556_v10 = vadd.f32 %v9959_v30, %v2063_v28 }
 0x1ea   : > { %v9849_v58 = vpop.f32.mrb[25].mxu0 }
 0x1eb   : > { %v9850_v55 = vadd.f32 %v9849_v58, %v9848_v40  ;;  %v9851_v4 = vpop.f32.mrb[26].mxu0  ;;  %v9960_v11 = vpop.f32.mrb[24].mxu1 }
 0x1ec   : > { %v9852_v32 = vpop.f32.mrb[27].mxu0  ;;  %v9961_v47 = vpop.f32.mrb[25].mxu1 }
 0x1ed   : > { %v9853_v41 = vadd.f32 %v9852_v32, %v9851_v4  ;;  %v2068_v53 = vadd.f32 %v9850_v55, %v13490_v27  ;;  %v9962_v19 = vadd.f32 %v9961_v47, %v9960_v11  ;;  %v9963_v20 = vpop.f32.mrb[26].mxu1 }
 0x1ee   : > { %11737 = vmatmul.mubr.bf16.gmra.mrb[132].mxu0 %v13150_v46  ;;  %v9964_v60 = vpop.f32.mrb[27].mxu1 }
 0x1ef   : > { %11740 = vmatprep.mubr.bf16.mxu0 %v13185_v35  ;;  %v2071_v43 = vadd.f32 %v9853_v41, %v13490_v27  ;;  %v13562_v14 = vadd.f32 %v9962_v19, %v2068_v53  ;;  %v9965_v38 = vadd.f32 %v9964_v60, %v9963_v20 }
 0x1f1   : > { %v9854_v7 = vpop.f32.mrb[28].mxu0  ;;  %v13564_v57 = vadd.f32 %v9965_v38, %v2071_v43 }
 0x1f2   : > { %v9855_v59 = vpop.f32.mrb[29].mxu0 }
 0x1f3   : > { %v9856_v16 = vadd.f32 %v9855_v59, %v9854_v7  ;;  %v9857_v62 = vpop.f32.mrb[30].mxu0  ;;  %v9966_v39 = vpop.f32.mrb[28].mxu1 }
 0x1f4   : > { %v9858_v5 = vpop.f32.mrb[31].mxu0  ;;  %v9967_v35 = vpop.f32.mrb[29].mxu1 }
 0x1f5   : > { %v9859_v21 = vadd.f32 %v9858_v5, %v9857_v62  ;;  %v2076_v46 = vadd.f32 %v9856_v16, %v13490_v27  ;;  %v9968_v48 = vadd.f32 %v9967_v35, %v9966_v39  ;;  %v9969_v24 = vpop.f32.mrb[30].mxu1 }
 0x1f6   : > { %11741 = vmatmul.mubr.bf16.gmra.mrb[136].mxu0 %v13215_v44  ;;  %v9970_v61 = vpop.f32.mrb[31].mxu1 }
 0x1f7   : > { %11744 = vmatprep.mubr.bf16.mxu0 %v13245_v49  ;;  %v2079_v9 = vadd.f32 %v9859_v21, %v13490_v27  ;;  %v13570_v63 = vadd.f32 %v9968_v48, %v2076_v46  ;;  %v9971_v28 = vadd.f32 %v9970_v61, %v9969_v24 }
 0x1f9   : > { %v9860_v51 = vpop.f32.mrb[32].mxu0  ;;  %v13572_v40 = vadd.f32 %v9971_v28, %v2079_v9 }
 0x1fa   : > { %v9861_v25 = vpop.f32.mrb[33].mxu0 }
 0x1fb   : > { %v9862_v12 = vadd.f32 %v9861_v25, %v9860_v51  ;;  %v9863_v1 = vpop.f32.mrb[34].mxu0  ;;  %v9972_v55 = vpop.f32.mrb[32].mxu1 }
 0x1fc   : > { %v9864_v30 = vpop.f32.mrb[35].mxu0  ;;  %v9973_v49 = vpop.f32.mrb[33].mxu1 }
 0x1fd   : > { %v9865_v58 = vadd.f32 %v9864_v30, %v9863_v1  ;;  %v2084_v44 = vadd.f32 %v9862_v12, %v13490_v27  ;;  %v9974_v32 = vadd.f32 %v9973_v49, %v9972_v55  ;;  %v9975_v41 = vpop.f32.mrb[34].mxu1 }
 0x1fe   : > { %11745 = vmatmul.mubr.bf16.gmra.mrb[140].mxu0 %v13279_v2  ;;  %v9976_v53 = vpop.f32.mrb[35].mxu1 }
 0x1ff   : > { %11748 = vmatprep.mubr.bf16.mxu0 %v13315_v13  ;;  %v2087_v4 = vadd.f32 %v9865_v58, %v13490_v27  ;;  %v13578_v47 = vadd.f32 %v9974_v32, %v2084_v44  ;;  %v9977_v43 = vadd.f32 %v9976_v53, %v9975_v41 }
 0x201   : > { %v9866_v11 = vpop.f32.mrb[36].mxu0  ;;  %v13580_v7 = vadd.f32 %v9977_v43, %v2087_v4 }
 0x202   : > { %v9867_v19 = vpop.f32.mrb[37].mxu0 }
 0x203   : > { %v9868_v20 = vadd.f32 %v9867_v19, %v9866_v11  ;;  %v9869_v60 = vpop.f32.mrb[38].mxu0  ;;  %v9978_v16 = vpop.f32.mrb[36].mxu1 }
 0x204   : > { %v9870_v38 = vpop.f32.mrb[39].mxu0  ;;  %v9979_v13 = vpop.f32.mrb[37].mxu1 }
 0x205   : > { %v9871_v59 = vadd.f32 %v9870_v38, %v9869_v60  ;;  %v2092_v2 = vadd.f32 %v9868_v20, %v13490_v27  ;;  %v9980_v5 = vadd.f32 %v9979_v13, %v9978_v16  ;;  %v9981_v21 = vpop.f32.mrb[38].mxu1 }
 0x206   : > { %11749 = vmatmul.mubr.bf16.gmra.mrb[144].mxu0 %v13349_v33  ;;  %v9982_v46 = vpop.f32.mrb[39].mxu1 }
 0x207   : > { %11752 = vmatprep.mubr.bf16.mxu0 %v13379_v52  ;;  %v2095_v62 = vadd.f32 %v9871_v59, %v13490_v27  ;;  %v13586_v35 = vadd.f32 %v9980_v5, %v2092_v2  ;;  %v9983_v9 = vadd.f32 %v9982_v46, %v9981_v21 }
 0x209   : > { %v9872_v39 = vpop.f32.mrb[40].mxu0  ;;  %v13588_v51 = vadd.f32 %v9983_v9, %v2095_v62 }
 0x20a   : > { %v9873_v48 = vpop.f32.mrb[41].mxu0 }
 0x20b   : > { %v9874_v24 = vadd.f32 %v9873_v48, %v9872_v39  ;;  %v9875_v61 = vpop.f32.mrb[42].mxu0  ;;  %v9984_v12 = vpop.f32.mrb[40].mxu1 }
 0x20c   : > { %v9876_v28 = vpop.f32.mrb[43].mxu0  ;;  %v9985_v52 = vpop.f32.mrb[41].mxu1 }
 0x20d   : > { %v9877_v25 = vadd.f32 %v9876_v28, %v9875_v61  ;;  %v2100_v33 = vadd.f32 %v9874_v24, %v13490_v27  ;;  %v9986_v30 = vadd.f32 %v9985_v52, %v9984_v12  ;;  %v9987_v58 = vpop.f32.mrb[42].mxu1 }
 0x20e   : > { %11753 = vmatmul.mubr.bf16.gmra.mrb[148].mxu0 %v13407_v0  ;;  %v9988_v44 = vpop.f32.mrb[43].mxu1 }
 0x20f   : > { %11756 = vmatprep.mubr.bf16.mxu0 %v13425_v18  ;;  %v2103_v1 = vadd.f32 %v9877_v25, %v13490_v27  ;;  %v13594_v49 = vadd.f32 %v9986_v30, %v2100_v33  ;;  %v9989_v4 = vadd.f32 %v9988_v44, %v9987_v58 }
 0x211   : > { %v9878_v55 = vpop.f32.mrb[44].mxu0  ;;  %v13596_v11 = vadd.f32 %v9989_v4, %v2103_v1 }
 0x212   : > { %v9879_v32 = vpop.f32.mrb[45].mxu0 }
 0x213   : > { %v9880_v41 = vadd.f32 %v9879_v32, %v9878_v55  ;;  %v9881_v53 = vpop.f32.mrb[46].mxu0  ;;  %v9990_v20 = vpop.f32.mrb[44].mxu1 }
 0x214   : > { %v9882_v43 = vpop.f32.mrb[47].mxu0  ;;  %v9991_v18 = vpop.f32.mrb[45].mxu1 }
 0x215   : > { %v9883_v19 = vadd.f32 %v9882_v43, %v9881_v53  ;;  %v2108_v0 = vadd.f32 %v9880_v41, %v13490_v27  ;;  %v9992_v38 = vadd.f32 %v9991_v18, %v9990_v20  ;;  %v9993_v59 = vpop.f32.mrb[46].mxu1 }
 0x216   : > { %11757 = vmatmul.mubr.bf16.gmra.mrb[152].mxu0 %v13438_v15  ;;  %v9994_v2 = vpop.f32.mrb[47].mxu1 }
 0x217   : > { %11760 = vmatprep.mubr.bf16.mxu0 %v13527_v54  ;;  %v2111_v60 = vadd.f32 %v9883_v19, %v13490_v27  ;;  %v13602_v13 = vadd.f32 %v9992_v38, %v2108_v0  ;;  %v9995_v62 = vadd.f32 %v9994_v2, %v9993_v59 }
 0x219   : > { %v9884_v16 = vpop.f32.mrb[48].mxu0  ;;  %v13604_v39 = vadd.f32 %v9995_v62, %v2111_v60 }
 0x21a   : > { %v9885_v5 = vpop.f32.mrb[49].mxu0 }
 0x21b   : > { %v9886_v21 = vadd.f32 %v9885_v5, %v9884_v16  ;;  %v9887_v46 = vpop.f32.mrb[50].mxu0  ;;  %v9996_v24 = vpop.f32.mrb[48].mxu1 }
 0x21c   : > { %v9888_v9 = vpop.f32.mrb[51].mxu0  ;;  %v9997_v54 = vpop.f32.mrb[49].mxu1 }
 0x21d   : > { %v9889_v48 = vadd.f32 %v9888_v9, %v9887_v46  ;;  %v2116_v15 = vadd.f32 %v9886_v21, %v13490_v27  ;;  %v9998_v28 = vadd.f32 %v9997_v54, %v9996_v24  ;;  %v9999_v25 = vpop.f32.mrb[50].mxu1 }
 0x21e   : > { %11761 = vmatmul.mubr.bf16.gmra.mrb[156].mxu0 %v12948_v50  ;;  %v10000_v33 = vpop.f32.mrb[51].mxu1 }
 0x21f   : > { %v2119_v61 = vadd.f32 %v9889_v48, %v13490_v27  ;;  %v13609_v52 = vadd.f32 %v9998_v28, %v2116_v15  ;;  %v10001_v1 = vadd.f32 %v10000_v33, %v9999_v25 }
 0x221   : > { %v9890_v12 = vpop.f32.mrb[52].mxu0  ;;  %v13611_v55 = vadd.f32 %v10001_v1, %v2119_v61 }
 0x222   : > { %v9891_v30 = vpop.f32.mrb[53].mxu0 }
 0x223   : > { %v9892_v58 = vadd.f32 %v9891_v30, %v9890_v12  ;;  %v9893_v44 = vpop.f32.mrb[54].mxu0  ;;  %v10002_v53 = vpop.f32.mrb[52].mxu1 }
 0x224   : > { %v9894_v4 = vpop.f32.mrb[55].mxu0  ;;  %v10003_v43 = vpop.f32.mrb[53].mxu1 }
 0x225   : > { %v9895_v32 = vadd.f32 %v9894_v4, %v9893_v44  ;;  %v2124_v41 = vadd.f32 %v9892_v58, %v13490_v27  ;;  %v10004_v0 = vadd.f32 %v10003_v43, %v10002_v53  ;;  %v10005_v20 = vpop.f32.mrb[54].mxu1 }
 0x226   : > { %v10006_v18 = vpop.f32.mrb[55].mxu1 }
 0x227   : > { %v2127_v19 = vadd.f32 %v9895_v32, %v13490_v27  ;;  %v13615_v38 = vadd.f32 %v10004_v0, %v2124_v41  ;;  %v10007_v59 = vadd.f32 %v10006_v18, %v10005_v20 }
 0x229   : > { %v9896_v60 = vpop.f32.mrb[56].mxu0  ;;  %v13617_v5 = vadd.f32 %v10007_v59, %v2127_v19 }
 0x22a   : > { %v9897_v2 = vpop.f32.mrb[57].mxu0 }
 0x22b   : > { %v9898_v16 = vadd.f32 %v9897_v2, %v9896_v60  ;;  %v9899_v62 = vpop.f32.mrb[58].mxu0  ;;  %v10008_v48 = vpop.f32.mrb[56].mxu1 }
 0x22c   : > { %v9900_v21 = vpop.f32.mrb[59].mxu0  ;;  %v10009_v15 = vpop.f32.mrb[57].mxu1 }
 0x22d   : > { %v9901_v46 = vadd.f32 %v9900_v21, %v9899_v62  ;;  %v2132_v9 = vadd.f32 %v9898_v16, %v13490_v27  ;;  %v10010_v54 = vadd.f32 %v10009_v15, %v10008_v48  ;;  %v10011_v61 = vpop.f32.mrb[58].mxu1 }
 0x22e   : > { %v10012_v28 = vpop.f32.mrb[59].mxu1 }
 0x22f   : > { %v2135_v24 = vadd.f32 %v9901_v46, %v13490_v27  ;;  %v13621_v33 = vadd.f32 %v10010_v54, %v2132_v9  ;;  %v10013_v12 = vadd.f32 %v10012_v28, %v10011_v61 }
 0x231   : > { %v9902_v25 = vpop.f32.mrb[60].mxu0  ;;  %v13623_v44 = vadd.f32 %v10013_v12, %v2135_v24 }
 0x232   : > { %v9903_v1 = vpop.f32.mrb[61].mxu0 }
 0x233   : > { %v9904_v30 = vadd.f32 %v9903_v1, %v9902_v25  ;;  %v9905_v58 = vpop.f32.mrb[62].mxu0  ;;  %v10014_v53 = vpop.f32.mrb[60].mxu1 }
 0x234   : > { %v9906_v4 = vpop.f32.mrb[63].mxu0  ;;  %v10015_v43 = vpop.f32.mrb[61].mxu1 }
 0x235   : > { %v9907_v32 = vadd.f32 %v9906_v4, %v9905_v58  ;;  %v2140_v41 = vadd.f32 %v9904_v30, %v13490_v27  ;;  %v10016_v0 = vadd.f32 %v10015_v43, %v10014_v53  ;;  %v10017_v20 = vpop.f32.mrb[62].mxu1 }
 0x236   : > { %v10018_v18 = vpop.f32.mrb[63].mxu1 }
 0x237   : > { %v2143_v19 = vadd.f32 %v9907_v32, %v13490_v27  ;;  %v13627_v59 = vadd.f32 %v10016_v0, %v2140_v41  ;;  %v10019_v2 = vadd.f32 %v10018_v18, %v10017_v20 }
 0x239   : > { %v10036_v60 = vpop.f32.mrb[64].mxu0  ;;  %v13629_v46 = vadd.f32 %v10019_v2, %v2143_v19 }
 0x23a   : > { %v10037_v16 = vpop.f32.mrb[65].mxu0 }
 0x23b   : > { %v10038_v62 = vadd.f32 %v10037_v16, %v10036_v60  ;;  %v10039_v21 = vpop.f32.mrb[66].mxu0  ;;  %v10148_v24 = vpop.f32.mrb[64].mxu1 }
 0x23c   : > { %v10040_v9 = vpop.f32.mrb[67].mxu0  ;;  %v10149_v27 = vpop.f32.mrb[65].mxu1 }
 0x23d   : > { %v2342_v48 = vadd.f32 %v10038_v62, %v13497_v31  ;;  %v10041_v15 = vadd.f32 %v10040_v9, %v10039_v21  ;;  %v10150_v61 = vadd.f32 %v10149_v27, %v10148_v24  ;;  %v10151_v28 = vpop.f32.mrb[66].mxu1 }
 0x23e   : > { %v10152_v25 = vpop.f32.mrb[67].mxu1 }
 0x23f   : > { %v2345_v54 = vadd.f32 %v10041_v15, %v13500_v3  ;;  %v10153_v1 = vadd.f32 %v10152_v25, %v10151_v28  ;;  %v13633_v58 = vadd.f32 %v10150_v61, %v2342_v48 }
 0x241   : > { %v10042_v12 = vpop.f32.mrb[68].mxu0  ;;  %v13635_v53 = vadd.f32 %v10153_v1, %v2345_v54 }
 0x242   : > { %v10043_v30 = vpop.f32.mrb[69].mxu0 }
 0x243   : > { %v10044_v4 = vadd.f32 %v10043_v30, %v10042_v12  ;;  %v10045_v32 = vpop.f32.mrb[70].mxu0  ;;  %v10154_v19 = vpop.f32.mrb[68].mxu1 }
 0x244   : > { %v10046_v41 = vpop.f32.mrb[71].mxu0  ;;  %v10155_v0 = vpop.f32.mrb[69].mxu1 }
 0x245   : > { %v2350_v31 = vadd.f32 %v10044_v4, %v13507_v8  ;;  %v10047_v43 = vadd.f32 %v10046_v41, %v10045_v32  ;;  %v10156_v20 = vadd.f32 %v10155_v0, %v10154_v19  ;;  %v10157_v18 = vpop.f32.mrb[70].mxu1 }
 0x246   : > { %v10158_v60 = vpop.f32.mrb[71].mxu1 }
 0x247   : > { %v2353_v3 = vadd.f32 %v10047_v43, %v13510_v56  ;;  %v10159_v16 = vadd.f32 %v10158_v60, %v10157_v18  ;;  %v13639_v21 = vadd.f32 %v10156_v20, %v2350_v31 }
 0x249   : > { %v10048_v2 = vpop.f32.mrb[72].mxu0  ;;  %v13641_v24 = vadd.f32 %v10159_v16, %v2353_v3 }
 0x24a   : > { %v10049_v62 = vpop.f32.mrb[73].mxu0 }
 0x24b   : > { %v10050_v9 = vadd.f32 %v10049_v62, %v10048_v2  ;;  %v10051_v48 = vpop.f32.mrb[74].mxu0  ;;  %v10160_v27 = vpop.f32.mrb[72].mxu1 }
 0x24c   : > { %v10052_v15 = vpop.f32.mrb[75].mxu0  ;;  %v10161_v61 = vpop.f32.mrb[73].mxu1 }
 0x24d   : > { %v2358_v8 = vadd.f32 %v10050_v9, %v13524_v17  ;;  %v10053_v54 = vadd.f32 %v10052_v15, %v10051_v48  ;;  %v10162_v28 = vadd.f32 %v10161_v61, %v10160_v27  ;;  %v10163_v25 = vpop.f32.mrb[74].mxu1 }
 0x24e   : > { %v10164_v12 = vpop.f32.mrb[75].mxu1 }
 0x24f   : > { %v2361_v56 = vadd.f32 %v10053_v54, %v13529_v26  ;;  %v10165_v30 = vadd.f32 %v10164_v12, %v10163_v25  ;;  %v13645_v32 = vadd.f32 %v10162_v28, %v2358_v8 }
 0x251   : > { %v10054_v1 = vpop.f32.mrb[76].mxu0  ;;  %v13647_v19 = vadd.f32 %v10165_v30, %v2361_v56 }
 0x252   : > { %v10055_v4 = vpop.f32.mrb[77].mxu0 }
 0x253   : > { %v10056_v41 = vadd.f32 %v10055_v4, %v10054_v1  ;;  %v10057_v31 = vpop.f32.mrb[78].mxu0  ;;  %v10166_v0 = vpop.f32.mrb[76].mxu1 }
 0x254   : > { %v10058_v43 = vpop.f32.mrb[79].mxu0  ;;  %v10167_v20 = vpop.f32.mrb[77].mxu1 }
 0x255   : > { %v2366_v17 = vadd.f32 %v10056_v41, %v13535_v22  ;;  %v10059_v3 = vadd.f32 %v10058_v43, %v10057_v31  ;;  %v10168_v18 = vadd.f32 %v10167_v20, %v10166_v0  ;;  %v10169_v60 = vpop.f32.mrb[78].mxu1 }
 0x256   : > { %v10170_v2 = vpop.f32.mrb[79].mxu1 }
 0x257   : > { %v2369_v26 = vadd.f32 %v10059_v3, %v13538_v6  ;;  %v10171_v62 = vadd.f32 %v10170_v2, %v10169_v60  ;;  %v13651_v48 = vadd.f32 %v10168_v18, %v2366_v17 }
 0x259   : > { %v10060_v16 = vpop.f32.mrb[80].mxu0  ;;  %v13653_v27 = vadd.f32 %v10171_v62, %v2369_v26 }
 0x25a   : > { %v10061_v9 = vpop.f32.mrb[81].mxu0 }
 0x25b   : > { %v10062_v15 = vadd.f32 %v10061_v9, %v10060_v16  ;;  %v10063_v8 = vpop.f32.mrb[82].mxu0  ;;  %v10172_v61 = vpop.f32.mrb[80].mxu1 }
 0x25c   : > { %v10064_v54 = vpop.f32.mrb[83].mxu0  ;;  %v10173_v28 = vpop.f32.mrb[81].mxu1 }
 0x25d   : > { %v2374_v22 = vadd.f32 %v10062_v15, %v13544_v37  ;;  %v10065_v56 = vadd.f32 %v10064_v54, %v10063_v8  ;;  %v10174_v25 = vadd.f32 %v10173_v28, %v10172_v61  ;;  %v10175_v12 = vpop.f32.mrb[82].mxu1 }
 0x25e   : > { %v10176_v1 = vpop.f32.mrb[83].mxu1 }
 0x25f   : > { %v2377_v6 = vadd.f32 %v10065_v56, %v13547_v45  ;;  %v10177_v4 = vadd.f32 %v10176_v1, %v10175_v12  ;;  %v13657_v31 = vadd.f32 %v10174_v25, %v2374_v22 }
 0x261   : > { %v10066_v30 = vpop.f32.mrb[84].mxu0  ;;  %v13659_v0 = vadd.f32 %v10177_v4, %v2377_v6 }
 0x262   : > { %v10067_v41 = vpop.f32.mrb[85].mxu0 }
 0x263   : > { %v10068_v43 = vadd.f32 %v10067_v41, %v10066_v30  ;;  %v10069_v17 = vpop.f32.mrb[86].mxu0  ;;  %v10178_v20 = vpop.f32.mrb[84].mxu1 }
 0x264   : > { %v10070_v3 = vpop.f32.mrb[87].mxu0  ;;  %v10179_v18 = vpop.f32.mrb[85].mxu1 }
 0x265   : > { %v2382_v37 = vadd.f32 %v10068_v43, %v13554_v23  ;;  %v10071_v26 = vadd.f32 %v10070_v3, %v10069_v17  ;;  %v10180_v60 = vadd.f32 %v10179_v18, %v10178_v20  ;;  %v10181_v2 = vpop.f32.mrb[86].mxu1 }
 0x266   : > { %v10182_v16 = vpop.f32.mrb[87].mxu1 }
 0x267   : > { %v2385_v45 = vadd.f32 %v10071_v26, %v13556_v10  ;;  %v10183_v9 = vadd.f32 %v10182_v16, %v10181_v2  ;;  %v13663_v8 = vadd.f32 %v10180_v60, %v2382_v37  ;;  %v12077_v16 = vld [vmem:[#allocation9] sm:$0xff]  }
 0x269   : > { %v10072_v62 = vpop.f32.mrb[88].mxu0  ;;  %v13665_v61 = vadd.f32 %v10183_v9, %v2385_v45  ;;  %v12076_v45 = vld [vmem:[#allocation9 + $0x40] sm:$0xff]  }
 0x26a   : > { %v10073_v15 = vpop.f32.mrb[89].mxu0  ;;  %10268 = vmatprep.subr.bf16.mxu1 %v12076_v45 }
 0x26b   : > { %v10074_v54 = vadd.f32 %v10073_v15, %v10072_v62  ;;  %v10075_v22 = vpop.f32.mrb[90].mxu0  ;;  %v10184_v28 = vpop.f32.mrb[88].mxu1  ;;  %10269 = vmatpush3.bf16.msra.mxu1 %v12077_v16 }
 0x26c   : > { %v10076_v56 = vpop.f32.mrb[91].mxu0  ;;  %v10185_v25 = vpop.f32.mrb[89].mxu1 }
 0x26d   : > { %v2390_v23 = vadd.f32 %v10074_v54, %v13562_v14  ;;  %v10077_v6 = vadd.f32 %v10076_v56, %v10075_v22  ;;  %v10186_v12 = vadd.f32 %v10185_v25, %v10184_v28  ;;  %v10187_v1 = vpop.f32.mrb[90].mxu1 }
 0x26e   : > { %v10188_v30 = vpop.f32.mrb[91].mxu1 }
 0x26f   : > { %v2393_v10 = vadd.f32 %v10077_v6, %v13564_v57  ;;  %v10189_v41 = vadd.f32 %v10188_v30, %v10187_v1  ;;  %v13669_v17 = vadd.f32 %v10186_v12, %v2390_v23 }
 0x271   : > { %v10078_v4 = vpop.f32.mrb[92].mxu0  ;;  %v13671_v20 = vadd.f32 %v10189_v41, %v2393_v10 }
 0x272   : > { %v10079_v43 = vpop.f32.mrb[93].mxu0 }
 0x273   : > { %v10080_v3 = vadd.f32 %v10079_v43, %v10078_v4  ;;  %v10081_v37 = vpop.f32.mrb[94].mxu0  ;;  %v10190_v60 = vpop.f32.mrb[92].mxu1 }
 0x274   : > { %v10082_v26 = vpop.f32.mrb[95].mxu0  ;;  %v10191_v2 = vpop.f32.mrb[93].mxu1 }
 0x275   : > { %v2398_v14 = vadd.f32 %v10080_v3, %v13570_v63  ;;  %v10083_v18 = vadd.f32 %v10082_v26, %v10081_v37  ;;  %v10192_v62 = vadd.f32 %v10191_v2, %v10190_v60  ;;  %v10193_v9 = vpop.f32.mrb[94].mxu1 }
 0x276   : > { %v10194_v15 = vpop.f32.mrb[95].mxu1 }
 0x277   : > { %v2401_v57 = vadd.f32 %v10083_v18, %v13572_v40  ;;  %v10195_v22 = vadd.f32 %v10194_v15, %v10193_v9  ;;  %v13675_v23 = vadd.f32 %v10192_v62, %v2398_v14 }
 0x279   : > { %v10084_v54 = vpop.f32.mrb[96].mxu0  ;;  %v13677_v63 = vadd.f32 %v10195_v22, %v2401_v57 }
 0x27a   : > { %v10085_v56 = vpop.f32.mrb[97].mxu0 }
 0x27b   : > { %v10086_v6 = vadd.f32 %v10085_v56, %v10084_v54  ;;  %v10087_v28 = vpop.f32.mrb[98].mxu0  ;;  %v10196_v40 = vpop.f32.mrb[96].mxu1 }
 0x27c   : > { %v10088_v10 = vpop.f32.mrb[99].mxu0  ;;  %v10197_v30 = vpop.f32.mrb[97].mxu1 }
 0x27d   : > { %v2406_v25 = vadd.f32 %v10086_v6, %v13578_v47  ;;  %v10089_v12 = vadd.f32 %v10088_v10, %v10087_v28  ;;  %v10198_v4 = vadd.f32 %v10197_v30, %v10196_v40  ;;  %v10199_v41 = vpop.f32.mrb[98].mxu1 }
 0x27e   : > { %v10200_v43 = vpop.f32.mrb[99].mxu1 }
 0x27f   : > { %v2409_v1 = vadd.f32 %v10089_v12, %v13580_v7  ;;  %v10201_v37 = vadd.f32 %v10200_v43, %v10199_v41  ;;  %v13681_v45 = vadd.f32 %v10198_v4, %v2406_v25 }
 0x281   : > { %v10090_v3 = vpop.f32.mrb[100].mxu0  ;;  %v13683_v57 = vadd.f32 %v10201_v37, %v2409_v1 }
 0x282   : > { %v10091_v26 = vpop.f32.mrb[101].mxu0 }
 0x283   : > { %v10092_v14 = vadd.f32 %v10091_v26, %v10090_v3  ;;  %v10093_v18 = vpop.f32.mrb[102].mxu0  ;;  %v10202_v16 = vpop.f32.mrb[100].mxu1 }
 0x284   : > { %v10094_v60 = vpop.f32.mrb[103].mxu0  ;;  %v10203_v62 = vpop.f32.mrb[101].mxu1 }
 0x285   : > { %v2414_v47 = vadd.f32 %v10092_v14, %v13586_v35  ;;  %v10095_v2 = vadd.f32 %v10094_v60, %v10093_v18  ;;  %v10204_v9 = vadd.f32 %v10203_v62, %v10202_v16  ;;  %v10205_v15 = vpop.f32.mrb[102].mxu1 }
 0x286   : > { %v10206_v54 = vpop.f32.mrb[103].mxu1 }
 0x287   : > { %v2417_v7 = vadd.f32 %v10095_v2, %v13588_v51  ;;  %v10207_v56 = vadd.f32 %v10206_v54, %v10205_v15  ;;  %v13687_v28 = vadd.f32 %v10204_v9, %v2414_v47  ;;  %v12078_v15 = vld [vmem:[#allocation9 + $0x48] sm:$0xff]  }
 0x288   : > { %10270 = vmatprep.subr.bf16.mxu1 %v12078_v15  ;;  %v12087_v15 = vld [vmem:[#allocation9 + $0x88] sm:$0xff]  }
 0x289   : > { %v10096_v22 = vpop.f32.mrb[104].mxu0  ;;  %v13689_v40 = vadd.f32 %v10207_v56, %v2417_v7  ;;  %v12079_v56 = vld [vmem:[#allocation9 + $0x8] sm:$0xff]  }
 0x28a   : > { %v10097_v6 = vpop.f32.mrb[105].mxu0  ;;  %10271 = vmatpush3.bf16.msra.mxu1 %v12079_v56 }
 0x28b   : > { %v10098_v10 = vadd.f32 %v10097_v6, %v10096_v22  ;;  %v10099_v25 = vpop.f32.mrb[106].mxu0  ;;  %v10208_v30 = vpop.f32.mrb[104].mxu1 }
 0x28c   : > { %v10100_v12 = vpop.f32.mrb[107].mxu0  ;;  %v10209_v4 = vpop.f32.mrb[105].mxu1 }
 0x28d   : > { %v2422_v35 = vadd.f32 %v10098_v10, %v13594_v49  ;;  %v10101_v1 = vadd.f32 %v10100_v12, %v10099_v25  ;;  %v10210_v41 = vadd.f32 %v10209_v4, %v10208_v30  ;;  %v10211_v43 = vpop.f32.mrb[106].mxu1 }
 0x28e   : > { %v10212_v3 = vpop.f32.mrb[107].mxu1 }
 0x28f   : > { %v2425_v51 = vadd.f32 %v10101_v1, %v13596_v11  ;;  %v10213_v26 = vadd.f32 %v10212_v3, %v10211_v43  ;;  %v13693_v18 = vadd.f32 %v10210_v41, %v2422_v35  ;;  %v12082_v41 = vld [vmem:[#allocation9 + $0xc0] sm:$0xff]  }
 0x290   : > { %10380 = vmatprep.subr.bf16.mxu0 %v12082_v41 }
 0x291   : > { %v10102_v37 = vpop.f32.mrb[108].mxu0  ;;  %v13695_v16 = vadd.f32 %v10213_v26, %v2425_v51 }
 0x292   : > { %v10103_v14 = vpop.f32.mrb[109].mxu0 }
 0x293   : > { %v10104_v60 = vadd.f32 %v10103_v14, %v10102_v37  ;;  %v10105_v47 = vpop.f32.mrb[110].mxu0  ;;  %v10214_v62 = vpop.f32.mrb[108].mxu1  ;;  %v12083_v37 = vld [vmem:[#allocation9 + $0x80] sm:$0xff]  }
 0x294   : > { %v10106_v2 = vpop.f32.mrb[111].mxu0  ;;  %v10215_v9 = vpop.f32.mrb[109].mxu1  ;;  %10381 = vmatpush3.bf16.msra.mxu0 %v12083_v37 }
 0x295   : > { %v2430_v49 = vadd.f32 %v10104_v60, %v13602_v13  ;;  %v10107_v7 = vadd.f32 %v10106_v2, %v10105_v47  ;;  %v10216_v54 = vadd.f32 %v10215_v9, %v10214_v62  ;;  %v10217_v22 = vpop.f32.mrb[110].mxu1  ;;  %v12080_v13 = vld [vmem:[#allocation9 + $0x50] sm:$0xff]   ;;  %v12084_v47 = vld [vmem:[#allocation9 + $0x58] sm:$0xff]   ;;  %v12086_v62 = vld [vmem:[#allocation9 + $0xc8] sm:$0xff]  }
 0x296   : > { %v10218_v6 = vpop.f32.mrb[111].mxu1  ;;  %10272 = vmatprep.subr.bf16.mxu1 %v12080_v13  ;;  %10382 = vmatprep.subr.bf16.mxu0 %v12086_v62 }
 0x297   : > { %v2433_v11 = vadd.f32 %v10107_v7, %v13604_v39  ;;  %v10219_v25 = vadd.f32 %v10218_v6, %v10217_v22  ;;  %v13699_v35 = vadd.f32 %v10216_v54, %v2430_v49  ;;  %v12081_v39 = vld [vmem:[#allocation9 + $0x10] sm:$0xff]   ;;  %v12085_v7 = vld [vmem:[#allocation9 + $0x18] sm:$0xff]  }
 0x298   : > { %10273 = vmatpush3.bf16.msra.mxu1 %v12081_v39  ;;  %10383 = vmatpush3.bf16.msra.mxu0 %v12087_v15 }
 0x299   : > { %v10108_v10 = vpop.f32.mrb[112].mxu0  ;;  %v13701_v4 = vadd.f32 %v10219_v25, %v2433_v11  ;;  %10274 = vmatprep.subr.bf16.mxu1 %v12084_v47 }
 0x29a   : > { %v10109_v12 = vpop.f32.mrb[113].mxu0 }
 0x29b   : > { %v10110_v1 = vadd.f32 %v10109_v12, %v10108_v10  ;;  %v10111_v30 = vpop.f32.mrb[114].mxu0  ;;  %v10220_v26 = vpop.f32.mrb[112].mxu1  ;;  %v12089_v12 = vld [vmem:[#allocation9 + $0x20] sm:$0xff]  }
 0x29c   : > { %v10112_v51 = vpop.f32.mrb[115].mxu0  ;;  %v10221_v60 = vpop.f32.mrb[113].mxu1  ;;  %10275 = vmatpush3.bf16.msra.mxu1 %v12085_v7 }
 0x29d   : > { %v2438_v43 = vadd.f32 %v10110_v1, %v13609_v52  ;;  %v10113_v3 = vadd.f32 %v10112_v51, %v10111_v30  ;;  %v10222_v2 = vadd.f32 %v10221_v60, %v10220_v26  ;;  %v10223_v49 = vpop.f32.mrb[114].mxu1  ;;  %v12090_v1 = vld [vmem:[#allocation9 + $0xd0] sm:$0xff]   ;;  %v12093_v60 = vld [vmem:[#allocation9 + $0x28] sm:$0xff]  }
 0x29e   : > { %v10224_v11 = vpop.f32.mrb[115].mxu1  ;;  %v12091_v51 = vld [vmem:[#allocation9 + $0x90] sm:$0xff]   ;;  %10384 = vmatprep.subr.bf16.mxu0 %v12090_v1 }
 0x29f   : > { %v2441_v14 = vadd.f32 %v10113_v3, %v13611_v55  ;;  %v10225_v52 = vadd.f32 %v10224_v11, %v10223_v49  ;;  %v13705_v22 = vadd.f32 %v10222_v2, %v2438_v43  ;;  %v12088_v55 = vld [vmem:[#allocation9 + $0x60] sm:$0xff]   ;;  %10385 = vmatpush3.bf16.msra.mxu0 %v12091_v51  ;;  %v12092_v3 = vld [vmem:[#allocation9 + $0x68] sm:$0xff]   ;;  %v12095_v49 = vld [vmem:[#allocation9 + $0x98] sm:$0xff]  }
 0x2a0   : > { %10276 = vmatprep.subr.bf16.mxu1 %v12088_v55 }
 0x2a1   : > { %v10114_v9 = vpop.f32.mrb[116].mxu0  ;;  %v13707_v25 = vadd.f32 %v10225_v52, %v2441_v14  ;;  %10277 = vmatpush3.bf16.msra.mxu1 %v12089_v12  ;;  %v12094_v14 = vld [vmem:[#allocation9 + $0xd8] sm:$0xff]  }
 0x2a2   : > { %v10115_v54 = vpop.f32.mrb[117].mxu0  ;;  %10278 = vmatprep.subr.bf16.mxu1 %v12092_v3  ;;  %10386 = vmatprep.subr.bf16.mxu0 %v12094_v14 }
 0x2a3   : > { %v10116_v56 = vadd.f32 %v10115_v54, %v10114_v9  ;;  %v10117_v6 = vpop.f32.mrb[118].mxu0  ;;  %v10226_v39 = vpop.f32.mrb[116].mxu1  ;;  %10387 = vmatpush3.bf16.msra.mxu0 %v12095_v49  ;;  %v12097_v54 = vld [vmem:[#allocation9 + $0x30] sm:$0xff]  }
 0x2a4   : > { %v10118_v10 = vpop.f32.mrb[119].mxu0  ;;  %v10227_v43 = vpop.f32.mrb[117].mxu1 }
 0x2a5   : > { %v2446_v30 = vadd.f32 %v10116_v56, %v13615_v38  ;;  %v10119_v13 = vadd.f32 %v10118_v10, %v10117_v6  ;;  %v10228_v37 = vadd.f32 %v10227_v43, %v10226_v39  ;;  %v10229_v26 = vpop.f32.mrb[118].mxu1  ;;  %10279 = vmatpush3.bf16.msra.mxu1 %v12093_v60  ;;  %v12098_v56 = vld [vmem:[#allocation9 + $0xe0] sm:$0xff]   ;;  %v12101_v43 = vld [vmem:[#allocation9 + $0x38] sm:$0xff]  }
 0x2a6   : > { %v10230_v47 = vpop.f32.mrb[119].mxu1  ;;  %v12099_v10 = vld [vmem:[#allocation9 + $0xa0] sm:$0xff]   ;;  %10388 = vmatprep.subr.bf16.mxu0 %v12098_v56 }
 0x2a7   : > { %v2449_v41 = vadd.f32 %v10119_v13, %v13617_v5  ;;  %v10231_v38 = vadd.f32 %v10230_v47, %v10229_v26  ;;  %v13711_v62 = vadd.f32 %v10228_v37, %v2446_v30  ;;  %v12096_v5 = vld [vmem:[#allocation9 + $0x70] sm:$0xff]   ;;  %10389 = vmatpush3.bf16.msra.mxu0 %v12099_v10  ;;  %v12100_v13 = vld [vmem:[#allocation9 + $0x78] sm:$0xff]   ;;  %v12103_v26 = vld [vmem:[#allocation9 + $0xa8] sm:$0xff]  }
 0x2a8   : > { %10280 = vmatprep.subr.bf16.mxu1 %v12096_v5 }
 0x2a9   : > { %v10120_v2 = vpop.f32.mrb[120].mxu0  ;;  %v13713_v52 = vadd.f32 %v10231_v38, %v2449_v41  ;;  %10281 = vmatpush3.bf16.msra.mxu1 %v12097_v54  ;;  %v12102_v41 = vld [vmem:[#allocation9 + $0xe8] sm:$0xff]   ;;  %v12104_v38 = vld [vmem:[#allocation9 + $0xf0] sm:$0xff]  }
 0x2aa   : > { %v10121_v7 = vpop.f32.mrb[121].mxu0  ;;  %10282 = vmatprep.subr.bf16.mxu1 %v12100_v13  ;;  %10390 = vmatprep.subr.bf16.mxu0 %v12102_v41 }
 0x2ab   : > { %v10122_v11 = vadd.f32 %v10121_v7, %v10120_v2  ;;  %v10123_v9 = vpop.f32.mrb[122].mxu0  ;;  %v10232_v12 = vpop.f32.mrb[120].mxu1  ;;  %10391 = vmatpush3.bf16.msra.mxu0 %v12103_v26 }
 0x2ac   : > { %v10124_v15 = vpop.f32.mrb[123].mxu0  ;;  %v10233_v30 = vpop.f32.mrb[121].mxu1  ;;  %10392 = vmatprep.subr.bf16.mxu0 %v12104_v38 }
 0x2ad   : > { %v2454_v6 = vadd.f32 %v10122_v11, %v13621_v33  ;;  %v10125_v55 = vadd.f32 %v10124_v15, %v10123_v9  ;;  %v10234_v51 = vadd.f32 %v10233_v30, %v10232_v12  ;;  %v10235_v39 = vpop.f32.mrb[122].mxu1  ;;  %10283 = vmatpush3.bf16.msra.mxu1 %v12101_v43  ;;  %v12105_v9 = vld [vmem:[#allocation9 + $0xb0] sm:$0xff]  }
 0x2ae   : > { %v10236_v3 = vpop.f32.mrb[123].mxu1 }
 0x2af   : > { %v2457_v1 = vadd.f32 %v10125_v55, %v13623_v44  ;;  %v10237_v33 = vadd.f32 %v10236_v3, %v10235_v39  ;;  %v13717_v14 = vadd.f32 %v10234_v51, %v2454_v6  ;;  %10393 = vmatpush3.bf16.msra.mxu0 %v12105_v9  ;;  %v12106_v55 = vld [vmem:[#allocation9 + $0xf8] sm:$0xff]  }
 0x2b0   : > { %4469 = vmatmul.mubr.bf16.vlgmr.msra.gmra.mrb[128].mxu1 %v12925_v34  ;;  %10394 = vmatprep.subr.bf16.mxu0 %v12106_v55 }
 0x2b1   : > { %v10126_v37 = vpop.f32.mrb[124].mxu0  ;;  %v13719_v49 = vadd.f32 %v10237_v33, %v2457_v1  ;;  %v12107_v1 = vld [vmem:[#allocation9 + $0xb8] sm:$0xff]  }
 0x2b2   : > { %v10127_v60 = vpop.f32.mrb[125].mxu0 }
 0x2b3   : > { %v10128_v47 = vadd.f32 %v10127_v60, %v10126_v37  ;;  %v10129_v2 = vpop.f32.mrb[126].mxu0  ;;  %v10238_v5 = vpop.f32.mrb[124].mxu1  ;;  %10395 = vmatpush3.bf16.msra.mxu0 %v12107_v1 }
 0x2b4   : > { %v10130_v44 = vpop.f32.mrb[127].mxu0  ;;  %v10239_v54 = vpop.f32.mrb[125].mxu1 }
 0x2b5   : > { %v2462_v7 = vadd.f32 %v10128_v47, %v13627_v59  ;;  %v10131_v11 = vadd.f32 %v10130_v44, %v10129_v2  ;;  %v10240_v56 = vadd.f32 %v10239_v54, %v10238_v5  ;;  %v10241_v6 = vpop.f32.mrb[126].mxu1 }
 0x2b6   : > { %v10242_v10 = vpop.f32.mrb[127].mxu1 }
 0x2b7   : > { %v2465_v15 = vadd.f32 %v10131_v11, %v13629_v46  ;;  %v10243_v30 = vadd.f32 %v10242_v10, %v10241_v6  ;;  %v13727_v51 = vadd.f32 %v10240_v56, %v2462_v7 }
 0x2b9   : > { %v11734_v12 = vpop.f32.mrb[128].mxu0  ;;  %v13735_v3 = vadd.f32 %v10243_v30, %v2465_v15 }
 0x2ba   : > { %v13725_v13 = vadd.f32 %v11734_v12, %v13639_v21  ;;  %v2663_v59 = vpop.f32.mrb[129].mxu0 }
 0x2bb   : > { %v13730_v39 = vadd.f32 %v2663_v59, %v13633_v58  ;;  %v11735_v46 = vpop.f32.mrb[130].mxu0 }
 0x2bc   : > { %v13733_v43 = vadd.f32 %v11735_v46, %v13641_v24  ;;  %v2666_v41 = vpop.f32.mrb[131].mxu0  ;;  %v2831_v33 = vmul.f32 %v13725_v13, %v13725_v13 }
 0x2bd   : > { %v13738_v37 = vadd.f32 %v2666_v41, %v13635_v53  ;;  %v2829_v21 = vmul.f32 %v13730_v39, %v13730_v39 }
 0x2be   : > { %v2832_v44 = vmul.f32 %v13733_v43, %v13733_v43 }
 0x2bf   : > { %v2790_v26 = vadd.f32 %v13738_v37, %v13730_v39  ;;  %v2830_v58 = vmul.f32 %v13738_v37, %v13738_v37 }
 0x2c1   : > { %v2791_v24 = vadd.f32 %v2790_v26, %v13725_v13  ;;  %v2861_v60 = vadd.f32 %v2830_v58, %v2829_v21  ;;  %v11738_v47 = vpop.f32.mrb[132].mxu0 }
 0x2c2   : > { %v13750_v2 = vadd.f32 %v11738_v47, %v13651_v48  ;;  %v2679_v53 = vpop.f32.mrb[133].mxu0 }
 0x2c3   : > { %v2862_v38 = vadd.f32 %v2861_v60, %v2831_v33  ;;  %v13755_v7 = vadd.f32 %v2679_v53, %v13645_v32  ;;  %v2792_v11 = vadd.f32 %v2791_v24, %v13733_v43  ;;  %v11739_v9 = vpop.f32.mrb[134].mxu0 }
 0x2c4   : > { %v13759_v5 = vadd.f32 %v11739_v9, %v13653_v27  ;;  %v2682_v15 = vpop.f32.mrb[135].mxu0  ;;  %v2835_v27 = vmul.f32 %v13750_v2, %v13750_v2 }
 0x2c5   : > { %v2793_v54 = vadd.f32 %v2792_v11, %v13755_v7  ;;  %v2833_v48 = vmul.f32 %v13755_v7, %v13755_v7  ;;  %v2863_v56 = vadd.f32 %v2862_v38, %v2832_v44  ;;  %v13765_v6 = vadd.f32 %v2682_v15, %v13647_v19 }
 0x2c6   : > { %v2836_v19 = vmul.f32 %v13759_v5, %v13759_v5 }
 0x2c7   : > { %v2864_v55 = vadd.f32 %v2863_v56, %v2833_v48  ;;  %v2794_v32 = vadd.f32 %v2793_v54, %v13765_v6  ;;  %v2834_v10 = vmul.f32 %v13765_v6, %v13765_v6 }
 0x2c9   : > { %v2795_v12 = vadd.f32 %v2794_v32, %v13750_v2  ;;  %v2865_v1 = vadd.f32 %v2864_v55, %v2834_v10  ;;  %v11742_v30 = vpop.f32.mrb[136].mxu0 }
 0x2ca   : > { %v13774_v59 = vadd.f32 %v11742_v30, %v13663_v8  ;;  %v2695_v46 = vpop.f32.mrb[137].mxu0 }
 0x2cb   : > { %v2866_v41 = vadd.f32 %v2865_v1, %v2835_v27  ;;  %v13779_v21 = vadd.f32 %v2695_v46, %v13657_v31  ;;  %v2796_v26 = vadd.f32 %v2795_v12, %v13759_v5  ;;  %v11743_v58 = vpop.f32.mrb[138].mxu0 }
 0x2cc   : > { %v13783_v33 = vadd.f32 %v11743_v58, %v13665_v61  ;;  %v2698_v24 = vpop.f32.mrb[139].mxu0  ;;  %v2839_v61 = vmul.f32 %v13774_v59, %v13774_v59 }
 0x2cd   : > { %v2797_v60 = vadd.f32 %v2796_v26, %v13779_v21  ;;  %v2837_v8 = vmul.f32 %v13779_v21, %v13779_v21  ;;  %v2867_v47 = vadd.f32 %v2866_v41, %v2836_v19  ;;  %v13789_v53 = vadd.f32 %v2698_v24, %v13659_v0 }
 0x2ce   : > { %v2840_v0 = vmul.f32 %v13783_v33, %v13783_v33 }
 0x2cf   : > { %v2868_v44 = vadd.f32 %v2867_v47, %v2837_v8  ;;  %v2798_v31 = vadd.f32 %v2797_v60, %v13789_v53  ;;  %v2838_v38 = vmul.f32 %v13789_v53, %v13789_v53 }
 0x2d1   : > { %v2799_v11 = vadd.f32 %v2798_v31, %v13774_v59  ;;  %v2869_v9 = vadd.f32 %v2868_v44, %v2838_v38  ;;  %v11746_v15 = vpop.f32.mrb[140].mxu0 }
 0x2d2   : > { %v13798_v54 = vadd.f32 %v11746_v15, %v13675_v23  ;;  %v2711_v48 = vpop.f32.mrb[141].mxu0 }
 0x2d3   : > { %v2870_v56 = vadd.f32 %v2869_v9, %v2839_v61  ;;  %v13803_v55 = vadd.f32 %v2711_v48, %v13669_v17  ;;  %v2800_v32 = vadd.f32 %v2799_v11, %v13783_v33  ;;  %v11747_v10 = vpop.f32.mrb[142].mxu0 }
 0x2d4   : > { %v13807_v27 = vadd.f32 %v11747_v10, %v13677_v63  ;;  %v2714_v12 = vpop.f32.mrb[143].mxu0  ;;  %v2843_v63 = vmul.f32 %v13798_v54, %v13798_v54 }
 0x2d5   : > { %v2801_v1 = vadd.f32 %v2800_v32, %v13803_v55  ;;  %v2841_v23 = vmul.f32 %v13803_v55, %v13803_v55  ;;  %v2871_v30 = vadd.f32 %v2870_v56, %v2840_v0  ;;  %v13813_v46 = vadd.f32 %v2714_v12, %v13671_v20 }
 0x2d6   : > { %v2844_v20 = vmul.f32 %v13807_v27, %v13807_v27 }
 0x2d7   : > { %v2872_v19 = vadd.f32 %v2871_v30, %v2841_v23  ;;  %v2802_v17 = vadd.f32 %v2801_v1, %v13813_v46  ;;  %v2842_v41 = vmul.f32 %v13813_v46, %v13813_v46 }
 0x2d9   : > { %v2803_v26 = vadd.f32 %v2802_v17, %v13798_v54  ;;  %v2873_v58 = vadd.f32 %v2872_v19, %v2842_v41  ;;  %v11750_v24 = vpop.f32.mrb[144].mxu0 }
 0x2da   : > { %v13822_v60 = vadd.f32 %v11750_v24, %v13687_v28  ;;  %v2727_v8 = vpop.f32.mrb[145].mxu0 }
 0x2db   : > { %v2874_v47 = vadd.f32 %v2873_v58, %v2843_v63  ;;  %v13827_v44 = vadd.f32 %v2727_v8, %v13681_v45  ;;  %v2804_v31 = vadd.f32 %v2803_v26, %v13807_v27  ;;  %v11751_v38 = vpop.f32.mrb[146].mxu0 }
 0x2dc   : > { %v13831_v61 = vadd.f32 %v11751_v38, %v13689_v40  ;;  %v2730_v11 = vpop.f32.mrb[147].mxu0  ;;  %v2847_v40 = vmul.f32 %v13822_v60, %v13822_v60 }
 0x2dd   : > { %v2805_v9 = vadd.f32 %v2804_v31, %v13827_v44  ;;  %v2845_v28 = vmul.f32 %v13827_v44, %v13827_v44  ;;  %v2875_v15 = vadd.f32 %v2874_v47, %v2844_v20  ;;  %v13837_v48 = vadd.f32 %v2730_v11, %v13683_v57 }
 0x2de   : > { %v2848_v57 = vmul.f32 %v13831_v61, %v13831_v61 }
 0x2df   : > { %v2876_v0 = vadd.f32 %v2875_v15, %v2845_v28  ;;  %v2806_v45 = vadd.f32 %v2805_v9, %v13837_v48  ;;  %v2846_v56 = vmul.f32 %v13837_v48, %v13837_v48 }
 0x2e1   : > { %v2807_v32 = vadd.f32 %v2806_v45, %v13822_v60  ;;  %v2877_v10 = vadd.f32 %v2876_v0, %v2846_v56  ;;  %v11754_v12 = vpop.f32.mrb[148].mxu0 }
 0x2e2   : > { %v13846_v1 = vadd.f32 %v11754_v12, %v13699_v35  ;;  %v2743_v23 = vpop.f32.mrb[149].mxu0 }
 0x2e3   : > { %v2878_v30 = vadd.f32 %v2877_v10, %v2847_v40  ;;  %v13851_v19 = vadd.f32 %v2743_v23, %v13693_v18  ;;  %v2808_v17 = vadd.f32 %v2807_v32, %v13831_v61  ;;  %v11755_v41 = vpop.f32.mrb[150].mxu0 }
 0x2e4   : > { %v13855_v63 = vadd.f32 %v11755_v41, %v13701_v4  ;;  %v2746_v26 = vpop.f32.mrb[151].mxu0  ;;  %v2851_v4 = vmul.f32 %v13846_v1, %v13846_v1 }
 0x2e5   : > { %v2809_v58 = vadd.f32 %v2808_v17, %v13851_v19  ;;  %v2849_v35 = vmul.f32 %v13851_v19, %v13851_v19  ;;  %v2879_v24 = vadd.f32 %v2878_v30, %v2848_v57  ;;  %v13861_v8 = vadd.f32 %v2746_v26, %v13695_v16 }
 0x2e6   : > { %v2852_v16 = vmul.f32 %v13855_v63, %v13855_v63 }
 0x2e7   : > { %v2880_v20 = vadd.f32 %v2879_v24, %v2849_v35  ;;  %v2810_v18 = vadd.f32 %v2809_v58, %v13861_v8  ;;  %v2850_v47 = vmul.f32 %v13861_v8, %v13861_v8 }
 0x2e9   : > { %v2811_v31 = vadd.f32 %v2810_v18, %v13846_v1  ;;  %v2881_v38 = vadd.f32 %v2880_v20, %v2850_v47  ;;  %v11758_v11 = vpop.f32.mrb[152].mxu0 }
 0x2ea   : > { %v13870_v9 = vadd.f32 %v11758_v11, %v13711_v62  ;;  %v2759_v28 = vpop.f32.mrb[153].mxu0 }
 0x2eb   : > { %v2882_v15 = vadd.f32 %v2881_v38, %v2851_v4  ;;  %v13875_v0 = vadd.f32 %v2759_v28, %v13705_v22  ;;  %v2812_v45 = vadd.f32 %v2811_v31, %v13855_v63  ;;  %v11759_v56 = vpop.f32.mrb[154].mxu0 }
 0x2ec   : > { %v13879_v40 = vadd.f32 %v11759_v56, %v13713_v52  ;;  %v2762_v32 = vpop.f32.mrb[155].mxu0  ;;  %v2855_v52 = vmul.f32 %v13870_v9, %v13870_v9 }
 0x2ed   : > { %v2813_v10 = vadd.f32 %v2812_v45, %v13875_v0  ;;  %v2853_v62 = vmul.f32 %v13875_v0, %v13875_v0  ;;  %v2883_v12 = vadd.f32 %v2882_v15, %v2852_v16  ;;  %v13885_v23 = vadd.f32 %v2762_v32, %v13707_v25 }
 0x2ee   : > { %v2856_v25 = vmul.f32 %v13879_v40, %v13879_v40 }
 0x2ef   : > { %v2884_v57 = vadd.f32 %v2883_v12, %v2853_v62  ;;  %v2814_v22 = vadd.f32 %v2813_v10, %v13885_v23  ;;  %v2854_v30 = vmul.f32 %v13885_v23, %v13885_v23 }
 0x2f1   : > { %v2815_v17 = vadd.f32 %v2814_v22, %v13870_v9  ;;  %v2885_v41 = vadd.f32 %v2884_v57, %v2854_v30  ;;  %v11762_v26 = vpop.f32.mrb[156].mxu0  ;;  %v12108_v22 = vld [vmem:[#allocation9 + $0x140] sm:$0xff]  }
 0x2f2   : > { %v13894_v58 = vadd.f32 %v11762_v26, %v13727_v51  ;;  %v2775_v35 = vpop.f32.mrb[157].mxu0  ;;  %v12109_v30 = vld [vmem:[#allocation9 + $0x100] sm:$0xff]   ;;  %10492 = vmatprep.subr.bf16.mxu1 %v12108_v22  ;;  %v12116_v22 = vld [vmem:[#allocation9 + $0x150] sm:$0xff]  }
 0x2f3   : > { %v2886_v24 = vadd.f32 %v2885_v41, %v2855_v52  ;;  %v13899_v20 = vadd.f32 %v2775_v35, %v13717_v14  ;;  %v2816_v18 = vadd.f32 %v2815_v17, %v13879_v40  ;;  %v11763_v47 = vpop.f32.mrb[158].mxu0  ;;  %10493 = vmatpush3.bf16.msra.mxu1 %v12109_v30 }
 0x2f4   : > { %v13903_v4 = vadd.f32 %v11763_v47, %v13735_v3  ;;  %v2778_v31 = vpop.f32.mrb[159].mxu0  ;;  %v2859_v14 = vmul.f32 %v13894_v58, %v13894_v58 }
 0x2f5   : > { %v2817_v38 = vadd.f32 %v2816_v18, %v13899_v20  ;;  %v2857_v51 = vmul.f32 %v13899_v20, %v13899_v20  ;;  %v2887_v11 = vadd.f32 %v2886_v24, %v2856_v25  ;;  %v2779_v28 = vadd.f32 %v2778_v31, %v13719_v49  ;;  %v12110_v49 = vld [vmem:[#allocation9 + $0x1c0] sm:$0xff]  }
 0x2f6   : > { %v2860_v3 = vmul.f32 %v13903_v4, %v13903_v4  ;;  %10604 = vmatprep.subr.bf16.mxu0 %v12110_v49  ;;  %v2910_v49 = vld [vmem:[%s16405_s4] sm:$0x1] }
 0x2f7   : > { %v2888_v16 = vadd.f32 %v2887_v11, %v2857_v51  ;;  %v2818_v15 = vadd.f32 %v2817_v38, %v2779_v28  ;;  %v2858_v45 = vmul.f32 %v2779_v28, %v2779_v28 }
 0x2f9   : > { %v2819_v56 = vadd.f32 %v2818_v15, %v13894_v58  ;;  %v2889_v32 = vadd.f32 %v2888_v16, %v2858_v45  ;;  %v12112_v45 = vld [vmem:[#allocation9 + $0x148] sm:$0xff]  }
 0x2fa   : > { %10494 = vmatprep.subr.bf16.mxu1 %v12112_v45 }
 0x2fb   : > { %v2820_v10 = vadd.f32 %v2819_v56, %v13903_v4  ;;  %v2890_v62 = vadd.f32 %v2889_v32, %v2859_v14  ;;  %v12113_v14 = vld [vmem:[#allocation9 + $0x108] sm:$0xff]  }
 0x2fc   : > { %10495 = vmatpush3.bf16.msra.mxu1 %v12113_v14 }
 0x2fd   : > { %v2821_v12 = vrot.slane %v2820_v10, 4  ;;  %v2891_v57 = vadd.f32 %v2890_v62, %v2860_v3  ;;  %v2904_v3 = vlaneseq  ;;  %v2907_v62 = vld [vmem:[%s16404_s3] sm:$0x1]  ;;  %10496 = vmatprep.subr.bf16.mxu1 %v12116_v22 }
 0x2ff   : > { %v2822_v52 = vadd.f32 %v2821_v12, %v2820_v10  ;;  %v2892_v17 = vrot.slane %v2891_v57, 4  ;;  %v2905_v10 = vand.u32 127, %v2904_v3  ;;  %v2916_v12 = vshrl.u32 %v2904_v3, 7 }
 0x301   : > { %v2823_v41 = vrot.slane %v2822_v52, 2  ;;  %v2893_v26 = vadd.f32 %v2892_v17, %v2891_v57  ;;  %vm2906_vm2 = vcmp.lt.s32.totalorder %v2905_v10, 4  ;;  %v12117_v17 = vld [vmem:[#allocation9 + $0x110] sm:$0xff]  }
 0x302   : > { %10497 = vmatpush3.bf16.msra.mxu1 %v12117_v17 }
 0x303   : > { %v2824_v35 = vadd.f32 %v2823_v41, %v2822_v52  ;;  %v2894_v25 = vrot.slane %v2893_v26, 2  ;;  %v2917_v52 = vsub.s32 0, %v2916_v12 }
 0x305   : > { %v2825_v24 = vrot.slane %v2824_v35, 1  ;;  %v2895_v18 = vadd.f32 %v2894_v25, %v2893_v26  ;;  %v12119_v25 = vld [vmem:[#allocation9 + $0x118] sm:$0xff]  }
 0x307   : > { %v2826_v47 = vadd.f32 %v2825_v24, %v2824_v35  ;;  %v2896_v31 = vrot.slane %v2895_v18, 1  ;;  %v12118_v35 = vld [vmem:[#allocation9 + $0x158] sm:$0xff]  }
 0x308   : > { %10498 = vmatprep.subr.bf16.mxu1 %v12118_v35 }
 0x309   : > { %v2828_v38 = vmul.f32 0.00390625, %v2826_v47  ;;  %v2897_v51 = vadd.f32 %v2896_v31, %v2895_v18  ;;  %10499 = vmatpush3.bf16.msra.mxu1 %v12119_v25  ;;  %v12132_v25 = vld [vmem:[#allocation9 + $0x178] sm:$0xff]  }
 0x30b   : > { %v2898_v11 = vmul.f32 0.00390625, %v2897_v51  ;;  %v2899_v16 = vmul.f32 %v2828_v38, %v2828_v38  ;;  %v2911_v57 = vmul.f32 %v2907_v62, %v2828_v38 }
 0x30d   : > { %v2900_v15 = vsub.f32 %v2898_v11, %v2899_v16 }
 0x30f   : > { %v2901_v56 = vmax.f32 %v2900_v15, 0.0 }
 0x311   : > { %v2902_v32 = vadd.f32 1e-05, %v2901_v56 }
 0x313   : > { %12284 = vrsqrt.f32 %v2902_v32  ;;  %v12122_v32 = vld [vmem:[#allocation9 + $0x160] sm:$0xff]  }
 0x314   : > { %10500 = vmatprep.subr.bf16.mxu1 %v12122_v32 }
 0x31d   : > { %v12285_v30 = vpop.eup %12284 }
 0x31e   : > { %v2908_v41 = vmul.f32 %v12285_v30, %v2907_v62  ;;  %v2912_v26 = vmul.f32 %v12285_v30, %v2911_v57 }
 0x320   : > { %v2909_v24 = vsel %vm2906_vm2, %v2908_v41, 1.0  ;;  %v2913_v18 = vsub.f32 %v2910_v49, %v2912_v26 }
 0x321   : > { %v2918_v47 = vrot.slane %v2909_v24, %v2917_v52 }
 0x322   : > { %v2914_v31 = vsel %vm2906_vm2, %v2913_v18, 0.0 }
 0x323   : > { %v2948_v38 = vmul.f32 %v2918_v47, %v2779_v28  ;;  %v13921_v51 = vrot.slane %v2914_v31, %v2917_v52  ;;  %v2919_v11 = vmul.f32 %v2918_v47, %v13730_v39  ;;  %v2920_v16 = vmul.f32 %v2918_v47, %v13738_v37  ;;  %v12123_v37 = vld [vmem:[#allocation9 + $0x120] sm:$0xff]   ;;  %v12129_v52 = vld [vmem:[#allocation9 + $0x130] sm:$0xff]  }
 0x324   : > { %v2921_v15 = vmul.f32 %v2918_v47, %v13725_v13  ;;  %v2922_v45 = vmul.f32 %v2918_v47, %v13733_v43  ;;  %v2923_v14 = vmul.f32 %v2918_v47, %v13755_v7  ;;  %v2924_v56 = vmul.f32 %v2918_v47, %v13765_v6  ;;  %v12124_v6 = vld [vmem:[#allocation9 + $0x168] sm:$0xff]   ;;  %10501 = vmatpush3.bf16.msra.mxu1 %v12123_v37 }
 0x325   : > { %v13930_v3 = vadd.f32 %v13921_v51, %v2948_v38  ;;  %v2925_v28 = vmul.f32 %v2918_v47, %v13750_v2  ;;  %v2926_v10 = vmul.f32 %v2918_v47, %v13759_v5  ;;  %v2927_v39 = vmul.f32 %v2918_v47, %v13779_v21  ;;  %v12125_v21 = vld [vmem:[#allocation9 + $0x128] sm:$0xff]   ;;  %10502 = vmatprep.subr.bf16.mxu1 %v12124_v6  ;;  %v12133_v38 = vld [vmem:[#allocation9 + $0x138] sm:$0xff]  }
 0x326   : > { %v2928_v62 = vmul.f32 %v2918_v47, %v13789_v53  ;;  %v2929_v13 = vmul.f32 %v2918_v47, %v13774_v59  ;;  %v2930_v43 = vmul.f32 %v2918_v47, %v13783_v33  ;;  %v2931_v7 = vmul.f32 %v2918_v47, %v13803_v55 }
 0x327   : > { %v2932_v12 = vmul.f32 %v2918_v47, %v13813_v46  ;;  %v2933_v57 = vmul.f32 %v2918_v47, %v13798_v54  ;;  %v2934_v2 = vmul.f32 %v2918_v47, %v13807_v27  ;;  %v2935_v5 = vmul.f32 %v2918_v47, %v13827_v44 }
 0x328   : > { %v2936_v53 = vmul.f32 %v2918_v47, %v13837_v48  ;;  %v2937_v59 = vmul.f32 %v2918_v47, %v13822_v60  ;;  %v2938_v33 = vmul.f32 %v2918_v47, %v13831_v61  ;;  %v2939_v55 = vmul.f32 %v2918_v47, %v13851_v19  ;;  %10503 = vmatpush3.bf16.msra.mxu1 %v12125_v21 }
 0x329   : > { %v2940_v22 = vmul.f32 %v2918_v47, %v13861_v8  ;;  %v2941_v46 = vmul.f32 %v2918_v47, %v13846_v1  ;;  %v2942_v54 = vmul.f32 %v2918_v47, %v13855_v63  ;;  %v2943_v27 = vmul.f32 %v2918_v47, %v13875_v0 }
 0x32a   : > { %v2944_v44 = vmul.f32 %v2918_v47, %v13885_v23  ;;  %v2945_v30 = vmul.f32 %v2918_v47, %v13870_v9  ;;  %v2946_v48 = vmul.f32 %v2918_v47, %v13879_v40  ;;  %v2947_v60 = vmul.f32 %v2918_v47, %v13899_v20  ;;  %v12128_v40 = vld [vmem:[#allocation9 + $0x170] sm:$0xff]  }
 0x32b   : > { %v2949_v61 = vmul.f32 %v2918_v47, %v13894_v58  ;;  %v2950_v19 = vmul.f32 %v2918_v47, %v13903_v4  ;;  %v2955_v8 = vadd.f32 %v13921_v51, %v2919_v11  ;;  %v2956_v1 = vadd.f32 %v13921_v51, %v2920_v16  ;;  %10504 = vmatprep.subr.bf16.mxu1 %v12128_v40 }
 0x32c   : > { %v2957_v63 = vadd.f32 %v13921_v51, %v2921_v15  ;;  %v2958_v0 = vadd.f32 %v13921_v51, %v2922_v45  ;;  %v13962_v23 = vadd.f32 %v13921_v51, %v2923_v14  ;;  %v13965_v9 = vadd.f32 %v13921_v51, %v2924_v56  ;;  %10505 = vmatpush3.bf16.msra.mxu1 %v12129_v52 }
 0x32d   : > { %v13968_v58 = vadd.f32 %v13921_v51, %v2925_v28  ;;  %v13971_v20 = vadd.f32 %v13921_v51, %v2926_v10  ;;  %v13974_v4 = vadd.f32 %v13921_v51, %v2927_v39  ;;  %v13977_v49 = vadd.f32 %v13921_v51, %v2928_v62  ;;  %10506 = vmatprep.subr.bf16.mxu1 %v12132_v25 }
 0x32e   : > { %v13980_v17 = vadd.f32 %v13921_v51, %v2929_v13  ;;  %v13983_v41 = vadd.f32 %v13921_v51, %v2930_v43  ;;  %v13986_v26 = vadd.f32 %v13921_v51, %v2931_v7  ;;  %v13989_v35 = vadd.f32 %v13921_v51, %v2932_v12 }
 0x32f   : > { %v13992_v24 = vadd.f32 %v13921_v51, %v2933_v57  ;;  %v13995_v18 = vadd.f32 %v13921_v51, %v2934_v2  ;;  %v13998_v47 = vadd.f32 %v13921_v51, %v2935_v5  ;;  %v14001_v31 = vadd.f32 %v13921_v51, %v2936_v53 }
 0x330   : > { %v14004_v11 = vadd.f32 %v13921_v51, %v2937_v59  ;;  %v14007_v16 = vadd.f32 %v13921_v51, %v2938_v33  ;;  %v14010_v15 = vadd.f32 %v13921_v51, %v2939_v55  ;;  %v14013_v45 = vadd.f32 %v13921_v51, %v2940_v22  ;;  %10507 = vmatpush3.bf16.msra.mxu1 %v12133_v38  ;;  %v12114_v38 = vld [vmem:[#allocation9 + $0x1c8] sm:$0xff]  }
 0x331   : > { %v14016_v14 = vadd.f32 %v13921_v51, %v2941_v46  ;;  %v14019_v56 = vadd.f32 %v13921_v51, %v2942_v54  ;;  %v14022_v32 = vadd.f32 %v13921_v51, %v2943_v27  ;;  %v14025_v28 = vadd.f32 %v13921_v51, %v2944_v44 }
 0x332   : > { %v14028_v10 = vadd.f32 %v13921_v51, %v2945_v30  ;;  %v14031_v39 = vadd.f32 %v13921_v51, %v2946_v48  ;;  %v14034_v37 = vadd.f32 %v13921_v51, %v2947_v60  ;;  %v14037_v62 = vadd.f32 %v13921_v51, %v2949_v61 }
 0x333   : > { %v14040_v13 = vadd.f32 %v13921_v51, %v2950_v19  ;;  %vm2987_vm3 = vcmp.ge.f32.partialorder %v2955_v8, 0.0  ;;  %vm2988_vm4 = vcmp.ge.f32.partialorder %v2956_v1, 0.0  ;;  %v3019_v43 = vmul.f32 0.2, %v2955_v8 }
 0x334   : > { %v14043_v7 = vmul.f32 0.2, %v14037_v62  ;;  %v3020_v6 = vmul.f32 0.2, %v2956_v1  ;;  %vm2989_vm5 = vcmp.ge.f32.partialorder %v2957_v63, 0.0  ;;  %vm2990_vm6 = vcmp.ge.f32.partialorder %v2958_v0, 0.0 }
 0x335   : > { %v14046_v12 = vmul.f32 0.2, %v14040_v13  ;;  %v3051_v57 = vsel %vm2987_vm3, %v2955_v8, %v3019_v43  ;;  %v3021_v2 = vmul.f32 0.2, %v2957_v63  ;;  %v3022_v5 = vmul.f32 0.2, %v2958_v0 }
 0x336   : > { %v3052_v21 = vsel %vm2988_vm4, %v2956_v1, %v3020_v6  ;;  %v3241_v53 = vrot.slane %v3051_v57, 7  ;;  %v3432_v51 = vrot.slane %v3051_v57, 1  ;;  %vm2991_vm7 = vcmp.ge.f32.partialorder %v13962_v23, 0.0 }
 0x337   : > { %v3243_v59 = vrot.slane %v3052_v21, 7  ;;  %v14049_v33 = vpack.c.bf16 %v3052_v21, %v3051_v57  ;;  %v3433_v55 = vrot.slane %v3052_v21, 1  ;;  %v3053_v22 = vsel %vm2989_vm5, %v2957_v63, %v3021_v2  ;;  %v12111_v63 = vld [vmem:[#allocation9 + $0x180] sm:$0xff]  }
 0x338   : > { %v3242_v46 = vsel %vm782_vm0, %v12921_v29, %v3241_v53  ;;  %v3054_v54 = vsel %vm2990_vm6, %v2958_v0, %v3022_v5  ;;  %v3246_v27 = vrot.slane %v3053_v22, 7  ;;  %v3437_v44 = vrot.slane %v3053_v22, 1 }
 0x339   : > { %4476 = vmatprep.mubr.bf16.mxu1 %v14049_v33  ;;  %v3244_v30 = vsel %vm782_vm0, %v3241_v53, %v3243_v59  ;;  %v3248_v48 = vrot.slane %v3054_v54, 7  ;;  %v14055_v60 = vpack.c.bf16 %v3054_v54, %v3053_v22  ;;  %v3438_v61 = vrot.slane %v3054_v54, 1 }
 0x33a   : > { %v3348_v19 = vpack.c.bf16 %v3244_v30, %v3242_v46  ;;  %v3247_v8 = vsel %vm782_vm0, %v12921_v29, %v3246_v27  ;;  %vm2992_vm8 = vcmp.ge.f32.partialorder %v13965_v9, 0.0  ;;  %v3023_v1 = vmul.f32 0.2, %v13962_v23 }
 0x33b   : > { %v3249_v0 = vsel %vm782_vm0, %v3246_v27, %v3248_v48  ;;  %v3024_v40 = vmul.f32 0.2, %v13965_v9  ;;  %v3434_v52 = vsel %vm975_vm1, %v3432_v51, %v3433_v55  ;;  %v3436_v25 = vsel %vm975_vm1, %v3433_v55, %v12928_v36  ;;  %v12115_v55 = vld [vmem:[#allocation9 + $0x188] sm:$0xff]   ;;  %v12120_v27 = vld [vmem:[#allocation9 + $0x1d0] sm:$0xff]  }
 0x33c   : > { %4477 = vmatmul.mubr.bf16.gmra.mrb[132].mxu1 %v3348_v19  ;;  %4629 = vmatprep.mubr.bf16.mxu0 %v3348_v19  ;;  %v14066_v43 = vpack.c.bf16 %v3249_v0, %v3247_v8  ;;  %v3055_v6 = vsel %vm2991_vm7, %v13962_v23, %v3023_v1  ;;  %v14071_v57 = vpack.c.bf16 %v3436_v25, %v3434_v52  ;;  %vm2993_vm9 = vcmp.ge.f32.partialorder %v13968_v58, 0.0 }
 0x33d   : > { %4484 = vmatprep.mubr.bf16.mxu1 %v14055_v60  ;;  %4630 = vmatmul.mubr.bf16.vlgmr.msra.gmra.mrb[160].mxu0 %v12948_v50  ;;  %v3056_v2 = vsel %vm2992_vm8, %v13965_v9, %v3024_v40  ;;  %v3251_v5 = vrot.slane %v3055_v6, 7  ;;  %v3442_v21 = vrot.slane %v3055_v6, 1  ;;  %vm2994_vm10 = vcmp.ge.f32.partialorder %v13971_v20, 0.0 }
 0x33e   : > { %4637 = vmatprep.mubr.bf16.mxu0 %v14066_v43  ;;  %v3253_v53 = vrot.slane %v3056_v2, 7  ;;  %v14081_v23 = vpack.c.bf16 %v3056_v2, %v3055_v6  ;;  %v3443_v51 = vrot.slane %v3056_v2, 1  ;;  %v3025_v59 = vmul.f32 0.2, %v13968_v58  ;;  %10605 = vmatpush3.bf16.msra.mxu0 %v12111_v63 }
 0x33f   : > { %v3252_v22 = vsel %vm782_vm0, %v12921_v29, %v3251_v5  ;;  %v3026_v46 = vmul.f32 0.2, %v13971_v20  ;;  %v3439_v9 = vsel %vm975_vm1, %v3437_v44, %v3438_v61  ;;  %v3441_v54 = vsel %vm975_vm1, %v3438_v61, %v12928_v36  ;;  %10606 = vmatprep.subr.bf16.mxu0 %v12114_v38 }
 0x340   : > { %v3254_v30 = vsel %vm782_vm0, %v3251_v5, %v3253_v53  ;;  %v3057_v48 = vsel %vm2993_vm9, %v13968_v58, %v3025_v59  ;;  %v14094_v19 = vpack.c.bf16 %v3441_v54, %v3439_v9  ;;  %vm2995_vm11 = vcmp.ge.f32.partialorder %v13974_v4, 0.0  ;;  %v12121_v58 = vld [vmem:[#allocation9 + $0x190] sm:$0xff]   ;;  %v12127_v54 = vld [vmem:[#allocation9 + $0x198] sm:$0xff]  }
 0x341   : > { %v14097_v8 = vpack.c.bf16 %v3254_v30, %v3252_v22  ;;  %v3058_v44 = vsel %vm2994_vm10, %v13971_v20, %v3026_v46  ;;  %v3256_v1 = vrot.slane %v3057_v48, 7  ;;  %v3447_v61 = vrot.slane %v3057_v48, 1  ;;  %v12126_v20 = vld [vmem:[#allocation9 + $0x1d8] sm:$0xff]  }
 0x342   : > { %v3258_v63 = vrot.slane %v3058_v44, 7  ;;  %v14102_v0 = vpack.c.bf16 %v3058_v44, %v3057_v48  ;;  %v3448_v40 = vrot.slane %v3058_v44, 1  ;;  %vm2996_vm12 = vcmp.ge.f32.partialorder %v13977_v49, 0.0  ;;  %10607 = vmatpush3.bf16.msra.mxu0 %v12115_v55  ;;  %v12130_v48 = vld [vmem:[#allocation9 + $0x1e0] sm:$0xff]  }
 0x343   : > { %v3257_v52 = vsel %vm782_vm0, %v12921_v29, %v3256_v1  ;;  %v3027_v25 = vmul.f32 0.2, %v13974_v4  ;;  %v3028_v38 = vmul.f32 0.2, %v13977_v49  ;;  %v3444_v6 = vsel %vm975_vm1, %v3442_v21, %v3443_v51  ;;  %10608 = vmatprep.subr.bf16.mxu0 %v12120_v27 }
 0x344   : > { %4485 = vmatmul.mubr.bf16.gmra.mrb[136].mxu1 %v14066_v43  ;;  %v3259_v2 = vsel %vm782_vm0, %v3256_v1, %v3258_v63  ;;  %v3446_v5 = vsel %vm975_vm1, %v3443_v51, %v12928_v36  ;;  %vm2997_vm13 = vcmp.ge.f32.partialorder %v13980_v17, 0.0  ;;  %vm2998_vm14 = vcmp.ge.f32.partialorder %v13983_v41, 0.0 }
 0x345   : > { %4492 = vmatprep.mubr.bf16.mxu1 %v14081_v23  ;;  %4638 = vmatmul.mubr.bf16.gmra.mrb[164].mxu0 %v14071_v57  ;;  %v14118_v53 = vpack.c.bf16 %v3259_v2, %v3257_v52  ;;  %v3059_v21 = vsel %vm2995_vm11, %v13974_v4, %v3027_v25  ;;  %v3060_v59 = vsel %vm2996_vm12, %v13977_v49, %v3028_v38  ;;  %v3029_v51 = vmul.f32 0.2, %v13980_v17 }
 0x346   : > { %4645 = vmatprep.mubr.bf16.mxu0 %v14097_v8  ;;  %v3261_v55 = vrot.slane %v3059_v21, 7  ;;  %v3263_v22 = vrot.slane %v3060_v59, 7  ;;  %v14128_v46 = vpack.c.bf16 %v3060_v59, %v3059_v21  ;;  %v3452_v9 = vrot.slane %v3059_v21, 1  ;;  %10609 = vmatpush3.bf16.msra.mxu0 %v12121_v58  ;;  %v12131_v21 = vld [vmem:[#allocation9 + $0x1a0] sm:$0xff]  }
 0x347   : > { %v3453_v27 = vrot.slane %v3060_v59, 1  ;;  %v14130_v30 = vpack.c.bf16 %v3446_v5, %v3444_v6  ;;  %v3030_v4 = vmul.f32 0.2, %v13983_v41  ;;  %v3061_v49 = vsel %vm2997_vm13, %v13980_v17, %v3029_v51  ;;  %10610 = vmatprep.subr.bf16.mxu0 %v12126_v20 }
 0x348   : > { %v3262_v44 = vsel %vm782_vm0, %v12921_v29, %v3261_v55  ;;  %v3264_v1 = vsel %vm782_vm0, %v3261_v55, %v3263_v22  ;;  %v3266_v63 = vrot.slane %v3061_v49, 7  ;;  %v3457_v52 = vrot.slane %v3061_v49, 1 }
 0x349   : > { %v14139_v58 = vpack.c.bf16 %v3264_v1, %v3262_v44  ;;  %v3062_v25 = vsel %vm2998_vm14, %v13983_v41, %v3030_v4  ;;  %v3449_v38 = vsel %vm975_vm1, %v3447_v61, %v3448_v40  ;;  %v3451_v17 = vsel %vm975_vm1, %v3448_v40, %v12928_v36  ;;  %v12134_v61 = vld [vmem:[#allocation9 + $0x1e8] sm:$0xff]  }
 0x34a   : > { %v3268_v6 = vrot.slane %v3062_v25, 7  ;;  %v14147_v20 = vpack.c.bf16 %v3062_v25, %v3061_v49  ;;  %v3458_v2 = vrot.slane %v3062_v25, 1  ;;  %v14149_v5 = vpack.c.bf16 %v3451_v17, %v3449_v38  ;;  %10611 = vmatpush3.bf16.msra.mxu0 %v12127_v54  ;;  %v12135_v44 = vld [vmem:[#allocation9 + $0x1a8] sm:$0xff]   ;;  %v12136_v38 = vld [vmem:[#allocation9 + $0x1f0] sm:$0xff]  }
 0x34b   : > { %v3267_v59 = vsel %vm782_vm0, %v12921_v29, %v3266_v63  ;;  %vm2999_vm15 = vcmp.ge.f32.partialorder %v13986_v26, 0.0  ;;  %vm3000_vm2 = vcmp.ge.f32.partialorder %v13989_v35, 0.0  ;;  %v3031_v41 = vmul.f32 0.2, %v13986_v26  ;;  %10612 = vmatprep.subr.bf16.mxu0 %v12130_v48 }
 0x34c   : > { %4493 = vmatmul.mubr.bf16.gmra.mrb[140].mxu1 %v14097_v8  ;;  %v3269_v40 = vsel %vm782_vm0, %v3266_v63, %v3268_v6  ;;  %v3032_v51 = vmul.f32 0.2, %v13989_v35  ;;  %v3454_v55 = vsel %vm975_vm1, %v3452_v9, %v3453_v27  ;;  %v3456_v22 = vsel %vm975_vm1, %v3453_v27, %v12928_v36 }
 0x34d   : > { %4500 = vmatprep.mubr.bf16.mxu1 %v14102_v0  ;;  %4646 = vmatmul.mubr.bf16.gmra.mrb[168].mxu0 %v14094_v19  ;;  %v14164_v54 = vpack.c.bf16 %v3269_v40, %v3267_v59  ;;  %v3063_v4 = vsel %vm2999_vm15, %v13986_v26, %v3031_v41  ;;  %v14167_v49 = vpack.c.bf16 %v3456_v22, %v3454_v55  ;;  %vm3001_vm3 = vcmp.ge.f32.partialorder %v13992_v24, 0.0 }
 0x34e   : > { %4653 = vmatprep.mubr.bf16.mxu0 %v14118_v53  ;;  %v3064_v9 = vsel %vm3000_vm2, %v13989_v35, %v3032_v51  ;;  %v3271_v48 = vrot.slane %v3063_v4, 7  ;;  %v3462_v27 = vrot.slane %v3063_v4, 1  ;;  %vm3002_vm4 = vcmp.ge.f32.partialorder %v13995_v18, 0.0  ;;  %10613 = vmatpush3.bf16.msra.mxu0 %v12131_v21 }
 0x34f   : > { %v3273_v1 = vrot.slane %v3064_v9, 7  ;;  %v14175_v63 = vpack.c.bf16 %v3064_v9, %v3063_v4  ;;  %v3463_v26 = vrot.slane %v3064_v9, 1  ;;  %v3033_v25 = vmul.f32 0.2, %v13992_v24  ;;  %10614 = vmatprep.subr.bf16.mxu0 %v12134_v61 }
 0x350   : > { %v3272_v17 = vsel %vm782_vm0, %v12921_v29, %v3271_v48  ;;  %v3034_v6 = vmul.f32 0.2, %v13995_v18  ;;  %v3459_v35 = vsel %vm975_vm1, %v3457_v52, %v3458_v2  ;;  %v3461_v59 = vsel %vm975_vm1, %v3458_v2, %v12928_v36 }
 0x351   : > { %v3274_v21 = vsel %vm782_vm0, %v3271_v48, %v3273_v1  ;;  %v3065_v41 = vsel %vm3001_vm3, %v13992_v24, %v3033_v25  ;;  %v14188_v40 = vpack.c.bf16 %v3461_v59, %v3459_v35  ;;  %vm3003_vm5 = vcmp.ge.f32.partialorder %v13998_v47, 0.0  ;;  %v12137_v24 = vld [vmem:[#allocation9 + $0x1b0] sm:$0xff]  }
 0x352   : > { %v14191_v61 = vpack.c.bf16 %v3274_v21, %v3272_v17  ;;  %v3066_v51 = vsel %vm3002_vm4, %v13995_v18, %v3034_v6  ;;  %v3276_v52 = vrot.slane %v3065_v41, 7  ;;  %v3467_v55 = vrot.slane %v3065_v41, 1  ;;  %10615 = vmatpush3.bf16.msra.mxu0 %v12135_v44  ;;  %v12138_v44 = vld [vmem:[#allocation9 + $0x1f8] sm:$0xff]  }
 0x353   : > { %v3278_v2 = vrot.slane %v3066_v51, 7  ;;  %v14196_v22 = vpack.c.bf16 %v3066_v51, %v3065_v41  ;;  %v3468_v4 = vrot.slane %v3066_v51, 1  ;;  %vm3004_vm6 = vcmp.ge.f32.partialorder %v14001_v31, 0.0  ;;  %10616 = vmatprep.subr.bf16.mxu0 %v12136_v38  ;;  %v12139_v51 = vld [vmem:[#allocation9 + $0x1b8] sm:$0xff]  }
 0x354   : > { %4501 = vmatmul.mubr.bf16.gmra.mrb[144].mxu1 %v14118_v53  ;;  %v3277_v9 = vsel %vm782_vm0, %v12921_v29, %v3276_v52  ;;  %v3035_v48 = vmul.f32 0.2, %v13998_v47  ;;  %v3036_v18 = vmul.f32 0.2, %v14001_v31  ;;  %v3464_v1 = vsel %vm975_vm1, %v3462_v27, %v3463_v26 }
 0x355   : > { %16559 = vst [vmem:[#allocation26_spill] sm:$0xff] %v14196_v22  ;;  %4508 = vmatprep.mubr.bf16.mxu1 %v14128_v46  ;;  %4654 = vmatmul.mubr.bf16.gmra.mrb[172].mxu0 %v14130_v30  ;;  %v3279_v25 = vsel %vm782_vm0, %v3276_v52, %v3278_v2  ;;  %v3466_v38 = vsel %vm975_vm1, %v3463_v26, %v12928_v36  ;;  %vm3005_vm7 = vcmp.ge.f32.partialorder %v14004_v11, 0.0  ;;  %vm3006_vm8 = vcmp.ge.f32.partialorder %v14007_v16, 0.0 }
 0x356   : > { %4661 = vmatprep.mubr.bf16.mxu0 %v14139_v58  ;;  %v14213_v17 = vpack.c.bf16 %v3279_v25, %v3277_v9  ;;  %v3067_v27 = vsel %vm3003_vm5, %v13998_v47, %v3035_v48  ;;  %v3068_v6 = vsel %vm3004_vm6, %v14001_v31, %v3036_v18  ;;  %v14221_v35 = vpack.c.bf16 %v3466_v38, %v3464_v1 }
 0x357   : > { %v3281_v59 = vrot.slane %v3067_v27, 7  ;;  %v3283_v26 = vrot.slane %v3068_v6, 7  ;;  %v14223_v21 = vpack.c.bf16 %v3068_v6, %v3067_v27  ;;  %v3472_v41 = vrot.slane %v3067_v27, 1  ;;  %10617 = vmatpush3.bf16.msra.mxu0 %v12137_v24 }
 0x358   : > { %v3473_v52 = vrot.slane %v3068_v6, 1  ;;  %v3037_v2 = vmul.f32 0.2, %v14004_v11  ;;  %v3038_v9 = vmul.f32 0.2, %v14007_v16  ;;  %v3469_v47 = vsel %vm975_vm1, %v3467_v55, %v3468_v4  ;;  %10618 = vmatprep.subr.bf16.mxu0 %v12138_v44 }
 0x359   : > { %v3282_v31 = vsel %vm782_vm0, %v12921_v29, %v3281_v59  ;;  %v3284_v48 = vsel %vm782_vm0, %v3281_v59, %v3283_v26  ;;  %v3471_v18 = vsel %vm975_vm1, %v3468_v4, %v12928_v36  ;;  %vm3007_vm9 = vcmp.ge.f32.partialorder %v14010_v15, 0.0 }
 0x35a   : > { %v14234_v24 = vpack.c.bf16 %v3284_v48, %v3282_v31  ;;  %v3069_v1 = vsel %vm3005_vm7, %v14004_v11, %v3037_v2  ;;  %v3070_v55 = vsel %vm3006_vm8, %v14007_v16, %v3038_v9  ;;  %v14242_v44 = vpack.c.bf16 %v3471_v18, %v3469_v47 }
 0x35b   : > { %v3286_v25 = vrot.slane %v3069_v1, 7  ;;  %v3288_v38 = vrot.slane %v3070_v55, 7  ;;  %v14244_v27 = vpack.c.bf16 %v3070_v55, %v3069_v1  ;;  %v3477_v6 = vrot.slane %v3069_v1, 1  ;;  %10619 = vmatpush3.bf16.msra.mxu0 %v12139_v51 }
 0x35c   : > { %4509 = vmatmul.mubr.bf16.gmra.mrb[148].mxu1 %v14139_v58  ;;  %v3478_v4 = vrot.slane %v3070_v55, 1  ;;  %vm3008_vm10 = vcmp.ge.f32.partialorder %v14013_v45, 0.0  ;;  %v3039_v59 = vmul.f32 0.2, %v14010_v15  ;;  %v3040_v11 = vmul.f32 0.2, %v14013_v45 }
 0x35d   : > { %4516 = vmatprep.mubr.bf16.mxu1 %v14147_v20  ;;  %4662 = vmatmul.mubr.bf16.gmra.mrb[176].mxu0 %v14149_v5  ;;  %v3287_v16 = vsel %vm782_vm0, %v12921_v29, %v3286_v25  ;;  %v3289_v26 = vsel %vm782_vm0, %v3286_v25, %v3288_v38  ;;  %v3474_v51 = vsel %vm975_vm1, %v3472_v41, %v3473_v52  ;;  %vm3009_vm11 = vcmp.ge.f32.partialorder %v14016_v14, 0.0 }
 0x35e   : > { %4669 = vmatprep.mubr.bf16.mxu0 %v14164_v54  ;;  %v14258_v2 = vpack.c.bf16 %v3289_v26, %v3287_v16  ;;  %v3071_v9 = vsel %vm3007_vm9, %v14010_v15, %v3039_v59  ;;  %v3072_v47 = vsel %vm3008_vm10, %v14013_v45, %v3040_v11  ;;  %v3476_v31 = vsel %vm975_vm1, %v3473_v52, %v12928_v36 }
 0x35f   : > { %v3291_v48 = vrot.slane %v3071_v9, 7  ;;  %v3293_v18 = vrot.slane %v3072_v47, 7  ;;  %v14266_v1 = vpack.c.bf16 %v3072_v47, %v3071_v9  ;;  %v3482_v41 = vrot.slane %v3071_v9, 1 }
 0x360   : > { %v3483_v55 = vrot.slane %v3072_v47, 1  ;;  %v14268_v25 = vpack.c.bf16 %v3476_v31, %v3474_v51  ;;  %vm3010_vm12 = vcmp.ge.f32.partialorder %v14019_v56, 0.0  ;;  %v3041_v38 = vmul.f32 0.2, %v14016_v14 }
 0x361   : > { %v3292_v15 = vsel %vm782_vm0, %v12921_v29, %v3291_v48  ;;  %v3294_v45 = vsel %vm782_vm0, %v3291_v48, %v3293_v18  ;;  %v3042_v59 = vmul.f32 0.2, %v14019_v56  ;;  %v3479_v52 = vsel %vm975_vm1, %v3477_v6, %v3478_v4 }
 0x362   : > { %v14277_v11 = vpack.c.bf16 %v3294_v45, %v3292_v15  ;;  %v3073_v16 = vsel %vm3009_vm11, %v14016_v14, %v3041_v38  ;;  %v3481_v26 = vsel %vm975_vm1, %v3478_v4, %v12928_v36  ;;  %vm3011_vm13 = vcmp.ge.f32.partialorder %v14022_v32, 0.0 }
 0x363   : > { %v3074_v51 = vsel %vm3010_vm12, %v14019_v56, %v3042_v59  ;;  %v3296_v9 = vrot.slane %v3073_v16, 7  ;;  %v3487_v47 = vrot.slane %v3073_v16, 1  ;;  %v14286_v31 = vpack.c.bf16 %v3481_v26, %v3479_v52 }
 0x364   : > { %4517 = vmatmul.mubr.bf16.gmra.mrb[152].mxu1 %v14164_v54  ;;  %v3298_v6 = vrot.slane %v3074_v51, 7  ;;  %v14289_v48 = vpack.c.bf16 %v3074_v51, %v3073_v16  ;;  %v3488_v18 = vrot.slane %v3074_v51, 1  ;;  %vm3012_vm14 = vcmp.ge.f32.partialorder %v14025_v28, 0.0 }
 0x365   : > { %4524 = vmatprep.mubr.bf16.mxu1 %v14175_v63  ;;  %4670 = vmatmul.mubr.bf16.gmra.mrb[180].mxu0 %v14167_v49  ;;  %v3297_v14 = vsel %vm782_vm0, %v12921_v29, %v3296_v9  ;;  %v3043_v56 = vmul.f32 0.2, %v14022_v32  ;;  %v3044_v4 = vmul.f32 0.2, %v14025_v28  ;;  %v3484_v38 = vsel %vm975_vm1, %v3482_v41, %v3483_v55 }
 0x366   : > { %4677 = vmatprep.mubr.bf16.mxu0 %v14191_v61  ;;  %v3299_v15 = vsel %vm782_vm0, %v3296_v9, %v3298_v6  ;;  %v3486_v45 = vsel %vm975_vm1, %v3483_v55, %v12928_v36  ;;  %vm3013_vm15 = vcmp.ge.f32.partialorder %v14028_v10, 0.0  ;;  %vm3014_vm2 = vcmp.ge.f32.partialorder %v14031_v39, 0.0 }
 0x367   : > { %v14305_v59 = vpack.c.bf16 %v3299_v15, %v3297_v14  ;;  %v3075_v52 = vsel %vm3011_vm13, %v14022_v32, %v3043_v56  ;;  %v3076_v16 = vsel %vm3012_vm14, %v14025_v28, %v3044_v4  ;;  %v14311_v41 = vpack.c.bf16 %v3486_v45, %v3484_v38 }
 0x368   : > { %v3301_v26 = vrot.slane %v3075_v52, 7  ;;  %v3303_v51 = vrot.slane %v3076_v16, 7  ;;  %v14313_v9 = vpack.c.bf16 %v3076_v16, %v3075_v52  ;;  %v3492_v6 = vrot.slane %v3075_v52, 1 }
 0x369   : > { %v3493_v55 = vrot.slane %v3076_v16, 1  ;;  %v3045_v50 = vmul.f32 0.2, %v14028_v10  ;;  %v3046_v34 = vmul.f32 0.2, %v14031_v39  ;;  %v3489_v14 = vsel %vm975_vm1, %v3487_v47, %v3488_v18 }
 0x36a   : > { %v3302_v15 = vsel %vm782_vm0, %v12921_v29, %v3301_v26  ;;  %v3304_v32 = vsel %vm782_vm0, %v3301_v26, %v3303_v51  ;;  %v3491_v28 = vsel %vm975_vm1, %v3488_v18, %v12928_v36  ;;  %vm3015_vm3 = vcmp.ge.f32.partialorder %v14034_v37, 0.0 }
 0x36b   : > { %v14324_v56 = vpack.c.bf16 %v3304_v32, %v3302_v15  ;;  %v3077_v4 = vsel %vm3013_vm15, %v14028_v10, %v3045_v50  ;;  %v3078_v47 = vsel %vm3014_vm2, %v14031_v39, %v3046_v34  ;;  %v14332_v38 = vpack.c.bf16 %v3491_v28, %v3489_v14 }
 0x36c   : > { %4525 = vmatmul.mubr.bf16.gmra.mrb[156].mxu1 %v14191_v61  ;;  %v3306_v45 = vrot.slane %v3077_v4, 7  ;;  %v3308_v52 = vrot.slane %v3078_v47, 7  ;;  %v14335_v16 = vpack.c.bf16 %v3078_v47, %v3077_v4  ;;  %v3497_v18 = vrot.slane %v3077_v4, 1 }
 0x36d   : > { %4532 = vmatprep.mubr.bf16.mxu1 %v14196_v22  ;;  %4678 = vmatmul.mubr.bf16.gmra.mrb[184].mxu0 %v14188_v40  ;;  %v3498_v26 = vrot.slane %v3078_v47, 1  ;;  %vm3016_vm4 = vcmp.ge.f32.partialorder %v13930_v3, 0.0  ;;  %v3047_v50 = vmul.f32 0.2, %v14034_v37  ;;  %v3048_v34 = vmul.f32 0.2, %v13930_v3 }
 0x36e   : > { %4685 = vmatprep.mubr.bf16.mxu0 %v14213_v17  ;;  %v3307_v10 = vsel %vm782_vm0, %v12921_v29, %v3306_v45  ;;  %v3309_v39 = vsel %vm782_vm0, %v3306_v45, %v3308_v52  ;;  %v3494_v51 = vsel %vm975_vm1, %v3492_v6, %v3493_v55  ;;  %v3496_v14 = vsel %vm975_vm1, %v3493_v55, %v12928_v36 }
 0x36f   : > { %v14349_v15 = vpack.c.bf16 %v3309_v39, %v3307_v10  ;;  %v3079_v32 = vsel %vm3015_vm3, %v14034_v37, %v3047_v50  ;;  %v3080_v28 = vsel %vm3016_vm4, %v13930_v3, %v3048_v34  ;;  %v14355_v4 = vpack.c.bf16 %v3496_v14, %v3494_v51 }
 0x370   : > { %v3311_v47 = vrot.slane %v3079_v32, 7  ;;  %v3313_v42 = vrot.slane %v3080_v28, 7  ;;  %v14357_v22 = vpack.c.bf16 %v3080_v28, %v3079_v32  ;;  %v3502_v45 = vrot.slane %v3079_v32, 1 }
 0x371   : > { %v3503_v52 = vrot.slane %v3080_v28, 1  ;;  %v3499_v6 = vsel %vm975_vm1, %v3497_v18, %v3498_v26  ;;  %v3501_v55 = vsel %vm975_vm1, %v3498_v26, %v12928_v36  ;;  %vm3017_vm5 = vcmp.ge.f32.partialorder %v14037_v62, 0.0 }
 0x372   : > { %v3312_v37 = vsel %vm782_vm0, %v12921_v29, %v3311_v47  ;;  %v3314_v3 = vsel %vm782_vm0, %v3311_v47, %v3313_v42  ;;  %v14366_v50 = vpack.c.bf16 %v3501_v55, %v3499_v6  ;;  %vm3018_vm6 = vcmp.ge.f32.partialorder %v14040_v13, 0.0  ;;  %v12140_v6 = vld [vmem:[#allocation9 + $0x200] sm:$0xff]  }
 0x373   : > { %v14369_v34 = vpack.c.bf16 %v3314_v3, %v3312_v37  ;;  %v3081_v10 = vsel %vm3017_vm5, %v14037_v62, %v14043_v7  ;;  %v3082_v18 = vsel %vm3018_vm6, %v14040_v13, %v14046_v12  ;;  %v3504_v26 = vsel %vm975_vm1, %v3502_v45, %v3503_v52  ;;  %v12141_v55 = vld [vmem:[#allocation10] sm:$0xff]   ;;  %11764 = vmatprep.subr.bf16.mxu1 %v12140_v6 }
 0x374   : > { %4533 = vmatmul.mubr.bf16.gmra.mrb[160].mxu1 %v14213_v17  ;;  %v3575_v39 = vrot.slane %v3081_v10, 7  ;;  %v3577_v51 = vrot.slane %v3082_v18, 7  ;;  %v3506_v42 = vsel %vm975_vm1, %v3503_v52, %v12928_v36  ;;  %v3616_v14 = vrot.slane %v3081_v10, 1  ;;  %11812 = vmatprep.subr.bf16.mxu0 %v12141_v55 }
 0x375   : > { %4540 = vmatprep.mubr.bf16.mxu1 %v14223_v21  ;;  %4686 = vmatmul.mubr.bf16.gmra.mrb[188].mxu0 %v14221_v35  ;;  %v14381_v32 = vpack.c.bf16 %v3506_v42, %v3504_v26  ;;  %v3617_v62 = vrot.slane %v3082_v18, 1  ;;  %v14383_v7 = vpack.c.bf16 %v3082_v18, %v3081_v10  ;;  %v12144_v42 = vld [vmem:[#allocation9 + $0x210] sm:$0xff]   ;;  %vm6173_vm15 = vcmask 1045504  }
 0x376   : > { %4693 = vmatprep.mubr.bf16.mxu0 %v14234_v24  ;;  %v3576_v13 = vsel %vm782_vm0, %v12921_v29, %v3575_v39  ;;  %v3578_v12 = vsel %vm782_vm0, %v3575_v39, %v3577_v51  ;;  %v12142_v51 = vld [vmem:[#allocation9 + $0x208] sm:$0xff]  }
 0x377   : > { %v14389_v28 = vpack.c.bf16 %v3578_v12, %v3576_v13  ;;  %v3618_v47 = vsel %vm975_vm1, %v3616_v14, %v3617_v62  ;;  %v3620_v45 = vsel %vm975_vm1, %v3617_v62, %v12928_v36  ;;  %v12143_v14 = vld [vmem:[#allocation10 + $0x8] sm:$0xff]   ;;  %v12147_v62 = vld [vmem:[#allocation9 + $0x220] sm:$0xff]   ;;  %v12149_v13 = vld [vmem:[#allocation10 + $0x18] sm:$0xff]  }
 0x378   : > { %v14394_v52 = vpack.c.bf16 %v3620_v45, %v3618_v47  ;;  %v12150_v12 = vld [vmem:[#allocation9 + $0x230] sm:$0xff]   ;;  %v12153_v47 = vld [vmem:[#allocation10 + $0x28] sm:$0xff]   ;;  %v12155_v45 = vld [vmem:[#allocation10 + $0x38] sm:$0xff]  }
 0x37c   : > { %4541 = vmatmul.mubr.bf16.gmra.mrb[164].mxu1 %v14234_v24 }
 0x37d   : > { %4548 = vmatprep.mubr.bf16.mxu1 %v14244_v27  ;;  %4694 = vmatmul.mubr.bf16.gmra.mrb[192].mxu0 %v14242_v44 }
 0x37e   : > { %4701 = vmatprep.mubr.bf16.mxu0 %v14258_v2 }
 0x383   : > { %v10284_v37 = vpop.f32.mrb[128].mxu1 }
 0x384   : > { %4549 = vmatmul.mubr.bf16.gmra.mrb[168].mxu1 %v14258_v2  ;;  %v10285_v3 = vpop.f32.mrb[129].mxu1 }
 0x385   : > { %4556 = vmatprep.mubr.bf16.mxu1 %v14266_v1  ;;  %4702 = vmatmul.mubr.bf16.gmra.mrb[196].mxu0 %v14268_v25  ;;  %v14404_v10 = vadd.f32 %v10285_v3, %v10284_v37  ;;  %v10287_v18 = vpop.f32.mrb[130].mxu1 }
 0x386   : > { %4709 = vmatprep.mubr.bf16.mxu0 %v14277_v11  ;;  %v10288_v26 = vpop.f32.mrb[131].mxu1 }
 0x387   : > { %v14409_v39 = vadd.f32 %v10288_v26, %v10287_v18 }
 0x38c   : > { %4557 = vmatmul.mubr.bf16.gmra.mrb[172].mxu1 %v14277_v11 }
 0x38d   : > { %4564 = vmatprep.mubr.bf16.mxu1 %v14289_v48  ;;  %4710 = vmatmul.mubr.bf16.gmra.mrb[200].mxu0 %v14286_v31 }
 0x38e   : > { %4717 = vmatprep.mubr.bf16.mxu0 %v14305_v59 }
 0x394   : > { %4565 = vmatmul.mubr.bf16.gmra.mrb[176].mxu1 %v14305_v59 }
 0x395   : > { %4572 = vmatprep.mubr.bf16.mxu1 %v14313_v9  ;;  %4718 = vmatmul.mubr.bf16.gmra.mrb[204].mxu0 %v14311_v41 }
 0x396   : > { %4725 = vmatprep.mubr.bf16.mxu0 %v14324_v56 }
 0x39c   : > { %4573 = vmatmul.mubr.bf16.gmra.mrb[180].mxu1 %v14324_v56 }
 0x39d   : > { %4580 = vmatprep.mubr.bf16.mxu1 %v14335_v16  ;;  %4726 = vmatmul.mubr.bf16.gmra.mrb[208].mxu0 %v14332_v38 }
 0x39e   : > { %4733 = vmatprep.mubr.bf16.mxu0 %v14349_v15 }
 0x3a4   : > { %4581 = vmatmul.mubr.bf16.gmra.mrb[184].mxu1 %v14349_v15 }
 0x3a5   : > { %4588 = vmatprep.mubr.bf16.mxu1 %v14357_v22  ;;  %4734 = vmatmul.mubr.bf16.gmra.mrb[212].mxu0 %v14355_v4 }
 0x3a6   : > { %4741 = vmatprep.mubr.bf16.mxu0 %v14369_v34 }
 0x3ac   : > { %4589 = vmatmul.mubr.bf16.gmra.mrb[188].mxu1 %v14369_v34 }
 0x3ad   : > { %4742 = vmatmul.mubr.bf16.gmra.mrb[216].mxu0 %v14366_v50  ;;  %4790 = vmatprep.mubr.bf16.mxu1 %v14071_v57  ;;  %v12145_v57 = vld [vmem:[#allocation9 + $0x218] sm:$0xff]  }
 0x3ae   : > { %4749 = vmatprep.mubr.bf16.mxu0 %v14389_v28 }
 0x3b4   : > { %4791 = vmatmul.mubr.bf16.vlgmr.msra.gmra.mrb[192].mxu1 %v14049_v33  ;;  %v12146_v33 = vld [vmem:[#allocation10 + $0x10] sm:$0xff]  }
 0x3b5   : > { %4750 = vmatmul.mubr.bf16.gmra.mrb[220].mxu0 %v14381_v32  ;;  %4798 = vmatprep.mubr.bf16.mxu1 %v14094_v19 }
 0x3b6   : > { %4951 = vmatprep.mubr.bf16.mxu0 %v14055_v60  ;;  %11765 = vmatpush3.bf16.msra.mxu1 %v12140_v6 }
 0x3b7   : > { %11766 = vmatprep.subr.bf16.mxu1 %v12142_v51 }
 0x3ba   : > { %11767 = vmatpush3.bf16.msra.mxu1 %v12142_v51 }
 0x3bb   : > { %11768 = vmatprep.subr.bf16.mxu1 %v12144_v42 }
 0x3bc   : > { %4799 = vmatmul.mubr.bf16.gmra.mrb[196].mxu1 %v14055_v60  ;;  %v12148_v60 = vld [vmem:[#allocation9 + $0x228] sm:$0xff]  }
 0x3bd   : > { %4806 = vmatprep.mubr.bf16.mxu1 %v14130_v30  ;;  %4952 = vmatmul.mubr.bf16.vlgmr.msra.gmra.mrb[224].mxu0 %v14066_v43  ;;  %v12151_v43 = vld [vmem:[#allocation10 + $0x20] sm:$0xff]  }
 0x3be   : > { %4959 = vmatprep.mubr.bf16.mxu0 %v14081_v23  ;;  %11813 = vmatpush3.bf16.msra.mxu0 %v12141_v55 }
 0x3bf   : > { %11814 = vmatprep.subr.bf16.mxu0 %v12143_v14  ;;  %11769 = vmatpush3.bf16.msra.mxu1 %v12144_v42 }
 0x3c0   : > { %11770 = vmatprep.subr.bf16.mxu1 %v12145_v57 }
 0x3c2   : > { %11815 = vmatpush3.bf16.msra.mxu0 %v12143_v14 }
 0x3c3   : > { %11771 = vmatpush3.bf16.msra.mxu1 %v12145_v57  ;;  %11816 = vmatprep.subr.bf16.mxu0 %v12146_v33 }
 0x3c4   : > { %4807 = vmatmul.mubr.bf16.gmra.mrb[200].mxu1 %v14081_v23  ;;  %11772 = vmatprep.subr.bf16.mxu1 %v12147_v62  ;;  %v12152_v23 = vld [vmem:[#allocation9 + $0x238] sm:$0xff]  }
 0x3c5   : > { %4814 = vmatprep.mubr.bf16.mxu1 %v14149_v5  ;;  %4960 = vmatmul.mubr.bf16.gmra.mrb[228].mxu0 %v14097_v8  ;;  %v12154_v8 = vld [vmem:[#allocation10 + $0x30] sm:$0xff]  }
 0x3c6   : > { %4967 = vmatprep.mubr.bf16.mxu0 %v14102_v0  ;;  %11817 = vmatpush3.bf16.msra.mxu0 %v12146_v33 }
 0x3c7   : > { %11773 = vmatpush3.bf16.msra.mxu1 %v12147_v62  ;;  %11818 = vmatprep.subr.bf16.mxu0 %v12149_v13 }
 0x3c8   : > { %11774 = vmatprep.subr.bf16.mxu1 %v12148_v60 }
 0x3ca   : > { %11819 = vmatpush3.bf16.msra.mxu0 %v12149_v13 }
 0x3cb   : > { %11775 = vmatpush3.bf16.msra.mxu1 %v12148_v60  ;;  %11820 = vmatprep.subr.bf16.mxu0 %v12151_v43 }
 0x3cc   : > { %4815 = vmatmul.mubr.bf16.gmra.mrb[204].mxu1 %v14102_v0  ;;  %11776 = vmatprep.subr.bf16.mxu1 %v12150_v12  ;;  %v16560_v0 = vld [vmem:[#allocation26_spill] sm:$0xff] }
 0x3cd   : > { %4822 = vmatprep.mubr.bf16.mxu1 %v14167_v49  ;;  %4968 = vmatmul.mubr.bf16.gmra.mrb[232].mxu0 %v14118_v53  ;;  %v14479_v53 = vld [vmem:[%s16561_s6] ss:$0 sm:$0xff]  ;;  %s9295_s6 = scalar_lea.sflag [#allocation6], %s12895_s30 }
 0x3ce   : > { %4975 = vmatprep.mubr.bf16.mxu0 %v14128_v46  ;;  %11821 = vmatpush3.bf16.msra.mxu0 %v12151_v43 }
 0x3cf   : > { %11777 = vmatpush3.bf16.msra.mxu1 %v12150_v12  ;;  %11822 = vmatprep.subr.bf16.mxu0 %v12153_v47 }
 0x3d0   : > { %11778 = vmatprep.subr.bf16.mxu1 %v12152_v23 }
 0x3d2   : > { %11823 = vmatpush3.bf16.msra.mxu0 %v12153_v47 }
 0x3d3   : > { %11779 = vmatpush3.bf16.msra.mxu1 %v12152_v23  ;;  %11824 = vmatprep.subr.bf16.mxu0 %v12154_v8 }
 0x3d4   : > { %4823 = vmatmul.mubr.bf16.gmra.mrb[208].mxu1 %v14128_v46 }
 0x3d5   : > { %4830 = vmatprep.mubr.bf16.mxu1 %v14188_v40  ;;  %4976 = vmatmul.mubr.bf16.gmra.mrb[236].mxu0 %v14139_v58 }
 0x3d6   : > { %4983 = vmatprep.mubr.bf16.mxu0 %v14147_v20  ;;  %11825 = vmatpush3.bf16.msra.mxu0 %v12154_v8 }
 0x3d7   : > { %11826 = vmatprep.subr.bf16.mxu0 %v12155_v45 }
 0x3da   : > { %11827 = vmatpush3.bf16.msra.mxu0 %v12155_v45 }
 0x3dc   : > { %4831 = vmatmul.mubr.bf16.gmra.mrb[212].mxu1 %v14147_v20 }
 0x3dd   : > { %4838 = vmatprep.mubr.bf16.mxu1 %v14221_v35  ;;  %4984 = vmatmul.mubr.bf16.gmra.mrb[240].mxu0 %v14164_v54 }
 0x3de   : > { %4991 = vmatprep.mubr.bf16.mxu0 %v14175_v63 }
 0x3e4   : > { %4839 = vmatmul.mubr.bf16.gmra.mrb[216].mxu1 %v14175_v63 }
 0x3e5   : > { %4846 = vmatprep.mubr.bf16.mxu1 %v14242_v44  ;;  %4992 = vmatmul.mubr.bf16.gmra.mrb[244].mxu0 %v14191_v61 }
 0x3e6   : > { %4999 = vmatprep.mubr.bf16.mxu0 %v16560_v0 }
 0x3ec   : > { %4847 = vmatmul.mubr.bf16.gmra.mrb[220].mxu1 %v16560_v0 }
 0x3ed   : > { %4854 = vmatprep.mubr.bf16.mxu1 %v14268_v25  ;;  %5000 = vmatmul.mubr.bf16.gmra.mrb[248].mxu0 %v14213_v17  ;;  %v4471_v17 = vadd.f32 %v14404_v10, %v14479_v53 }
 0x3ee   : > { %5007 = vmatprep.mubr.bf16.mxu0 %v14223_v21 }
 0x3f4   : > { %4855 = vmatmul.mubr.bf16.gmra.mrb[224].mxu1 %v14223_v21 }
 0x3f5   : > { %4862 = vmatprep.mubr.bf16.mxu1 %v14286_v31  ;;  %5008 = vmatmul.mubr.bf16.gmra.mrb[252].mxu0 %v14234_v24 }
 0x3f6   : > { %5015 = vmatprep.mubr.bf16.mxu0 %v14244_v27 }
 0x3fc   : > { %4863 = vmatmul.mubr.bf16.gmra.mrb[228].mxu1 %v14244_v27 }
 0x3fd   : > { %4870 = vmatprep.mubr.bf16.mxu1 %v14311_v41  ;;  %5016 = vmatmul.mubr.bf16.gmra.mrb[0].mxu0 %v14258_v2 }
 0x3fe   : > { %5023 = vmatprep.mubr.bf16.mxu0 %v14266_v1 }
 0x404   : > { %4871 = vmatmul.mubr.bf16.gmra.mrb[232].mxu1 %v14266_v1 }
 0x405   : > { %4878 = vmatprep.mubr.bf16.mxu1 %v14332_v38  ;;  %5024 = vmatmul.mubr.bf16.gmra.mrb[4].mxu0 %v14277_v11  ;;  %v4474_v11 = vadd.f32 %v14409_v39, %v14479_v53 }
 0x406   : > { %5031 = vmatprep.mubr.bf16.mxu0 %v14289_v48 }
 0x40c   : > { %4879 = vmatmul.mubr.bf16.gmra.mrb[236].mxu1 %v14289_v48 }
 0x40d   : > { %4886 = vmatprep.mubr.bf16.mxu1 %v14355_v4  ;;  %5032 = vmatmul.mubr.bf16.gmra.mrb[8].mxu0 %v14305_v59 }
 0x40e   : > { %5039 = vmatprep.mubr.bf16.mxu0 %v14313_v9 }
 0x40f   : > { %v10290_v46 = vpop.f32.mrb[132].mxu1 }
 0x410   : > { %v10291_v58 = vpop.f32.mrb[133].mxu1  ;;  %v10396_v20 = vpop.f32.mrb[160].mxu0 }
 0x411   : > { %v10292_v54 = vadd.f32 %v10291_v58, %v10290_v46  ;;  %v10293_v63 = vpop.f32.mrb[134].mxu1  ;;  %v10397_v61 = vpop.f32.mrb[161].mxu0 }
 0x412   : > { %v10398_v21 = vadd.f32 %v10397_v61, %v10396_v20  ;;  %v10294_v24 = vpop.f32.mrb[135].mxu1  ;;  %v10399_v27 = vpop.f32.mrb[162].mxu0 }
 0x413   : > { %v10295_v2 = vadd.f32 %v10294_v24, %v10293_v63  ;;  %v10400_v1 = vpop.f32.mrb[163].mxu0  ;;  %v4479_v39 = vadd.f32 %v10292_v54, %v14479_v53 }
 0x414   : > { %v14485_v48 = vadd.f32 %v10398_v21, %v4471_v17  ;;  %v10401_v59 = vadd.f32 %v10400_v1, %v10399_v27  ;;  %4887 = vmatmul.mubr.bf16.gmra.mrb[240].mxu1 %v14313_v9 }
 0x415   : > { %4894 = vmatprep.mubr.bf16.mxu1 %v14366_v50  ;;  %5040 = vmatmul.mubr.bf16.gmra.mrb[12].mxu0 %v14324_v56  ;;  %v4482_v33 = vadd.f32 %v10295_v2, %v14479_v53 }
 0x416   : > { %v14490_v6 = vadd.f32 %v10401_v59, %v4474_v11  ;;  %5047 = vmatprep.mubr.bf16.mxu0 %v14335_v16 }
 0x417   : > { %v10296_v55 = vpop.f32.mrb[136].mxu1 }
 0x418   : > { %v10297_v37 = vpop.f32.mrb[137].mxu1  ;;  %v10402_v3 = vpop.f32.mrb[164].mxu0 }
 0x419   : > { %v10298_v10 = vadd.f32 %v10297_v37, %v10296_v55  ;;  %v10299_v18 = vpop.f32.mrb[138].mxu1  ;;  %v10403_v26 = vpop.f32.mrb[165].mxu0 }
 0x41a   : > { %v10404_v51 = vadd.f32 %v10403_v26, %v10402_v3  ;;  %v10300_v42 = vpop.f32.mrb[139].mxu1  ;;  %v10405_v14 = vpop.f32.mrb[166].mxu0 }
 0x41b   : > { %v10301_v9 = vadd.f32 %v10300_v42, %v10299_v18  ;;  %v10406_v57 = vpop.f32.mrb[167].mxu0  ;;  %v4487_v45 = vadd.f32 %v10298_v10, %v14479_v53  ;;  %v5241_v42 = vld [vmem:[%s12901_s25] sm:$0xff] }
 0x41c   : > { %v14495_v56 = vadd.f32 %v10404_v51, %v4479_v39  ;;  %v10407_v62 = vadd.f32 %v10406_v57, %v10405_v14  ;;  %4895 = vmatmul.mubr.bf16.gmra.mrb[244].mxu1 %v14335_v16  ;;  %v16562_v39 = vmov 0.0|0.0   ;;  %v5242_v14 = vld [vmem:[%s12901_s25 + $0x8] sm:$0xff] }
 0x41d   : > { %4902 = vmatprep.mubr.bf16.mxu1 %v14381_v32  ;;  %5048 = vmatmul.mubr.bf16.gmra.mrb[16].mxu0 %v14349_v15  ;;  %v4490_v54 = vadd.f32 %v10301_v9, %v14479_v53 }
 0x41e   : > { %v14500_v13 = vadd.f32 %v10407_v62, %v4482_v33  ;;  %5055 = vmatprep.mubr.bf16.mxu0 %v14357_v22 }
 0x41f   : > { %v10302_v60 = vpop.f32.mrb[140].mxu1 }
 0x420   : > { %v10303_v43 = vpop.f32.mrb[141].mxu1  ;;  %v10408_v12 = vpop.f32.mrb[168].mxu0 }
 0x421   : > { %v10304_v47 = vadd.f32 %v10303_v43, %v10302_v60  ;;  %v10305_v23 = vpop.f32.mrb[142].mxu1  ;;  %v10409_v8 = vpop.f32.mrb[169].mxu0 }
 0x422   : > { %v10410_v0 = vadd.f32 %v10409_v8, %v10408_v12  ;;  %v10306_v46 = vpop.f32.mrb[143].mxu1  ;;  %v10411_v58 = vpop.f32.mrb[170].mxu0  ;;  %v5273_v12 = vpack.c.bf16 %v5242_v14, %v5241_v42  ;;  %v5247_v14 = vld [vmem:[%s12901_s25 + $0x30] sm:$0xff] }
 0x423   : > { %v10307_v16 = vadd.f32 %v10306_v46, %v10305_v23  ;;  %v10412_v20 = vpop.f32.mrb[171].mxu0  ;;  %v4495_v11 = vadd.f32 %v10304_v47, %v14479_v53  ;;  %v16563_v46 = vld [vmem:[#allocation24_spill] sm:$0xff] }
 0x424   : > { %v14505_v15 = vadd.f32 %v10410_v0, %v4487_v45  ;;  %v10413_v63 = vadd.f32 %v10412_v20, %v10411_v58  ;;  %4903 = vmatmul.mubr.bf16.gmra.mrb[248].mxu1 %v14357_v22  ;;  %v5244_v20 = vld [vmem:[%s12901_s25 + $0x18] sm:$0xff] }
 0x425   : > { %4910 = vmatprep.mubr.bf16.mxu1 %v14394_v52  ;;  %5056 = vmatmul.mubr.bf16.gmra.mrb[20].mxu0 %v14369_v34  ;;  %v4498_v34 = vadd.f32 %v10307_v16, %v14479_v53  ;;  %v5243_v16 = vld [vmem:[%s12901_s25 + $0x10] sm:$0xff] }
 0x426   : > { %v14510_v61 = vadd.f32 %v10413_v63, %v4490_v54  ;;  %5063 = vmatprep.mubr.bf16.mxu0 %v14383_v7  ;;  %v5245_v63 = vld [vmem:[%s12901_s25 + $0x20] sm:$0xff] }
 0x427   : > { %v10308_v17 = vpop.f32.mrb[144].mxu1 }
 0x428   : > { %v10309_v21 = vpop.f32.mrb[145].mxu1  ;;  %v10414_v24 = vpop.f32.mrb[172].mxu0 }
 0x429   : > { %v10310_v27 = vadd.f32 %v10309_v21, %v10308_v17  ;;  %v10311_v2 = vpop.f32.mrb[146].mxu1  ;;  %v10415_v1 = vpop.f32.mrb[173].mxu0  ;;  %v5246_v17 = vld [vmem:[%s12901_s25 + $0x28] sm:$0xff] }
 0x42a   : > { %v10416_v59 = vadd.f32 %v10415_v1, %v10414_v24  ;;  %v10312_v22 = vpop.f32.mrb[147].mxu1  ;;  %v10417_v55 = vpop.f32.mrb[174].mxu0 }
 0x42b   : > { %v10313_v37 = vadd.f32 %v10312_v22, %v10311_v2  ;;  %v10418_v3 = vpop.f32.mrb[175].mxu0  ;;  %v4503_v43 = vadd.f32 %v10310_v27, %v14479_v53 }
 0x42c   : > { %v14515_v10 = vadd.f32 %v10416_v59, %v4495_v11  ;;  %v10419_v18 = vadd.f32 %v10418_v3, %v10417_v55  ;;  %4911 = vmatmul.mubr.bf16.gmra.mrb[252].mxu1 %v14383_v7  ;;  %v5274_v11 = vpack.c.bf16 %v5244_v20, %v5243_v16  ;;  %v5275_v55 = vpack.c.bf16 %v5246_v17, %v5245_v63 }
 0x42d   : > { %5064 = vmatmul.mubr.bf16.gmra.mrb[24].mxu0 %v14389_v28  ;;  %11780 = vmatprep.mubr.bf16.mxu1 %v14094_v19  ;;  %v4506_v8 = vadd.f32 %v10313_v37, %v14479_v53 }
 0x42e   : > { %v14520_v26 = vadd.f32 %v10419_v18, %v4498_v34  ;;  %5071 = vmatprep.mubr.bf16.mxu0 %v16562_v39 }
 0x42f   : > { %v10314_v51 = vpop.f32.mrb[148].mxu1 }
 0x430   : > { %v10315_v9 = vpop.f32.mrb[149].mxu1  ;;  %v10420_v57 = vpop.f32.mrb[176].mxu0 }
 0x431   : > { %v10316_v33 = vadd.f32 %v10315_v9, %v10314_v51  ;;  %v10317_v62 = vpop.f32.mrb[150].mxu1  ;;  %v10421_v60 = vpop.f32.mrb[177].mxu0  ;;  %v5248_v9 = vld [vmem:[%s12901_s25 + $0x38] sm:$0xff] }
 0x432   : > { %v10422_v7 = vadd.f32 %v10421_v60, %v10420_v57  ;;  %v10318_v28 = vpop.f32.mrb[151].mxu1  ;;  %v10423_v19 = vpop.f32.mrb[178].mxu0 }
 0x433   : > { %v10319_v47 = vadd.f32 %v10318_v28, %v10317_v62  ;;  %v10424_v23 = vpop.f32.mrb[179].mxu0  ;;  %v5250_v62 = vld [vmem:[%s12901_s25 + $0x48] sm:$0xff] }
 0x434   : > { %v14527_v45 = vadd.f32 %v10422_v7, %v4503_v43  ;;  %v10425_v0 = vadd.f32 %v10424_v23, %v10423_v19  ;;  %11781 = vmatmul.mubr.bf16.vlgmr.msra.gmra.mrb[0].mxu1 %v14130_v30  ;;  %v4511_v30 = vadd.f32 %v10316_v33, %v14479_v53  ;;  %v5249_v33 = vld [vmem:[%s12901_s25 + $0x40] sm:$0xff] }
 0x435   : > { %5072 = vmatmul.mubr.bf16.gmra.mrb[28].mxu0 %v16563_v46  ;;  %11784 = vmatprep.mubr.bf16.mxu1 %v14149_v5  ;;  %v4514_v34 = vadd.f32 %v10319_v47, %v14479_v53 }
 0x436   : > { %v14532_v58 = vadd.f32 %v10425_v0, %v4506_v8  ;;  %11828 = vmatprep.mubr.bf16.mxu0 %v5273_v12  ;;  %v5276_v12 = vpack.c.bf16 %v5248_v9, %v5247_v14  ;;  %v5277_v8 = vpack.c.bf16 %v5250_v62, %v5249_v33 }
 0x437   : > { %v10320_v54 = vpop.f32.mrb[152].mxu1 }
 0x438   : > { %v10321_v21 = vpop.f32.mrb[153].mxu1  ;;  %v10426_v24 = vpop.f32.mrb[180].mxu0 }
 0x439   : > { %v10322_v27 = vadd.f32 %v10321_v21, %v10320_v54  ;;  %v10323_v2 = vpop.f32.mrb[154].mxu1  ;;  %v10427_v1 = vpop.f32.mrb[181].mxu0  ;;  %v5251_v21 = vld [vmem:[%s12901_s25 + $0x50] sm:$0xff] }
 0x43a   : > { %v10428_v59 = vadd.f32 %v10427_v1, %v10426_v24  ;;  %v10324_v5 = vpop.f32.mrb[155].mxu1  ;;  %v10429_v22 = vpop.f32.mrb[182].mxu0  ;;  %v5252_v24 = vld [vmem:[%s12901_s25 + $0x58] sm:$0xff]  ;;  %v5254_v1 = vld [vmem:[%s12901_s25 + $0x68] sm:$0xff] }
 0x43b   : > { %v10325_v37 = vadd.f32 %v10324_v5, %v10323_v2  ;;  %v10430_v3 = vpop.f32.mrb[183].mxu0  ;;  %v5253_v2 = vld [vmem:[%s12901_s25 + $0x60] sm:$0xff] }
 0x43c   : > { %v14540_v18 = vadd.f32 %v10428_v59, %v4511_v30  ;;  %v10431_v51 = vadd.f32 %v10430_v3, %v10429_v22  ;;  %11785 = vmatmul.mubr.bf16.gmra.mrb[4].mxu1 %v14167_v49  ;;  %v4519_v49 = vadd.f32 %v10322_v27, %v14479_v53 }
 0x43d   : > { %11788 = vmatprep.mubr.bf16.mxu1 %v14188_v40  ;;  %11829 = vmatmul.mubr.bf16.vlgmr.msra.gmra.mrb[32].mxu0 %v5274_v11  ;;  %v4522_v20 = vadd.f32 %v10325_v37, %v14479_v53 }
 0x43e   : > { %v14544_v42 = vadd.f32 %v10431_v51, %v4514_v34  ;;  %11832 = vmatprep.mubr.bf16.mxu0 %v5275_v55  ;;  %v5278_v55 = vpack.c.bf16 %v5252_v24, %v5251_v21  ;;  %v5279_v34 = vpack.c.bf16 %v5254_v1, %v5253_v2 }
 0x43f   : > { %v10326_v57 = vpop.f32.mrb[156].mxu1 }
 0x440   : > { %v10327_v60 = vpop.f32.mrb[157].mxu1  ;;  %v10432_v43 = vpop.f32.mrb[184].mxu0 }
 0x441   : > { %v10328_v7 = vadd.f32 %v10327_v60, %v10326_v57  ;;  %v10329_v28 = vpop.f32.mrb[158].mxu1  ;;  %v10433_v19 = vpop.f32.mrb[185].mxu0  ;;  %v5255_v60 = vld [vmem:[%s12901_s25 + $0x70] sm:$0xff] }
 0x442   : > { %v10434_v40 = vadd.f32 %v10433_v19, %v10432_v43  ;;  %v10330_v47 = vpop.f32.mrb[159].mxu1  ;;  %v10435_v23 = vpop.f32.mrb[186].mxu0  ;;  %v5256_v43 = vld [vmem:[%s12901_s25 + $0x78] sm:$0xff]  ;;  %v5258_v19 = vld [vmem:[%s12901_s25 + $0x88] sm:$0xff] }
 0x443   : > { %v10331_v0 = vadd.f32 %v10330_v47, %v10329_v28  ;;  %v10436_v16 = vpop.f32.mrb[187].mxu0  ;;  %v5257_v28 = vld [vmem:[%s12901_s25 + $0x80] sm:$0xff] }
 0x444   : > { %v14552_v54 = vadd.f32 %v10434_v40, %v4519_v49  ;;  %v10437_v63 = vadd.f32 %v10436_v16, %v10435_v23  ;;  %11789 = vmatmul.mubr.bf16.gmra.mrb[8].mxu1 %v14221_v35  ;;  %v4527_v35 = vadd.f32 %v10328_v7, %v14479_v53 }
 0x445   : > { %11792 = vmatprep.mubr.bf16.mxu1 %v14242_v44  ;;  %11833 = vmatmul.mubr.bf16.gmra.mrb[36].mxu0 %v5276_v12  ;;  %v4530_v9 = vadd.f32 %v10331_v0, %v14479_v53 }
 0x446   : > { %v14556_v17 = vadd.f32 %v10437_v63, %v4522_v20  ;;  %11836 = vmatprep.mubr.bf16.mxu0 %v5277_v8  ;;  %v5280_v8 = vpack.c.bf16 %v5256_v43, %v5255_v60  ;;  %v5281_v20 = vpack.c.bf16 %v5258_v19, %v5257_v28 }
 0x447   : > { %v10332_v27 = vpop.f32.mrb[160].mxu1 }
 0x448   : > { %v10333_v11 = vpop.f32.mrb[161].mxu1  ;;  %v10438_v30 = vpop.f32.mrb[188].mxu0 }
 0x449   : > { %v10334_v59 = vadd.f32 %v10333_v11, %v10332_v27  ;;  %v10335_v5 = vpop.f32.mrb[162].mxu1  ;;  %v10439_v22 = vpop.f32.mrb[189].mxu0  ;;  %v5259_v11 = vld [vmem:[%s12901_s25 + $0x90] sm:$0xff] }
 0x44a   : > { %v10440_v44 = vadd.f32 %v10439_v22, %v10438_v30  ;;  %v10336_v37 = vpop.f32.mrb[163].mxu1  ;;  %v10441_v3 = vpop.f32.mrb[190].mxu0  ;;  %v5260_v30 = vld [vmem:[%s12901_s25 + $0x98] sm:$0xff]  ;;  %v5262_v22 = vld [vmem:[%s12901_s25 + $0xa8] sm:$0xff] }
 0x44b   : > { %v10337_v51 = vadd.f32 %v10336_v37, %v10335_v5  ;;  %v10442_v14 = vpop.f32.mrb[191].mxu0  ;;  %v5261_v5 = vld [vmem:[%s12901_s25 + $0xa0] sm:$0xff] }
 0x44c   : > { %v14564_v57 = vadd.f32 %v10440_v44, %v4527_v35  ;;  %v10443_v33 = vadd.f32 %v10442_v14, %v10441_v3  ;;  %11793 = vmatmul.mubr.bf16.gmra.mrb[12].mxu1 %v14268_v25  ;;  %v4535_v25 = vadd.f32 %v10334_v59, %v14479_v53 }
 0x44d   : > { %11796 = vmatprep.mubr.bf16.mxu1 %v14286_v31  ;;  %11837 = vmatmul.mubr.bf16.gmra.mrb[40].mxu0 %v5278_v55  ;;  %v4538_v24 = vadd.f32 %v10337_v51, %v14479_v53 }
 0x44e   : > { %v14568_v62 = vadd.f32 %v10443_v33, %v4530_v9  ;;  %11840 = vmatprep.mubr.bf16.mxu0 %v5279_v34  ;;  %v5282_v34 = vpack.c.bf16 %v5260_v30, %v5259_v11  ;;  %v5283_v9 = vpack.c.bf16 %v5262_v22, %v5261_v5 }
 0x44f   : > { %v10338_v7 = vpop.f32.mrb[164].mxu1 }
 0x450   : > { %v10339_v12 = vpop.f32.mrb[165].mxu1  ;;  %v10444_v49 = vpop.f32.mrb[192].mxu0 }
 0x451   : > { %v10340_v40 = vadd.f32 %v10339_v12, %v10338_v7  ;;  %v10341_v47 = vpop.f32.mrb[166].mxu1  ;;  %v10445_v23 = vpop.f32.mrb[193].mxu0  ;;  %v5263_v12 = vld [vmem:[%s12901_s25 + $0xb0] sm:$0xff] }
 0x452   : > { %v10446_v31 = vadd.f32 %v10445_v23, %v10444_v49  ;;  %v10342_v0 = vpop.f32.mrb[167].mxu1  ;;  %v10447_v16 = vpop.f32.mrb[194].mxu0  ;;  %v5264_v49 = vld [vmem:[%s12901_s25 + $0xb8] sm:$0xff]  ;;  %v5266_v23 = vld [vmem:[%s12901_s25 + $0xc8] sm:$0xff] }
 0x453   : > { %v10343_v63 = vadd.f32 %v10342_v0, %v10341_v47  ;;  %v10448_v21 = vpop.f32.mrb[195].mxu0  ;;  %v5265_v47 = vld [vmem:[%s12901_s25 + $0xc0] sm:$0xff] }
 0x454   : > { %v14576_v27 = vadd.f32 %v10446_v31, %v4535_v25  ;;  %v10449_v2 = vadd.f32 %v10448_v21, %v10447_v16  ;;  %11797 = vmatmul.mubr.bf16.gmra.mrb[16].mxu1 %v14311_v41  ;;  %v4543_v41 = vadd.f32 %v10340_v40, %v14479_v53 }
 0x455   : > { %11800 = vmatprep.mubr.bf16.mxu1 %v14332_v38  ;;  %11841 = vmatmul.mubr.bf16.gmra.mrb[44].mxu0 %v5280_v8  ;;  %v4546_v43 = vadd.f32 %v10343_v63, %v14479_v53 }
 0x456   : > { %v14580_v1 = vadd.f32 %v10449_v2, %v4538_v24  ;;  %11844 = vmatprep.mubr.bf16.mxu0 %v5281_v20  ;;  %v5284_v20 = vpack.c.bf16 %v5264_v49, %v5263_v12  ;;  %v5285_v24 = vpack.c.bf16 %v5266_v23, %v5265_v47  ;;  %v16564_v23 = vld [vmem:[#allocation25_spill] sm:$0xff] }
 0x457   : > { %v10344_v59 = vpop.f32.mrb[168].mxu1 }
 0x458   : > { %v10345_v55 = vpop.f32.mrb[169].mxu1  ;;  %v10450_v35 = vpop.f32.mrb[196].mxu0 }
 0x459   : > { %v10346_v44 = vadd.f32 %v10345_v55, %v10344_v59  ;;  %v10347_v37 = vpop.f32.mrb[170].mxu1  ;;  %v10451_v3 = vpop.f32.mrb[197].mxu0  ;;  %v5267_v55 = vld [vmem:[%s12901_s25 + $0xd0] sm:$0xff] }
 0x45a   : > { %v10452_v38 = vadd.f32 %v10451_v3, %v10450_v35  ;;  %v10348_v51 = vpop.f32.mrb[171].mxu1  ;;  %v10453_v14 = vpop.f32.mrb[198].mxu0  ;;  %v5268_v35 = vld [vmem:[%s12901_s25 + $0xd8] sm:$0xff]  ;;  %v5270_v3 = vld [vmem:[%s12901_s25 + $0xe8] sm:$0xff] }
 0x45b   : > { %v10349_v33 = vadd.f32 %v10348_v51, %v10347_v37  ;;  %v10454_v60 = vpop.f32.mrb[199].mxu0  ;;  %v5269_v37 = vld [vmem:[%s12901_s25 + $0xe0] sm:$0xff] }
 0x45c   : > { %v14588_v7 = vadd.f32 %v10452_v38, %v4543_v41  ;;  %v10455_v28 = vadd.f32 %v10454_v60, %v10453_v14  ;;  %11801 = vmatmul.mubr.bf16.gmra.mrb[20].mxu1 %v14355_v4  ;;  %v4551_v4 = vadd.f32 %v10346_v44, %v14479_v53 }
 0x45d   : > { %11804 = vmatprep.mubr.bf16.mxu1 %v14366_v50  ;;  %11845 = vmatmul.mubr.bf16.gmra.mrb[48].mxu0 %v5282_v34  ;;  %v4554_v30 = vadd.f32 %v10349_v33, %v14479_v53 }
 0x45e   : > { %v14592_v19 = vadd.f32 %v10455_v28, %v4546_v43  ;;  %11848 = vmatprep.mubr.bf16.mxu0 %v5283_v9  ;;  %v5286_v9 = vpack.c.bf16 %v5268_v35, %v5267_v55  ;;  %v5287_v43 = vpack.c.bf16 %v5270_v3, %v5269_v37  ;;  %v12156_v3 = vld [vmem:[#allocation12 + $0x40] sm:$0xff]  }
 0x45f   : > { %v10350_v40 = vpop.f32.mrb[172].mxu1  ;;  %10764 = vmatprep.subr.bf16.mxu1 %v12156_v3 }
 0x460   : > { %v10351_v8 = vpop.f32.mrb[173].mxu1  ;;  %v10456_v25 = vpop.f32.mrb[200].mxu0 }
 0x461   : > { %v10352_v31 = vadd.f32 %v10351_v8, %v10350_v40  ;;  %v10353_v0 = vpop.f32.mrb[174].mxu1  ;;  %v10457_v16 = vpop.f32.mrb[201].mxu0 }
 0x462   : > { %v10458_v50 = vadd.f32 %v10457_v16, %v10456_v25  ;;  %v10354_v63 = vpop.f32.mrb[175].mxu1  ;;  %v10459_v21 = vpop.f32.mrb[202].mxu0  ;;  %v5271_v25 = vld [vmem:[%s12901_s25 + $0xf0] sm:$0xff] }
 0x463   : > { %v10355_v2 = vadd.f32 %v10354_v63, %v10353_v0  ;;  %v10460_v11 = vpop.f32.mrb[203].mxu0 }
 0x464   : > { %v14600_v59 = vadd.f32 %v10458_v50, %v4551_v4  ;;  %v10461_v5 = vadd.f32 %v10460_v11, %v10459_v21  ;;  %11805 = vmatmul.mubr.bf16.gmra.mrb[24].mxu1 %v14381_v32  ;;  %v4559_v32 = vadd.f32 %v10352_v31, %v14479_v53  ;;  %v5272_v31 = vld [vmem:[%s12901_s25 + $0xf8] sm:$0xff]  ;;  %s16570_s25 = sld [smem:[#allocation75_spill]] }
 0x465   : > { %11808 = vmatprep.mubr.bf16.mxu1 %v14394_v52  ;;  %11849 = vmatmul.mubr.bf16.gmra.mrb[52].mxu0 %v5284_v20  ;;  %v4562_v49 = vadd.f32 %v10355_v2, %v14479_v53  ;;  %v5288_v21 = vpack.c.bf16 %v5272_v31, %v5271_v25 }
 0x466   : > { %v14604_v22 = vadd.f32 %v10461_v5, %v4554_v30  ;;  %11852 = vmatprep.mubr.bf16.mxu0 %v5285_v24 }
 0x467   : > { %v10356_v44 = vpop.f32.mrb[176].mxu1 }
 0x468   : > { %v10357_v34 = vpop.f32.mrb[177].mxu1  ;;  %v10462_v41 = vpop.f32.mrb[204].mxu0 }
 0x469   : > { %v10358_v38 = vadd.f32 %v10357_v34, %v10356_v44  ;;  %v10359_v51 = vpop.f32.mrb[178].mxu1  ;;  %v10463_v14 = vpop.f32.mrb[205].mxu0  ;;  %v12157_v34 = vld [vmem:[#allocation12 + $0xc0] sm:$0xff]  }
 0x46a   : > { %v10464_v52 = vadd.f32 %v10463_v14, %v10462_v41  ;;  %v10360_v33 = vpop.f32.mrb[179].mxu1  ;;  %v10465_v60 = vpop.f32.mrb[206].mxu0  ;;  %v12158_v41 = vld [vmem:[#allocation12] sm:$0xff]   ;;  %10876 = vmatprep.subr.bf16.mxu0 %v12157_v34 }
 0x46b   : > { %v10361_v28 = vadd.f32 %v10360_v33, %v10359_v51  ;;  %v10466_v12 = vpop.f32.mrb[207].mxu0  ;;  %v4567_v24 = vadd.f32 %v10358_v38, %v14479_v53  ;;  %v12159_v14 = vld [vmem:[#allocation12 + $0x80] sm:$0xff]   ;;  %10765 = vmatpush3.bf16.msra.mxu1 %v12158_v41  ;;  %v12171_v41 = vld [vmem:[#allocation12 + $0x98] sm:$0xff]  }
 0x46c   : > { %v14612_v40 = vadd.f32 %v10464_v52, %v4559_v32  ;;  %v10467_v47 = vadd.f32 %v10466_v12, %v10465_v60  ;;  %11809 = vmatmul.mubr.bf16.gmra.mrb[28].mxu1 %v16564_v23  ;;  %v12161_v32 = vld [vmem:[#allocation12 + $0xc8] sm:$0xff]   ;;  %10877 = vmatpush3.bf16.msra.mxu0 %v12159_v14 }
 0x46d   : > { %11853 = vmatmul.mubr.bf16.gmra.mrb[56].mxu0 %v5286_v9  ;;  %7909 = vmatprep.mubr.bf16.mxu1 %v16562_v39  ;;  %v4570_v35 = vadd.f32 %v10361_v28, %v14479_v53  ;;  %v12160_v9 = vld [vmem:[#allocation12 + $0x48] sm:$0xff]  }
 0x46e   : > { %v14616_v8 = vadd.f32 %v10467_v47, %v4562_v49  ;;  %11856 = vmatprep.mubr.bf16.mxu0 %v5287_v43  ;;  %v12162_v60 = vld [vmem:[#allocation12 + $0x8] sm:$0xff]   ;;  %10766 = vmatprep.subr.bf16.mxu1 %v12160_v9 }
 0x46f   : > { %v10362_v0 = vpop.f32.mrb[180].mxu1  ;;  %v12163_v43 = vld [vmem:[#allocation12 + $0x88] sm:$0xff]   ;;  %10878 = vmatprep.subr.bf16.mxu0 %v12161_v32  ;;  %10767 = vmatpush3.bf16.msra.mxu1 %v12162_v60 }
 0x470   : > { %v10363_v16 = vpop.f32.mrb[181].mxu1  ;;  %v10468_v20 = vpop.f32.mrb[208].mxu0  ;;  %10879 = vmatpush3.bf16.msra.mxu0 %v12163_v43 }
 0x471   : > { %v10364_v4 = vadd.f32 %v10363_v16, %v10362_v0  ;;  %v10365_v50 = vpop.f32.mrb[182].mxu1  ;;  %v10469_v63 = vpop.f32.mrb[209].mxu0 }
 0x472   : > { %v10470_v2 = vadd.f32 %v10469_v63, %v10468_v20  ;;  %v10366_v11 = vpop.f32.mrb[183].mxu1  ;;  %v10471_v30 = vpop.f32.mrb[210].mxu0 }
 0x473   : > { %v10367_v5 = vadd.f32 %v10366_v11, %v10365_v50  ;;  %v10472_v55 = vpop.f32.mrb[211].mxu0  ;;  %v4575_v47 = vadd.f32 %v10364_v4, %v14479_v53  ;;  %v12166_v11 = vld [vmem:[#allocation12 + $0x10] sm:$0xff]   ;;  %v12169_v4 = vld [vmem:[#allocation12 + $0xd8] sm:$0xff]  }
 0x474   : > { %v14622_v44 = vadd.f32 %v10470_v2, %v4567_v24  ;;  %v10473_v37 = vadd.f32 %v10472_v55, %v10471_v30  ;;  %v12164_v24 = vld [vmem:[#allocation12 + $0x50] sm:$0xff]  }
 0x475   : > { %11857 = vmatmul.mubr.bf16.gmra.mrb[60].mxu0 %v5288_v21  ;;  %v4578_v50 = vadd.f32 %v10367_v5, %v14479_v53  ;;  %v12165_v2 = vld [vmem:[#allocation12 + $0xd0] sm:$0xff]   ;;  %10768 = vmatprep.subr.bf16.mxu1 %v12164_v24  ;;  %v12170_v5 = vld [vmem:[#allocation12 + $0x18] sm:$0xff]   ;;  %v12176_v24 = vld [vmem:[#allocation12 + $0x68] sm:$0xff]  }
 0x476   : > { %v14624_v51 = vadd.f32 %v10473_v37, %v4570_v35  ;;  %v12167_v55 = vld [vmem:[#allocation12 + $0x90] sm:$0xff]   ;;  %v12168_v35 = vld [vmem:[#allocation12 + $0x58] sm:$0xff]   ;;  %10880 = vmatprep.subr.bf16.mxu0 %v12165_v2  ;;  %10769 = vmatpush3.bf16.msra.mxu1 %v12166_v11 }
 0x477   : > { %v10368_v38 = vpop.f32.mrb[184].mxu1  ;;  %10881 = vmatpush3.bf16.msra.mxu0 %v12167_v55  ;;  %10770 = vmatprep.subr.bf16.mxu1 %v12168_v35 }
 0x478   : > { %v10369_v52 = vpop.f32.mrb[185].mxu1  ;;  %v10474_v33 = vpop.f32.mrb[212].mxu0  ;;  %10882 = vmatprep.subr.bf16.mxu0 %v12169_v4 }
 0x479   : > { %v10370_v28 = vadd.f32 %v10369_v52, %v10368_v38  ;;  %v10371_v12 = vpop.f32.mrb[186].mxu1  ;;  %v10475_v49 = vpop.f32.mrb[213].mxu0 }
 0x47a   : > { %v10476_v25 = vadd.f32 %v10475_v49, %v10474_v33  ;;  %v10372_v31 = vpop.f32.mrb[187].mxu1  ;;  %v10477_v0 = vpop.f32.mrb[214].mxu0  ;;  %10771 = vmatpush3.bf16.msra.mxu1 %v12170_v5 }
 0x47b   : > { %v10373_v16 = vadd.f32 %v10372_v31, %v10371_v12  ;;  %v10478_v20 = vpop.f32.mrb[215].mxu0  ;;  %v4583_v38 = vadd.f32 %v10370_v28, %v14479_v53  ;;  %10883 = vmatpush3.bf16.msra.mxu0 %v12171_v41  ;;  %v12172_v31 = vld [vmem:[#allocation12 + $0x60] sm:$0xff]   ;;  %v12177_v28 = vld [vmem:[#allocation12 + $0xe8] sm:$0xff]  }
 0x47c   : > { %v14628_v63 = vadd.f32 %v10476_v25, %v4575_v47  ;;  %v10479_v21 = vadd.f32 %v10478_v20, %v10477_v0  ;;  %v12173_v0 = vld [vmem:[#allocation12 + $0xe0] sm:$0xff]   ;;  %10772 = vmatprep.subr.bf16.mxu1 %v12172_v31  ;;  %v12178_v41 = vld [vmem:[#allocation12 + $0x28] sm:$0xff]   ;;  %v12182_v31 = vld [vmem:[#allocation12 + $0x30] sm:$0xff]  }
 0x47d   : > { %v4586_v49 = vadd.f32 %v10373_v16, %v14479_v53  ;;  %v12174_v20 = vld [vmem:[#allocation12 + $0x20] sm:$0xff]   ;;  %10884 = vmatprep.subr.bf16.mxu0 %v12173_v0 }
 0x47e   : > { %v14630_v30 = vadd.f32 %v10479_v21, %v4578_v50  ;;  %v12175_v21 = vld [vmem:[#allocation12 + $0xa0] sm:$0xff]   ;;  %10773 = vmatpush3.bf16.msra.mxu1 %v12174_v20  ;;  %v12183_v20 = vld [vmem:[#allocation12 + $0xb0] sm:$0xff]  }
 0x47f   : > { %v10374_v37 = vpop.f32.mrb[188].mxu1  ;;  %10885 = vmatpush3.bf16.msra.mxu0 %v12175_v21  ;;  %10774 = vmatprep.subr.bf16.mxu1 %v12176_v24  ;;  %v12184_v21 = vld [vmem:[#allocation12 + $0x78] sm:$0xff]  }
 0x480   : > { %v10375_v3 = vpop.f32.mrb[189].mxu1  ;;  %v10480_v34 = vpop.f32.mrb[216].mxu0  ;;  %10886 = vmatprep.subr.bf16.mxu0 %v12177_v28  ;;  %v12185_v24 = vld [vmem:[#allocation12 + $0xf8] sm:$0xff]  }
 0x481   : > { %v10376_v14 = vadd.f32 %v10375_v3, %v10374_v37  ;;  %v10377_v9 = vpop.f32.mrb[190].mxu1  ;;  %v10481_v32 = vpop.f32.mrb[217].mxu0 }
 0x482   : > { %v10482_v52 = vadd.f32 %v10481_v32, %v10480_v34  ;;  %v10378_v33 = vpop.f32.mrb[191].mxu1  ;;  %v10483_v60 = vpop.f32.mrb[218].mxu0  ;;  %10775 = vmatpush3.bf16.msra.mxu1 %v12178_v41 }
 0x483   : > { %v10379_v43 = vadd.f32 %v10378_v33, %v10377_v9  ;;  %v10484_v12 = vpop.f32.mrb[219].mxu0  ;;  %v4591_v37 = vadd.f32 %v10376_v14, %v14479_v53  ;;  %v12179_v9 = vld [vmem:[#allocation12 + $0xa8] sm:$0xff]   ;;  %v12181_v14 = vld [vmem:[#allocation12 + $0xf0] sm:$0xff]  }
 0x484   : > { %v14634_v47 = vadd.f32 %v10482_v52, %v4583_v38  ;;  %v10485_v25 = vadd.f32 %v10484_v12, %v10483_v60  ;;  %10887 = vmatpush3.bf16.msra.mxu0 %v12179_v9 }
 0x485   : > { %v4594_v33 = vadd.f32 %v10379_v43, %v14479_v53  ;;  %10888 = vmatprep.subr.bf16.mxu0 %v12181_v14 }
 0x486   : > { %v14636_v50 = vadd.f32 %v10485_v25, %v4586_v49  ;;  %v12180_v25 = vld [vmem:[#allocation12 + $0x70] sm:$0xff]  }
 0x487   : > { %v10508_v2 = vpop.f32.mrb[192].mxu1  ;;  %10776 = vmatprep.subr.bf16.mxu1 %v12180_v25  ;;  %v16565_v25 = vmov 0.0  }
 0x488   : > { %v10486_v11 = vpop.f32.mrb[220].mxu0  ;;  %v10509_v55 = vpop.f32.mrb[193].mxu1  ;;  %10777 = vmatpush3.bf16.msra.mxu1 %v12182_v31  ;;  %10889 = vmatpush3.bf16.msra.mxu0 %v12183_v20  ;;  %v14654_v14 = vrot.slane %v16565_v25, 2 }
 0x489   : > { %v10510_v16 = vadd.f32 %v10509_v55, %v10508_v2  ;;  %v10487_v35 = vpop.f32.mrb[221].mxu0  ;;  %v10511_v4 = vpop.f32.mrb[194].mxu1  ;;  %10778 = vmatprep.subr.bf16.mxu1 %v12184_v21  ;;  %10890 = vmatprep.subr.bf16.mxu0 %v12185_v24 }
 0x48a   : > { %v10488_v3 = vadd.f32 %v10487_v35, %v10486_v11  ;;  %v10489_v34 = vpop.f32.mrb[222].mxu0  ;;  %v10512_v5 = vpop.f32.mrb[195].mxu1  ;;  %v12186_v35 = vld [vmem:[#allocation12 + $0x38] sm:$0xff]  }
 0x48b   : > { %v4793_v32 = vadd.f32 %v10510_v16, %v14485_v48  ;;  %v10513_v38 = vadd.f32 %v10512_v5, %v10511_v4  ;;  %v10490_v52 = vpop.f32.mrb[223].mxu0  ;;  %v12187_v4 = vld [vmem:[#allocation12 + $0xb8] sm:$0xff]  }
 0x48c   : > { %v14641_v60 = vadd.f32 %v10488_v3, %v4591_v37  ;;  %v10491_v12 = vadd.f32 %v10490_v52, %v10489_v34  ;;  %10779 = vmatpush3.bf16.msra.mxu1 %v12186_v35  ;;  %10891 = vmatpush3.bf16.msra.mxu0 %v12187_v4 }
 0x48d   : > { %v4796_v49 = vadd.f32 %v10513_v38, %v14490_v6 }
 0x48e   : > { %v14644_v0 = vadd.f32 %v10491_v12, %v4594_v33 }
 0x48f   : > { %v10514_v48 = vpop.f32.mrb[196].mxu1  ;;  %7910 = vmatmul.mubr.bf16.vlgmr.msra.gmra.mrb[32].mxu1 %v16563_v46  ;;  %v12203_v46 = vld [vmem:[#allocation12 + $0x198] sm:$0xff]  }
 0x490   : > { %v10515_v28 = vpop.f32.mrb[197].mxu1  ;;  %v10620_v53 = vpop.f32.mrb[224].mxu0 }
 0x491   : > { %v10516_v43 = vadd.f32 %v10515_v28, %v10514_v48  ;;  %v10517_v2 = vpop.f32.mrb[198].mxu1  ;;  %v10621_v11 = vpop.f32.mrb[225].mxu0  ;;  %v14658_v48 = vpack.c.bf16 %v14654_v14, %v14654_v14 }
 0x492   : > { %v10622_v6 = vadd.f32 %v10621_v11, %v10620_v53  ;;  %v10518_v55 = vpop.f32.mrb[199].mxu1  ;;  %v10623_v16 = vpop.f32.mrb[226].mxu0 }
 0x493   : > { %v4801_v37 = vadd.f32 %v10516_v43, %v14495_v56  ;;  %v10519_v3 = vadd.f32 %v10518_v55, %v10517_v2  ;;  %v10624_v34 = vpop.f32.mrb[227].mxu0  ;;  %16566 = vst [vmem:[#allocation26_spill] sm:$0xff] %v14658_v48  ;;  %8070 = vmatprep.mubr.bf16.mxu0 %v14658_v48 }
 0x494   : > { %v10625_v5 = vadd.f32 %v10624_v34, %v10623_v16  ;;  %v14647_v41 = vadd.f32 %v10622_v6, %v4793_v32  ;;  %8071 = vmatmul.mubr.bf16.vlgmr.msra.gmra.mrb[64].mxu0 %v16564_v23 }
 0x495   : > { %v4804_v9 = vadd.f32 %v10519_v3, %v14500_v13 }
 0x496   : > { %v14650_v38 = vadd.f32 %v10625_v5, %v4796_v49 }
 0x497   : > { %v10520_v52 = vpop.f32.mrb[200].mxu1 }
 0x498   : > { %v10521_v33 = vpop.f32.mrb[201].mxu1  ;;  %v10626_v12 = vpop.f32.mrb[228].mxu0 }
 0x499   : > { %v10522_v56 = vadd.f32 %v10521_v33, %v10520_v52  ;;  %v10523_v31 = vpop.f32.mrb[202].mxu1  ;;  %v10627_v20 = vpop.f32.mrb[229].mxu0 }
 0x49a   : > { %v10628_v21 = vadd.f32 %v10627_v20, %v10626_v12  ;;  %v10524_v32 = vpop.f32.mrb[203].mxu1  ;;  %v10629_v24 = vpop.f32.mrb[230].mxu0 }
 0x49b   : > { %v4809_v13 = vadd.f32 %v10522_v56, %v14505_v15  ;;  %v10525_v49 = vadd.f32 %v10524_v32, %v10523_v31  ;;  %v10630_v28 = vpop.f32.mrb[231].mxu0 }
 0x49c   : > { %v10631_v53 = vadd.f32 %v10630_v28, %v10629_v24  ;;  %v14661_v43 = vadd.f32 %v10628_v21, %v4801_v37 }
 0x49d   : > { %v4812_v2 = vadd.f32 %v10525_v49, %v14510_v61 }
 0x49e   : > { %v14666_v11 = vadd.f32 %v10631_v53, %v4804_v9 }
 0x49f   : > { %v10526_v6 = vpop.f32.mrb[204].mxu1 }
 0x4a0   : > { %v10527_v55 = vpop.f32.mrb[205].mxu1  ;;  %v10632_v16 = vpop.f32.mrb[232].mxu0 }
 0x4a1   : > { %v10528_v35 = vadd.f32 %v10527_v55, %v10526_v6  ;;  %v10529_v4 = vpop.f32.mrb[206].mxu1  ;;  %v10633_v3 = vpop.f32.mrb[233].mxu0 }
 0x4a2   : > { %v10634_v15 = vadd.f32 %v10633_v3, %v10632_v16  ;;  %v10530_v34 = vpop.f32.mrb[207].mxu1  ;;  %v10635_v5 = vpop.f32.mrb[234].mxu0 }
 0x4a3   : > { %v4817_v37 = vadd.f32 %v10528_v35, %v14515_v10  ;;  %v10531_v52 = vadd.f32 %v10530_v34, %v10529_v4  ;;  %v10636_v33 = vpop.f32.mrb[235].mxu0 }
 0x4a4   : > { %v10637_v12 = vadd.f32 %v10636_v33, %v10635_v5  ;;  %v14669_v25 = vadd.f32 %v10634_v15, %v4809_v13 }
 0x4a5   : > { %v4820_v61 = vadd.f32 %v10531_v52, %v14520_v26 }
 0x4a6   : > { %v14672_v9 = vadd.f32 %v10637_v12, %v4812_v2 }
 0x4a7   : > { %v10532_v56 = vpop.f32.mrb[208].mxu1 }
 0x4a8   : > { %v10533_v31 = vpop.f32.mrb[209].mxu1  ;;  %v10638_v20 = vpop.f32.mrb[236].mxu0 }
 0x4a9   : > { %v10534_v21 = vadd.f32 %v10533_v31, %v10532_v56  ;;  %v10535_v32 = vpop.f32.mrb[210].mxu1  ;;  %v10639_v24 = vpop.f32.mrb[237].mxu0 }
 0x4aa   : > { %v10640_v49 = vadd.f32 %v10639_v24, %v10638_v20  ;;  %v10536_v28 = vpop.f32.mrb[211].mxu1  ;;  %v10641_v53 = vpop.f32.mrb[238].mxu0 }
 0x4ab   : > { %v4825_v10 = vadd.f32 %v10534_v21, %v14527_v45  ;;  %v10537_v6 = vadd.f32 %v10536_v28, %v10535_v32  ;;  %v10642_v55 = vpop.f32.mrb[239].mxu0 }
 0x4ac   : > { %v10643_v16 = vadd.f32 %v10642_v55, %v10641_v53  ;;  %v14675_v13 = vadd.f32 %v10640_v49, %v4817_v37 }
 0x4ad   : > { %v4828_v26 = vadd.f32 %v10537_v6, %v14532_v58 }
 0x4ae   : > { %v14678_v2 = vadd.f32 %v10643_v16, %v4820_v61 }
 0x4af   : > { %v10538_v35 = vpop.f32.mrb[212].mxu1 }
 0x4b0   : > { %v10539_v4 = vpop.f32.mrb[213].mxu1  ;;  %v10644_v3 = vpop.f32.mrb[240].mxu0 }
 0x4b1   : > { %v10540_v15 = vadd.f32 %v10539_v4, %v10538_v35  ;;  %v10541_v34 = vpop.f32.mrb[214].mxu1  ;;  %v10645_v5 = vpop.f32.mrb[241].mxu0 }
 0x4b2   : > { %v10646_v52 = vadd.f32 %v10645_v5, %v10644_v3  ;;  %v10542_v33 = vpop.f32.mrb[215].mxu1  ;;  %v10647_v12 = vpop.f32.mrb[242].mxu0 }
 0x4b3   : > { %v4833_v45 = vadd.f32 %v10540_v15, %v14540_v18  ;;  %v10543_v56 = vadd.f32 %v10542_v33, %v10541_v34  ;;  %v10648_v31 = vpop.f32.mrb[243].mxu0 }
 0x4b4   : > { %v10649_v20 = vadd.f32 %v10648_v31, %v10647_v12  ;;  %v14681_v37 = vadd.f32 %v10646_v52, %v4825_v10 }
 0x4b5   : > { %v4836_v58 = vadd.f32 %v10543_v56, %v14544_v42 }
 0x4b6   : > { %v14684_v61 = vadd.f32 %v10649_v20, %v4828_v26 }
 0x4b7   : > { %v10544_v21 = vpop.f32.mrb[216].mxu1 }
 0x4b8   : > { %v10545_v32 = vpop.f32.mrb[217].mxu1  ;;  %v10650_v24 = vpop.f32.mrb[244].mxu0 }
 0x4b9   : > { %v10546_v49 = vadd.f32 %v10545_v32, %v10544_v21  ;;  %v10547_v28 = vpop.f32.mrb[218].mxu1  ;;  %v10651_v53 = vpop.f32.mrb[245].mxu0 }
 0x4ba   : > { %v10652_v6 = vadd.f32 %v10651_v53, %v10650_v24  ;;  %v10548_v55 = vpop.f32.mrb[219].mxu1  ;;  %v10653_v16 = vpop.f32.mrb[246].mxu0 }
 0x4bb   : > { %v4841_v18 = vadd.f32 %v10546_v49, %v14552_v54  ;;  %v10549_v35 = vadd.f32 %v10548_v55, %v10547_v28  ;;  %v10654_v4 = vpop.f32.mrb[247].mxu0 }
 0x4bc   : > { %v10655_v3 = vadd.f32 %v10654_v4, %v10653_v16  ;;  %v14687_v10 = vadd.f32 %v10652_v6, %v4833_v45 }
 0x4bd   : > { %v4844_v42 = vadd.f32 %v10549_v35, %v14556_v17 }
 0x4be   : > { %v14690_v26 = vadd.f32 %v10655_v3, %v4836_v58 }
 0x4bf   : > { %v10550_v15 = vpop.f32.mrb[220].mxu1 }
 0x4c0   : > { %v10551_v34 = vpop.f32.mrb[221].mxu1  ;;  %v10656_v5 = vpop.f32.mrb[248].mxu0 }
 0x4c1   : > { %v10552_v52 = vadd.f32 %v10551_v34, %v10550_v15  ;;  %v10553_v33 = vpop.f32.mrb[222].mxu1  ;;  %v10657_v12 = vpop.f32.mrb[249].mxu0 }
 0x4c2   : > { %v10658_v56 = vadd.f32 %v10657_v12, %v10656_v5  ;;  %v10554_v31 = vpop.f32.mrb[223].mxu1  ;;  %v10659_v20 = vpop.f32.mrb[250].mxu0 }
 0x4c3   : > { %v4849_v54 = vadd.f32 %v10552_v52, %v14564_v57  ;;  %v10555_v21 = vadd.f32 %v10554_v31, %v10553_v33  ;;  %v10660_v32 = vpop.f32.mrb[251].mxu0 }
 0x4c4   : > { %v10661_v24 = vadd.f32 %v10660_v32, %v10659_v20  ;;  %v14693_v45 = vadd.f32 %v10658_v56, %v4841_v18 }
 0x4c5   : > { %v4852_v17 = vadd.f32 %v10555_v21, %v14568_v62 }
 0x4c6   : > { %v14696_v58 = vadd.f32 %v10661_v24, %v4844_v42 }
 0x4c7   : > { %v10556_v49 = vpop.f32.mrb[224].mxu1 }
 0x4c8   : > { %v10557_v28 = vpop.f32.mrb[225].mxu1  ;;  %v10662_v53 = vpop.f32.mrb[252].mxu0 }
 0x4c9   : > { %v10558_v6 = vadd.f32 %v10557_v28, %v10556_v49  ;;  %v10559_v55 = vpop.f32.mrb[226].mxu1  ;;  %v10663_v16 = vpop.f32.mrb[253].mxu0 }
 0x4ca   : > { %v10664_v35 = vadd.f32 %v10663_v16, %v10662_v53  ;;  %v10560_v4 = vpop.f32.mrb[227].mxu1  ;;  %v10665_v3 = vpop.f32.mrb[254].mxu0 }
 0x4cb   : > { %v4857_v57 = vadd.f32 %v10558_v6, %v14576_v27  ;;  %v10561_v15 = vadd.f32 %v10560_v4, %v10559_v55  ;;  %v10666_v34 = vpop.f32.mrb[255].mxu0 }
 0x4cc   : > { %v10667_v5 = vadd.f32 %v10666_v34, %v10665_v3  ;;  %v14699_v18 = vadd.f32 %v10664_v35, %v4849_v54 }
 0x4cd   : > { %v4860_v62 = vadd.f32 %v10561_v15, %v14580_v1 }
 0x4ce   : > { %v14702_v42 = vadd.f32 %v10667_v5, %v4852_v17 }
 0x4cf   : > { %v10562_v52 = vpop.f32.mrb[228].mxu1 }
 0x4d0   : > { %v10563_v33 = vpop.f32.mrb[229].mxu1  ;;  %v10668_v12 = vpop.f32.mrb[0].mxu0 }
 0x4d1   : > { %v10564_v56 = vadd.f32 %v10563_v33, %v10562_v52  ;;  %v10565_v31 = vpop.f32.mrb[230].mxu1  ;;  %v10669_v20 = vpop.f32.mrb[1].mxu0 }
 0x4d2   : > { %v10670_v21 = vadd.f32 %v10669_v20, %v10668_v12  ;;  %v10566_v32 = vpop.f32.mrb[231].mxu1  ;;  %v10671_v24 = vpop.f32.mrb[2].mxu0 }
 0x4d3   : > { %v4865_v27 = vadd.f32 %v10564_v56, %v14588_v7  ;;  %v10567_v49 = vadd.f32 %v10566_v32, %v10565_v31  ;;  %v10672_v28 = vpop.f32.mrb[3].mxu0 }
 0x4d4   : > { %v10673_v53 = vadd.f32 %v10672_v28, %v10671_v24  ;;  %v14705_v54 = vadd.f32 %v10670_v21, %v4857_v57 }
 0x4d5   : > { %v4868_v1 = vadd.f32 %v10567_v49, %v14592_v19 }
 0x4d6   : > { %v14708_v17 = vadd.f32 %v10673_v53, %v4860_v62 }
 0x4d7   : > { %v10568_v6 = vpop.f32.mrb[232].mxu1 }
 0x4d8   : > { %v10569_v55 = vpop.f32.mrb[233].mxu1  ;;  %v10674_v16 = vpop.f32.mrb[4].mxu0 }
 0x4d9   : > { %v10570_v35 = vadd.f32 %v10569_v55, %v10568_v6  ;;  %v10571_v4 = vpop.f32.mrb[234].mxu1  ;;  %v10675_v3 = vpop.f32.mrb[5].mxu0 }
 0x4da   : > { %v10676_v15 = vadd.f32 %v10675_v3, %v10674_v16  ;;  %v10572_v34 = vpop.f32.mrb[235].mxu1  ;;  %v10677_v5 = vpop.f32.mrb[6].mxu0 }
 0x4db   : > { %v4873_v7 = vadd.f32 %v10570_v35, %v14600_v59  ;;  %v10573_v52 = vadd.f32 %v10572_v34, %v10571_v4  ;;  %v10678_v33 = vpop.f32.mrb[7].mxu0 }
 0x4dc   : > { %v10679_v12 = vadd.f32 %v10678_v33, %v10677_v5  ;;  %v14711_v57 = vadd.f32 %v10676_v15, %v4865_v27 }
 0x4dd   : > { %v4876_v19 = vadd.f32 %v10573_v52, %v14604_v22 }
 0x4de   : > { %v14714_v62 = vadd.f32 %v10679_v12, %v4868_v1 }
 0x4df   : > { %v10574_v56 = vpop.f32.mrb[236].mxu1 }
 0x4e0   : > { %v10575_v31 = vpop.f32.mrb[237].mxu1  ;;  %v10680_v20 = vpop.f32.mrb[8].mxu0 }
 0x4e1   : > { %v10576_v21 = vadd.f32 %v10575_v31, %v10574_v56  ;;  %v10577_v32 = vpop.f32.mrb[238].mxu1  ;;  %v10681_v24 = vpop.f32.mrb[9].mxu0 }
 0x4e2   : > { %v10682_v49 = vadd.f32 %v10681_v24, %v10680_v20  ;;  %v10578_v28 = vpop.f32.mrb[239].mxu1  ;;  %v10683_v53 = vpop.f32.mrb[10].mxu0 }
 0x4e3   : > { %v4881_v59 = vadd.f32 %v10576_v21, %v14612_v40  ;;  %v10579_v6 = vadd.f32 %v10578_v28, %v10577_v32  ;;  %v10684_v55 = vpop.f32.mrb[11].mxu0 }
 0x4e4   : > { %v10685_v16 = vadd.f32 %v10684_v55, %v10683_v53  ;;  %v14717_v27 = vadd.f32 %v10682_v49, %v4873_v7 }
 0x4e5   : > { %v4884_v22 = vadd.f32 %v10579_v6, %v14616_v8 }
 0x4e6   : > { %v14720_v1 = vadd.f32 %v10685_v16, %v4876_v19 }
 0x4e7   : > { %v10580_v35 = vpop.f32.mrb[240].mxu1 }
 0x4e8   : > { %v10581_v4 = vpop.f32.mrb[241].mxu1  ;;  %v10686_v3 = vpop.f32.mrb[12].mxu0 }
 0x4e9   : > { %v10582_v15 = vadd.f32 %v10581_v4, %v10580_v35  ;;  %v10583_v34 = vpop.f32.mrb[242].mxu1  ;;  %v10687_v5 = vpop.f32.mrb[13].mxu0 }
 0x4ea   : > { %v10688_v52 = vadd.f32 %v10687_v5, %v10686_v3  ;;  %v10584_v33 = vpop.f32.mrb[243].mxu1  ;;  %v10689_v12 = vpop.f32.mrb[14].mxu0  ;;  %v12190_v5 = vld [vmem:[#allocation12 + $0x1c0] sm:$0xff]  }
 0x4eb   : > { %v4889_v40 = vadd.f32 %v10582_v15, %v14622_v44  ;;  %v10585_v56 = vadd.f32 %v10584_v33, %v10583_v34  ;;  %v10690_v31 = vpop.f32.mrb[15].mxu0  ;;  %v12188_v15 = vld [vmem:[#allocation12 + $0x140] sm:$0xff]   ;;  %11100 = vmatprep.subr.bf16.mxu0 %v12190_v5 }
 0x4ec   : > { %v10691_v20 = vadd.f32 %v10690_v31, %v10689_v12  ;;  %v14723_v7 = vadd.f32 %v10688_v52, %v4881_v59  ;;  %v12189_v34 = vld [vmem:[#allocation12 + $0x100] sm:$0xff]   ;;  %10988 = vmatprep.subr.bf16.mxu1 %v12188_v15 }
 0x4ed   : > { %v4892_v8 = vadd.f32 %v10585_v56, %v14624_v51  ;;  %v12191_v33 = vld [vmem:[#allocation12 + $0x180] sm:$0xff]   ;;  %10989 = vmatpush3.bf16.msra.mxu1 %v12189_v34 }
 0x4ee   : > { %v14726_v19 = vadd.f32 %v10691_v20, %v4884_v22  ;;  %11101 = vmatpush3.bf16.msra.mxu0 %v12191_v33 }
 0x4ef   : > { %v10586_v21 = vpop.f32.mrb[244].mxu1 }
 0x4f0   : > { %v10587_v32 = vpop.f32.mrb[245].mxu1  ;;  %v10692_v24 = vpop.f32.mrb[16].mxu0 }
 0x4f1   : > { %v10588_v49 = vadd.f32 %v10587_v32, %v10586_v21  ;;  %v10589_v28 = vpop.f32.mrb[246].mxu1  ;;  %v10693_v53 = vpop.f32.mrb[17].mxu0 }
 0x4f2   : > { %v10694_v6 = vadd.f32 %v10693_v53, %v10692_v24  ;;  %v10590_v55 = vpop.f32.mrb[247].mxu1  ;;  %v10695_v16 = vpop.f32.mrb[18].mxu0 }
 0x4f3   : > { %v4897_v44 = vadd.f32 %v10588_v49, %v14628_v63  ;;  %v10591_v35 = vadd.f32 %v10590_v55, %v10589_v28  ;;  %v10696_v4 = vpop.f32.mrb[19].mxu0 }
 0x4f4   : > { %v10697_v3 = vadd.f32 %v10696_v4, %v10695_v16  ;;  %v14729_v59 = vadd.f32 %v10694_v6, %v4889_v40 }
 0x4f5   : > { %v4900_v51 = vadd.f32 %v10591_v35, %v14630_v30 }
 0x4f6   : > { %v14732_v22 = vadd.f32 %v10697_v3, %v4892_v8 }
 0x4f7   : > { %v10592_v52 = vpop.f32.mrb[248].mxu1 }
 0x4f8   : > { %v10593_v12 = vpop.f32.mrb[249].mxu1  ;;  %v10698_v56 = vpop.f32.mrb[20].mxu0 }
 0x4f9   : > { %v10594_v31 = vadd.f32 %v10593_v12, %v10592_v52  ;;  %v10595_v63 = vpop.f32.mrb[250].mxu1  ;;  %v10699_v20 = vpop.f32.mrb[21].mxu0 }
 0x4fa   : > { %v10700_v40 = vadd.f32 %v10699_v20, %v10698_v56  ;;  %v10596_v21 = vpop.f32.mrb[251].mxu1  ;;  %v10701_v32 = vpop.f32.mrb[22].mxu0  ;;  %v12195_v20 = vld [vmem:[#allocation12 + $0x188] sm:$0xff]  }
 0x4fb   : > { %v4905_v30 = vadd.f32 %v10594_v31, %v14634_v47  ;;  %v10597_v8 = vadd.f32 %v10596_v21, %v10595_v63  ;;  %v10702_v24 = vpop.f32.mrb[23].mxu0  ;;  %v12192_v31 = vld [vmem:[#allocation12 + $0x148] sm:$0xff]  }
 0x4fc   : > { %v10703_v49 = vadd.f32 %v10702_v24, %v10701_v32  ;;  %v14735_v28 = vadd.f32 %v10700_v40, %v4897_v44  ;;  %10990 = vmatprep.subr.bf16.mxu1 %v12192_v31 }
 0x4fd   : > { %v4908_v53 = vadd.f32 %v10597_v8, %v14636_v50  ;;  %v12193_v50 = vld [vmem:[#allocation12 + $0x108] sm:$0xff]  }
 0x4fe   : > { %v14738_v6 = vadd.f32 %v10703_v49, %v4900_v51  ;;  %v12194_v51 = vld [vmem:[#allocation12 + $0x1c8] sm:$0xff]   ;;  %10991 = vmatpush3.bf16.msra.mxu1 %v12193_v50 }
 0x4ff   : > { %v10598_v55 = vpop.f32.mrb[252].mxu1  ;;  %11102 = vmatprep.subr.bf16.mxu0 %v12194_v51 }
 0x500   : > { %v10599_v16 = vpop.f32.mrb[253].mxu1  ;;  %v10704_v35 = vpop.f32.mrb[24].mxu0  ;;  %11103 = vmatpush3.bf16.msra.mxu0 %v12195_v20 }
 0x501   : > { %v10600_v4 = vadd.f32 %v10599_v16, %v10598_v55  ;;  %v10601_v3 = vpop.f32.mrb[254].mxu1  ;;  %v10705_v15 = vpop.f32.mrb[25].mxu0 }
 0x502   : > { %v10706_v34 = vadd.f32 %v10705_v15, %v10704_v35  ;;  %v10602_v5 = vpop.f32.mrb[255].mxu1  ;;  %v10707_v52 = vpop.f32.mrb[26].mxu0 }
 0x503   : > { %v4913_v47 = vadd.f32 %v10600_v4, %v14641_v60  ;;  %v10603_v33 = vadd.f32 %v10602_v5, %v10601_v3  ;;  %v10708_v12 = vpop.f32.mrb[27].mxu0 }
 0x504   : > { %v10709_v56 = vadd.f32 %v10708_v12, %v10707_v52  ;;  %v14741_v44 = vadd.f32 %v10706_v34, %v4905_v30 }
 0x505   : > { %v4916_v63 = vadd.f32 %v10603_v33, %v14644_v0 }
 0x506   : > { %16567 = vst [vmem:[#allocation27_spill] sm:$0xff] %v14741_v44  ;;  %v14744_v40 = vadd.f32 %v10709_v56, %v4908_v53 }
 0x507   : > { %v11782_v21 = vpop.f32.mrb[0].mxu1 }
 0x508   : > { %16568 = vst [vmem:[#allocation28_spill] sm:$0xff] %v14744_v40  ;;  %v5123_v60 = vadd.f32 %v11782_v21, %v14661_v43  ;;  %v10710_v32 = vpop.f32.mrb[28].mxu0  ;;  %v5114_v8 = vpop.f32.mrb[1].mxu1  ;;  %v14755_v43 = vld [vmem:[%s16570_s25] ss:$0 sm:$0xff] }
 0x509   : > { %v5115_v30 = vadd.f32 %v5114_v8, %v14647_v41  ;;  %v10711_v24 = vpop.f32.mrb[29].mxu0  ;;  %v11783_v49 = vpop.f32.mrb[2].mxu1 }
 0x50a   : > { %v10712_v55 = vadd.f32 %v10711_v24, %v10710_v32  ;;  %v5126_v16 = vadd.f32 %v11783_v49, %v14666_v11  ;;  %v10713_v0 = vpop.f32.mrb[30].mxu0  ;;  %v5117_v35 = vpop.f32.mrb[3].mxu1  ;;  %v5555_v34 = vmul.f32 0.2, %v5123_v60  ;;  %vm5523_vm7 = vcmp.ge.f32.partialorder %v5123_v60, 0.0 }
 0x50b   : > { %v5118_v53 = vadd.f32 %v5117_v35, %v14650_v38  ;;  %v10714_v4 = vpop.f32.mrb[31].mxu0  ;;  %vm5521_vm8 = vcmp.ge.f32.partialorder %v5115_v30, 0.0  ;;  %v5553_v5 = vmul.f32 0.2, %v5115_v30  ;;  %v12196_v35 = vld [vmem:[#allocation12 + $0x150] sm:$0xff]  }
 0x50c   : > { %v10715_v3 = vadd.f32 %v10714_v4, %v10713_v0  ;;  %v14750_v15 = vadd.f32 %v10712_v55, %v4913_v47  ;;  %v5556_v52 = vmul.f32 0.2, %v5126_v16  ;;  %vm5524_vm9 = vcmp.ge.f32.partialorder %v5126_v16, 0.0  ;;  %v12197_v4 = vld [vmem:[#allocation12 + $0x110] sm:$0xff]   ;;  %10992 = vmatprep.subr.bf16.mxu1 %v12196_v35 }
 0x50d   : > { %v5554_v33 = vmul.f32 0.2, %v5118_v53  ;;  %vm5522_vm10 = vcmp.ge.f32.partialorder %v5118_v53, 0.0  ;;  %v5585_v24 = vsel %vm5521_vm8, %v5115_v30, %v5553_v5  ;;  %v12199_v30 = vld [vmem:[#allocation12 + $0x190] sm:$0xff]   ;;  %10993 = vmatpush3.bf16.msra.mxu1 %v12197_v4 }
 0x50e   : > { %16569 = vst [vmem:[#allocation29_spill] sm:$0xff] %v14750_v15  ;;  %v14757_v41 = vadd.f32 %v10715_v3, %v4916_v63  ;;  %v5587_v63 = vsel %vm5523_vm7, %v5123_v60, %v5555_v34  ;;  %v12198_v3 = vld [vmem:[#allocation12 + $0x1d0] sm:$0xff]  }
 0x50f   : > { %v11786_v11 = vpop.f32.mrb[4].mxu1  ;;  %v5586_v0 = vsel %vm5522_vm10, %v5118_v53, %v5554_v33  ;;  %11104 = vmatprep.subr.bf16.mxu0 %v12198_v3 }
 0x510   : > { %16571 = vst [vmem:[#allocation30_spill] sm:$0xff] %v14757_v41  ;;  %v14760_v38 = vadd.f32 %v11786_v11, %v14675_v13  ;;  %v5130_v12 = vpop.f32.mrb[5].mxu1  ;;  %v11830_v47 = vpop.f32.mrb[32].mxu0  ;;  %11105 = vmatpush3.bf16.msra.mxu0 %v12199_v30 }
 0x511   : > { %v14763_v56 = vadd.f32 %v5130_v12, %v14669_v25  ;;  %v5403_v31 = vadd.f32 %v11830_v47, %v14755_v43  ;;  %v11787_v50 = vpop.f32.mrb[6].mxu1  ;;  %v5394_v51 = vpop.f32.mrb[33].mxu0 }
 0x512   : > { %v14767_v20 = vadd.f32 %v11787_v50, %v14678_v2  ;;  %v5395_v21 = vadd.f32 %v14755_v43, %v5394_v51  ;;  %v5133_v32 = vpop.f32.mrb[7].mxu1  ;;  %v11831_v13 = vpop.f32.mrb[34].mxu0  ;;  %v5588_v2 = vsel %vm5524_vm9, %v5126_v16, %v5556_v52  ;;  %vm5527_vm11 = vcmp.ge.f32.partialorder %v14760_v38, 0.0 }
 0x513   : > { %v14770_v8 = vadd.f32 %v5587_v63, %v5403_v31  ;;  %v14774_v25 = vadd.f32 %v5133_v32, %v14672_v9  ;;  %v5397_v49 = vpop.f32.mrb[35].mxu0  ;;  %v5406_v60 = vadd.f32 %v11831_v13, %v14755_v43  ;;  %v5559_v34 = vmul.f32 0.2, %v14760_v38 }
 0x514   : > { %v14776_v55 = vadd.f32 %v5585_v24, %v5395_v21  ;;  %vm5525_vm12 = vcmp.ge.f32.partialorder %v14763_v56, 0.0  ;;  %v5557_v16 = vmul.f32 0.2, %v14763_v56  ;;  %v5560_v53 = vmul.f32 0.2, %v14767_v20 }
 0x515   : > { %5651 = vst [vmem:[%s14786_s28 + $0x10] sm:$0xff] %v14770_v8  ;;  %v5848_v9 = vrot.slane %v14770_v8, 7  ;;  %v14795_v5 = vadd.f32 %v5588_v2, %v5406_v60  ;;  %v5398_v11 = vadd.f32 %v14755_v43, %v5397_v49  ;;  %v6039_v52 = vrot.slane %v14770_v8, 1 }
 0x516   : > { %5649 = vst [vmem:[%s14786_s28] sm:$0xff] %v14776_v55  ;;  %vm5528_vm13 = vcmp.ge.f32.partialorder %v14767_v20, 0.0  ;;  %vm5526_vm14 = vcmp.ge.f32.partialorder %v14774_v25, 0.0  ;;  %v5558_v33 = vmul.f32 0.2, %v14774_v25  ;;  %v5843_v47 = vrot.slane %v14776_v55, 7 }
 0x517   : > { %v11790_v12 = vpop.f32.mrb[8].mxu1  ;;  %5652 = vst [vmem:[%s14786_s28 + $0x18] sm:$0xff] %v14795_v5  ;;  %v5850_v31 = vrot.slane %v14795_v5, 7  ;;  %v6040_v50 = vrot.slane %v14795_v5, 1  ;;  %v14807_v51 = vadd.f32 %v5586_v0, %v5398_v11  ;;  %v5849_v32 = vsel %vm782_vm0, %v12921_v29, %v5848_v9 }
 0x518   : > { %v5146_v63 = vpop.f32.mrb[9].mxu1  ;;  %v11834_v21 = vpop.f32.mrb[36].mxu0  ;;  %v14812_v13 = vadd.f32 %v11790_v12, %v14687_v10 }
 0x519   : > { %v14815_v24 = vadd.f32 %v5146_v63, %v14681_v37  ;;  %v5419_v49 = vadd.f32 %v11834_v21, %v14755_v43  ;;  %v11791_v60 = vpop.f32.mrb[10].mxu1  ;;  %v5410_v2 = vpop.f32.mrb[37].mxu0  ;;  %v5851_v0 = vsel %vm782_vm0, %v5848_v9, %v5850_v31  ;;  %v6041_v35 = vsel %vm975_vm1, %v6039_v52, %v6040_v50  ;;  %5650 = vst [vmem:[%s14786_s28 + $0x8] sm:$0xff] %v14807_v51 }
 0x51a   : > { %v6043_v4 = vsel %vm975_vm1, %v6040_v50, %v12928_v36  ;;  %v5845_v10 = vrot.slane %v14807_v51, 7  ;;  %v5149_v3 = vpop.f32.mrb[11].mxu1  ;;  %v11835_v30 = vpop.f32.mrb[38].mxu0  ;;  %v6034_v37 = vrot.slane %v14776_v55, 1  ;;  %v14826_v11 = vpack.c.bf16 %v5851_v0, %v5849_v32  ;;  %v12200_v32 = vld [vmem:[#allocation12 + $0x158] sm:$0xff]  }
 0x51b   : > { %v14828_v12 = vpack.c.bf16 %v6043_v4, %v6041_v35  ;;  %v6035_v63 = vrot.slane %v14807_v51, 1  ;;  %v5413_v9 = vpop.f32.mrb[39].mxu0  ;;  %v5844_v52 = vsel %vm782_vm0, %v12921_v29, %v5843_v47  ;;  %v5591_v50 = vsel %vm5527_vm11, %v14760_v38, %v5559_v34  ;;  %10994 = vmatprep.subr.bf16.mxu1 %v12200_v32 }
 0x51c   : > { %16572 = vst [vmem:[#allocation31_spill] sm:$0xff] %v14826_v11  ;;  %v5846_v31 = vsel %vm782_vm0, %v5843_v47, %v5845_v10  ;;  %v5589_v21 = vsel %vm5525_vm12, %v14763_v56, %v5557_v16  ;;  %v14845_v23 = vadd.f32 %v5591_v50, %v5419_v49  ;;  %v12201_v47 = vld [vmem:[#allocation12 + $0x118] sm:$0xff]   ;;  %v14850_v38 = vadd.f32 %v11791_v60, %v14690_v26  ;;  %v12204_v16 = vld [vmem:[#allocation12 + $0x160] sm:$0xff]  }
 0x51d   : > { %16573 = vst [vmem:[#allocation32_spill] sm:$0xff] %v14828_v12  ;;  %v14840_v0 = vpack.c.bf16 %v5846_v31, %v5844_v52  ;;  %v6036_v35 = vsel %vm975_vm1, %v6034_v37, %v6035_v63  ;;  %v6038_v4 = vsel %vm975_vm1, %v6035_v63, %v12928_v36  ;;  %v12202_v10 = vld [vmem:[#allocation12 + $0x1d8] sm:$0xff]   ;;  %v5411_v56 = vadd.f32 %v14755_v43, %v5410_v2 }
 0x51e   : > { %v14847_v48 = vpack.c.bf16 %v6038_v4, %v6036_v35  ;;  %v14854_v34 = vadd.f32 %v5149_v3, %v14684_v61  ;;  %5655 = vst [vmem:[%s14786_s28 + $0x30] sm:$0xff] %v14845_v23  ;;  %v5858_v49 = vrot.slane %v14845_v23, 7  ;;  %v5422_v37 = vadd.f32 %v11835_v30, %v14755_v43  ;;  %10995 = vmatpush3.bf16.msra.mxu1 %v12201_v47 }
 0x51f   : > { %16574 = vst [vmem:[#allocation33_spill] sm:$0xff] %v14840_v0  ;;  %v5592_v63 = vsel %vm5528_vm13, %v14767_v20, %v5560_v53  ;;  %v14865_v26 = vpack.c.bf16 %v14807_v51, %v14776_v55  ;;  %v11794_v60 = vpop.f32.mrb[12].mxu1  ;;  %11106 = vmatprep.subr.bf16.mxu0 %v12202_v10  ;;  %vm5531_vm2 = vcmp.ge.f32.partialorder %v14812_v13, 0.0  ;;  %v14869_v61 = vmul.f32 0.2, %v14812_v13  ;;  %10996 = vmatprep.subr.bf16.mxu1 %v12204_v16 }
 0x520   : > { %16575 = vst [vmem:[#allocation34_spill] sm:$0xff] %v14847_v48  ;;  %v14871_v2 = vadd.f32 %v5589_v21, %v5411_v56  ;;  %v5590_v3 = vsel %vm5526_vm14, %v14774_v25, %v5558_v33  ;;  %v14876_v20 = vpop.f32.mrb[13].mxu1  ;;  %v14878_v53 = vpop.f32.mrb[40].mxu0  ;;  %11107 = vmatpush3.bf16.msra.mxu0 %v12203_v46  ;;  %vm5529_vm3 = vcmp.ge.f32.partialorder %v14815_v24, 0.0  ;;  %v14882_v30 = vmul.f32 0.2, %v14815_v24 }
 0x521   : > { %16576 = vst [vmem:[#allocation35_spill] sm:$0xff] %v14865_v26  ;;  %v6049_v52 = vrot.slane %v14845_v23, 1  ;;  %v14885_v31 = vadd.f32 %v5592_v63, %v5422_v37  ;;  %7917 = vmatprep.mubr.bf16.mxu1 %v14865_v26  ;;  %v5414_v25 = vadd.f32 %v14755_v43, %v5413_v9  ;;  %v14889_v33 = vpop.f32.mrb[14].mxu1  ;;  %v14891_v50 = vpop.f32.mrb[41].mxu0  ;;  %v5859_v46 = vsel %vm782_vm0, %v12921_v29, %v5858_v49  ;;  %v12206_v37 = vld [vmem:[#allocation12 + $0x1e0] sm:$0xff]  }
 0x522   : > { %5653 = vst [vmem:[%s14786_s28 + $0x20] sm:$0xff] %v14871_v2  ;;  %v5853_v21 = vrot.slane %v14871_v2, 7  ;;  %7918 = vmatmul.mubr.bf16.gmra.mrb[36].mxu1 %v14840_v0  ;;  %v6179_v32 = vrot.slane %v14776_v55, 2  ;;  %v6180_v35 = vrot.slane %v14807_v51, 2  ;;  %v14901_v4 = vpop.f32.mrb[15].mxu1  ;;  %v14903_v9 = vpop.f32.mrb[42].mxu0  ;;  %v14913_v16 = vpack.c.bf16 %v14795_v5, %v14770_v8  ;;  %11108 = vmatprep.subr.bf16.mxu0 %v12206_v37 }
 0x523   : > { %5656 = vst [vmem:[%s14786_s28 + $0x38] sm:$0xff] %v14885_v31  ;;  %v5860_v47 = vrot.slane %v14885_v31, 7  ;;  %v6050_v10 = vrot.slane %v14885_v31, 1  ;;  %v14909_v56 = vadd.f32 %v5590_v3, %v5414_v25  ;;  %v14915_v55 = vpop.f32.mrb[43].mxu0  ;;  %v12205_v51 = vld [vmem:[#allocation12 + $0x120] sm:$0xff]   ;;  %v6044_v63 = vrot.slane %v14871_v2, 1 }
 0x524   : > { %16577 = vst [vmem:[#allocation36_spill] sm:$0xff] %v14913_v16  ;;  %v6181_v39 = vsel %vm6173_vm15, %v6179_v32, %v6180_v35  ;;  %v6183_v0 = vsel %vm6173_vm15, %v6180_v35, %v14654_v14  ;;  %v14922_v26 = vadd.f32 %v11794_v60, %v14699_v18  ;;  %v12207_v3 = vld [vmem:[#allocation12 + $0x1a0] sm:$0xff]   ;;  %v12208_v25 = vld [vmem:[#allocation12 + $0x168] sm:$0xff]   ;;  %7925 = vmatprep.mubr.bf16.mxu1 %v14913_v16  ;;  %vm5532_vm4 = vcmp.ge.f32.partialorder %v14850_v38, 0.0 }
 0x525   : > { %v5861_v40 = vsel %vm782_vm0, %v5858_v49, %v5860_v47  ;;  %v6051_v41 = vsel %vm975_vm1, %v6049_v52, %v6050_v10  ;;  %v6053_v44 = vsel %vm975_vm1, %v6050_v10, %v12928_v36  ;;  %5654 = vst [vmem:[%s14786_s28 + $0x28] sm:$0xff] %v14909_v56  ;;  %v5855_v15 = vrot.slane %v14909_v56, 7  ;;  %10997 = vmatpush3.bf16.msra.mxu1 %v12205_v51  ;;  %v12210_v32 = vld [vmem:[#allocation12 + $0x1e8] sm:$0xff]  }
 0x526   : > { %v14932_v35 = vpack.c.bf16 %v5861_v40, %v5859_v46  ;;  %v14934_v18 = vpack.c.bf16 %v6053_v44, %v6051_v41  ;;  %v6045_v60 = vrot.slane %v14909_v56, 1  ;;  %v14937_v49 = vpack.c.bf16 %v6183_v0, %v6181_v39  ;;  %10998 = vmatprep.subr.bf16.mxu1 %v12208_v25  ;;  %11109 = vmatpush3.bf16.msra.mxu0 %v12207_v3  ;;  %v12209_v44 = vld [vmem:[#allocation12 + $0x128] sm:$0xff]  }
 0x527   : > { %v5564_v52 = vmul.f32 0.2, %v14850_v38  ;;  %v5854_v47 = vsel %vm782_vm0, %v12921_v29, %v5853_v21  ;;  %v5856_v10 = vsel %vm782_vm0, %v5853_v21, %v5855_v15  ;;  %v6184_v51 = vrot.slane %v14770_v8, 2  ;;  %v14944_v16 = vpop.f32.mrb[16].mxu1  ;;  %v12211_v40 = vld [vmem:[#allocation12 + $0x1a8] sm:$0xff]   ;;  %11110 = vmatprep.subr.bf16.mxu0 %v12210_v32  ;;  %v12212_v8 = vld [vmem:[#allocation12 + $0x170] sm:$0xff]  }
 0x528   : > { %16578 = vst [vmem:[#allocation37_spill] sm:$0xff] %v14932_v35  ;;  %16579 = vst [vmem:[#allocation38_spill] sm:$0xff] %v14934_v18  ;;  %v14946_v41 = vpack.c.bf16 %v5856_v10, %v5854_v47  ;;  %v6046_v39 = vsel %vm975_vm1, %v6044_v63, %v6045_v60  ;;  %v6048_v0 = vsel %vm975_vm1, %v6045_v60, %v12928_v36  ;;  %8078 = vmatprep.mubr.bf16.mxu0 %v14937_v49  ;;  %v14953_v37 = vpop.f32.mrb[17].mxu1  ;;  %v14955_v15 = vpop.f32.mrb[44].mxu0 }
 0x529   : > { %16580 = vst [vmem:[#allocation39_spill] sm:$0xff] %v14937_v49  ;;  %v6185_v46 = vrot.slane %v14795_v5, 2  ;;  %v14957_v21 = vpack.c.bf16 %v6048_v0, %v6046_v39  ;;  %8079 = vmatmul.mubr.bf16.gmra.mrb[68].mxu0 %v14847_v48  ;;  %v14962_v63 = vadd.f32 %v14876_v20, %v14693_v45  ;;  %v5435_v3 = vadd.f32 %v14878_v53, %v14755_v43  ;;  %v14970_v25 = vpop.f32.mrb[18].mxu1  ;;  %v14972_v32 = vpop.f32.mrb[45].mxu0 }
 0x52a   : > { %16581 = vst [vmem:[#allocation40_spill] sm:$0xff] %v14946_v41  ;;  %v5595_v5 = vsel %vm5531_vm2, %v14812_v13, %v14869_v61  ;;  %v14979_v45 = vadd.f32 %v14889_v33, %v14702_v42  ;;  %v5427_v20 = vadd.f32 %v14755_v43, %v14891_v50  ;;  %7926 = vmatmul.mubr.bf16.gmra.mrb[40].mxu1 %v14826_v11  ;;  %v14984_v53 = vpop.f32.mrb[19].mxu1  ;;  %v14986_v13 = vpop.f32.mrb[46].mxu0  ;;  %v12213_v42 = vld [vmem:[#allocation12 + $0x130] sm:$0xff]   ;;  %vm5530_vm5 = vcmp.ge.f32.partialorder %v14854_v34, 0.0 }
 0x52b   : > { %16582 = vst [vmem:[#allocation41_spill] sm:$0xff] %v14957_v21  ;;  %v6186_v60 = vsel %vm6173_vm15, %v6184_v51, %v6185_v46  ;;  %v6188_v47 = vsel %vm6173_vm15, %v6185_v46, %v14654_v14  ;;  %v14991_v10 = vadd.f32 %v5595_v5, %v5435_v3  ;;  %v14993_v51 = vpop.f32.mrb[47].mxu0  ;;  %10999 = vmatpush3.bf16.msra.mxu1 %v12209_v44  ;;  %v12214_v33 = vld [vmem:[#allocation12 + $0x1f0] sm:$0xff]   ;;  %v5562_v50 = vmul.f32 0.2, %v14854_v34  ;;  %v12216_v3 = vld [vmem:[#allocation12 + $0x178] sm:$0xff]  }
 0x52c   : > { %v14989_v61 = vpack.c.bf16 %v6188_v47, %v6186_v60  ;;  %11111 = vmatpush3.bf16.msra.mxu0 %v12211_v40  ;;  %v5593_v39 = vsel %vm5529_vm3, %v14815_v24, %v14882_v30  ;;  %v15003_v0 = vadd.f32 %v14901_v4, %v14696_v58  ;;  %11000 = vmatprep.subr.bf16.mxu1 %v12212_v8  ;;  %v12215_v46 = vld [vmem:[#allocation12 + $0x1b0] sm:$0xff]   ;;  %vm5535_vm6 = vcmp.ge.f32.partialorder %v14922_v26, 0.0  ;;  %v12218_v30 = vld [vmem:[#allocation12 + $0x1f8] sm:$0xff]  }
 0x52d   : > { %v15007_v44 = vmul.f32 0.2, %v14922_v26  ;;  %5659 = vst [vmem:[%s14786_s28 + $0x50] sm:$0xff] %v14991_v10  ;;  %v5868_v40 = vrot.slane %v14991_v10, 7  ;;  %v15013_v24 = vadd.f32 %v5593_v39, %v5427_v20  ;;  %v5438_v58 = vadd.f32 %v14903_v9, %v14755_v43  ;;  %11112 = vmatprep.subr.bf16.mxu0 %v12214_v33 }
 0x52e   : > { %16583 = vst [vmem:[#allocation42_spill] sm:$0xff] %v14989_v61  ;;  %8086 = vmatprep.mubr.bf16.mxu0 %v14989_v61  ;;  %vm5533_vm7 = vcmp.ge.f32.partialorder %v14962_v63, 0.0  ;;  %v15019_v4 = vmul.f32 0.2, %v14962_v63  ;;  %v5596_v8 = vsel %vm5532_vm4, %v14850_v38, %v5564_v52  ;;  %v5430_v5 = vadd.f32 %v14755_v43, %v14915_v55  ;;  %v12219_v38 = vld [vmem:[#allocation12 + $0x1b8] sm:$0xff]  }
 0x52f   : > { %v5869_v60 = vsel %vm782_vm0, %v12921_v29, %v5868_v40  ;;  %vm5536_vm8 = vcmp.ge.f32.partialorder %v14979_v45, 0.0  ;;  %v15030_v9 = vmul.f32 0.2, %v14979_v45  ;;  %5657 = vst [vmem:[%s14786_s28 + $0x40] sm:$0xff] %v15013_v24  ;;  %v15034_v47 = vadd.f32 %v5596_v8, %v5438_v58  ;;  %v15036_v20 = vpop.f32.mrb[20].mxu1  ;;  %11001 = vmatpush3.bf16.msra.mxu1 %v12213_v42  ;;  %v12217_v42 = vld [vmem:[#allocation12 + $0x138] sm:$0xff]  }
 0x530   : > { %11113 = vmatpush3.bf16.msra.mxu0 %v12215_v46  ;;  %v6059_v55 = vrot.slane %v14991_v10, 1  ;;  %v5594_v52 = vsel %vm5530_vm5, %v14854_v34, %v5562_v50  ;;  %v15044_v33 = vpack.c.bf16 %v14909_v56, %v14871_v2  ;;  %v15048_v39 = vadd.f32 %v14944_v16, %v14711_v57  ;;  %v15050_v58 = vpop.f32.mrb[21].mxu1  ;;  %v15052_v8 = vpop.f32.mrb[48].mxu0  ;;  %11002 = vmatprep.subr.bf16.mxu1 %v12216_v3 }
 0x531   : > { %16584 = vst [vmem:[#allocation43_spill] sm:$0xff] %v15034_v47  ;;  %11114 = vmatprep.subr.bf16.mxu0 %v12218_v30  ;;  %v5863_v46 = vrot.slane %v15013_v24, 7  ;;  %5660 = vst [vmem:[%s14786_s28 + $0x58] sm:$0xff] %v15034_v47  ;;  %v5870_v34 = vrot.slane %v15034_v47, 7  ;;  %v6060_v50 = vrot.slane %v15034_v47, 1  ;;  %v15059_v11 = vadd.f32 %v5594_v52, %v5430_v5  ;;  %8087 = vmatmul.mubr.bf16.gmra.mrb[72].mxu0 %v14828_v12  ;;  %v15062_v57 = vpop.f32.mrb[22].mxu1 }
 0x532   : > { %16585 = vst [vmem:[#allocation44_spill] sm:$0xff] %v15044_v33  ;;  %v15064_v16 = vpop.f32.mrb[49].mxu0  ;;  %v6054_v3 = vrot.slane %v15013_v24, 1  ;;  %7933 = vmatprep.mubr.bf16.mxu1 %v15044_v33  ;;  %v6189_v30 = vrot.slane %v14871_v2, 2  ;;  %v6190_v61 = vrot.slane %v14909_v56, 2  ;;  %v15072_v48 = vadd.f32 %v14953_v37, %v14705_v54  ;;  %v15074_v5 = vpop.f32.mrb[23].mxu1 }
 0x533   : > { %v15076_v52 = vpop.f32.mrb[50].mxu0  ;;  %v5871_v12 = vsel %vm782_vm0, %v5868_v40, %v5870_v34  ;;  %v6061_v49 = vsel %vm975_vm1, %v6059_v55, %v6060_v50  ;;  %v6063_v47 = vsel %vm975_vm1, %v6060_v50, %v12928_v36  ;;  %5658 = vst [vmem:[%s14786_s28 + $0x48] sm:$0xff] %v15059_v11  ;;  %v5865_v2 = vrot.slane %v15059_v11, 7  ;;  %7934 = vmatmul.mubr.bf16.gmra.mrb[44].mxu1 %v14946_v41 }
 0x534   : > { %v15086_v56 = vpop.f32.mrb[51].mxu0  ;;  %11115 = vmatpush3.bf16.msra.mxu0 %v12219_v38  ;;  %v15088_v54 = vpack.c.bf16 %v5871_v12, %v5869_v60  ;;  %v15090_v37 = vpack.c.bf16 %v6063_v47, %v6061_v49  ;;  %v6055_v40 = vrot.slane %v15059_v11, 1  ;;  %v6191_v55 = vsel %vm6173_vm15, %v6189_v30, %v6190_v61  ;;  %11003 = vmatpush3.bf16.msra.mxu1 %v12217_v42 }
 0x535   : > { %v5864_v34 = vsel %vm782_vm0, %v12921_v29, %v5863_v46  ;;  %vm5534_vm9 = vcmp.ge.f32.partialorder %v15003_v0, 0.0  ;;  %v5866_v50 = vsel %vm782_vm0, %v5863_v46, %v5865_v2  ;;  %v6193_v41 = vsel %vm6173_vm15, %v6190_v61, %v14654_v14 }
 0x536   : > { %v15100_v38 = vpack.c.bf16 %v5866_v50, %v5864_v34  ;;  %v6056_v12 = vsel %vm975_vm1, %v6054_v3, %v6055_v40  ;;  %v6058_v49 = vsel %vm975_vm1, %v6055_v40, %v12928_v36  ;;  %v15105_v60 = vpack.c.bf16 %v6193_v41, %v6191_v55 }
 0x537   : > { %v5566_v47 = vmul.f32 0.2, %v15003_v0  ;;  %v15108_v42 = vpack.c.bf16 %v6058_v49, %v6056_v12  ;;  %v5451_v30 = vadd.f32 %v14955_v15, %v14755_v43  ;;  %v15114_v46 = vadd.f32 %v14970_v25, %v14714_v62  ;;  %v15116_v61 = vpop.f32.mrb[24].mxu1 }
 0x538   : > { %16586 = vst [vmem:[#allocation45_spill] sm:$0xff] %v15105_v60  ;;  %8094 = vmatprep.mubr.bf16.mxu0 %v15105_v60  ;;  %v5599_v41 = vsel %vm5535_vm6, %v14922_v26, %v15007_v44  ;;  %v5443_v3 = vadd.f32 %v14755_v43, %v14972_v32  ;;  %v15127_v2 = vadd.f32 %v14984_v53, %v14708_v17  ;;  %v15131_v15 = vpop.f32.mrb[25].mxu1  ;;  %v15133_v25 = vpop.f32.mrb[52].mxu0  ;;  %vm5539_vm10 = vcmp.ge.f32.partialorder %v15048_v39, 0.0 }
 0x539   : > { %v5454_v62 = vadd.f32 %v14986_v13, %v14755_v43  ;;  %v15136_v40 = vadd.f32 %v5599_v41, %v5451_v30  ;;  %v5597_v26 = vsel %vm5533_vm7, %v14962_v63, %v15019_v4  ;;  %v5600_v17 = vsel %vm5536_vm8, %v14979_v45, %v15030_v9  ;;  %8095 = vmatmul.mubr.bf16.gmra.mrb[76].mxu0 %v14957_v21  ;;  %v15147_v32 = vpop.f32.mrb[26].mxu1  ;;  %v15149_v53 = vpop.f32.mrb[53].mxu0 }
 0x53a   : > { %v5571_v13 = vmul.f32 0.2, %v15048_v39  ;;  %vm5537_vm11 = vcmp.ge.f32.partialorder %v15072_v48, 0.0  ;;  %v15153_v44 = vadd.f32 %v5597_v26, %v5443_v3  ;;  %v15157_v4 = vpop.f32.mrb[27].mxu1  ;;  %v15159_v55 = vpop.f32.mrb[54].mxu0  ;;  %v5446_v50 = vadd.f32 %v14755_v43, %v14993_v51 }
 0x53b   : > { %v15155_v63 = vadd.f32 %v5600_v17, %v5454_v62  ;;  %v5569_v45 = vmul.f32 0.2, %v15072_v48  ;;  %5663 = vst [vmem:[%s14786_s28 + $0x70] sm:$0xff] %v15136_v40  ;;  %v5878_v9 = vrot.slane %v15136_v40, 7  ;;  %v6069_v34 = vrot.slane %v15136_v40, 1  ;;  %v15168_v12 = vpop.f32.mrb[55].mxu0 }
 0x53c   : > { %5661 = vst [vmem:[%s14786_s28 + $0x60] sm:$0xff] %v15153_v44  ;;  %v5873_v49 = vrot.slane %v15153_v44, 7  ;;  %v5598_v3 = vsel %vm5534_vm9, %v15003_v0, %v5566_v47  ;;  %v6064_v62 = vrot.slane %v15153_v44, 1  ;;  %v15185_v26 = vpack.c.bf16 %v14885_v31, %v14845_v23 }
 0x53d   : > { %16587 = vst [vmem:[#allocation46_spill] sm:$0xff] %v15155_v63  ;;  %5664 = vst [vmem:[%s14786_s28 + $0x78] sm:$0xff] %v15155_v63  ;;  %v5880_v30 = vrot.slane %v15155_v63, 7  ;;  %v6070_v41 = vrot.slane %v15155_v63, 1  ;;  %v15181_v51 = vadd.f32 %v5598_v3, %v5446_v50  ;;  %v15189_v17 = vadd.f32 %v15036_v20, %v14723_v7 }
 0x53e   : > { %16588 = vst [vmem:[#allocation47_spill] sm:$0xff] %v15185_v26  ;;  %v5879_v21 = vsel %vm782_vm0, %v12921_v29, %v5878_v9  ;;  %7941 = vmatprep.mubr.bf16.mxu1 %v15185_v26  ;;  %vm5540_vm12 = vcmp.ge.f32.partialorder %v15114_v46, 0.0  ;;  %vm5538_vm13 = vcmp.ge.f32.partialorder %v15127_v2, 0.0 }
 0x53f   : > { %v5881_v60 = vsel %vm782_vm0, %v5878_v9, %v5880_v30  ;;  %v6071_v33 = vsel %vm975_vm1, %v6069_v34, %v6070_v41  ;;  %v6073_v0 = vsel %vm975_vm1, %v6070_v41, %v12928_v36  ;;  %5662 = vst [vmem:[%s14786_s28 + $0x68] sm:$0xff] %v15181_v51  ;;  %v5875_v3 = vrot.slane %v15181_v51, 7  ;;  %v15206_v20 = vpop.f32.mrb[28].mxu1  ;;  %7942 = vmatmul.mubr.bf16.gmra.mrb[48].mxu1 %v14932_v35 }
 0x540   : > { %v15197_v47 = vpack.c.bf16 %v5881_v60, %v5879_v21  ;;  %v15199_v50 = vpack.c.bf16 %v6073_v0, %v6071_v33  ;;  %v6065_v7 = vrot.slane %v15181_v51, 1  ;;  %v5874_v9 = vsel %vm782_vm0, %v12921_v29, %v5873_v49  ;;  %v15214_v60 = vpop.f32.mrb[29].mxu1  ;;  %v15224_v26 = vpop.f32.mrb[56].mxu0 }
 0x541   : > { %v6194_v21 = vrot.slane %v14845_v23, 2  ;;  %v6195_v33 = vrot.slane %v14885_v31, 2  ;;  %v5876_v34 = vsel %vm782_vm0, %v5873_v49, %v5875_v3  ;;  %v15222_v0 = vadd.f32 %v15050_v58, %v14717_v27  ;;  %v15226_v23 = vpop.f32.mrb[30].mxu1 }
 0x542   : > { %16589 = vst [vmem:[#allocation48_spill] sm:$0xff] %v15197_v47  ;;  %16590 = vst [vmem:[#allocation49_spill] sm:$0xff] %v15199_v50  ;;  %v6066_v30 = vsel %vm975_vm1, %v6064_v62, %v6065_v7  ;;  %v6068_v41 = vsel %vm975_vm1, %v6065_v7, %v12928_v36  ;;  %v15228_v31 = vpack.c.bf16 %v5876_v34, %v5874_v9  ;;  %v15235_v62 = vpop.f32.mrb[57].mxu0  ;;  %v15237_v3 = vpop.f32.mrb[31].mxu1  ;;  %v5572_v27 = vmul.f32 0.2, %v15114_v46 }
 0x543   : > { %v15230_v35 = vpack.c.bf16 %v6068_v41, %v6066_v30  ;;  %v6196_v50 = vsel %vm6173_vm15, %v6194_v21, %v6195_v33  ;;  %v6198_v49 = vsel %vm6173_vm15, %v6195_v33, %v14654_v14  ;;  %v5467_v7 = vadd.f32 %v15052_v8, %v14755_v43  ;;  %v15245_v9 = vpop.f32.mrb[58].mxu0 }
 0x544   : > { %v15241_v58 = vpack.c.bf16 %v6198_v49, %v6196_v50  ;;  %v5570_v21 = vmul.f32 0.2, %v15127_v2  ;;  %v5603_v33 = vsel %vm5539_vm10, %v15048_v39, %v5571_v13  ;;  %v15253_v34 = vadd.f32 %v15062_v57, %v14726_v19  ;;  %v15257_v30 = vpop.f32.mrb[59].mxu0 }
 0x545   : > { %16591 = vst [vmem:[#allocation50_spill] sm:$0xff] %v15230_v35  ;;  %v5459_v50 = vadd.f32 %v14755_v43, %v15064_v16  ;;  %v15260_v8 = vadd.f32 %v5603_v33, %v5467_v7  ;;  %v5601_v41 = vsel %vm5537_vm11, %v15072_v48, %v5569_v45  ;;  %v15267_v39 = vadd.f32 %v15074_v5, %v14720_v1 }
 0x546   : > { %16592 = vst [vmem:[#allocation51_spill] sm:$0xff] %v15241_v58  ;;  %8102 = vmatprep.mubr.bf16.mxu0 %v15241_v58  ;;  %v5470_v19 = vadd.f32 %v15076_v52, %v14755_v43  ;;  %vm5543_vm14 = vcmp.ge.f32.partialorder %v15189_v17, 0.0  ;;  %v5575_v57 = vmul.f32 0.2, %v15189_v17  ;;  %v5462_v13 = vadd.f32 %v14755_v43, %v15086_v56 }
 0x547   : > { %16593 = vst [vmem:[#allocation52_spill] sm:$0xff] %v15260_v8  ;;  %v15273_v16 = vadd.f32 %v5601_v41, %v5459_v50  ;;  %8103 = vmatmul.mubr.bf16.gmra.mrb[80].mxu0 %v14934_v18  ;;  %vm5541_vm2 = vcmp.ge.f32.partialorder %v15222_v0, 0.0  ;;  %v5573_v48 = vmul.f32 0.2, %v15222_v0  ;;  %5667 = vst [vmem:[%s14786_s28 + $0x90] sm:$0xff] %v15260_v8  ;;  %v5888_v1 = vrot.slane %v15260_v8, 7 }
 0x548   : > { %v5604_v5 = vsel %vm5540_vm12, %v15114_v46, %v5572_v27  ;;  %v15287_v52 = vmul.f32 0.2, %v15253_v34  ;;  %v5602_v49 = vsel %vm5538_vm13, %v15127_v2, %v5570_v21  ;;  %v15297_v7 = vpop.f32.mrb[60].mxu0  ;;  %v6079_v33 = vrot.slane %v15260_v8, 1 }
 0x549   : > { %16594 = vst [vmem:[#allocation53_spill] sm:$0xff] %v15273_v16  ;;  %5665 = vst [vmem:[%s14786_s28 + $0x80] sm:$0xff] %v15273_v16  ;;  %v5883_v56 = vrot.slane %v15273_v16, 7  ;;  %v15292_v45 = vadd.f32 %v5604_v5, %v5470_v19  ;;  %vm5544_vm3 = vcmp.ge.f32.partialorder %v15253_v34, 0.0  ;;  %v15301_v46 = vadd.f32 %v5602_v49, %v5462_v13  ;;  %v15311_v41 = vpop.f32.mrb[61].mxu0 }
 0x54a   : > { %v15305_v27 = vpack.c.bf16 %v15059_v11, %v15013_v24  ;;  %v15309_v50 = vadd.f32 %v15116_v61, %v14735_v28  ;;  %v5889_v2 = vsel %vm782_vm0, %v12921_v29, %v5888_v1  ;;  %v6074_v21 = vrot.slane %v15273_v16, 1  ;;  %v15320_v5 = vpop.f32.mrb[62].mxu0 }
 0x54b   : > { %16595 = vst [vmem:[#allocation54_spill] sm:$0xff] %v15292_v45  ;;  %16596 = vst [vmem:[#allocation55_spill] sm:$0xff] %v15301_v46  ;;  %v5890_v19 = vrot.slane %v15292_v45, 7  ;;  %v6080_v13 = vrot.slane %v15292_v45, 1  ;;  %v5884_v49 = vsel %vm782_vm0, %v12921_v29, %v5883_v56  ;;  %v5885_v28 = vrot.slane %v15301_v46, 7  ;;  %v15330_v58 = vpop.f32.mrb[63].mxu0 }
 0x54c   : > { %16597 = vst [vmem:[#allocation56_spill] sm:$0xff] %v15305_v27  ;;  %5668 = vst [vmem:[%s14786_s28 + $0x98] sm:$0xff] %v15292_v45  ;;  %v6075_v61 = vrot.slane %v15301_v46, 1  ;;  %7949 = vmatprep.mubr.bf16.mxu1 %v15305_v27  ;;  %v6199_v18 = vrot.slane %v15013_v24, 2  ;;  %v6200_v16 = vrot.slane %v15059_v11, 2  ;;  %vm5542_vm4 = vcmp.ge.f32.partialorder %v15267_v39, 0.0 }
 0x54d   : > { %5666 = vst [vmem:[%s14786_s28 + $0x88] sm:$0xff] %v15301_v46  ;;  %v5891_v8 = vsel %vm782_vm0, %v5888_v1, %v5890_v19  ;;  %v6081_v45 = vsel %vm975_vm1, %v6079_v33, %v6080_v13  ;;  %v6083_v47 = vsel %vm975_vm1, %v6080_v13, %v12928_v36  ;;  %7950 = vmatmul.mubr.bf16.gmra.mrb[52].mxu1 %v15100_v38  ;;  %vm5547_vm5 = vcmp.ge.f32.partialorder %v15309_v50, 0.0 }
 0x54e   : > { %v15338_v35 = vpack.c.bf16 %v5891_v8, %v5889_v2  ;;  %v15340_v46 = vpack.c.bf16 %v6083_v47, %v6081_v45  ;;  %v5886_v27 = vsel %vm782_vm0, %v5883_v56, %v5885_v28  ;;  %v6076_v24 = vsel %vm975_vm1, %v6074_v21, %v6075_v61 }
 0x54f   : > { %v15344_v63 = vpack.c.bf16 %v5886_v27, %v5884_v49  ;;  %v6078_v1 = vsel %vm975_vm1, %v6075_v61, %v12928_v36  ;;  %v6201_v33 = vsel %vm6173_vm15, %v6199_v18, %v6200_v16  ;;  %v6203_v11 = vsel %vm6173_vm15, %v6200_v16, %v14654_v14  ;;  %v16602_v49 = vld [vmem:[#allocation43_spill] sm:$0xff] }
 0x550   : > { %16598 = vst [vmem:[#allocation57_spill] sm:$0xff] %v15338_v35  ;;  %16599 = vst [vmem:[#allocation58_spill] sm:$0xff] %v15340_v46  ;;  %v15351_v19 = vpack.c.bf16 %v6078_v1, %v6076_v24  ;;  %v15353_v8 = vpack.c.bf16 %v6203_v11, %v6201_v33  ;;  %v15357_v47 = vadd.f32 %v15131_v15, %v14729_v59  ;;  %v5574_v59 = vmul.f32 0.2, %v15267_v39  ;;  %v16605_v11 = vld [vmem:[#allocation27_spill] sm:$0xff] }
 0x551   : > { %16600 = vst [vmem:[#allocation59_spill] sm:$0xff] %v15344_v63  ;;  %v5483_v56 = vadd.f32 %v15133_v25, %v14755_v43  ;;  %v5607_v18 = vsel %vm5543_vm14, %v15189_v17, %v5575_v57  ;;  %v15367_v16 = vadd.f32 %v15147_v32, %v14738_v6  ;;  %v5475_v45 = vadd.f32 %v14755_v43, %v15149_v53 }
 0x552   : > { %16601 = vst [vmem:[#allocation60_spill] sm:$0xff] %v15351_v19  ;;  %8110 = vmatprep.mubr.bf16.mxu0 %v15353_v8  ;;  %v5605_v25 = vsel %vm5541_vm2, %v15222_v0, %v5573_v48  ;;  %v15380_v17 = vadd.f32 %v15157_v4, %v14732_v22  ;;  %v5579_v6 = vmul.f32 0.2, %v15309_v50  ;;  %vm5545_vm6 = vcmp.ge.f32.partialorder %v15357_v47, 0.0 }
 0x553   : > { %v15373_v15 = vadd.f32 %v5607_v18, %v5483_v56  ;;  %v15385_v32 = vadd.f32 %v5605_v25, %v5475_v45  ;;  %v5486_v53 = vadd.f32 %v15159_v55, %v14755_v43  ;;  %8111 = vmatmul.mubr.bf16.gmra.mrb[84].mxu0 %v15108_v42  ;;  %v5577_v57 = vmul.f32 0.2, %v15357_v47 }
 0x554   : > { %vm5548_vm7 = vcmp.ge.f32.partialorder %v15367_v16, 0.0  ;;  %v5580_v4 = vmul.f32 0.2, %v15367_v16  ;;  %v5608_v55 = vsel %vm5544_vm3, %v15253_v34, %v15287_v52  ;;  %v5478_v27 = vadd.f32 %v14755_v43, %v15168_v12  ;;  %v16604_v12 = vld [vmem:[#allocation29_spill] sm:$0xff] }
 0x555   : > { %5671 = vst [vmem:[%s14786_s28 + $0xb0] sm:$0xff] %v15373_v15  ;;  %v5898_v22 = vrot.slane %v15373_v15, 7  ;;  %v6089_v0 = vrot.slane %v15373_v15, 1  ;;  %5669 = vst [vmem:[%s14786_s28 + $0xa0] sm:$0xff] %v15385_v32  ;;  %v5893_v48 = vrot.slane %v15385_v32, 7  ;;  %v15409_v21 = vadd.f32 %v5608_v55, %v5486_v53 }
 0x556   : > { %v15407_v2 = vmul.f32 0.2, %v15380_v17  ;;  %v5606_v13 = vsel %vm5542_vm4, %v15267_v39, %v5574_v59  ;;  %v15416_v28 = vpack.c.bf16 %v16602_v49, %v14991_v10  ;;  %v6084_v61 = vrot.slane %v15385_v32, 1 }
 0x557   : > { %vm5546_vm8 = vcmp.ge.f32.partialorder %v15380_v17, 0.0  ;;  %v15420_v34 = vadd.f32 %v5606_v13, %v5478_v27  ;;  %v15424_v52 = vadd.f32 %v15206_v20, %v16604_v12  ;;  %v6204_v24 = vrot.slane %v14991_v10, 2  ;;  %5672 = vst [vmem:[%s14786_s28 + $0xb8] sm:$0xff] %v15409_v21 }
 0x558   : > { %16603 = vst [vmem:[#allocation43_spill] sm:$0xff] %v15416_v28  ;;  %v5900_v39 = vrot.slane %v15409_v21, 7  ;;  %v6090_v1 = vrot.slane %v15409_v21, 1  ;;  %7957 = vmatprep.mubr.bf16.mxu1 %v15416_v28  ;;  %v6205_v33 = vrot.slane %v16602_v49, 2  ;;  %v15435_v56 = vadd.f32 %v15214_v60, %v16605_v11 }
 0x559   : > { %v5899_v20 = vsel %vm782_vm0, %v12921_v29, %v5898_v22  ;;  %v5894_v10 = vsel %vm782_vm0, %v12921_v29, %v5893_v48  ;;  %5670 = vst [vmem:[%s14786_s28 + $0xa8] sm:$0xff] %v15420_v34  ;;  %v5895_v18 = vrot.slane %v15420_v34, 7  ;;  %v6085_v45 = vrot.slane %v15420_v34, 1  ;;  %7958 = vmatmul.mubr.bf16.gmra.mrb[56].mxu1 %v15088_v54 }
 0x55a   : > { %v5901_v59 = vsel %vm782_vm0, %v5898_v22, %v5900_v39  ;;  %v6091_v25 = vsel %vm975_vm1, %v6089_v0, %v6090_v1  ;;  %v6093_v60 = vsel %vm975_vm1, %v6090_v1, %v12928_v36  ;;  %vm5551_vm9 = vcmp.ge.f32.partialorder %v15424_v52, 0.0 }
 0x55b   : > { %v6206_v53 = vsel %vm6173_vm15, %v6204_v24, %v6205_v33  ;;  %v15452_v55 = vpack.c.bf16 %v5901_v59, %v5899_v20  ;;  %v15454_v27 = vpack.c.bf16 %v6093_v60, %v6091_v25  ;;  %v5896_v13 = vsel %vm782_vm0, %v5893_v48, %v5895_v18  ;;  %v16607_v20 = vld [vmem:[#allocation30_spill] sm:$0xff] }
 0x55c   : > { %v6086_v49 = vsel %vm975_vm1, %v6084_v61, %v6085_v45  ;;  %v15458_v12 = vpack.c.bf16 %v5896_v13, %v5894_v10  ;;  %v6088_v22 = vsel %vm975_vm1, %v6085_v45, %v12928_v36  ;;  %v5583_v0 = vmul.f32 0.2, %v15424_v52  ;;  %v16608_v45 = vld [vmem:[#allocation28_spill] sm:$0xff] }
 0x55d   : > { %16606 = vst [vmem:[#allocation29_spill] sm:$0xff] %v15452_v55  ;;  %v6208_v39 = vsel %vm6173_vm15, %v6205_v33, %v14654_v14  ;;  %v15465_v1 = vpack.c.bf16 %v6088_v22, %v6086_v49  ;;  %v5581_v11 = vmul.f32 0.2, %v15435_v56  ;;  %v5499_v48 = vadd.f32 %v15224_v26, %v14755_v43 }
 0x55e   : > { %v15467_v24 = vpack.c.bf16 %v6208_v39, %v6206_v53  ;;  %vm5549_vm10 = vcmp.ge.f32.partialorder %v15435_v56, 0.0  ;;  %v5611_v61 = vsel %vm5547_vm5, %v15309_v50, %v5579_v6  ;;  %v5238_v10 = vadd.f32 %v15226_v23, %v16607_v20 }
 0x55f   : > { %v5491_v33 = vadd.f32 %v14755_v43, %v15235_v62  ;;  %v5609_v18 = vsel %vm5545_vm6, %v15357_v47, %v5577_v57  ;;  %v15484_v26 = vadd.f32 %v5611_v61, %v5499_v48  ;;  %v5230_v59 = vadd.f32 %v15237_v3, %v16608_v45 }
 0x560   : > { %8118 = vmatprep.mubr.bf16.mxu0 %v15467_v24  ;;  %v5502_v50 = vadd.f32 %v15245_v9, %v14755_v43  ;;  %v5612_v23 = vsel %vm5548_vm7, %v15367_v16, %v5580_v4  ;;  %vm5552_vm11 = vcmp.ge.f32.partialorder %v5238_v10, 0.0  ;;  %v5584_v62 = vmul.f32 0.2, %v5238_v10 }
 0x561   : > { %v15493_v6 = vadd.f32 %v5609_v18, %v5491_v33  ;;  %v5494_v47 = vadd.f32 %v14755_v43, %v15257_v30  ;;  %8119 = vmatmul.mubr.bf16.gmra.mrb[88].mxu0 %v15090_v37  ;;  %5675 = vst [vmem:[%s14786_s28 + $0xd0] sm:$0xff] %v15484_v26  ;;  %v5908_v3 = vrot.slane %v15484_v26, 7  ;;  %v6099_v9 = vrot.slane %v15484_v26, 1 }
 0x562   : > { %vm5550_vm12 = vcmp.ge.f32.partialorder %v5230_v59, 0.0  ;;  %v5582_v57 = vmul.f32 0.2, %v5230_v59  ;;  %v15506_v25 = vadd.f32 %v5612_v23, %v5502_v50  ;;  %v5610_v30 = vsel %vm5546_vm8, %v15380_v17, %v15407_v2 }
 0x563   : > { %5673 = vst [vmem:[%s14786_s28 + $0xc0] sm:$0xff] %v15493_v6  ;;  %v5903_v16 = vrot.slane %v15493_v6, 7  ;;  %v6094_v4 = vrot.slane %v15493_v6, 1  ;;  %v5909_v60 = vsel %vm782_vm0, %v12921_v29, %v5908_v3  ;;  %v15514_v53 = vadd.f32 %v5610_v30, %v5494_v47 }
 0x564   : > { %v15518_v13 = vpack.c.bf16 %v15181_v51, %v15153_v44  ;;  %v6209_v49 = vrot.slane %v15153_v44, 2  ;;  %5676 = vst [vmem:[%s14786_s28 + $0xd8] sm:$0xff] %v15506_v25  ;;  %v5910_v39 = vrot.slane %v15506_v25, 7  ;;  %v6100_v17 = vrot.slane %v15506_v25, 1 }
 0x565   : > { %v5904_v22 = vsel %vm782_vm0, %v12921_v29, %v5903_v16  ;;  %v6210_v2 = vrot.slane %v15181_v51, 2  ;;  %5674 = vst [vmem:[%s14786_s28 + $0xc8] sm:$0xff] %v15514_v53  ;;  %v5905_v48 = vrot.slane %v15514_v53, 7  ;;  %v6095_v61 = vrot.slane %v15514_v53, 1 }
 0x566   : > { %7965 = vmatprep.mubr.bf16.mxu1 %v15518_v13  ;;  %v5515_v44 = vadd.f32 %v15297_v7, %v14755_v43  ;;  %v5615_v20 = vsel %vm5551_vm9, %v15424_v52, %v5583_v0  ;;  %v5911_v33 = vsel %vm782_vm0, %v5908_v3, %v5910_v39  ;;  %v6101_v18 = vsel %vm975_vm1, %v6099_v9, %v6100_v17 }
 0x567   : > { %v6103_v51 = vsel %vm975_vm1, %v6100_v17, %v12928_v36  ;;  %v6211_v45 = vsel %vm6173_vm15, %v6209_v49, %v6210_v2  ;;  %7966 = vmatmul.mubr.bf16.gmra.mrb[60].mxu1 %v15228_v31  ;;  %v15544_v50 = vpack.c.bf16 %v5911_v33, %v5909_v60  ;;  %v5906_v43 = vsel %vm782_vm0, %v5903_v16, %v5905_v48  ;;  %v12286_v16 = vld [vmem:[%s16570_s25] ss:$0 sm:$0xff]  ;;  %v16612_v33 = vld [vmem:[#allocation55_spill] sm:$0xff] }
 0x568   : > { %v15546_v23 = vpack.c.bf16 %v6103_v51, %v6101_v18  ;;  %v6096_v7 = vsel %vm975_vm1, %v6094_v4, %v6095_v61  ;;  %v15550_v52 = vpack.c.bf16 %v5906_v43, %v5904_v22  ;;  %v6098_v0 = vsel %vm975_vm1, %v6095_v61, %v12928_v36 }
 0x569   : > { %v6213_v47 = vsel %vm6173_vm15, %v6210_v2, %v14654_v14  ;;  %v15556_v3 = vadd.f32 %v5615_v20, %v5515_v44  ;;  %v15558_v9 = vpack.c.bf16 %v6098_v0, %v6096_v7  ;;  %v5507_v4 = vadd.f32 %v12286_v16, %v15311_v41  ;;  %v16611_v20 = vld [vmem:[#allocation53_spill] sm:$0xff]  ;;  %v16614_v7 = vld [vmem:[#allocation48_spill] sm:$0xff] }
 0x56a   : > { %v15560_v30 = vpack.c.bf16 %v6213_v47, %v6211_v45  ;;  %v5613_v60 = vsel %vm5549_vm10, %v15435_v56, %v5581_v11  ;;  %v5518_v39 = vadd.f32 %v12286_v16, %v15320_v5  ;;  %v5616_v17 = vsel %vm5552_vm11, %v5238_v10, %v5584_v62  ;;  %v16609_v11 = vld [vmem:[#allocation46_spill] sm:$0xff] }
 0x56b   : > { %5679 = vst [vmem:[%s14786_s28 + $0xf0] sm:$0xff] %v15556_v3  ;;  %v6322_v49 = vrot.slane %v15556_v3, 7  ;;  %v6363_v22 = vrot.slane %v15556_v3, 1  ;;  %v15576_v2 = vadd.f32 %v5613_v60, %v5507_v4  ;;  %v5510_v41 = vadd.f32 %v12286_v16, %v15330_v58  ;;  %v16610_v5 = vld [vmem:[#allocation50_spill] sm:$0xff] }
 0x56c   : > { %8126 = vmatprep.mubr.bf16.mxu0 %v15560_v30  ;;  %v5614_v56 = vsel %vm5550_vm12, %v5230_v59, %v5582_v57  ;;  %v15582_v48 = vpack.c.bf16 %v16609_v11, %v15136_v40  ;;  %v15586_v44 = vadd.f32 %v5616_v17, %v5518_v39  ;;  %v6214_v10 = vrot.slane %v15136_v40, 2 }
 0x56d   : > { %v6323_v61 = vsel %vm782_vm0, %v12921_v29, %v6322_v49  ;;  %8127 = vmatmul.mubr.bf16.gmra.mrb[92].mxu0 %v16610_v5  ;;  %v6215_v62 = vrot.slane %v16609_v11, 2  ;;  %5677 = vst [vmem:[%s14786_s28 + $0xe0] sm:$0xff] %v15576_v2  ;;  %v5913_v58 = vrot.slane %v15576_v2, 7  ;;  %v6104_v59 = vrot.slane %v15576_v2, 1 }
 0x56e   : > { %v15595_v57 = vadd.f32 %v5614_v56, %v5510_v41  ;;  %7973 = vmatprep.mubr.bf16.mxu1 %v15582_v48  ;;  %v15600_v18 = vpack.c.bf16 %v16612_v33, %v16611_v20  ;;  %5680 = vst [vmem:[%s14786_s28 + $0xf8] sm:$0xff] %v15586_v44  ;;  %v6324_v40 = vrot.slane %v15586_v44, 7  ;;  %v6364_v51 = vrot.slane %v15586_v44, 1 }
 0x56f   : > { %v6216_v45 = vsel %vm6173_vm15, %v6214_v10, %v6215_v62  ;;  %v6218_v43 = vsel %vm6173_vm15, %v6215_v62, %v14654_v14  ;;  %7974 = vmatmul.mubr.bf16.gmra.mrb[64].mxu1 %v16614_v7  ;;  %v5914_v0 = vsel %vm782_vm0, %v12921_v29, %v5913_v58  ;;  %v6219_v41 = vrot.slane %v16611_v20, 2 }
 0x570   : > { %16613 = vst [vmem:[#allocation27_spill] sm:$0xff] %v15600_v18  ;;  %5678 = vst [vmem:[%s14786_s28 + $0xe8] sm:$0xff] %v15595_v57  ;;  %v5915_v47 = vrot.slane %v15595_v57, 7  ;;  %v6105_v16 = vrot.slane %v15595_v57, 1  ;;  %v15616_v4 = vpack.c.bf16 %v6218_v43, %v6216_v45  ;;  %7981 = vmatprep.mubr.bf16.mxu1 %v15600_v18  ;;  %v6325_v60 = vsel %vm782_vm0, %v6322_v49, %v6324_v40  ;;  %v16617_v40 = vld [vmem:[#allocation52_spill] sm:$0xff]  ;;  %v16622_v43 = vld [vmem:[#allocation49_spill] sm:$0xff] }
 0x571   : > { %v6365_v39 = vsel %vm975_vm1, %v6363_v22, %v6364_v51  ;;  %v6367_v17 = vsel %vm975_vm1, %v6364_v51, %v12928_v36  ;;  %v15624_v29 = vpack.c.bf16 %v6325_v60, %v6323_v61  ;;  %v6220_v22 = vrot.slane %v16612_v33, 2  ;;  %v16618_v51 = vld [vmem:[#allocation54_spill] sm:$0xff] }
 0x572   : > { %v15626_v56 = vpack.c.bf16 %v6367_v17, %v6365_v39  ;;  %v5916_v11 = vsel %vm782_vm0, %v5913_v58, %v5915_v47  ;;  %v6106_v10 = vsel %vm975_vm1, %v6104_v59, %v6105_v16  ;;  %8134 = vmatprep.mubr.bf16.mxu0 %v15616_v4  ;;  %v6108_v49 = vsel %vm975_vm1, %v6105_v16, %v12928_v36 }
 0x573   : > { %16615 = vst [vmem:[#allocation30_spill] sm:$0xff] %v15624_v29  ;;  %v15631_v62 = vpack.c.bf16 %v5916_v11, %v5914_v0  ;;  %v15638_v20 = vpack.c.bf16 %v16618_v51, %v16617_v40  ;;  %v15640_v61 = vpack.c.bf16 %v6108_v49, %v6106_v10  ;;  %v6224_v45 = vrot.slane %v16617_v40, 2  ;;  %v12220_v11 = vld [vmem:[#allocation12 + $0x240] sm:$0xff]  }
 0x574   : > { %16616 = vst [vmem:[#allocation28_spill] sm:$0xff] %v15626_v56  ;;  %v6225_v58 = vrot.slane %v16618_v51, 2  ;;  %v15646_v59 = vpack.c.bf16 %v15420_v34, %v15385_v32  ;;  %v6221_v36 = vsel %vm6173_vm15, %v6219_v41, %v6220_v22  ;;  %v6223_v33 = vsel %vm6173_vm15, %v6220_v22, %v14654_v14  ;;  %v12222_v41 = vld [vmem:[#allocation12 + $0x2c0] sm:$0xff]   ;;  %11212 = vmatprep.subr.bf16.mxu1 %v12220_v11 }
 0x575   : > { %16619 = vst [vmem:[#allocation46_spill] sm:$0xff] %v15638_v20  ;;  %16620 = vst [vmem:[#allocation50_spill] sm:$0xff] %v15640_v61  ;;  %8135 = vmatmul.mubr.bf16.gmra.mrb[96].mxu0 %v16622_v43  ;;  %v6229_v0 = vrot.slane %v15385_v32, 2  ;;  %v6230_v47 = vrot.slane %v15420_v34, 2  ;;  %v15654_v16 = vpack.c.bf16 %v6223_v33, %v6221_v36  ;;  %v15661_v17 = vpack.c.bf16 %v15409_v21, %v15373_v15 }
 0x576   : > { %16621 = vst [vmem:[#allocation53_spill] sm:$0xff] %v15646_v59  ;;  %v6226_v60 = vsel %vm6173_vm15, %v6224_v45, %v6225_v58  ;;  %v6228_v39 = vsel %vm6173_vm15, %v6225_v58, %v14654_v14  ;;  %v6234_v49 = vrot.slane %v15373_v15, 2  ;;  %v6235_v40 = vrot.slane %v15409_v21, 2  ;;  %11324 = vmatprep.subr.bf16.mxu0 %v12222_v41 }
 0x577   : > { %16623 = vst [vmem:[#allocation55_spill] sm:$0xff] %v15654_v16  ;;  %16624 = vst [vmem:[#allocation52_spill] sm:$0xff] %v15661_v17  ;;  %7982 = vmatmul.mubr.bf16.gmra.mrb[68].mxu1 %v15344_v63  ;;  %v15664_v10 = vpack.c.bf16 %v6228_v39, %v6226_v60  ;;  %v6231_v32 = vsel %vm6173_vm15, %v6229_v0, %v6230_v47  ;;  %v6233_v34 = vsel %vm6173_vm15, %v6230_v47, %v14654_v14 }
 0x578   : > { %8142 = vmatprep.mubr.bf16.mxu0 %v15654_v16  ;;  %7989 = vmatprep.mubr.bf16.mxu1 %v15638_v20  ;;  %v15672_v22 = vpack.c.bf16 %v6233_v34, %v6231_v32  ;;  %v15677_v51 = vpack.c.bf16 %v15514_v53, %v15493_v6  ;;  %v6239_v45 = vrot.slane %v15493_v6, 2  ;;  %v6240_v58 = vrot.slane %v15514_v53, 2 }
 0x579   : > { %16625 = vst [vmem:[#allocation54_spill] sm:$0xff] %v15664_v10  ;;  %v15683_v36 = vpack.c.bf16 %v15506_v25, %v15484_v26  ;;  %v6244_v15 = vrot.slane %v15484_v26, 2  ;;  %v6245_v33 = vrot.slane %v15506_v25, 2  ;;  %v6236_v21 = vsel %vm6173_vm15, %v6234_v49, %v6235_v40 }
 0x57a   : > { %16626 = vst [vmem:[#allocation61_spill] sm:$0xff] %v15672_v22  ;;  %16627 = vst [vmem:[#allocation62_spill] sm:$0xff] %v15677_v51  ;;  %v6238_v0 = vsel %vm6173_vm15, %v6235_v40, %v14654_v14  ;;  %v15692_v6 = vpack.c.bf16 %v15595_v57, %v15576_v2  ;;  %v6249_v53 = vrot.slane %v15576_v2, 2  ;;  %v6241_v60 = vsel %vm6173_vm15, %v6239_v45, %v6240_v58 }
 0x57b   : > { %v15695_v47 = vpack.c.bf16 %v6238_v0, %v6236_v21  ;;  %v6243_v26 = vsel %vm6173_vm15, %v6240_v58, %v14654_v14  ;;  %v6246_v25 = vsel %vm6173_vm15, %v6244_v15, %v6245_v33  ;;  %v6248_v11 = vsel %vm6173_vm15, %v6245_v33, %v14654_v14  ;;  %v10892_v58 = vpop.f32.mrb[64].mxu0 }
 0x57c   : > { %v15701_v39 = vpack.c.bf16 %v6243_v26, %v6241_v60  ;;  %v6250_v41 = vrot.slane %v15595_v57, 2  ;;  %v15708_v32 = vpack.c.bf16 %v15586_v44, %v15556_v3  ;;  %v15711_v2 = vpack.c.bf16 %v6248_v11, %v6246_v25  ;;  %v10780_v57 = vpop.f32.mrb[32].mxu1  ;;  %v10893_v21 = vpop.f32.mrb[65].mxu0 }
 0x57d   : > { %8143 = vmatmul.mubr.bf16.gmra.mrb[100].mxu0 %v15351_v19  ;;  %v6387_v34 = vrot.slane %v15556_v3, 2  ;;  %v6388_v49 = vrot.slane %v15586_v44, 2  ;;  %v10781_v33 = vpop.f32.mrb[33].mxu1  ;;  %v10895_v11 = vpop.f32.mrb[66].mxu0 }
 0x57e   : > { %16628 = vst [vmem:[#allocation63_spill] sm:$0xff] %v15708_v32  ;;  %8150 = vmatprep.mubr.bf16.mxu0 %v15664_v10  ;;  %v6251_v40 = vsel %vm6173_vm15, %v6249_v53, %v6250_v41  ;;  %v6253_v45 = vsel %vm6173_vm15, %v6250_v41, %v14654_v14  ;;  %v10782_v44 = vadd.f32 %v10781_v33, %v10780_v57  ;;  %v10783_v25 = vpop.f32.mrb[34].mxu1  ;;  %v12221_v57 = vld [vmem:[#allocation12 + $0x200] sm:$0xff]   ;;  %v16633_v33 = vld [vmem:[#allocation39_spill] sm:$0xff] }
 0x57f   : > { %7990 = vmatmul.mubr.bf16.gmra.mrb[72].mxu1 %v15338_v35  ;;  %v15720_v15 = vpack.c.bf16 %v6253_v45, %v6251_v40  ;;  %v6389_v0 = vsel %vm6173_vm15, %v6387_v34, %v6388_v49  ;;  %v6391_v3 = vsel %vm6173_vm15, %v6388_v49, %v14654_v14  ;;  %v10894_v53 = vadd.f32 %v10893_v21, %v10892_v58  ;;  %v10784_v41 = vpop.f32.mrb[35].mxu1  ;;  %v10896_v40 = vpop.f32.mrb[67].mxu0  ;;  %v16632_v45 = vld [vmem:[#allocation35_spill] sm:$0xff]  ;;  %v12224_v58 = vld [vmem:[#allocation12 + $0x248] sm:$0xff]  }
 0x580   : > { %7997 = vmatprep.mubr.bf16.mxu1 %v15646_v59  ;;  %v15726_v60 = vpack.c.bf16 %v6391_v3, %v6389_v0  ;;  %v10785_v34 = vadd.f32 %v10784_v41, %v10783_v25  ;;  %v10897_v14 = vadd.f32 %v10896_v40, %v10895_v11  ;;  %v16634_v21 = vld [vmem:[#allocation33_spill] sm:$0xff]  ;;  %v16635_v0 = vld [vmem:[#allocation36_spill] sm:$0xff]  ;;  %v12229_v11 = vld [vmem:[#allocation12 + $0x210] sm:$0xff]  }
 0x581   : > { %v15728_v26 = vadd.f32 %v10894_v53, %v10782_v44  ;;  %v12225_v3 = vld [vmem:[#allocation12 + $0x208] sm:$0xff]   ;;  %v12228_v44 = vld [vmem:[#allocation12 + $0x250] sm:$0xff]   ;;  %v12223_v53 = vld [vmem:[#allocation12 + $0x280] sm:$0xff]  }
 0x582   : > { %16629 = vst [vmem:[#allocation64_spill] sm:$0xff] %v15726_v60  ;;  %v15734_v49 = vadd.f32 %v10897_v14, %v10785_v34  ;;  %v12226_v25 = vld [vmem:[#allocation12 + $0x2c8] sm:$0xff]   ;;  %v16636_v41 = vld [vmem:[#allocation34_spill] sm:$0xff]  ;;  %v12232_v40 = vld [vmem:[#allocation12 + $0x258] sm:$0xff]  }
 0x583   : > { %16630 = vst [vmem:[#allocation65_spill] sm:$0xff] %v15728_v26  ;;  %v16637_v34 = vld [vmem:[#allocation42_spill] sm:$0xff]  ;;  %v12227_v14 = vld [vmem:[#allocation12 + $0x288] sm:$0xff]  }
 0x584   : > { %16631 = vst [vmem:[#allocation66_spill] sm:$0xff] %v15734_v49  ;;  %v16640_v49 = vld [vmem:[#allocation32_spill] sm:$0xff]  ;;  %v16641_v26 = vld [vmem:[#allocation45_spill] sm:$0xff] }
 0x585   : > { %8151 = vmatmul.mubr.bf16.gmra.mrb[104].mxu0 %v15340_v46 }
 0x586   : > { %8158 = vmatprep.mubr.bf16.mxu0 %v15672_v22 }
 0x587   : > { %7998 = vmatmul.mubr.bf16.gmra.mrb[76].mxu1 %v15458_v12 }
 0x588   : > { %8005 = vmatprep.mubr.bf16.mxu1 %v15661_v17 }
 0x58d   : > { %8159 = vmatmul.mubr.bf16.gmra.mrb[108].mxu0 %v15465_v1 }
 0x58e   : > { %8166 = vmatprep.mubr.bf16.mxu0 %v15695_v47 }
 0x58f   : > { %8006 = vmatmul.mubr.bf16.gmra.mrb[80].mxu1 %v15452_v55 }
 0x590   : > { %8013 = vmatprep.mubr.bf16.mxu1 %v15677_v51 }
 0x595   : > { %8167 = vmatmul.mubr.bf16.gmra.mrb[112].mxu0 %v15454_v27 }
 0x596   : > { %8174 = vmatprep.mubr.bf16.mxu0 %v15701_v39 }
 0x597   : > { %8014 = vmatmul.mubr.bf16.gmra.mrb[84].mxu1 %v15550_v52 }
 0x598   : > { %8021 = vmatprep.mubr.bf16.mxu1 %v15683_v36 }
 0x59d   : > { %8175 = vmatmul.mubr.bf16.gmra.mrb[116].mxu0 %v15558_v9 }
 0x59e   : > { %8182 = vmatprep.mubr.bf16.mxu0 %v15711_v2 }
 0x59f   : > { %8022 = vmatmul.mubr.bf16.gmra.mrb[88].mxu1 %v15544_v50 }
 0x5a0   : > { %8029 = vmatprep.mubr.bf16.mxu1 %v15692_v6 }
 0x5a5   : > { %8183 = vmatmul.mubr.bf16.gmra.mrb[120].mxu0 %v15546_v23 }
 0x5a6   : > { %8190 = vmatprep.mubr.bf16.mxu0 %v15720_v15 }
 0x5a7   : > { %8030 = vmatmul.mubr.bf16.gmra.mrb[92].mxu1 %v15631_v62 }
 0x5a8   : > { %8231 = vmatprep.mubr.bf16.mxu1 %v16632_v45  ;;  %v16638_v45 = vld [vmem:[#allocation31_spill] sm:$0xff] }
 0x5ad   : > { %8191 = vmatmul.mubr.bf16.gmra.mrb[124].mxu0 %v15640_v61 }
 0x5ae   : > { %8392 = vmatprep.mubr.bf16.mxu0 %v16633_v33  ;;  %v12230_v33 = vld [vmem:[#allocation12 + $0x2d0] sm:$0xff]  }
 0x5af   : > { %8232 = vmatmul.mubr.bf16.vlgmr.msra.gmra.mrb[96].mxu1 %v16634_v21  ;;  %v12236_v21 = vld [vmem:[#allocation12 + $0x260] sm:$0xff]  }
 0x5b0   : > { %8239 = vmatprep.mubr.bf16.mxu1 %v16635_v0  ;;  %11213 = vmatpush3.bf16.msra.mxu1 %v12221_v57  ;;  %v16639_v57 = vld [vmem:[#allocation44_spill] sm:$0xff] }
 0x5b1   : > { %11214 = vmatprep.subr.bf16.mxu1 %v12224_v58  ;;  %v12233_v58 = vld [vmem:[#allocation12 + $0x218] sm:$0xff]  }
 0x5b4   : > { %11215 = vmatpush3.bf16.msra.mxu1 %v12225_v3  ;;  %v12231_v3 = vld [vmem:[#allocation12 + $0x290] sm:$0xff]  }
 0x5b5   : > { %8393 = vmatmul.mubr.bf16.vlgmr.msra.gmra.mrb[128].mxu0 %v16636_v41  ;;  %11216 = vmatprep.subr.bf16.mxu1 %v12228_v44  ;;  %v12234_v41 = vld [vmem:[#allocation12 + $0x2d8] sm:$0xff]   ;;  %v12237_v44 = vld [vmem:[#allocation12 + $0x220] sm:$0xff]  }
 0x5b6   : > { %8400 = vmatprep.mubr.bf16.mxu0 %v16637_v34  ;;  %11325 = vmatpush3.bf16.msra.mxu0 %v12223_v53  ;;  %v12240_v53 = vld [vmem:[#allocation12 + $0x268] sm:$0xff]  }
 0x5b7   : > { %8240 = vmatmul.mubr.bf16.gmra.mrb[100].mxu1 %v16638_v45  ;;  %11326 = vmatprep.subr.bf16.mxu0 %v12226_v25  ;;  %v12235_v25 = vld [vmem:[#allocation12 + $0x298] sm:$0xff]   ;;  %v16642_v45 = vld [vmem:[#allocation40_spill] sm:$0xff] }
 0x5b8   : > { %8247 = vmatprep.mubr.bf16.mxu1 %v16639_v57  ;;  %11217 = vmatpush3.bf16.msra.mxu1 %v12229_v11  ;;  %v12238_v11 = vld [vmem:[#allocation12 + $0x2e0] sm:$0xff]   ;;  %v16644_v57 = vld [vmem:[#allocation41_spill] sm:$0xff] }
 0x5b9   : > { %11218 = vmatprep.subr.bf16.mxu1 %v12232_v40  ;;  %v16643_v40 = vld [vmem:[#allocation47_spill] sm:$0xff] }
 0x5ba   : > { %11327 = vmatpush3.bf16.msra.mxu0 %v12227_v14  ;;  %v12241_v14 = vld [vmem:[#allocation12 + $0x228] sm:$0xff]  }
 0x5bb   : > { %11328 = vmatprep.subr.bf16.mxu0 %v12230_v33  ;;  %v12244_v33 = vld [vmem:[#allocation12 + $0x270] sm:$0xff]  }
 0x5bc   : > { %11219 = vmatpush3.bf16.msra.mxu1 %v12233_v58  ;;  %v12239_v58 = vld [vmem:[#allocation12 + $0x2a0] sm:$0xff]  }
 0x5bd   : > { %8401 = vmatmul.mubr.bf16.gmra.mrb[132].mxu0 %v16640_v49  ;;  %11220 = vmatprep.subr.bf16.mxu1 %v12236_v21  ;;  %v12242_v49 = vld [vmem:[#allocation12 + $0x2e8] sm:$0xff]   ;;  %v12245_v21 = vld [vmem:[#allocation12 + $0x230] sm:$0xff]  }
 0x5be   : > { %8408 = vmatprep.mubr.bf16.mxu0 %v16641_v26  ;;  %11329 = vmatpush3.bf16.msra.mxu0 %v12231_v3  ;;  %v12248_v3 = vld [vmem:[#allocation12 + $0x278] sm:$0xff]  }
 0x5bf   : > { %8248 = vmatmul.mubr.bf16.gmra.mrb[104].mxu1 %v16642_v45  ;;  %11330 = vmatprep.subr.bf16.mxu0 %v12234_v41  ;;  %v16645_v26 = vld [vmem:[#allocation51_spill] sm:$0xff]  ;;  %v12243_v41 = vld [vmem:[#allocation12 + $0x2a8] sm:$0xff]  }
 0x5c0   : > { %8255 = vmatprep.mubr.bf16.mxu1 %v16643_v40  ;;  %11221 = vmatpush3.bf16.msra.mxu1 %v12237_v44  ;;  %v16646_v45 = vld [vmem:[#allocation37_spill] sm:$0xff]  ;;  %v12246_v44 = vld [vmem:[#allocation12 + $0x2f0] sm:$0xff]  }
 0x5c1   : > { %11222 = vmatprep.subr.bf16.mxu1 %v12240_v53  ;;  %v16647_v53 = vld [vmem:[#allocation56_spill] sm:$0xff] }
 0x5c2   : > { %11331 = vmatpush3.bf16.msra.mxu0 %v12235_v25  ;;  %v12249_v25 = vld [vmem:[#allocation12 + $0x238] sm:$0xff]  }
 0x5c3   : > { %11332 = vmatprep.subr.bf16.mxu0 %v12238_v11  ;;  %v12247_v11 = vld [vmem:[#allocation12 + $0x2b0] sm:$0xff]  }
 0x5c4   : > { %11223 = vmatpush3.bf16.msra.mxu1 %v12241_v14  ;;  %v12250_v14 = vld [vmem:[#allocation12 + $0x2f8] sm:$0xff]  }
 0x5c5   : > { %8409 = vmatmul.mubr.bf16.gmra.mrb[136].mxu0 %v16644_v57  ;;  %11224 = vmatprep.subr.bf16.mxu1 %v12244_v33  ;;  %v16648_v33 = vld [vmem:[#allocation38_spill] sm:$0xff] }
 0x5c6   : > { %8416 = vmatprep.mubr.bf16.mxu0 %v16645_v26  ;;  %11333 = vmatpush3.bf16.msra.mxu0 %v12239_v58  ;;  %v12251_v58 = vld [vmem:[#allocation12 + $0x2b8] sm:$0xff]  }
 0x5c7   : > { %8256 = vmatmul.mubr.bf16.gmra.mrb[108].mxu1 %v16646_v45  ;;  %11334 = vmatprep.subr.bf16.mxu0 %v12242_v49 }
 0x5c8   : > { %8263 = vmatprep.mubr.bf16.mxu1 %v16647_v53  ;;  %11225 = vmatpush3.bf16.msra.mxu1 %v12245_v21 }
 0x5c9   : > { %11226 = vmatprep.subr.bf16.mxu1 %v12248_v3  ;;  %v12252_v3 = vld [vmem:[#allocation12 + $0x340] sm:$0xff]  }
 0x5ca   : > { %11335 = vmatpush3.bf16.msra.mxu0 %v12243_v41 }
 0x5cb   : > { %11336 = vmatprep.subr.bf16.mxu0 %v12246_v44 }
 0x5cc   : > { %11227 = vmatpush3.bf16.msra.mxu1 %v12249_v25 }
 0x5cd   : > { %8417 = vmatmul.mubr.bf16.gmra.mrb[140].mxu0 %v16648_v33  ;;  %11436 = vmatprep.subr.bf16.mxu1 %v12252_v3 }
 0x5ce   : > { %8424 = vmatprep.mubr.bf16.mxu0 %v15353_v8  ;;  %11337 = vmatpush3.bf16.msra.mxu0 %v12247_v11 }
 0x5cf   : > { %8264 = vmatmul.mubr.bf16.gmra.mrb[112].mxu1 %v15100_v38  ;;  %11338 = vmatprep.subr.bf16.mxu0 %v12250_v14  ;;  %v12254_v14 = vld [vmem:[#allocation12 + $0x3c0] sm:$0xff]  }
 0x5d0   : > { %8271 = vmatprep.mubr.bf16.mxu1 %v15416_v28 }
 0x5d2   : > { %11339 = vmatpush3.bf16.msra.mxu0 %v12251_v58 }
 0x5d3   : > { %11548 = vmatprep.subr.bf16.mxu0 %v12254_v14 }
 0x5d5   : > { %8425 = vmatmul.mubr.bf16.gmra.mrb[144].mxu0 %v15108_v42 }
 0x5d6   : > { %8432 = vmatprep.mubr.bf16.mxu0 %v15467_v24 }
 0x5d7   : > { %8272 = vmatmul.mubr.bf16.gmra.mrb[116].mxu1 %v15088_v54 }
 0x5d8   : > { %8279 = vmatprep.mubr.bf16.mxu1 %v15518_v13 }
 0x5dd   : > { %8433 = vmatmul.mubr.bf16.gmra.mrb[148].mxu0 %v15090_v37 }
 0x5de   : > { %8440 = vmatprep.mubr.bf16.mxu0 %v15560_v30 }
 0x5df   : > { %8280 = vmatmul.mubr.bf16.gmra.mrb[120].mxu1 %v15228_v31 }
 0x5e0   : > { %8287 = vmatprep.mubr.bf16.mxu1 %v15582_v48 }
 0x5e5   : > { %8441 = vmatmul.mubr.bf16.gmra.mrb[152].mxu0 %v16610_v5 }
 0x5e6   : > { %8448 = vmatprep.mubr.bf16.mxu0 %v15616_v4 }
 0x5e7   : > { %8288 = vmatmul.mubr.bf16.gmra.mrb[124].mxu1 %v16614_v7 }
 0x5e8   : > { %8295 = vmatprep.mubr.bf16.mxu1 %v15600_v18 }
 0x5ed   : > { %8449 = vmatmul.mubr.bf16.gmra.mrb[156].mxu0 %v16622_v43 }
 0x5ee   : > { %8456 = vmatprep.mubr.bf16.mxu0 %v15654_v16 }
 0x5ef   : > { %8296 = vmatmul.mubr.bf16.gmra.mrb[128].mxu1 %v15344_v63 }
 0x5f0   : > { %8303 = vmatprep.mubr.bf16.mxu1 %v15638_v20 }
 0x5f5   : > { %8457 = vmatmul.mubr.bf16.gmra.mrb[160].mxu0 %v15351_v19  ;;  %v10786_v49 = vpop.f32.mrb[36].mxu1 }
 0x5f6   : > { %8464 = vmatprep.mubr.bf16.mxu0 %v15664_v10  ;;  %v10787_v21 = vpop.f32.mrb[37].mxu1 }
 0x5f7   : > { %8304 = vmatmul.mubr.bf16.gmra.mrb[132].mxu1 %v15338_v35  ;;  %v10788_v41 = vadd.f32 %v10787_v21, %v10786_v49  ;;  %v10789_v44 = vpop.f32.mrb[38].mxu1 }
 0x5f8   : > { %8311 = vmatprep.mubr.bf16.mxu1 %v15646_v59  ;;  %v10790_v25 = vpop.f32.mrb[39].mxu1 }
 0x5f9   : > { %v10791_v11 = vadd.f32 %v10790_v25, %v10789_v44 }
 0x5fc   : > { %v10898_v58 = vpop.f32.mrb[68].mxu0 }
 0x5fd   : > { %8465 = vmatmul.mubr.bf16.gmra.mrb[164].mxu0 %v15340_v46  ;;  %v10899_v35 = vpop.f32.mrb[69].mxu0  ;;  %v10792_v10 = vpop.f32.mrb[40].mxu1 }
 0x5fe   : > { %8472 = vmatprep.mubr.bf16.mxu0 %v15672_v22  ;;  %v10900_v59 = vadd.f32 %v10899_v35, %v10898_v58  ;;  %v10901_v19 = vpop.f32.mrb[70].mxu0  ;;  %v10793_v49 = vpop.f32.mrb[41].mxu1 }
 0x5ff   : > { %8312 = vmatmul.mubr.bf16.gmra.mrb[136].mxu1 %v15458_v12  ;;  %v10902_v21 = vpop.f32.mrb[71].mxu0  ;;  %v10794_v20 = vadd.f32 %v10793_v49, %v10792_v10  ;;  %v10795_v3 = vpop.f32.mrb[42].mxu1 }
 0x600   : > { %8319 = vmatprep.mubr.bf16.mxu1 %v15661_v17  ;;  %v15796_v44 = vadd.f32 %v10900_v59, %v10788_v41  ;;  %v10903_v25 = vadd.f32 %v10902_v21, %v10901_v19  ;;  %v10796_v46 = vpop.f32.mrb[43].mxu1 }
 0x601   : > { %v10797_v63 = vadd.f32 %v10796_v46, %v10795_v3 }
 0x602   : > { %16649 = vst [vmem:[#allocation35_spill] sm:$0xff] %v15796_v44  ;;  %v15798_v22 = vadd.f32 %v10903_v25, %v10791_v11 }
 0x604   : > { %16650 = vst [vmem:[#allocation39_spill] sm:$0xff] %v15798_v22  ;;  %v10904_v14 = vpop.f32.mrb[72].mxu0 }
 0x605   : > { %8473 = vmatmul.mubr.bf16.gmra.mrb[168].mxu0 %v15465_v1  ;;  %v10905_v35 = vpop.f32.mrb[73].mxu0 }
 0x606   : > { %8480 = vmatprep.mubr.bf16.mxu0 %v15695_v47  ;;  %v10906_v58 = vadd.f32 %v10905_v35, %v10904_v14  ;;  %v10907_v10 = vpop.f32.mrb[74].mxu0  ;;  %v10798_v49 = vpop.f32.mrb[44].mxu1 }
 0x607   : > { %8320 = vmatmul.mubr.bf16.gmra.mrb[140].mxu1 %v15452_v55  ;;  %v10908_v59 = vpop.f32.mrb[75].mxu0  ;;  %v10799_v41 = vpop.f32.mrb[45].mxu1 }
 0x608   : > { %8327 = vmatprep.mubr.bf16.mxu1 %v15677_v51  ;;  %v15804_v19 = vadd.f32 %v10906_v58, %v10794_v20  ;;  %v10909_v46 = vadd.f32 %v10908_v59, %v10907_v10  ;;  %v10800_v11 = vadd.f32 %v10799_v41, %v10798_v49  ;;  %v10801_v21 = vpop.f32.mrb[46].mxu1 }
 0x609   : > { %v10802_v3 = vpop.f32.mrb[47].mxu1 }
 0x60a   : > { %v15806_v25 = vadd.f32 %v10909_v46, %v10797_v63  ;;  %v10803_v22 = vadd.f32 %v10802_v3, %v10801_v21 }
 0x60c   : > { %v10910_v44 = vpop.f32.mrb[76].mxu0 }
 0x60d   : > { %8481 = vmatmul.mubr.bf16.gmra.mrb[172].mxu0 %v15454_v27  ;;  %v10911_v14 = vpop.f32.mrb[77].mxu0 }
 0x60e   : > { %8488 = vmatprep.mubr.bf16.mxu0 %v15701_v39  ;;  %v10912_v35 = vadd.f32 %v10911_v14, %v10910_v44  ;;  %v10913_v20 = vpop.f32.mrb[78].mxu0 }
 0x60f   : > { %8328 = vmatmul.mubr.bf16.gmra.mrb[144].mxu1 %v15550_v52  ;;  %v10914_v58 = vpop.f32.mrb[79].mxu0 }
 0x610   : > { %8335 = vmatprep.mubr.bf16.mxu1 %v15683_v36  ;;  %v15812_v10 = vadd.f32 %v10912_v35, %v10800_v11  ;;  %v10915_v49 = vadd.f32 %v10914_v58, %v10913_v20 }
 0x612   : > { %16651 = vst [vmem:[#allocation33_spill] sm:$0xff] %v15812_v10  ;;  %v15814_v59 = vadd.f32 %v10915_v49, %v10803_v22  ;;  %v10804_v63 = vpop.f32.mrb[48].mxu1 }
 0x613   : > { %v10805_v41 = vpop.f32.mrb[49].mxu1 }
 0x614   : > { %16652 = vst [vmem:[#allocation36_spill] sm:$0xff] %v15814_v59  ;;  %v10806_v46 = vadd.f32 %v10805_v41, %v10804_v63  ;;  %v10807_v21 = vpop.f32.mrb[50].mxu1 }
 0x615   : > { %8489 = vmatmul.mubr.bf16.gmra.mrb[176].mxu0 %v15558_v9  ;;  %v10808_v44 = vpop.f32.mrb[51].mxu1 }
 0x616   : > { %8496 = vmatprep.mubr.bf16.mxu0 %v15711_v2  ;;  %v10809_v3 = vadd.f32 %v10808_v44, %v10807_v21 }
 0x617   : > { %8336 = vmatmul.mubr.bf16.gmra.mrb[148].mxu1 %v15544_v50 }
 0x618   : > { %8343 = vmatprep.mubr.bf16.mxu1 %v15692_v6 }
 0x61a   : > { %v10916_v14 = vpop.f32.mrb[80].mxu0 }
 0x61b   : > { %v10917_v11 = vpop.f32.mrb[81].mxu0 }
 0x61c   : > { %v10918_v22 = vadd.f32 %v10917_v11, %v10916_v14  ;;  %v10919_v35 = vpop.f32.mrb[82].mxu0 }
 0x61d   : > { %8497 = vmatmul.mubr.bf16.gmra.mrb[180].mxu0 %v15546_v23  ;;  %v10920_v20 = vpop.f32.mrb[83].mxu0 }
 0x61e   : > { %8504 = vmatprep.mubr.bf16.mxu0 %v15720_v15  ;;  %v15823_v58 = vadd.f32 %v10918_v22, %v10806_v46  ;;  %v10921_v49 = vadd.f32 %v10920_v20, %v10919_v35 }
 0x61f   : > { %8344 = vmatmul.mubr.bf16.gmra.mrb[152].mxu1 %v15631_v62 }
 0x620   : > { %16653 = vst [vmem:[#allocation34_spill] sm:$0xff] %v15823_v58  ;;  %8351 = vmatprep.mubr.bf16.mxu1 %v15708_v32  ;;  %v15826_v63 = vadd.f32 %v10921_v49, %v10809_v3  ;;  %v10810_v41 = vpop.f32.mrb[52].mxu1  ;;  %v16657_v58 = vld [vmem:[#allocation31_spill] sm:$0xff] }
 0x621   : > { %v10811_v21 = vpop.f32.mrb[53].mxu1 }
 0x622   : > { %16654 = vst [vmem:[#allocation42_spill] sm:$0xff] %v15826_v63  ;;  %v10812_v44 = vadd.f32 %v10811_v21, %v10810_v41  ;;  %v10813_v59 = vpop.f32.mrb[54].mxu1  ;;  %v12253_v41 = vld [vmem:[#allocation12 + $0x300] sm:$0xff]  }
 0x623   : > { %v10814_v10 = vpop.f32.mrb[55].mxu1 }
 0x624   : > { %v10815_v14 = vadd.f32 %v10814_v10, %v10813_v59  ;;  %v12256_v59 = vld [vmem:[#allocation12 + $0x348] sm:$0xff]  }
 0x625   : > { %8505 = vmatmul.mubr.bf16.gmra.mrb[184].mxu0 %v15640_v61 }
 0x626   : > { %8512 = vmatprep.mubr.bf16.mxu0 %v15726_v60  ;;  %v10922_v11 = vpop.f32.mrb[84].mxu0 }
 0x627   : > { %8352 = vmatmul.mubr.bf16.gmra.mrb[156].mxu1 %v15624_v29  ;;  %v10923_v46 = vpop.f32.mrb[85].mxu0 }
 0x628   : > { %8553 = vmatprep.mubr.bf16.mxu1 %v16635_v0  ;;  %v10924_v22 = vadd.f32 %v10923_v46, %v10922_v11  ;;  %v10925_v35 = vpop.f32.mrb[86].mxu0  ;;  %v16658_v11 = vld [vmem:[#allocation44_spill] sm:$0xff] }
 0x629   : > { %v10926_v3 = vpop.f32.mrb[87].mxu0 }
 0x62a   : > { %v15832_v20 = vadd.f32 %v10924_v22, %v10812_v44  ;;  %v10927_v49 = vadd.f32 %v10926_v3, %v10925_v35  ;;  %v12257_v44 = vld [vmem:[#allocation12 + $0x308] sm:$0xff]   ;;  %v12260_v35 = vld [vmem:[#allocation12 + $0x350] sm:$0xff]   ;;  %v12255_v3 = vld [vmem:[#allocation12 + $0x380] sm:$0xff]  }
 0x62c   : > { %16655 = vst [vmem:[#allocation47_spill] sm:$0xff] %v15832_v20  ;;  %v15835_v21 = vadd.f32 %v10927_v49, %v10815_v14  ;;  %v10816_v10 = vpop.f32.mrb[56].mxu1  ;;  %v12258_v14 = vld [vmem:[#allocation12 + $0x3c8] sm:$0xff]   ;;  %v16659_v20 = vld [vmem:[#allocation32_spill] sm:$0xff] }
 0x62d   : > { %8513 = vmatmul.mubr.bf16.gmra.mrb[188].mxu0 %v15626_v56  ;;  %v10817_v63 = vpop.f32.mrb[57].mxu1 }
 0x62e   : > { %16656 = vst [vmem:[#allocation41_spill] sm:$0xff] %v15835_v21  ;;  %8714 = vmatprep.mubr.bf16.mxu0 %v16637_v34  ;;  %v10818_v0 = vadd.f32 %v10817_v63, %v10816_v10  ;;  %v10819_v29 = vpop.f32.mrb[58].mxu1  ;;  %v12261_v21 = vld [vmem:[#allocation12 + $0x310] sm:$0xff]   ;;  %v16660_v63 = vld [vmem:[#allocation45_spill] sm:$0xff] }
 0x62f   : > { %8554 = vmatmul.mubr.bf16.vlgmr.msra.gmra.mrb[160].mxu1 %v16657_v58  ;;  %v10820_v46 = vpop.f32.mrb[59].mxu1  ;;  %v12264_v58 = vld [vmem:[#allocation12 + $0x358] sm:$0xff]  }
 0x630   : > { %8561 = vmatprep.mubr.bf16.mxu1 %v16658_v11  ;;  %11437 = vmatpush3.bf16.msra.mxu1 %v12253_v41  ;;  %v10821_v22 = vadd.f32 %v10820_v46, %v10819_v29  ;;  %v12259_v41 = vld [vmem:[#allocation12 + $0x388] sm:$0xff]   ;;  %v16661_v29 = vld [vmem:[#allocation40_spill] sm:$0xff] }
 0x631   : > { %11438 = vmatprep.subr.bf16.mxu1 %v12256_v59  ;;  %v12262_v59 = vld [vmem:[#allocation12 + $0x3d0] sm:$0xff]  }
 0x634   : > { %v10928_v49 = vpop.f32.mrb[88].mxu0  ;;  %11439 = vmatpush3.bf16.msra.mxu1 %v12257_v44 }
 0x635   : > { %8715 = vmatmul.mubr.bf16.vlgmr.msra.gmra.mrb[192].mxu0 %v16659_v20  ;;  %v10929_v34 = vpop.f32.mrb[89].mxu0  ;;  %11440 = vmatprep.subr.bf16.mxu1 %v12260_v35  ;;  %v12265_v20 = vld [vmem:[#allocation12 + $0x318] sm:$0xff]   ;;  %v12268_v35 = vld [vmem:[#allocation12 + $0x360] sm:$0xff]  }
 0x636   : > { %8722 = vmatprep.mubr.bf16.mxu0 %v16660_v63  ;;  %v10930_v10 = vadd.f32 %v10929_v34, %v10928_v49  ;;  %v10931_v11 = vpop.f32.mrb[90].mxu0  ;;  %11549 = vmatpush3.bf16.msra.mxu0 %v12255_v3  ;;  %v12263_v3 = vld [vmem:[#allocation12 + $0x390] sm:$0xff]   ;;  %v12266_v63 = vld [vmem:[#allocation12 + $0x3d8] sm:$0xff]  }
 0x637   : > { %v10932_v56 = vpop.f32.mrb[91].mxu0  ;;  %8562 = vmatmul.mubr.bf16.gmra.mrb[164].mxu1 %v16661_v29  ;;  %11550 = vmatprep.subr.bf16.mxu0 %v12258_v14 }
 0x638   : > { %v15843_v46 = vadd.f32 %v10930_v10, %v10818_v0  ;;  %v10933_v44 = vadd.f32 %v10932_v56, %v10931_v11  ;;  %8569 = vmatprep.mubr.bf16.mxu1 %v16643_v40  ;;  %11441 = vmatpush3.bf16.msra.mxu1 %v12261_v21  ;;  %v12269_v0 = vld [vmem:[#allocation12 + $0x320] sm:$0xff]   ;;  %v12272_v21 = vld [vmem:[#allocation12 + $0x368] sm:$0xff]  }
 0x639   : > { %11442 = vmatprep.subr.bf16.mxu1 %v12264_v58  ;;  %v12270_v58 = vld [vmem:[#allocation12 + $0x3e0] sm:$0xff]  }
 0x63a   : > { %16662 = vst [vmem:[#allocation51_spill] sm:$0xff] %v15843_v46  ;;  %v15846_v60 = vadd.f32 %v10933_v44, %v10821_v22  ;;  %v10822_v49 = vpop.f32.mrb[60].mxu1  ;;  %11551 = vmatpush3.bf16.msra.mxu0 %v12259_v41  ;;  %v12267_v22 = vld [vmem:[#allocation12 + $0x398] sm:$0xff]   ;;  %v12273_v41 = vld [vmem:[#allocation12 + $0x328] sm:$0xff]   ;;  %v12276_v44 = vld [vmem:[#allocation12 + $0x370] sm:$0xff]  }
 0x63b   : > { %v10823_v34 = vpop.f32.mrb[61].mxu1  ;;  %11552 = vmatprep.subr.bf16.mxu0 %v12262_v59 }
 0x63c   : > { %16663 = vst [vmem:[#allocation56_spill] sm:$0xff] %v15846_v60  ;;  %v10824_v29 = vadd.f32 %v10823_v34, %v10822_v49  ;;  %v10825_v14 = vpop.f32.mrb[62].mxu1  ;;  %11443 = vmatpush3.bf16.msra.mxu1 %v12265_v20  ;;  %v12271_v34 = vld [vmem:[#allocation12 + $0x3a0] sm:$0xff]  }
 0x63d   : > { %8723 = vmatmul.mubr.bf16.gmra.mrb[196].mxu0 %v16644_v57  ;;  %v10826_v56 = vpop.f32.mrb[63].mxu1  ;;  %11444 = vmatprep.subr.bf16.mxu1 %v12268_v35 }
 0x63e   : > { %8730 = vmatprep.mubr.bf16.mxu0 %v16645_v26  ;;  %v10827_v11 = vadd.f32 %v10826_v56, %v10825_v14  ;;  %11553 = vmatpush3.bf16.msra.mxu0 %v12263_v3  ;;  %v12274_v56 = vld [vmem:[#allocation12 + $0x3e8] sm:$0xff]  }
 0x63f   : > { %8570 = vmatmul.mubr.bf16.gmra.mrb[168].mxu1 %v16646_v45  ;;  %11554 = vmatprep.subr.bf16.mxu0 %v12266_v63 }
 0x640   : > { %v10934_v10 = vpop.f32.mrb[92].mxu0  ;;  %8577 = vmatprep.mubr.bf16.mxu1 %v16647_v53  ;;  %11445 = vmatpush3.bf16.msra.mxu1 %v12269_v0  ;;  %v12277_v0 = vld [vmem:[#allocation12 + $0x330] sm:$0xff]  }
 0x641   : > { %v10935_v59 = vpop.f32.mrb[93].mxu0  ;;  %11446 = vmatprep.subr.bf16.mxu1 %v12272_v21 }
 0x642   : > { %v10936_v20 = vadd.f32 %v10935_v59, %v10934_v10  ;;  %v10937_v35 = vpop.f32.mrb[94].mxu0  ;;  %v10828_v49 = vpop.f32.mrb[64].mxu1  ;;  %11555 = vmatpush3.bf16.msra.mxu0 %v12267_v22  ;;  %v12280_v10 = vld [vmem:[#allocation12 + $0x378] sm:$0xff]  }
 0x643   : > { %v10938_v14 = vpop.f32.mrb[95].mxu0  ;;  %v10829_v3 = vpop.f32.mrb[65].mxu1  ;;  %11556 = vmatprep.subr.bf16.mxu0 %v12270_v58  ;;  %v12275_v58 = vld [vmem:[#allocation12 + $0x3a8] sm:$0xff]  }
 0x644   : > { %v15852_v60 = vadd.f32 %v10936_v20, %v10824_v29  ;;  %v10939_v63 = vadd.f32 %v10938_v14, %v10937_v35  ;;  %v10830_v45 = vadd.f32 %v10829_v3, %v10828_v49  ;;  %v10831_v46 = vpop.f32.mrb[66].mxu1  ;;  %11447 = vmatpush3.bf16.msra.mxu1 %v12273_v41  ;;  %v12278_v29 = vld [vmem:[#allocation12 + $0x3f0] sm:$0xff]   ;;  %v12281_v41 = vld [vmem:[#allocation12 + $0x338] sm:$0xff]  }
 0x645   : > { %8731 = vmatmul.mubr.bf16.gmra.mrb[200].mxu0 %v16648_v33  ;;  %v10832_v21 = vpop.f32.mrb[67].mxu1  ;;  %11448 = vmatprep.subr.bf16.mxu1 %v12276_v44  ;;  %v12279_v14 = vld [vmem:[#allocation12 + $0x3b0] sm:$0xff]  }
 0x646   : > { %v15855_v59 = vadd.f32 %v10939_v63, %v10827_v11  ;;  %8738 = vmatprep.mubr.bf16.mxu0 %v15353_v8  ;;  %v10833_v22 = vadd.f32 %v10832_v21, %v10831_v46  ;;  %11557 = vmatpush3.bf16.msra.mxu0 %v12271_v34  ;;  %v12282_v34 = vld [vmem:[#allocation12 + $0x3f8] sm:$0xff]  }
 0x647   : > { %8578 = vmatmul.mubr.bf16.gmra.mrb[172].mxu1 %v15100_v38  ;;  %11558 = vmatprep.subr.bf16.mxu0 %v12274_v56 }
 0x648   : > { %16664 = vst [vmem:[#allocation38_spill] sm:$0xff] %v15855_v59  ;;  %v10940_v20 = vpop.f32.mrb[96].mxu0  ;;  %8585 = vmatprep.mubr.bf16.mxu1 %v15416_v28  ;;  %11449 = vmatpush3.bf16.msra.mxu1 %v12277_v0 }
 0x649   : > { %v10941_v35 = vpop.f32.mrb[97].mxu0  ;;  %11450 = vmatprep.subr.bf16.mxu1 %v12280_v10 }
 0x64a   : > { %v10942_v44 = vadd.f32 %v10941_v35, %v10940_v20  ;;  %v10943_v49 = vpop.f32.mrb[98].mxu0  ;;  %v10834_v11 = vpop.f32.mrb[68].mxu1  ;;  %11559 = vmatpush3.bf16.msra.mxu0 %v12275_v58  ;;  %v12283_v58 = vld [vmem:[#allocation12 + $0x3b8] sm:$0xff]  }
 0x64b   : > { %v10944_v3 = vpop.f32.mrb[99].mxu0  ;;  %v10835_v46 = vpop.f32.mrb[69].mxu1  ;;  %11560 = vmatprep.subr.bf16.mxu0 %v12278_v29 }
 0x64c   : > { %v15860_v63 = vadd.f32 %v10942_v44, %v10830_v45  ;;  %v10945_v56 = vadd.f32 %v10944_v3, %v10943_v49  ;;  %v10836_v21 = vadd.f32 %v10835_v46, %v10834_v11  ;;  %v10837_v59 = vpop.f32.mrb[70].mxu1  ;;  %11451 = vmatpush3.bf16.msra.mxu1 %v12281_v41 }
 0x64d   : > { %8739 = vmatmul.mubr.bf16.gmra.mrb[204].mxu0 %v15108_v42  ;;  %v10838_v0 = vpop.f32.mrb[71].mxu1 }
 0x64e   : > { %v15863_v28 = vadd.f32 %v10945_v56, %v10833_v22  ;;  %8746 = vmatprep.mubr.bf16.mxu0 %v15467_v24  ;;  %v10839_v10 = vadd.f32 %v10838_v0, %v10837_v59  ;;  %11561 = vmatpush3.bf16.msra.mxu0 %v12279_v14 }
 0x64f   : > { %8586 = vmatmul.mubr.bf16.gmra.mrb[176].mxu1 %v15088_v54  ;;  %11562 = vmatprep.subr.bf16.mxu0 %v12282_v34 }
 0x650   : > { %v10946_v29 = vpop.f32.mrb[100].mxu0  ;;  %8593 = vmatprep.mubr.bf16.mxu1 %v15518_v13 }
 0x651   : > { %v10947_v45 = vpop.f32.mrb[101].mxu0 }
 0x652   : > { %v10948_v20 = vadd.f32 %v10947_v45, %v10946_v29  ;;  %v10949_v35 = vpop.f32.mrb[102].mxu0  ;;  %v10840_v41 = vpop.f32.mrb[72].mxu1  ;;  %11563 = vmatpush3.bf16.msra.mxu0 %v12283_v58 }
 0x653   : > { %v10950_v44 = vpop.f32.mrb[103].mxu0  ;;  %v10841_v49 = vpop.f32.mrb[73].mxu1 }
 0x654   : > { %v15868_v22 = vadd.f32 %v10948_v20, %v10836_v21  ;;  %v10951_v11 = vadd.f32 %v10950_v44, %v10949_v35  ;;  %v10842_v3 = vadd.f32 %v10841_v49, %v10840_v41  ;;  %v10843_v59 = vpop.f32.mrb[74].mxu1 }
 0x655   : > { %8747 = vmatmul.mubr.bf16.gmra.mrb[208].mxu0 %v15090_v37  ;;  %v10844_v14 = vpop.f32.mrb[75].mxu1 }
 0x656   : > { %v15871_v46 = vadd.f32 %v10951_v11, %v10839_v10  ;;  %8754 = vmatprep.mubr.bf16.mxu0 %v15560_v30  ;;  %v10845_v34 = vadd.f32 %v10844_v14, %v10843_v59 }
 0x657   : > { %8594 = vmatmul.mubr.bf16.gmra.mrb[180].mxu1 %v15228_v31 }
 0x658   : > { %v10952_v56 = vpop.f32.mrb[104].mxu0  ;;  %8601 = vmatprep.mubr.bf16.mxu1 %v15582_v48 }
 0x659   : > { %v10953_v0 = vpop.f32.mrb[105].mxu0 }
 0x65a   : > { %v10954_v58 = vadd.f32 %v10953_v0, %v10952_v56  ;;  %v10955_v21 = vpop.f32.mrb[106].mxu0  ;;  %v10846_v29 = vpop.f32.mrb[76].mxu1 }
 0x65b   : > { %v10956_v45 = vpop.f32.mrb[107].mxu0  ;;  %v10847_v20 = vpop.f32.mrb[77].mxu1 }
 0x65c   : > { %v15876_v35 = vadd.f32 %v10954_v58, %v10842_v3  ;;  %v10957_v41 = vadd.f32 %v10956_v45, %v10955_v21  ;;  %v10848_v44 = vadd.f32 %v10847_v20, %v10846_v29  ;;  %v10849_v10 = vpop.f32.mrb[78].mxu1 }
 0x65d   : > { %8755 = vmatmul.mubr.bf16.gmra.mrb[212].mxu0 %v16610_v5  ;;  %v10850_v49 = vpop.f32.mrb[79].mxu1 }
 0x65e   : > { %16665 = vst [vmem:[#allocation31_spill] sm:$0xff] %v15876_v35  ;;  %v15879_v11 = vadd.f32 %v10957_v41, %v10845_v34  ;;  %8762 = vmatprep.mubr.bf16.mxu0 %v15616_v4  ;;  %v10851_v59 = vadd.f32 %v10850_v49, %v10849_v10 }
 0x65f   : > { %8602 = vmatmul.mubr.bf16.gmra.mrb[184].mxu1 %v16614_v7 }
 0x660   : > { %16666 = vst [vmem:[#allocation32_spill] sm:$0xff] %v15879_v11  ;;  %v10958_v14 = vpop.f32.mrb[108].mxu0  ;;  %8609 = vmatprep.mubr.bf16.mxu1 %v15600_v18  ;;  %v16669_v18 = vld [vmem:[#allocation59_spill] sm:$0xff] }
 0x661   : > { %v10959_v56 = vpop.f32.mrb[109].mxu0 }
 0x662   : > { %v10960_v0 = vadd.f32 %v10959_v56, %v10958_v14  ;;  %v10961_v3 = vpop.f32.mrb[110].mxu0  ;;  %v10852_v58 = vpop.f32.mrb[80].mxu1  ;;  %v16670_v56 = vld [vmem:[#allocation46_spill] sm:$0xff] }
 0x663   : > { %v10962_v21 = vpop.f32.mrb[111].mxu0  ;;  %v10853_v29 = vpop.f32.mrb[81].mxu1 }
 0x664   : > { %v15884_v45 = vadd.f32 %v10960_v0, %v10848_v44  ;;  %v10963_v20 = vadd.f32 %v10962_v21, %v10961_v3  ;;  %v10854_v35 = vadd.f32 %v10853_v29, %v10852_v58  ;;  %v10855_v34 = vpop.f32.mrb[82].mxu1 }
 0x665   : > { %8763 = vmatmul.mubr.bf16.gmra.mrb[216].mxu0 %v16622_v43  ;;  %v10856_v41 = vpop.f32.mrb[83].mxu1 }
 0x666   : > { %16667 = vst [vmem:[#allocation67_spill] sm:$0xff] %v15884_v45  ;;  %v15887_v10 = vadd.f32 %v10963_v20, %v10851_v59  ;;  %8770 = vmatprep.mubr.bf16.mxu0 %v15654_v16  ;;  %v10857_v49 = vadd.f32 %v10856_v41, %v10855_v34  ;;  %v16672_v20 = vld [vmem:[#allocation60_spill] sm:$0xff]  ;;  %v16674_v41 = vld [vmem:[#allocation54_spill] sm:$0xff] }
 0x667   : > { %8610 = vmatmul.mubr.bf16.gmra.mrb[188].mxu1 %v16669_v18 }
 0x668   : > { %16668 = vst [vmem:[#allocation68_spill] sm:$0xff] %v15887_v10  ;;  %v10964_v14 = vpop.f32.mrb[112].mxu0  ;;  %8617 = vmatprep.mubr.bf16.mxu1 %v16670_v56  ;;  %v16675_v56 = vld [vmem:[#allocation57_spill] sm:$0xff] }
 0x669   : > { %v10965_v11 = vpop.f32.mrb[113].mxu0 }
 0x66a   : > { %v10966_v7 = vadd.f32 %v10965_v11, %v10964_v14  ;;  %v10967_v44 = vpop.f32.mrb[114].mxu0  ;;  %v10858_v0 = vpop.f32.mrb[84].mxu1  ;;  %v16676_v14 = vld [vmem:[#allocation53_spill] sm:$0xff] }
 0x66b   : > { %v10968_v3 = vpop.f32.mrb[115].mxu0  ;;  %v10859_v58 = vpop.f32.mrb[85].mxu1 }
 0x66c   : > { %v15892_v21 = vadd.f32 %v10966_v7, %v10854_v35  ;;  %v10969_v29 = vadd.f32 %v10968_v3, %v10967_v44  ;;  %v10860_v45 = vadd.f32 %v10859_v58, %v10858_v0  ;;  %v10861_v59 = vpop.f32.mrb[86].mxu1 }
 0x66d   : > { %8771 = vmatmul.mubr.bf16.gmra.mrb[220].mxu0 %v16672_v20  ;;  %v10862_v10 = vpop.f32.mrb[87].mxu1 }
 0x66e   : > { %16671 = vst [vmem:[#allocation69_spill] sm:$0xff] %v15892_v21  ;;  %v15895_v34 = vadd.f32 %v10969_v29, %v10857_v49  ;;  %8778 = vmatprep.mubr.bf16.mxu0 %v16674_v41  ;;  %v10863_v18 = vadd.f32 %v10862_v10, %v10861_v59  ;;  %v16678_v29 = vld [vmem:[#allocation58_spill] sm:$0xff]  ;;  %v16679_v59 = vld [vmem:[#allocation61_spill] sm:$0xff] }
 0x66f   : > { %8618 = vmatmul.mubr.bf16.gmra.mrb[192].mxu1 %v16675_v56 }
 0x670   : > { %16673 = vst [vmem:[#allocation60_spill] sm:$0xff] %v15895_v34  ;;  %v10970_v11 = vpop.f32.mrb[116].mxu0  ;;  %8625 = vmatprep.mubr.bf16.mxu1 %v16676_v14 }
 0x671   : > { %v10971_v16 = vpop.f32.mrb[117].mxu0 }
 0x672   : > { %v10972_v43 = vadd.f32 %v10971_v16, %v10970_v11  ;;  %v10973_v7 = vpop.f32.mrb[118].mxu0  ;;  %v10864_v35 = vpop.f32.mrb[88].mxu1 }
 0x673   : > { %v10974_v44 = vpop.f32.mrb[119].mxu0  ;;  %v10865_v0 = vpop.f32.mrb[89].mxu1 }
 0x674   : > { %v15900_v3 = vadd.f32 %v10972_v43, %v10860_v45  ;;  %v10975_v58 = vadd.f32 %v10974_v44, %v10973_v7  ;;  %v10866_v21 = vadd.f32 %v10865_v0, %v10864_v35  ;;  %v10867_v49 = vpop.f32.mrb[90].mxu1 }
 0x675   : > { %8779 = vmatmul.mubr.bf16.gmra.mrb[224].mxu0 %v16678_v29  ;;  %v10868_v34 = vpop.f32.mrb[91].mxu1 }
 0x676   : > { %16677 = vst [vmem:[#allocation54_spill] sm:$0xff] %v15900_v3  ;;  %v15903_v10 = vadd.f32 %v10975_v58, %v10863_v18  ;;  %8786 = vmatprep.mubr.bf16.mxu0 %v16679_v59  ;;  %v10869_v56 = vadd.f32 %v10868_v34, %v10867_v49 }
 0x677   : > { %8626 = vmatmul.mubr.bf16.gmra.mrb[196].mxu1 %v15458_v12 }
 0x678   : > { %v10976_v16 = vpop.f32.mrb[120].mxu0  ;;  %8633 = vmatprep.mubr.bf16.mxu1 %v15661_v17 }
 0x679   : > { %v10977_v11 = vpop.f32.mrb[121].mxu0 }
 0x67a   : > { %v10978_v14 = vadd.f32 %v10977_v11, %v10976_v16  ;;  %v10979_v43 = vpop.f32.mrb[122].mxu0  ;;  %v10870_v45 = vpop.f32.mrb[92].mxu1 }
 0x67b   : > { %v10980_v7 = vpop.f32.mrb[123].mxu0  ;;  %v10871_v35 = vpop.f32.mrb[93].mxu1 }
 0x67c   : > { %v15908_v44 = vadd.f32 %v10978_v14, %v10866_v21  ;;  %v10981_v0 = vadd.f32 %v10980_v7, %v10979_v43  ;;  %v10872_v3 = vadd.f32 %v10871_v35, %v10870_v45  ;;  %v10873_v18 = vpop.f32.mrb[94].mxu1 }
 0x67d   : > { %8787 = vmatmul.mubr.bf16.gmra.mrb[228].mxu0 %v15465_v1  ;;  %v10874_v58 = vpop.f32.mrb[95].mxu1 }
 0x67e   : > { %16680 = vst [vmem:[#allocation58_spill] sm:$0xff] %v15908_v44  ;;  %v15911_v34 = vadd.f32 %v10981_v0, %v10869_v56  ;;  %8794 = vmatprep.mubr.bf16.mxu0 %v15695_v47  ;;  %v10875_v49 = vadd.f32 %v10874_v58, %v10873_v18  ;;  %v16684_v58 = vld [vmem:[#allocation65_spill] sm:$0xff] }
 0x67f   : > { %8634 = vmatmul.mubr.bf16.gmra.mrb[200].mxu1 %v15452_v55 }
 0x680   : > { %16681 = vst [vmem:[#allocation61_spill] sm:$0xff] %v15911_v34  ;;  %v10982_v16 = vpop.f32.mrb[124].mxu0  ;;  %8641 = vmatprep.mubr.bf16.mxu1 %v15677_v51 }
 0x681   : > { %v10983_v11 = vpop.f32.mrb[125].mxu0 }
 0x682   : > { %v10984_v17 = vadd.f32 %v10983_v11, %v10982_v16  ;;  %v10985_v21 = vpop.f32.mrb[126].mxu0  ;;  %v11004_v14 = vpop.f32.mrb[96].mxu1  ;;  %v16685_v11 = vld [vmem:[#allocation66_spill] sm:$0xff] }
 0x683   : > { %v10986_v43 = vpop.f32.mrb[127].mxu0  ;;  %v11005_v45 = vpop.f32.mrb[97].mxu1 }
 0x684   : > { %v15916_v7 = vadd.f32 %v10984_v17, %v10872_v3  ;;  %v10987_v35 = vadd.f32 %v10986_v43, %v10985_v21  ;;  %v11006_v44 = vadd.f32 %v11005_v45, %v11004_v14  ;;  %v11007_v56 = vpop.f32.mrb[98].mxu1 }
 0x685   : > { %8795 = vmatmul.mubr.bf16.gmra.mrb[232].mxu0 %v15454_v27  ;;  %v11008_v0 = vpop.f32.mrb[99].mxu1 }
 0x686   : > { %16682 = vst [vmem:[#allocation70_spill] sm:$0xff] %v15916_v7  ;;  %v15919_v18 = vadd.f32 %v10987_v35, %v10875_v49  ;;  %8802 = vmatprep.mubr.bf16.mxu0 %v15701_v39  ;;  %v8234_v51 = vadd.f32 %v11006_v44, %v16684_v58  ;;  %v11009_v34 = vadd.f32 %v11008_v0, %v11007_v56 }
 0x687   : > { %8642 = vmatmul.mubr.bf16.gmra.mrb[204].mxu1 %v15550_v52 }
 0x688   : > { %16683 = vst [vmem:[#allocation71_spill] sm:$0xff] %v15919_v18  ;;  %v11116_v16 = vpop.f32.mrb[128].mxu0  ;;  %v8237_v55 = vadd.f32 %v11009_v34, %v16685_v11  ;;  %8649 = vmatprep.mubr.bf16.mxu1 %v15683_v36  ;;  %v16688_v34 = vld [vmem:[#allocation35_spill] sm:$0xff] }
 0x689   : > { %v11117_v17 = vpop.f32.mrb[129].mxu0  ;;  %v16689_v11 = vld [vmem:[#allocation39_spill] sm:$0xff] }
 0x68a   : > { %v11118_v3 = vadd.f32 %v11117_v17, %v11116_v16  ;;  %v11119_v21 = vpop.f32.mrb[130].mxu0  ;;  %v11010_v14 = vpop.f32.mrb[100].mxu1 }
 0x68b   : > { %v11120_v43 = vpop.f32.mrb[131].mxu0  ;;  %v11011_v45 = vpop.f32.mrb[101].mxu1 }
 0x68c   : > { %v15926_v49 = vadd.f32 %v11118_v3, %v8234_v51  ;;  %v11121_v35 = vadd.f32 %v11120_v43, %v11119_v21  ;;  %v11012_v18 = vadd.f32 %v11011_v45, %v11010_v14  ;;  %v11013_v7 = vpop.f32.mrb[102].mxu1 }
 0x68d   : > { %8803 = vmatmul.mubr.bf16.gmra.mrb[236].mxu0 %v15558_v9  ;;  %v11014_v44 = vpop.f32.mrb[103].mxu1 }
 0x68e   : > { %16686 = vst [vmem:[#allocation65_spill] sm:$0xff] %v15926_v49  ;;  %v15929_v56 = vadd.f32 %v11121_v35, %v8237_v55  ;;  %8810 = vmatprep.mubr.bf16.mxu0 %v15711_v2  ;;  %v8242_v0 = vadd.f32 %v11012_v18, %v16688_v34  ;;  %v11015_v58 = vadd.f32 %v11014_v44, %v11013_v7 }
 0x68f   : > { %8650 = vmatmul.mubr.bf16.gmra.mrb[208].mxu1 %v15544_v50 }
 0x690   : > { %16687 = vst [vmem:[#allocation66_spill] sm:$0xff] %v15929_v56  ;;  %v11122_v16 = vpop.f32.mrb[132].mxu0  ;;  %v8245_v17 = vadd.f32 %v11015_v58, %v16689_v11  ;;  %8657 = vmatprep.mubr.bf16.mxu1 %v15692_v6 }
 0x691   : > { %v11123_v51 = vpop.f32.mrb[133].mxu0 }
 0x692   : > { %v11124_v3 = vadd.f32 %v11123_v51, %v11122_v16  ;;  %v11125_v21 = vpop.f32.mrb[134].mxu0  ;;  %v11016_v14 = vpop.f32.mrb[104].mxu1 }
 0x693   : > { %v11126_v43 = vpop.f32.mrb[135].mxu0  ;;  %v11017_v45 = vpop.f32.mrb[105].mxu1 }
 0x694   : > { %v15936_v55 = vadd.f32 %v11124_v3, %v8242_v0  ;;  %v11127_v35 = vadd.f32 %v11126_v43, %v11125_v21  ;;  %v11018_v56 = vadd.f32 %v11017_v45, %v11016_v14  ;;  %v11019_v49 = vpop.f32.mrb[106].mxu1 }
 0x695   : > { %8811 = vmatmul.mubr.bf16.gmra.mrb[240].mxu0 %v15546_v23  ;;  %v11020_v7 = vpop.f32.mrb[107].mxu1 }
 0x696   : > { %v15939_v18 = vadd.f32 %v11127_v35, %v8245_v17  ;;  %8818 = vmatprep.mubr.bf16.mxu0 %v15720_v15  ;;  %v8250_v44 = vadd.f32 %v11018_v56, %v15804_v19  ;;  %v11021_v34 = vadd.f32 %v11020_v7, %v11019_v49  ;;  %v16693_v56 = vld [vmem:[#allocation64_spill] sm:$0xff] }
 0x697   : > { %8658 = vmatmul.mubr.bf16.gmra.mrb[212].mxu1 %v15631_v62 }
 0x698   : > { %16690 = vst [vmem:[#allocation35_spill] sm:$0xff] %v15939_v18  ;;  %v11128_v58 = vpop.f32.mrb[136].mxu0  ;;  %v8253_v16 = vadd.f32 %v11021_v34, %v15806_v25  ;;  %8665 = vmatprep.mubr.bf16.mxu1 %v15708_v32  ;;  %v16694_v25 = vld [vmem:[#allocation33_spill] sm:$0xff]  ;;  %v16696_v32 = vld [vmem:[#allocation36_spill] sm:$0xff] }
 0x699   : > { %v11129_v0 = vpop.f32.mrb[137].mxu0 }
 0x69a   : > { %v11130_v11 = vadd.f32 %v11129_v0, %v11128_v58  ;;  %v11131_v51 = vpop.f32.mrb[138].mxu0  ;;  %v11022_v3 = vpop.f32.mrb[108].mxu1  ;;  %v16695_v58 = vld [vmem:[#allocation30_spill] sm:$0xff] }
 0x69b   : > { %v11132_v21 = vpop.f32.mrb[139].mxu0  ;;  %v11023_v14 = vpop.f32.mrb[109].mxu1 }
 0x69c   : > { %v15946_v17 = vadd.f32 %v11130_v11, %v8250_v44  ;;  %v11133_v43 = vadd.f32 %v11132_v21, %v11131_v51  ;;  %v11024_v45 = vadd.f32 %v11023_v14, %v11022_v3  ;;  %v11025_v35 = vpop.f32.mrb[110].mxu1  ;;  %v16697_v44 = vmov 0.0|0.0  }
 0x69d   : > { %8819 = vmatmul.mubr.bf16.gmra.mrb[244].mxu0 %v15640_v61  ;;  %v11026_v19 = vpop.f32.mrb[111].mxu1 }
 0x69e   : > { %16691 = vst [vmem:[#allocation39_spill] sm:$0xff] %v15946_v17  ;;  %v15949_v49 = vadd.f32 %v11133_v43, %v8253_v16  ;;  %8826 = vmatprep.mubr.bf16.mxu0 %v16693_v56  ;;  %v8258_v7 = vadd.f32 %v11024_v45, %v16694_v25  ;;  %v11027_v34 = vadd.f32 %v11026_v19, %v11025_v35  ;;  %v16699_v45 = vld [vmem:[#allocation28_spill] sm:$0xff]  ;;  %v16701_v25 = vld [vmem:[#allocation34_spill] sm:$0xff] }
 0x69f   : > { %8666 = vmatmul.mubr.bf16.gmra.mrb[216].mxu1 %v16695_v58  ;;  %v16704_v58 = vld [vmem:[#allocation42_spill] sm:$0xff] }
 0x6a0   : > { %16692 = vst [vmem:[#allocation72_spill] sm:$0xff] %v15949_v49  ;;  %v11134_v0 = vpop.f32.mrb[140].mxu0  ;;  %v8261_v18 = vadd.f32 %v11027_v34, %v16696_v32  ;;  %8673 = vmatprep.mubr.bf16.mxu1 %v16697_v44  ;;  %v16702_v44 = vld [vmem:[#allocation26_spill] sm:$0xff] }
 0x6a1   : > { %v11135_v11 = vpop.f32.mrb[141].mxu0 }
 0x6a2   : > { %v11136_v51 = vadd.f32 %v11135_v11, %v11134_v0  ;;  %v11137_v3 = vpop.f32.mrb[142].mxu0  ;;  %v11028_v21 = vpop.f32.mrb[112].mxu1  ;;  %v16703_v0 = vld [vmem:[#allocation24_spill] sm:$0xff] }
 0x6a3   : > { %v11138_v14 = vpop.f32.mrb[143].mxu0  ;;  %v11029_v17 = vpop.f32.mrb[113].mxu1 }
 0x6a4   : > { %v15956_v16 = vadd.f32 %v11136_v51, %v8258_v7  ;;  %v11139_v43 = vadd.f32 %v11138_v14, %v11137_v3  ;;  %v11030_v49 = vadd.f32 %v11029_v17, %v11028_v21  ;;  %v11031_v56 = vpop.f32.mrb[114].mxu1  ;;  %v16705_v7 = vld [vmem:[#allocation44_spill] sm:$0xff] }
 0x6a5   : > { %8827 = vmatmul.mubr.bf16.gmra.mrb[248].mxu0 %v16699_v45  ;;  %v11032_v35 = vpop.f32.mrb[115].mxu1 }
 0x6a6   : > { %16698 = vst [vmem:[#allocation33_spill] sm:$0xff] %v15956_v16  ;;  %v15959_v19 = vadd.f32 %v11139_v43, %v8261_v18  ;;  %v8266_v32 = vadd.f32 %v11030_v49, %v16701_v25  ;;  %v11033_v34 = vadd.f32 %v11032_v35, %v11031_v56  ;;  %8834 = vmatprep.mubr.bf16.mxu0 %v16702_v44  ;;  %v16706_v35 = vld [vmem:[#allocation25_spill] sm:$0xff] }
 0x6a7   : > { %8674 = vmatmul.mubr.bf16.gmra.mrb[220].mxu1 %v16703_v0  ;;  %v16708_v0 = vld [vmem:[#allocation45_spill] sm:$0xff] }
 0x6a8   : > { %16700 = vst [vmem:[#allocation36_spill] sm:$0xff] %v15959_v19  ;;  %v11140_v11 = vpop.f32.mrb[144].mxu0  ;;  %v8269_v61 = vadd.f32 %v11033_v34, %v16704_v58  ;;  %8875 = vmatprep.mubr.bf16.mxu1 %v16705_v7  ;;  %v16709_v58 = vld [vmem:[#allocation47_spill] sm:$0xff]  ;;  %v16711_v44 = vld [vmem:[#allocation41_spill] sm:$0xff] }
 0x6a9   : > { %v11141_v51 = vpop.f32.mrb[145].mxu0 }
 0x6aa   : > { %v11142_v17 = vadd.f32 %v11141_v51, %v11140_v11  ;;  %v11143_v3 = vpop.f32.mrb[146].mxu0  ;;  %v11034_v21 = vpop.f32.mrb[116].mxu1  ;;  %v16710_v11 = vld [vmem:[#allocation40_spill] sm:$0xff] }
 0x6ab   : > { %v11144_v14 = vpop.f32.mrb[147].mxu0  ;;  %v11035_v16 = vpop.f32.mrb[117].mxu1 }
 0x6ac   : > { %v15966_v18 = vadd.f32 %v11142_v17, %v8266_v32  ;;  %v11145_v43 = vadd.f32 %v11144_v14, %v11143_v3  ;;  %v11036_v49 = vadd.f32 %v11035_v16, %v11034_v21  ;;  %v11037_v56 = vpop.f32.mrb[118].mxu1 }
 0x6ad   : > { %8835 = vmatmul.mubr.bf16.gmra.mrb[252].mxu0 %v16706_v35  ;;  %v11038_v25 = vpop.f32.mrb[119].mxu1 }
 0x6ae   : > { %v15969_v19 = vadd.f32 %v11145_v43, %v8269_v61  ;;  %9036 = vmatprep.mubr.bf16.mxu0 %v16708_v0  ;;  %v8274_v34 = vadd.f32 %v11036_v49, %v16709_v58  ;;  %v11039_v7 = vadd.f32 %v11038_v25, %v11037_v56  ;;  %v16713_v58 = vld [vmem:[#allocation37_spill] sm:$0xff] }
 0x6af   : > { %8876 = vmatmul.mubr.bf16.vlgmr.msra.gmra.mrb[224].mxu1 %v16710_v11  ;;  %v16714_v11 = vld [vmem:[#allocation56_spill] sm:$0xff] }
 0x6b0   : > { %16707 = vst [vmem:[#allocation34_spill] sm:$0xff] %v15969_v19  ;;  %v11146_v51 = vpop.f32.mrb[148].mxu0  ;;  %v8277_v45 = vadd.f32 %v11039_v7, %v16711_v44  ;;  %8883 = vmatprep.mubr.bf16.mxu1 %v16643_v40  ;;  %v16712_v44 = vld [vmem:[#allocation51_spill] sm:$0xff] }
 0x6b1   : > { %v11147_v32 = vpop.f32.mrb[149].mxu0 }
 0x6b2   : > { %v11148_v16 = vadd.f32 %v11147_v32, %v11146_v51  ;;  %v11149_v17 = vpop.f32.mrb[150].mxu0  ;;  %v11040_v3 = vpop.f32.mrb[120].mxu1 }
 0x6b3   : > { %v11150_v21 = vpop.f32.mrb[151].mxu0  ;;  %v11041_v14 = vpop.f32.mrb[121].mxu1 }
 0x6b4   : > { %v15976_v61 = vadd.f32 %v11148_v16, %v8274_v34  ;;  %v11151_v43 = vadd.f32 %v11150_v21, %v11149_v17  ;;  %v11042_v0 = vadd.f32 %v11041_v14, %v11040_v3  ;;  %v11043_v19 = vpop.f32.mrb[122].mxu1 }
 0x6b5   : > { %9037 = vmatmul.mubr.bf16.vlgmr.msra.gmra.mrb[0].mxu0 %v16644_v57  ;;  %v11044_v49 = vpop.f32.mrb[123].mxu1 }
 0x6b6   : > { %v15979_v56 = vadd.f32 %v11151_v43, %v8277_v45  ;;  %9044 = vmatprep.mubr.bf16.mxu0 %v16645_v26  ;;  %v8282_v40 = vadd.f32 %v11042_v0, %v16712_v44  ;;  %v11045_v25 = vadd.f32 %v11044_v49, %v11043_v19  ;;  %v16715_v44 = vld [vmem:[#allocation38_spill] sm:$0xff] }
 0x6b7   : > { %8884 = vmatmul.mubr.bf16.gmra.mrb[228].mxu1 %v16713_v58 }
 0x6b8   : > { %v11152_v7 = vpop.f32.mrb[152].mxu0  ;;  %v8285_v51 = vadd.f32 %v11045_v25, %v16714_v11  ;;  %8891 = vmatprep.mubr.bf16.mxu1 %v16647_v53 }
 0x6b9   : > { %v11153_v34 = vpop.f32.mrb[153].mxu0 }
 0x6ba   : > { %v11154_v32 = vadd.f32 %v11153_v34, %v11152_v7  ;;  %v11155_v16 = vpop.f32.mrb[154].mxu0  ;;  %v11046_v17 = vpop.f32.mrb[124].mxu1 }
 0x6bb   : > { %v11156_v57 = vpop.f32.mrb[155].mxu0  ;;  %v11047_v3 = vpop.f32.mrb[125].mxu1 }
 0x6bc   : > { %v15986_v45 = vadd.f32 %v11154_v32, %v8282_v40  ;;  %v11157_v21 = vadd.f32 %v11156_v57, %v11155_v16  ;;  %v11048_v26 = vadd.f32 %v11047_v3, %v11046_v17  ;;  %v11049_v14 = vpop.f32.mrb[126].mxu1  ;;  %v16716_v40 = vld [vmem:[#allocation43_spill] sm:$0xff] }
 0x6bd   : > { %9045 = vmatmul.mubr.bf16.gmra.mrb[4].mxu0 %v16648_v33  ;;  %v11050_v19 = vpop.f32.mrb[127].mxu1 }
 0x6be   : > { %v15989_v43 = vadd.f32 %v11157_v21, %v8285_v51  ;;  %9052 = vmatprep.mubr.bf16.mxu0 %v15353_v8  ;;  %v8290_v53 = vadd.f32 %v11048_v26, %v15852_v60  ;;  %v11051_v0 = vadd.f32 %v11050_v19, %v11049_v14 }
 0x6bf   : > { %8892 = vmatmul.mubr.bf16.gmra.mrb[232].mxu1 %v15100_v38 }
 0x6c0   : > { %v11158_v49 = vpop.f32.mrb[156].mxu0  ;;  %v8293_v25 = vadd.f32 %v11051_v0, %v16715_v44  ;;  %8899 = vmatprep.mubr.bf16.mxu1 %v16716_v40 }
 0x6c1   : > { %v11159_v58 = vpop.f32.mrb[157].mxu0 }
 0x6c2   : > { %v11160_v7 = vadd.f32 %v11159_v58, %v11158_v49  ;;  %v11161_v11 = vpop.f32.mrb[158].mxu0  ;;  %v11052_v34 = vpop.f32.mrb[128].mxu1 }
 0x6c3   : > { %v11162_v33 = vpop.f32.mrb[159].mxu0  ;;  %v11053_v32 = vpop.f32.mrb[129].mxu1 }
 0x6c4   : > { %v15996_v51 = vadd.f32 %v11160_v7, %v8290_v53  ;;  %v11163_v16 = vadd.f32 %v11162_v33, %v11161_v11  ;;  %v11054_v8 = vadd.f32 %v11053_v32, %v11052_v34  ;;  %v11055_v17 = vpop.f32.mrb[130].mxu1 }
 0x6c5   : > { %9053 = vmatmul.mubr.bf16.gmra.mrb[8].mxu0 %v15108_v42  ;;  %v11056_v60 = vpop.f32.mrb[131].mxu1 }
 0x6c6   : > { %v15999_v38 = vadd.f32 %v11163_v16, %v8293_v25  ;;  %9060 = vmatprep.mubr.bf16.mxu0 %v15467_v24  ;;  %v8298_v57 = vadd.f32 %v11054_v8, %v15860_v63  ;;  %v11057_v3 = vadd.f32 %v11056_v60, %v11055_v17 }
 0x6c7   : > { %8900 = vmatmul.mubr.bf16.gmra.mrb[236].mxu1 %v15088_v54 }
 0x6c8   : > { %v11164_v21 = vpop.f32.mrb[160].mxu0  ;;  %v8301_v26 = vadd.f32 %v11057_v3, %v15863_v28  ;;  %8907 = vmatprep.mubr.bf16.mxu1 %v15518_v13  ;;  %v16718_v3 = vld [vmem:[#allocation48_spill] sm:$0xff] }
 0x6c9   : > { %v11165_v14 = vpop.f32.mrb[161].mxu0 }
 0x6ca   : > { %v11166_v19 = vadd.f32 %v11165_v14, %v11164_v21  ;;  %v11167_v53 = vpop.f32.mrb[162].mxu0  ;;  %v11058_v0 = vpop.f32.mrb[132].mxu1 }
 0x6cb   : > { %v11168_v42 = vpop.f32.mrb[163].mxu0  ;;  %v11059_v49 = vpop.f32.mrb[133].mxu1 }
 0x6cc   : > { %v16006_v44 = vadd.f32 %v11166_v19, %v8298_v57  ;;  %v11169_v25 = vadd.f32 %v11168_v42, %v11167_v53  ;;  %v11060_v24 = vadd.f32 %v11059_v49, %v11058_v0  ;;  %v11061_v40 = vpop.f32.mrb[134].mxu1  ;;  %v16720_v19 = vld [vmem:[#allocation27_spill] sm:$0xff] }
 0x6cd   : > { %9061 = vmatmul.mubr.bf16.gmra.mrb[12].mxu0 %v15090_v37  ;;  %v11062_v63 = vpop.f32.mrb[135].mxu1 }
 0x6ce   : > { %v16009_v54 = vadd.f32 %v11169_v25, %v8301_v26  ;;  %9068 = vmatprep.mubr.bf16.mxu0 %v15560_v30  ;;  %v8306_v28 = vadd.f32 %v11060_v24, %v15868_v22  ;;  %v11063_v13 = vadd.f32 %v11062_v63, %v11061_v40  ;;  %v16719_v26 = vld [vmem:[#allocation32_spill] sm:$0xff] }
 0x6cf   : > { %8908 = vmatmul.mubr.bf16.gmra.mrb[240].mxu1 %v15228_v31 }
 0x6d0   : > { %v11170_v58 = vpop.f32.mrb[164].mxu0  ;;  %v8309_v7 = vadd.f32 %v11063_v13, %v15871_v46  ;;  %8915 = vmatprep.mubr.bf16.mxu1 %v15582_v48  ;;  %v16717_v46 = vld [vmem:[#allocation31_spill] sm:$0xff] }
 0x6d1   : > { %v11171_v11 = vpop.f32.mrb[165].mxu0 }
 0x6d2   : > { %v11172_v34 = vadd.f32 %v11171_v11, %v11170_v58  ;;  %v11173_v33 = vpop.f32.mrb[166].mxu0  ;;  %v11064_v32 = vpop.f32.mrb[136].mxu1  ;;  %v16723_v11 = vld [vmem:[#allocation67_spill] sm:$0xff] }
 0x6d3   : > { %v11174_v37 = vpop.f32.mrb[167].mxu0  ;;  %v11065_v16 = vpop.f32.mrb[137].mxu1 }
 0x6d4   : > { %v16016_v8 = vadd.f32 %v11172_v34, %v8306_v28  ;;  %v11175_v17 = vadd.f32 %v11174_v37, %v11173_v33  ;;  %v11066_v30 = vadd.f32 %v11065_v16, %v11064_v32  ;;  %v11067_v60 = vpop.f32.mrb[138].mxu1  ;;  %v16721_v28 = vld [vmem:[#allocation49_spill] sm:$0xff]  ;;  %v16724_v32 = vld [vmem:[#allocation59_spill] sm:$0xff]  ;;  %v16725_v16 = vld [vmem:[#allocation68_spill] sm:$0xff] }
 0x6d5   : > { %9069 = vmatmul.mubr.bf16.gmra.mrb[16].mxu0 %v16610_v5  ;;  %v11068_v22 = vpop.f32.mrb[139].mxu1 }
 0x6d6   : > { %v16019_v31 = vadd.f32 %v11175_v17, %v8309_v7  ;;  %9076 = vmatprep.mubr.bf16.mxu0 %v15616_v4  ;;  %v8314_v48 = vadd.f32 %v11066_v30, %v16717_v46  ;;  %v11069_v57 = vadd.f32 %v11068_v22, %v11067_v60  ;;  %v16722_v7 = vld [vmem:[#allocation55_spill] sm:$0xff]  ;;  %v16726_v30 = vld [vmem:[#allocation46_spill] sm:$0xff] }
 0x6d7   : > { %8916 = vmatmul.mubr.bf16.gmra.mrb[244].mxu1 %v16718_v3 }
 0x6d8   : > { %v11176_v21 = vpop.f32.mrb[168].mxu0  ;;  %v8317_v14 = vadd.f32 %v11069_v57, %v16719_v26  ;;  %8923 = vmatprep.mubr.bf16.mxu1 %v16720_v19 }
 0x6d9   : > { %v11177_v53 = vpop.f32.mrb[169].mxu0 }
 0x6da   : > { %v11178_v0 = vadd.f32 %v11177_v53, %v11176_v21  ;;  %v11179_v42 = vpop.f32.mrb[170].mxu0  ;;  %v11070_v49 = vpop.f32.mrb[140].mxu1 }
 0x6db   : > { %v11180_v5 = vpop.f32.mrb[171].mxu0  ;;  %v11071_v25 = vpop.f32.mrb[141].mxu1 }
 0x6dc   : > { %v16026_v24 = vadd.f32 %v11178_v0, %v8314_v48  ;;  %v11181_v40 = vadd.f32 %v11180_v5, %v11179_v42  ;;  %v11072_v4 = vadd.f32 %v11071_v25, %v11070_v49  ;;  %v11073_v63 = vpop.f32.mrb[142].mxu1  ;;  %v16727_v42 = vld [vmem:[#allocation69_spill] sm:$0xff] }
 0x6dd   : > { %9077 = vmatmul.mubr.bf16.gmra.mrb[20].mxu0 %v16721_v28  ;;  %v11074_v13 = vpop.f32.mrb[143].mxu1  ;;  %v16728_v25 = vld [vmem:[#allocation57_spill] sm:$0xff] }
 0x6de   : > { %v16029_v58 = vadd.f32 %v11181_v40, %v8317_v14  ;;  %9084 = vmatprep.mubr.bf16.mxu0 %v16722_v7  ;;  %v8322_v34 = vadd.f32 %v11072_v4, %v16723_v11  ;;  %v11075_v33 = vadd.f32 %v11074_v13, %v11073_v63  ;;  %v16729_v4 = vld [vmem:[#allocation60_spill] sm:$0xff]  ;;  %v16730_v28 = vld [vmem:[#allocation53_spill] sm:$0xff] }
 0x6df   : > { %8924 = vmatmul.mubr.bf16.gmra.mrb[248].mxu1 %v16724_v32 }
 0x6e0   : > { %v11182_v37 = vpop.f32.mrb[172].mxu0  ;;  %v8325_v17 = vadd.f32 %v11075_v33, %v16725_v16  ;;  %8931 = vmatprep.mubr.bf16.mxu1 %v16726_v30 }
 0x6e1   : > { %v11183_v60 = vpop.f32.mrb[173].mxu0 }
 0x6e2   : > { %v11184_v22 = vadd.f32 %v11183_v60, %v11182_v37  ;;  %v11185_v46 = vpop.f32.mrb[174].mxu0  ;;  %v11076_v48 = vpop.f32.mrb[144].mxu1  ;;  %v16731_v60 = vld [vmem:[#allocation54_spill] sm:$0xff] }
 0x6e3   : > { %v11186_v57 = vpop.f32.mrb[175].mxu0  ;;  %v11077_v3 = vpop.f32.mrb[145].mxu1 }
 0x6e4   : > { %v16036_v21 = vadd.f32 %v11184_v22, %v8322_v34  ;;  %v11187_v26 = vadd.f32 %v11186_v57, %v11185_v46  ;;  %v11078_v14 = vadd.f32 %v11077_v3, %v11076_v48  ;;  %v11079_v19 = vpop.f32.mrb[146].mxu1  ;;  %v16732_v3 = vld [vmem:[#allocation52_spill] sm:$0xff] }
 0x6e5   : > { %9085 = vmatmul.mubr.bf16.gmra.mrb[24].mxu0 %v16672_v20  ;;  %v11080_v53 = vpop.f32.mrb[147].mxu1 }
 0x6e6   : > { %v16039_v0 = vadd.f32 %v11187_v26, %v8325_v17  ;;  %9092 = vmatprep.mubr.bf16.mxu0 %v16674_v41  ;;  %v8330_v49 = vadd.f32 %v11078_v14, %v16727_v42  ;;  %v11081_v5 = vadd.f32 %v11080_v53, %v11079_v19 }
 0x6e7   : > { %8932 = vmatmul.mubr.bf16.gmra.mrb[252].mxu1 %v16728_v25 }
 0x6e8   : > { %v11188_v40 = vpop.f32.mrb[176].mxu0  ;;  %v8333_v63 = vadd.f32 %v11081_v5, %v16729_v4  ;;  %8939 = vmatprep.mubr.bf16.mxu1 %v16730_v28  ;;  %v16734_v28 = vld [vmem:[#allocation29_spill] sm:$0xff] }
 0x6e9   : > { %v11189_v13 = vpop.f32.mrb[177].mxu0 }
 0x6ea   : > { %v11190_v7 = vadd.f32 %v11189_v13, %v11188_v40  ;;  %v11191_v11 = vpop.f32.mrb[178].mxu0  ;;  %v11082_v34 = vpop.f32.mrb[148].mxu1 }
 0x6eb   : > { %v11192_v20 = vpop.f32.mrb[179].mxu0  ;;  %v11083_v33 = vpop.f32.mrb[149].mxu1 }
 0x6ec   : > { %v16046_v32 = vadd.f32 %v11190_v7, %v8330_v49  ;;  %v11193_v37 = vadd.f32 %v11192_v20, %v11191_v11  ;;  %v11084_v41 = vadd.f32 %v11083_v33, %v11082_v34  ;;  %v11085_v16 = vpop.f32.mrb[150].mxu1  ;;  %v16735_v7 = vld [vmem:[#allocation61_spill] sm:$0xff]  ;;  %v16736_v34 = vld [vmem:[#allocation62_spill] sm:$0xff] }
 0x6ed   : > { %9093 = vmatmul.mubr.bf16.gmra.mrb[28].mxu0 %v16678_v29  ;;  %v11086_v17 = vpop.f32.mrb[151].mxu1 }
 0x6ee   : > { %v16049_v30 = vadd.f32 %v11193_v37, %v8333_v63  ;;  %9100 = vmatprep.mubr.bf16.mxu0 %v16679_v59  ;;  %v8338_v22 = vadd.f32 %v11084_v41, %v16731_v60  ;;  %v11087_v46 = vadd.f32 %v11086_v17, %v11085_v16 }
 0x6ef   : > { %8940 = vmatmul.mubr.bf16.gmra.mrb[0].mxu1 %v15458_v12 }
 0x6f0   : > { %v11194_v48 = vpop.f32.mrb[180].mxu0  ;;  %v8341_v57 = vadd.f32 %v11087_v46, %v15903_v10  ;;  %8947 = vmatprep.mubr.bf16.mxu1 %v16732_v3  ;;  %v16733_v10 = vld [vmem:[#allocation58_spill] sm:$0xff] }
 0x6f1   : > { %v11195_v26 = vpop.f32.mrb[181].mxu0 }
 0x6f2   : > { %v11196_v14 = vadd.f32 %v11195_v26, %v11194_v48  ;;  %v11197_v19 = vpop.f32.mrb[182].mxu0  ;;  %v11088_v53 = vpop.f32.mrb[152].mxu1 }
 0x6f3   : > { %v11198_v29 = vpop.f32.mrb[183].mxu0  ;;  %v11089_v42 = vpop.f32.mrb[153].mxu1 }
 0x6f4   : > { %v16056_v49 = vadd.f32 %v11196_v14, %v8338_v22  ;;  %v11199_v5 = vadd.f32 %v11198_v29, %v11197_v19  ;;  %v11090_v59 = vadd.f32 %v11089_v42, %v11088_v53  ;;  %v11091_v25 = vpop.f32.mrb[154].mxu1  ;;  %v16738_v19 = vld [vmem:[#allocation71_spill] sm:$0xff] }
 0x6f5   : > { %9101 = vmatmul.mubr.bf16.gmra.mrb[32].mxu0 %v15465_v1  ;;  %v11092_v40 = vpop.f32.mrb[155].mxu1 }
 0x6f6   : > { %v16059_v12 = vadd.f32 %v11199_v5, %v8341_v57  ;;  %9108 = vmatprep.mubr.bf16.mxu0 %v15695_v47  ;;  %v8346_v4 = vadd.f32 %v11090_v59, %v16733_v10  ;;  %v11093_v63 = vadd.f32 %v11092_v40, %v11091_v25  ;;  %v16737_v57 = vld [vmem:[#allocation70_spill] sm:$0xff] }
 0x6f7   : > { %8948 = vmatmul.mubr.bf16.gmra.mrb[4].mxu1 %v16734_v28  ;;  %v16739_v28 = vld [vmem:[#allocation65_spill] sm:$0xff] }
 0x6f8   : > { %v11200_v13 = vpop.f32.mrb[184].mxu0  ;;  %v8349_v11 = vadd.f32 %v11093_v63, %v16735_v7  ;;  %8955 = vmatprep.mubr.bf16.mxu1 %v16736_v34 }
 0x6f9   : > { %v11201_v20 = vpop.f32.mrb[185].mxu0 }
 0x6fa   : > { %v11202_v33 = vadd.f32 %v11201_v20, %v11200_v13  ;;  %v11203_v37 = vpop.f32.mrb[186].mxu0  ;;  %v11094_v41 = vpop.f32.mrb[156].mxu1 }
 0x6fb   : > { %v11204_v1 = vpop.f32.mrb[187].mxu0  ;;  %v11095_v16 = vpop.f32.mrb[157].mxu1 }
 0x6fc   : > { %v16066_v17 = vadd.f32 %v11202_v33, %v8346_v4  ;;  %v11205_v60 = vadd.f32 %v11204_v1, %v11203_v37  ;;  %v11096_v47 = vadd.f32 %v11095_v16, %v11094_v41  ;;  %v11097_v22 = vpop.f32.mrb[158].mxu1 }
 0x6fd   : > { %9109 = vmatmul.mubr.bf16.gmra.mrb[36].mxu0 %v15454_v27  ;;  %v11098_v46 = vpop.f32.mrb[159].mxu1 }
 0x6fe   : > { %v16069_v48 = vadd.f32 %v11205_v60, %v8349_v11  ;;  %9116 = vmatprep.mubr.bf16.mxu0 %v15701_v39  ;;  %v8354_v3 = vadd.f32 %v11096_v47, %v16737_v57  ;;  %v11099_v26 = vadd.f32 %v11098_v46, %v11097_v22  ;;  %v16740_v11 = vld [vmem:[#allocation66_spill] sm:$0xff] }
 0x6ff   : > { %8956 = vmatmul.mubr.bf16.gmra.mrb[8].mxu1 %v15550_v52 }
 0x700   : > { %v11206_v14 = vpop.f32.mrb[188].mxu0  ;;  %v8357_v53 = vadd.f32 %v11099_v26, %v16738_v19  ;;  %8963 = vmatprep.mubr.bf16.mxu1 %v15683_v36 }
 0x701   : > { %v11207_v29 = vpop.f32.mrb[189].mxu0 }
 0x702   : > { %v11208_v42 = vadd.f32 %v11207_v29, %v11206_v14  ;;  %v11209_v5 = vpop.f32.mrb[190].mxu0  ;;  %v11228_v59 = vpop.f32.mrb[160].mxu1  ;;  %v16742_v14 = vld [vmem:[#allocation63_spill] sm:$0xff] }
 0x703   : > { %v11210_v27 = vpop.f32.mrb[191].mxu0  ;;  %v11229_v25 = vpop.f32.mrb[161].mxu1 }
 0x704   : > { %v16076_v40 = vadd.f32 %v11208_v42, %v8354_v3  ;;  %v11211_v10 = vadd.f32 %v11210_v27, %v11209_v5  ;;  %v11230_v39 = vadd.f32 %v11229_v25, %v11228_v59  ;;  %v11231_v4 = vpop.f32.mrb[162].mxu1  ;;  %v16741_v3 = vld [vmem:[#allocation35_spill] sm:$0xff] }
 0x705   : > { %9117 = vmatmul.mubr.bf16.gmra.mrb[40].mxu0 %v15558_v9  ;;  %v11232_v63 = vpop.f32.mrb[163].mxu1 }
 0x706   : > { %v16079_v52 = vadd.f32 %v11211_v10, %v8357_v53  ;;  %9124 = vmatprep.mubr.bf16.mxu0 %v15711_v2  ;;  %v8556_v36 = vadd.f32 %v11230_v39, %v16739_v28  ;;  %v11233_v13 = vadd.f32 %v11232_v63, %v11231_v4  ;;  %v16744_v39 = vld [vmem:[#allocation64_spill] sm:$0xff]  ;;  %v16745_v4 = vld [vmem:[#allocation39_spill] sm:$0xff] }
 0x707   : > { %8964 = vmatmul.mubr.bf16.gmra.mrb[12].mxu1 %v15544_v50 }
 0x708   : > { %v11340_v7 = vpop.f32.mrb[192].mxu0  ;;  %v8559_v34 = vadd.f32 %v11233_v13, %v16740_v11  ;;  %8971 = vmatprep.mubr.bf16.mxu1 %v15692_v6 }
 0x709   : > { %v11341_v20 = vpop.f32.mrb[193].mxu0 }
 0x70a   : > { %v11342_v33 = vadd.f32 %v11341_v20, %v11340_v7  ;;  %v11343_v37 = vpop.f32.mrb[194].mxu0  ;;  %v11234_v41 = vpop.f32.mrb[164].mxu1  ;;  %v16747_v7 = vld [vmem:[#allocation72_spill] sm:$0xff] }
 0x70b   : > { %v11344_v9 = vpop.f32.mrb[195].mxu0  ;;  %v11235_v1 = vpop.f32.mrb[165].mxu1 }
 0x70c   : > { %v16086_v16 = vadd.f32 %v11342_v33, %v8556_v36  ;;  %v11345_v60 = vadd.f32 %v11344_v9, %v11343_v37  ;;  %v11236_v2 = vadd.f32 %v11235_v1, %v11234_v41  ;;  %v11237_v47 = vpop.f32.mrb[166].mxu1  ;;  %v16746_v36 = vld [vmem:[#allocation30_spill] sm:$0xff] }
 0x70d   : > { %9125 = vmatmul.mubr.bf16.gmra.mrb[44].mxu0 %v15546_v23  ;;  %v11238_v22 = vpop.f32.mrb[167].mxu1 }
 0x70e   : > { %v16089_v50 = vadd.f32 %v11345_v60, %v8559_v34  ;;  %9132 = vmatprep.mubr.bf16.mxu0 %v15720_v15  ;;  %v8564_v6 = vadd.f32 %v11236_v2, %v15936_v55  ;;  %v11239_v46 = vadd.f32 %v11238_v22, %v11237_v47  ;;  %v16743_v55 = vld [vmem:[#allocation50_spill] sm:$0xff]  ;;  %v16748_v34 = vmov 0.0|0.0  }
 0x70f   : > { %8972 = vmatmul.mubr.bf16.gmra.mrb[16].mxu1 %v15631_v62 }
 0x710   : > { %v11346_v57 = vpop.f32.mrb[196].mxu0  ;;  %v8567_v26 = vadd.f32 %v11239_v46, %v16741_v3  ;;  %8979 = vmatprep.mubr.bf16.mxu1 %v16742_v14  ;;  %v16750_v3 = vld [vmem:[#allocation33_spill] sm:$0xff] }
 0x711   : > { %v11347_v19 = vpop.f32.mrb[197].mxu0 }
 0x712   : > { %v11348_v53 = vadd.f32 %v11347_v19, %v11346_v57  ;;  %v11349_v29 = vpop.f32.mrb[198].mxu0  ;;  %v11240_v42 = vpop.f32.mrb[168].mxu1  ;;  %v16751_v19 = vld [vmem:[#allocation26_spill] sm:$0xff] }
 0x713   : > { %v11350_v23 = vpop.f32.mrb[199].mxu0  ;;  %v11241_v5 = vpop.f32.mrb[169].mxu1 }
 0x714   : > { %v16096_v59 = vadd.f32 %v11348_v53, %v8564_v6  ;;  %v11351_v27 = vadd.f32 %v11350_v23, %v11349_v29  ;;  %v11242_v15 = vadd.f32 %v11241_v5, %v11240_v42  ;;  %v11243_v25 = vpop.f32.mrb[170].mxu1  ;;  %v16749_v6 = vld [vmem:[#allocation28_spill] sm:$0xff] }
 0x715   : > { %9133 = vmatmul.mubr.bf16.gmra.mrb[48].mxu0 %v16743_v55  ;;  %v11244_v10 = vpop.f32.mrb[171].mxu1  ;;  %v16752_v53 = vld [vmem:[#allocation24_spill] sm:$0xff] }
 0x716   : > { %v16099_v62 = vadd.f32 %v11351_v27, %v8567_v26  ;;  %9140 = vmatprep.mubr.bf16.mxu0 %v16744_v39  ;;  %v8572_v63 = vadd.f32 %v11242_v15, %v16745_v4  ;;  %v11245_v28 = vadd.f32 %v11244_v10, %v11243_v25  ;;  %v16753_v42 = vld [vmem:[#allocation36_spill] sm:$0xff] }
 0x717   : > { %8980 = vmatmul.mubr.bf16.gmra.mrb[20].mxu1 %v16746_v36 }
 0x718   : > { %v11352_v13 = vpop.f32.mrb[200].mxu0  ;;  %v8575_v11 = vadd.f32 %v11245_v28, %v16747_v7  ;;  %8987 = vmatprep.mubr.bf16.mxu1 %v16748_v34 }
 0x719   : > { %v11353_v20 = vpop.f32.mrb[201].mxu0 }
 0x71a   : > { %v11354_v33 = vadd.f32 %v11353_v20, %v11352_v13  ;;  %v11355_v37 = vpop.f32.mrb[202].mxu0  ;;  %v11246_v41 = vpop.f32.mrb[172].mxu1  ;;  %v16754_v20 = vld [vmem:[#allocation34_spill] sm:$0xff] }
 0x71b   : > { %v11356_v9 = vpop.f32.mrb[203].mxu0  ;;  %v11247_v1 = vpop.f32.mrb[173].mxu1 }
 0x71c   : > { %v16106_v60 = vadd.f32 %v11354_v33, %v8572_v63  ;;  %v11357_v2 = vadd.f32 %v11356_v9, %v11355_v37  ;;  %v11248_v47 = vadd.f32 %v11247_v1, %v11246_v41  ;;  %v11249_v22 = vpop.f32.mrb[174].mxu1 }
 0x71d   : > { %9141 = vmatmul.mubr.bf16.gmra.mrb[52].mxu0 %v16749_v6  ;;  %v11250_v46 = vpop.f32.mrb[175].mxu1 }
 0x71e   : > { %v16109_v57 = vadd.f32 %v11357_v2, %v8575_v11  ;;  %v8580_v26 = vadd.f32 %v11248_v47, %v16750_v3  ;;  %v11251_v14 = vadd.f32 %v11250_v46, %v11249_v22  ;;  %9148 = vmatprep.mubr.bf16.mxu0 %v16751_v19 }
 0x71f   : > { %8988 = vmatmul.mubr.bf16.gmra.mrb[24].mxu1 %v16752_v53 }
 0x720   : > { %v11358_v29 = vpop.f32.mrb[204].mxu0  ;;  %v8583_v23 = vadd.f32 %v11251_v14, %v16753_v42  ;;  %8995 = vmatprep.mubr.bf16.mxu1 %v16748_v34 }
 0x721   : > { %v11359_v5 = vpop.f32.mrb[205].mxu0 }
 0x722   : > { %v11360_v27 = vadd.f32 %v11359_v5, %v11358_v29  ;;  %v11361_v15 = vpop.f32.mrb[206].mxu0  ;;  %v11252_v25 = vpop.f32.mrb[176].mxu1 }
 0x723   : > { %v11362_v55 = vpop.f32.mrb[207].mxu0  ;;  %v11253_v10 = vpop.f32.mrb[177].mxu1 }
 0x724   : > { %v16116_v39 = vadd.f32 %v11360_v27, %v8580_v26  ;;  %v11363_v4 = vadd.f32 %v11362_v55, %v11361_v15  ;;  %v11254_v63 = vadd.f32 %v11253_v10, %v11252_v25  ;;  %v11255_v28 = vpop.f32.mrb[178].mxu1 }
 0x725   : > { %9149 = vmatmul.mubr.bf16.gmra.mrb[56].mxu0 %v16706_v35  ;;  %v11256_v36 = vpop.f32.mrb[179].mxu1 }
 0x726   : > { %v16119_v13 = vadd.f32 %v11363_v4, %v8583_v23  ;;  %v8588_v7 = vadd.f32 %v11254_v63, %v15966_v18  ;;  %v11257_v11 = vadd.f32 %v11256_v36, %v11255_v28  ;;  %9156 = vmatprep.mubr.bf16.mxu0 %v16751_v19 }
 0x727   : > { %8996 = vmatmul.mubr.bf16.gmra.mrb[28].mxu1 %v16752_v53 }
 0x728   : > { %v11364_v34 = vpop.f32.mrb[208].mxu0  ;;  %v8591_v33 = vadd.f32 %v11257_v11, %v16754_v20 }
 0x729   : > { %v11365_v37 = vpop.f32.mrb[209].mxu0 }
 0x72a   : > { %v11366_v41 = vadd.f32 %v11365_v37, %v11364_v34  ;;  %v11367_v9 = vpop.f32.mrb[210].mxu0  ;;  %v11258_v1 = vpop.f32.mrb[180].mxu1 }
 0x72b   : > { %v11368_v2 = vpop.f32.mrb[211].mxu0  ;;  %v11259_v47 = vpop.f32.mrb[181].mxu1 }
 0x72c   : > { %v16125_v22 = vadd.f32 %v11366_v41, %v8588_v7  ;;  %v11369_v6 = vadd.f32 %v11368_v2, %v11367_v9  ;;  %v11260_v46 = vadd.f32 %v11259_v47, %v11258_v1  ;;  %v11261_v3 = vpop.f32.mrb[182].mxu1 }
 0x72d   : > { %9157 = vmatmul.mubr.bf16.gmra.mrb[60].mxu0 %v16706_v35  ;;  %v11262_v18 = vpop.f32.mrb[183].mxu1 }
 0x72e   : > { %v16128_v26 = vadd.f32 %v11369_v6, %v8591_v33  ;;  %v8596_v14 = vadd.f32 %v11260_v46, %v15976_v61  ;;  %v11263_v19 = vadd.f32 %v11262_v18, %v11261_v3 }
 0x730   : > { %v11370_v53 = vpop.f32.mrb[212].mxu0  ;;  %v8599_v29 = vadd.f32 %v11263_v19, %v15979_v56 }
 0x731   : > { %v11371_v42 = vpop.f32.mrb[213].mxu0 }
 0x732   : > { %v11372_v23 = vadd.f32 %v11371_v42, %v11370_v53  ;;  %v11373_v5 = vpop.f32.mrb[214].mxu0  ;;  %v11264_v27 = vpop.f32.mrb[184].mxu1 }
 0x733   : > { %v11374_v15 = vpop.f32.mrb[215].mxu0  ;;  %v11265_v25 = vpop.f32.mrb[185].mxu1 }
 0x734   : > { %v16132_v55 = vadd.f32 %v11372_v23, %v8596_v14  ;;  %v11375_v10 = vadd.f32 %v11374_v15, %v11373_v5  ;;  %v11266_v4 = vadd.f32 %v11265_v25, %v11264_v27  ;;  %v11267_v35 = vpop.f32.mrb[186].mxu1 }
 0x735   : > { %v11268_v63 = vpop.f32.mrb[187].mxu1 }
 0x736   : > { %v16134_v28 = vadd.f32 %v11375_v10, %v8599_v29  ;;  %v8604_v61 = vadd.f32 %v11266_v4, %v15986_v45  ;;  %v11269_v36 = vadd.f32 %v11268_v63, %v11267_v35 }
 0x738   : > { %v11376_v7 = vpop.f32.mrb[216].mxu0  ;;  %v8607_v56 = vadd.f32 %v11269_v36, %v15989_v43 }
 0x739   : > { %v11377_v11 = vpop.f32.mrb[217].mxu0 }
 0x73a   : > { %v11378_v34 = vadd.f32 %v11377_v11, %v11376_v7  ;;  %v11379_v20 = vpop.f32.mrb[218].mxu0  ;;  %v11270_v33 = vpop.f32.mrb[188].mxu1 }
 0x73b   : > { %v11380_v37 = vpop.f32.mrb[219].mxu0  ;;  %v11271_v41 = vpop.f32.mrb[189].mxu1 }
 0x73c   : > { %v16138_v9 = vadd.f32 %v11378_v34, %v8604_v61  ;;  %v11381_v1 = vadd.f32 %v11380_v37, %v11379_v20  ;;  %v11272_v2 = vadd.f32 %v11271_v41, %v11270_v33  ;;  %v11273_v47 = vpop.f32.mrb[190].mxu1 }
 0x73d   : > { %v11274_v6 = vpop.f32.mrb[191].mxu1 }
 0x73e   : > { %v16140_v46 = vadd.f32 %v11381_v1, %v8607_v56  ;;  %v8612_v45 = vadd.f32 %v11272_v2, %v15996_v51  ;;  %v11275_v3 = vadd.f32 %v11274_v6, %v11273_v47 }
 0x740   : > { %v11382_v18 = vpop.f32.mrb[220].mxu0  ;;  %v8615_v43 = vadd.f32 %v11275_v3, %v15999_v38 }
 0x741   : > { %v11383_v14 = vpop.f32.mrb[221].mxu0 }
 0x742   : > { %v11384_v19 = vadd.f32 %v11383_v14, %v11382_v18  ;;  %v11385_v53 = vpop.f32.mrb[222].mxu0  ;;  %v11276_v29 = vpop.f32.mrb[192].mxu1 }
 0x743   : > { %v11386_v42 = vpop.f32.mrb[223].mxu0  ;;  %v11277_v23 = vpop.f32.mrb[193].mxu1 }
 0x744   : > { %v16144_v5 = vadd.f32 %v11384_v19, %v8612_v45  ;;  %v11387_v27 = vadd.f32 %v11386_v42, %v11385_v53  ;;  %v11278_v15 = vadd.f32 %v11277_v23, %v11276_v29  ;;  %v11279_v25 = vpop.f32.mrb[194].mxu1 }
 0x745   : > { %v11280_v10 = vpop.f32.mrb[195].mxu1 }
 0x746   : > { %v16146_v4 = vadd.f32 %v11387_v27, %v8615_v43  ;;  %v8620_v51 = vadd.f32 %v11278_v15, %v16006_v44  ;;  %v11281_v35 = vadd.f32 %v11280_v10, %v11279_v25 }
 0x748   : > { %v11388_v63 = vpop.f32.mrb[224].mxu0  ;;  %v8623_v38 = vadd.f32 %v11281_v35, %v16009_v54 }
 0x749   : > { %v11389_v61 = vpop.f32.mrb[225].mxu0 }
 0x74a   : > { %v11390_v36 = vadd.f32 %v11389_v61, %v11388_v63  ;;  %v11391_v7 = vpop.f32.mrb[226].mxu0  ;;  %v11282_v56 = vpop.f32.mrb[196].mxu1 }
 0x74b   : > { %v11392_v11 = vpop.f32.mrb[227].mxu0  ;;  %v11283_v34 = vpop.f32.mrb[197].mxu1 }
 0x74c   : > { %v16150_v20 = vadd.f32 %v11390_v36, %v8620_v51  ;;  %v11393_v33 = vadd.f32 %v11392_v11, %v11391_v7  ;;  %v11284_v37 = vadd.f32 %v11283_v34, %v11282_v56  ;;  %v11285_v41 = vpop.f32.mrb[198].mxu1 }
 0x74d   : > { %v11286_v1 = vpop.f32.mrb[199].mxu1 }
 0x74e   : > { %v16152_v2 = vadd.f32 %v11393_v33, %v8623_v38  ;;  %v8628_v44 = vadd.f32 %v11284_v37, %v16016_v8  ;;  %v11287_v47 = vadd.f32 %v11286_v1, %v11285_v41 }
 0x750   : > { %v11394_v6 = vpop.f32.mrb[228].mxu0  ;;  %v8631_v54 = vadd.f32 %v11287_v47, %v16019_v31 }
 0x751   : > { %v11395_v45 = vpop.f32.mrb[229].mxu0 }
 0x752   : > { %v11396_v3 = vadd.f32 %v11395_v45, %v11394_v6  ;;  %v11397_v18 = vpop.f32.mrb[230].mxu0  ;;  %v11288_v43 = vpop.f32.mrb[200].mxu1 }
 0x753   : > { %v11398_v14 = vpop.f32.mrb[231].mxu0  ;;  %v11289_v19 = vpop.f32.mrb[201].mxu1 }
 0x754   : > { %v16156_v53 = vadd.f32 %v11396_v3, %v8628_v44  ;;  %v11399_v29 = vadd.f32 %v11398_v14, %v11397_v18  ;;  %v11290_v42 = vadd.f32 %v11289_v19, %v11288_v43  ;;  %v11291_v23 = vpop.f32.mrb[202].mxu1 }
 0x755   : > { %v11292_v27 = vpop.f32.mrb[203].mxu1 }
 0x756   : > { %v16158_v15 = vadd.f32 %v11399_v29, %v8631_v54  ;;  %v8636_v8 = vadd.f32 %v11290_v42, %v16026_v24  ;;  %v11293_v25 = vadd.f32 %v11292_v27, %v11291_v23 }
 0x758   : > { %v11400_v10 = vpop.f32.mrb[232].mxu0  ;;  %v8639_v31 = vadd.f32 %v11293_v25, %v16029_v58 }
 0x759   : > { %v11401_v51 = vpop.f32.mrb[233].mxu0 }
 0x75a   : > { %v11402_v35 = vadd.f32 %v11401_v51, %v11400_v10  ;;  %v11403_v63 = vpop.f32.mrb[234].mxu0  ;;  %v11294_v38 = vpop.f32.mrb[204].mxu1 }
 0x75b   : > { %v11404_v61 = vpop.f32.mrb[235].mxu0  ;;  %v11295_v36 = vpop.f32.mrb[205].mxu1 }
 0x75c   : > { %v16162_v7 = vadd.f32 %v11402_v35, %v8636_v8  ;;  %v11405_v56 = vadd.f32 %v11404_v61, %v11403_v63  ;;  %v11296_v11 = vadd.f32 %v11295_v36, %v11294_v38  ;;  %v11297_v34 = vpop.f32.mrb[206].mxu1 }
 0x75d   : > { %v11298_v33 = vpop.f32.mrb[207].mxu1 }
 0x75e   : > { %v16164_v37 = vadd.f32 %v11405_v56, %v8639_v31  ;;  %v8644_v24 = vadd.f32 %v11296_v11, %v16036_v21  ;;  %v11299_v41 = vadd.f32 %v11298_v33, %v11297_v34 }
 0x760   : > { %v11406_v1 = vpop.f32.mrb[236].mxu0  ;;  %v8647_v58 = vadd.f32 %v11299_v41, %v16039_v0 }
 0x761   : > { %v11407_v44 = vpop.f32.mrb[237].mxu0 }
 0x762   : > { %v11408_v47 = vadd.f32 %v11407_v44, %v11406_v1  ;;  %v11409_v6 = vpop.f32.mrb[238].mxu0  ;;  %v11300_v54 = vpop.f32.mrb[208].mxu1 }
 0x763   : > { %v11410_v45 = vpop.f32.mrb[239].mxu0  ;;  %v11301_v3 = vpop.f32.mrb[209].mxu1 }
 0x764   : > { %v16168_v18 = vadd.f32 %v11408_v47, %v8644_v24  ;;  %v11411_v43 = vadd.f32 %v11410_v45, %v11409_v6  ;;  %v11302_v14 = vadd.f32 %v11301_v3, %v11300_v54  ;;  %v11303_v19 = vpop.f32.mrb[210].mxu1 }
 0x765   : > { %v11304_v29 = vpop.f32.mrb[211].mxu1 }
 0x766   : > { %v16170_v42 = vadd.f32 %v11411_v43, %v8647_v58  ;;  %v8652_v21 = vadd.f32 %v11302_v14, %v16046_v32  ;;  %v11305_v23 = vadd.f32 %v11304_v29, %v11303_v19 }
 0x768   : > { %v11412_v27 = vpop.f32.mrb[240].mxu0  ;;  %v8655_v0 = vadd.f32 %v11305_v23, %v16049_v30 }
 0x769   : > { %v11413_v8 = vpop.f32.mrb[241].mxu0 }
 0x76a   : > { %v11414_v25 = vadd.f32 %v11413_v8, %v11412_v27  ;;  %v11415_v10 = vpop.f32.mrb[242].mxu0  ;;  %v11306_v31 = vpop.f32.mrb[212].mxu1 }
 0x76b   : > { %v11416_v51 = vpop.f32.mrb[243].mxu0  ;;  %v11307_v35 = vpop.f32.mrb[213].mxu1 }
 0x76c   : > { %v16174_v63 = vadd.f32 %v11414_v25, %v8652_v21  ;;  %v11417_v38 = vadd.f32 %v11416_v51, %v11415_v10  ;;  %v11308_v61 = vadd.f32 %v11307_v35, %v11306_v31  ;;  %v11309_v36 = vpop.f32.mrb[214].mxu1 }
 0x76d   : > { %v11310_v56 = vpop.f32.mrb[215].mxu1 }
 0x76e   : > { %v16176_v11 = vadd.f32 %v11417_v38, %v8655_v0  ;;  %v8660_v32 = vadd.f32 %v11308_v61, %v16056_v49  ;;  %v11311_v34 = vadd.f32 %v11310_v56, %v11309_v36 }
 0x770   : > { %v11418_v33 = vpop.f32.mrb[244].mxu0  ;;  %v8663_v30 = vadd.f32 %v11311_v34, %v16059_v12 }
 0x771   : > { %v11419_v24 = vpop.f32.mrb[245].mxu0 }
 0x772   : > { %v11420_v41 = vadd.f32 %v11419_v24, %v11418_v33  ;;  %v11421_v1 = vpop.f32.mrb[246].mxu0  ;;  %v11312_v58 = vpop.f32.mrb[216].mxu1 }
 0x773   : > { %v11422_v44 = vpop.f32.mrb[247].mxu0  ;;  %v11313_v47 = vpop.f32.mrb[217].mxu1 }
 0x774   : > { %v16180_v6 = vadd.f32 %v11420_v41, %v8660_v32  ;;  %v11423_v54 = vadd.f32 %v11422_v44, %v11421_v1  ;;  %v11314_v45 = vadd.f32 %v11313_v47, %v11312_v58  ;;  %v11315_v3 = vpop.f32.mrb[218].mxu1 }
 0x775   : > { %v11316_v43 = vpop.f32.mrb[219].mxu1 }
 0x776   : > { %v16182_v14 = vadd.f32 %v11423_v54, %v8663_v30  ;;  %v8668_v49 = vadd.f32 %v11314_v45, %v16066_v17  ;;  %v11317_v19 = vadd.f32 %v11316_v43, %v11315_v3 }
 0x778   : > { %v11424_v29 = vpop.f32.mrb[248].mxu0  ;;  %v8671_v12 = vadd.f32 %v11317_v19, %v16069_v48 }
 0x779   : > { %v11425_v21 = vpop.f32.mrb[249].mxu0 }
 0x77a   : > { %v11426_v23 = vadd.f32 %v11425_v21, %v11424_v29  ;;  %v11427_v27 = vpop.f32.mrb[250].mxu0  ;;  %v11318_v0 = vpop.f32.mrb[220].mxu1 }
 0x77b   : > { %v11428_v8 = vpop.f32.mrb[251].mxu0  ;;  %v11319_v25 = vpop.f32.mrb[221].mxu1 }
 0x77c   : > { %v16186_v10 = vadd.f32 %v11426_v23, %v8668_v49  ;;  %v11429_v31 = vadd.f32 %v11428_v8, %v11427_v27  ;;  %v11320_v51 = vadd.f32 %v11319_v25, %v11318_v0  ;;  %v11321_v35 = vpop.f32.mrb[222].mxu1  ;;  %v9166_v27 = vld [vmem:[#allocation13 + $0x8] sm:$0xff] }
 0x77d   : > { %v11322_v38 = vpop.f32.mrb[223].mxu1  ;;  %9245 = vmatprep.mubr.f32.mxu1 %v9166_v27 }
 0x77e   : > { %v16188_v61 = vadd.f32 %v11429_v31, %v8671_v12  ;;  %v8676_v17 = vadd.f32 %v11320_v51, %v16076_v40  ;;  %v11323_v36 = vadd.f32 %v11322_v38, %v11321_v35 }
 0x780   : > { %v11430_v56 = vpop.f32.mrb[252].mxu0  ;;  %v8679_v48 = vadd.f32 %v11323_v36, %v16079_v52 }
 0x781   : > { %v11431_v32 = vpop.f32.mrb[253].mxu0 }
 0x782   : > { %v11432_v34 = vadd.f32 %v11431_v32, %v11430_v56  ;;  %v11433_v33 = vpop.f32.mrb[254].mxu0  ;;  %v11452_v30 = vpop.f32.mrb[224].mxu1 }
 0x783   : > { %v11434_v24 = vpop.f32.mrb[255].mxu0  ;;  %v11453_v41 = vpop.f32.mrb[225].mxu1 }
 0x784   : > { %v16192_v1 = vadd.f32 %v11432_v34, %v8676_v17  ;;  %v11435_v58 = vadd.f32 %v11434_v24, %v11433_v33  ;;  %v11454_v44 = vadd.f32 %v11453_v41, %v11452_v30  ;;  %v11455_v47 = vpop.f32.mrb[226].mxu1 }
 0x785   : > { %v11456_v54 = vpop.f32.mrb[227].mxu1 }
 0x786   : > { %v16194_v45 = vadd.f32 %v11435_v58, %v8679_v48  ;;  %v8878_v40 = vadd.f32 %v11454_v44, %v16086_v16  ;;  %v11457_v3 = vadd.f32 %v11456_v54, %v11455_v47 }
 0x788   : > { %v11564_v43 = vpop.f32.mrb[0].mxu0  ;;  %v8881_v52 = vadd.f32 %v11457_v3, %v16089_v50 }
 0x789   : > { %v11565_v49 = vpop.f32.mrb[1].mxu0 }
 0x78a   : > { %v11566_v19 = vadd.f32 %v11565_v49, %v11564_v43  ;;  %v11567_v29 = vpop.f32.mrb[2].mxu0  ;;  %v11458_v12 = vpop.f32.mrb[228].mxu1 }
 0x78b   : > { %v11568_v21 = vpop.f32.mrb[3].mxu0  ;;  %v11459_v23 = vpop.f32.mrb[229].mxu1 }
 0x78c   : > { %v16198_v0 = vadd.f32 %v11566_v19, %v8878_v40  ;;  %v11569_v8 = vadd.f32 %v11568_v21, %v11567_v29  ;;  %v11460_v25 = vadd.f32 %v11459_v23, %v11458_v12  ;;  %v11461_v31 = vpop.f32.mrb[230].mxu1 }
 0x78d   : > { %v11462_v51 = vpop.f32.mrb[231].mxu1 }
 0x78e   : > { %v16200_v35 = vadd.f32 %v11569_v8, %v8881_v52  ;;  %v8886_v16 = vadd.f32 %v11460_v25, %v16096_v59  ;;  %v11463_v38 = vadd.f32 %v11462_v51, %v11461_v31 }
 0x790   : > { %v11862_v50 = vpack.c.bf16 %v16200_v35, %v16198_v0  ;;  %v11570_v17 = vpop.f32.mrb[4].mxu0  ;;  %v8889_v36 = vadd.f32 %v11463_v38, %v16099_v62 }
 0x791   : > { %v11571_v56 = vpop.f32.mrb[5].mxu0 }
 0x792   : > { %v11572_v48 = vadd.f32 %v11571_v56, %v11570_v17  ;;  %v11573_v32 = vpop.f32.mrb[6].mxu0  ;;  %v11464_v34 = vpop.f32.mrb[232].mxu1 }
 0x793   : > { %v11574_v33 = vpop.f32.mrb[7].mxu0  ;;  %v11465_v30 = vpop.f32.mrb[233].mxu1 }
 0x794   : > { %v16206_v24 = vadd.f32 %v11572_v48, %v8886_v16  ;;  %v11575_v41 = vadd.f32 %v11574_v33, %v11573_v32  ;;  %v11466_v58 = vadd.f32 %v11465_v30, %v11464_v34  ;;  %v11467_v44 = vpop.f32.mrb[234].mxu1 }
 0x795   : > { %v11468_v47 = vpop.f32.mrb[235].mxu1 }
 0x796   : > { %v16208_v59 = vadd.f32 %v11575_v41, %v8889_v36  ;;  %v8894_v54 = vadd.f32 %v11466_v58, %v16106_v60  ;;  %v11469_v40 = vadd.f32 %v11468_v47, %v11467_v44 }
 0x798   : > { %v11866_v62 = vpack.c.bf16 %v16208_v59, %v16206_v24  ;;  %v11576_v3 = vpop.f32.mrb[8].mxu0  ;;  %v8897_v43 = vadd.f32 %v11469_v40, %v16109_v57 }
 0x799   : > { %v11577_v52 = vpop.f32.mrb[9].mxu0 }
 0x79a   : > { %v11578_v49 = vadd.f32 %v11577_v52, %v11576_v3  ;;  %v11579_v19 = vpop.f32.mrb[10].mxu0  ;;  %v11470_v29 = vpop.f32.mrb[236].mxu1 }
 0x79b   : > { %v11580_v12 = vpop.f32.mrb[11].mxu0  ;;  %v11471_v21 = vpop.f32.mrb[237].mxu1 }
 0x79c   : > { %v16214_v23 = vadd.f32 %v11578_v49, %v8894_v54  ;;  %v11581_v27 = vadd.f32 %v11580_v12, %v11579_v19  ;;  %v11472_v8 = vadd.f32 %v11471_v21, %v11470_v29  ;;  %v11473_v25 = vpop.f32.mrb[238].mxu1 }
 0x79d   : > { %v11474_v31 = vpop.f32.mrb[239].mxu1 }
 0x79e   : > { %v16216_v60 = vadd.f32 %v11581_v27, %v8897_v43  ;;  %v8902_v51 = vadd.f32 %v11472_v8, %v16116_v39  ;;  %v11475_v16 = vadd.f32 %v11474_v31, %v11473_v25 }
 0x7a0   : > { %v11870_v57 = vpack.c.bf16 %v16216_v60, %v16214_v23  ;;  %v11582_v38 = vpop.f32.mrb[12].mxu0  ;;  %v8905_v17 = vadd.f32 %v11475_v16, %v16119_v13 }
 0x7a1   : > { %v11583_v36 = vpop.f32.mrb[13].mxu0 }
 0x7a2   : > { %v11584_v56 = vadd.f32 %v11583_v36, %v11582_v38  ;;  %v11585_v48 = vpop.f32.mrb[14].mxu0  ;;  %v11476_v32 = vpop.f32.mrb[240].mxu1 }
 0x7a3   : > { %v11586_v34 = vpop.f32.mrb[15].mxu0  ;;  %v11477_v33 = vpop.f32.mrb[241].mxu1 }
 0x7a4   : > { %v16222_v30 = vadd.f32 %v11584_v56, %v8902_v51  ;;  %v11587_v41 = vadd.f32 %v11586_v34, %v11585_v48  ;;  %v11478_v58 = vadd.f32 %v11477_v33, %v11476_v32  ;;  %v11479_v44 = vpop.f32.mrb[242].mxu1 }
 0x7a5   : > { %v11480_v47 = vpop.f32.mrb[243].mxu1 }
 0x7a6   : > { %v16224_v39 = vadd.f32 %v11587_v41, %v8905_v17  ;;  %v8910_v54 = vadd.f32 %v11478_v58, %v16125_v22  ;;  %v11481_v40 = vadd.f32 %v11480_v47, %v11479_v44 }
 0x7a8   : > { %v11874_v13 = vpack.c.bf16 %v16224_v39, %v16222_v30  ;;  %v11588_v3 = vpop.f32.mrb[16].mxu0  ;;  %v8913_v43 = vadd.f32 %v11481_v40, %v16128_v26 }
 0x7a9   : > { %v11589_v52 = vpop.f32.mrb[17].mxu0 }
 0x7aa   : > { %v11590_v49 = vadd.f32 %v11589_v52, %v11588_v3  ;;  %v11591_v19 = vpop.f32.mrb[18].mxu0  ;;  %v11482_v29 = vpop.f32.mrb[244].mxu1 }
 0x7ab   : > { %v11592_v12 = vpop.f32.mrb[19].mxu0  ;;  %v11483_v21 = vpop.f32.mrb[245].mxu1 }
 0x7ac   : > { %v16230_v27 = vadd.f32 %v11590_v49, %v8910_v54  ;;  %v11593_v8 = vadd.f32 %v11592_v12, %v11591_v19  ;;  %v11484_v25 = vadd.f32 %v11483_v21, %v11482_v29  ;;  %v11485_v31 = vpop.f32.mrb[246].mxu1 }
 0x7ad   : > { %v11486_v51 = vpop.f32.mrb[247].mxu1 }
 0x7ae   : > { %v16232_v22 = vadd.f32 %v11593_v8, %v8913_v43  ;;  %v8918_v16 = vadd.f32 %v11484_v25, %v16132_v55  ;;  %v11487_v38 = vadd.f32 %v11486_v51, %v11485_v31 }
 0x7b0   : > { %v11878_v26 = vpack.c.bf16 %v16232_v22, %v16230_v27  ;;  %v11594_v17 = vpop.f32.mrb[20].mxu0  ;;  %v8921_v36 = vadd.f32 %v11487_v38, %v16134_v28 }
 0x7b1   : > { %v11595_v56 = vpop.f32.mrb[21].mxu0 }
 0x7b2   : > { %v11596_v48 = vadd.f32 %v11595_v56, %v11594_v17  ;;  %v11597_v32 = vpop.f32.mrb[22].mxu0  ;;  %v11488_v34 = vpop.f32.mrb[248].mxu1 }
 0x7b3   : > { %v11598_v33 = vpop.f32.mrb[23].mxu0  ;;  %v11489_v41 = vpop.f32.mrb[249].mxu1 }
 0x7b4   : > { %v16238_v58 = vadd.f32 %v11596_v48, %v8918_v16  ;;  %v11599_v44 = vadd.f32 %v11598_v33, %v11597_v32  ;;  %v11490_v47 = vadd.f32 %v11489_v41, %v11488_v34  ;;  %v11491_v54 = vpop.f32.mrb[250].mxu1 }
 0x7b5   : > { %v11492_v40 = vpop.f32.mrb[251].mxu1 }
 0x7b6   : > { %v16240_v55 = vadd.f32 %v11599_v44, %v8921_v36  ;;  %v8926_v3 = vadd.f32 %v11490_v47, %v16138_v9  ;;  %v11493_v43 = vadd.f32 %v11492_v40, %v11491_v54 }
 0x7b8   : > { %v11882_v28 = vpack.c.bf16 %v16240_v55, %v16238_v58  ;;  %v11600_v52 = vpop.f32.mrb[24].mxu0  ;;  %v8929_v49 = vadd.f32 %v11493_v43, %v16140_v46 }
 0x7b9   : > { %v11601_v19 = vpop.f32.mrb[25].mxu0 }
 0x7ba   : > { %v11602_v29 = vadd.f32 %v11601_v19, %v11600_v52  ;;  %v11603_v12 = vpop.f32.mrb[26].mxu0  ;;  %v11494_v21 = vpop.f32.mrb[252].mxu1 }
 0x7bb   : > { %v11604_v8 = vpop.f32.mrb[27].mxu0  ;;  %v11495_v25 = vpop.f32.mrb[253].mxu1 }
 0x7bc   : > { %v16246_v31 = vadd.f32 %v11602_v29, %v8926_v3  ;;  %v11605_v51 = vadd.f32 %v11604_v8, %v11603_v12  ;;  %v11496_v16 = vadd.f32 %v11495_v25, %v11494_v21  ;;  %v11497_v38 = vpop.f32.mrb[254].mxu1 }
 0x7bd   : > { %v11498_v17 = vpop.f32.mrb[255].mxu1 }
 0x7be   : > { %v16248_v9 = vadd.f32 %v11605_v51, %v8929_v49  ;;  %v8934_v36 = vadd.f32 %v11496_v16, %v16144_v5  ;;  %v11499_v56 = vadd.f32 %v11498_v17, %v11497_v38 }
 0x7c0   : > { %v11886_v46 = vpack.c.bf16 %v16248_v9, %v16246_v31  ;;  %v11606_v48 = vpop.f32.mrb[28].mxu0  ;;  %v8937_v32 = vadd.f32 %v11499_v56, %v16146_v4  ;;  %v9172_v31 = vld [vmem:[#allocation13 + $0x38] sm:$0xff]  ;;  %v9171_v9 = vld [vmem:[#allocation13 + $0x30] sm:$0xff] }
 0x7c1   : > { %v11607_v34 = vpop.f32.mrb[29].mxu0 }
 0x7c2   : > { %v11608_v33 = vadd.f32 %v11607_v34, %v11606_v48  ;;  %v11609_v41 = vpop.f32.mrb[30].mxu0  ;;  %v11500_v44 = vpop.f32.mrb[0].mxu1 }
 0x7c3   : > { %v11610_v47 = vpop.f32.mrb[31].mxu0  ;;  %v11501_v54 = vpop.f32.mrb[1].mxu1 }
 0x7c4   : > { %v16254_v40 = vadd.f32 %v11608_v33, %v8934_v36  ;;  %v11611_v3 = vadd.f32 %v11610_v47, %v11609_v41  ;;  %v11502_v43 = vadd.f32 %v11501_v54, %v11500_v44  ;;  %v11503_v52 = vpop.f32.mrb[2].mxu1 }
 0x7c5   : > { %v11504_v49 = vpop.f32.mrb[3].mxu1 }
 0x7c6   : > { %v16256_v5 = vadd.f32 %v11611_v3, %v8937_v32  ;;  %v8942_v19 = vadd.f32 %v11502_v43, %v16150_v20  ;;  %v11505_v29 = vadd.f32 %v11504_v49, %v11503_v52 }
 0x7c8   : > { %v11890_v4 = vpack.c.bf16 %v16256_v5, %v16254_v40  ;;  %v11612_v12 = vpop.f32.mrb[32].mxu0  ;;  %v8945_v21 = vadd.f32 %v11505_v29, %v16152_v2  ;;  %v9176_v40 = vld [vmem:[#allocation13 + $0x58] sm:$0xff]  ;;  %v9175_v5 = vld [vmem:[#allocation13 + $0x50] sm:$0xff] }
 0x7c9   : > { %v11613_v8 = vpop.f32.mrb[33].mxu0 }
 0x7ca   : > { %v11614_v25 = vadd.f32 %v11613_v8, %v11612_v12  ;;  %v11615_v51 = vpop.f32.mrb[34].mxu0  ;;  %v11506_v16 = vpop.f32.mrb[4].mxu1 }
 0x7cb   : > { %v11616_v38 = vpop.f32.mrb[35].mxu0  ;;  %v11507_v17 = vpop.f32.mrb[5].mxu1 }
 0x7cc   : > { %v9103_v36 = vadd.f32 %v11614_v25, %v8942_v19  ;;  %v11617_v56 = vadd.f32 %v11616_v38, %v11615_v51  ;;  %v11508_v48 = vadd.f32 %v11507_v17, %v11506_v16  ;;  %v11509_v32 = vpop.f32.mrb[6].mxu1 }
 0x7cd   : > { %v11510_v34 = vpop.f32.mrb[7].mxu1 }
 0x7ce   : > { %v9106_v33 = vadd.f32 %v11617_v56, %v8945_v21  ;;  %v8950_v20 = vadd.f32 %v11508_v48, %v16156_v53  ;;  %v11511_v41 = vadd.f32 %v11510_v34, %v11509_v32 }
 0x7d0   : > { %v11618_v44 = vpop.f32.mrb[36].mxu0  ;;  %v8953_v47 = vadd.f32 %v11511_v41, %v16158_v15  ;;  %v11860_v54 = vpack.c.bf16 %v9106_v33, %v9103_v36 }
 0x7d1   : > { %v11619_v2 = vpop.f32.mrb[37].mxu0 }
 0x7d2   : > { %v11620_v3 = vadd.f32 %v11619_v2, %v11618_v44  ;;  %v11621_v43 = vpop.f32.mrb[38].mxu0  ;;  %11861 = vmatprep.subr.bf16.mxu1 %v11860_v54  ;;  %v11512_v52 = vpop.f32.mrb[8].mxu1 }
 0x7d3   : > { %v11622_v49 = vpop.f32.mrb[39].mxu0  ;;  %11863 = vmatpush3.bf16.msra.mxu1 %v11862_v50  ;;  %v11513_v19 = vpop.f32.mrb[9].mxu1 }
 0x7d4   : > { %v9111_v29 = vadd.f32 %v11620_v3, %v8950_v20  ;;  %v11623_v12 = vadd.f32 %v11622_v49, %v11621_v43  ;;  %v11514_v21 = vadd.f32 %v11513_v19, %v11512_v52  ;;  %v11515_v53 = vpop.f32.mrb[10].mxu1 }
 0x7d5   : > { %v11516_v8 = vpop.f32.mrb[11].mxu1 }
 0x7d6   : > { %v9114_v25 = vadd.f32 %v11623_v12, %v8953_v47  ;;  %v8958_v15 = vadd.f32 %v11514_v21, %v16162_v7  ;;  %v11517_v51 = vadd.f32 %v11516_v8, %v11515_v53 }
 0x7d8   : > { %v11624_v16 = vpop.f32.mrb[40].mxu0  ;;  %v8961_v38 = vadd.f32 %v11517_v51, %v16164_v37  ;;  %v11864_v17 = vpack.c.bf16 %v9114_v25, %v9111_v29 }
 0x7d9   : > { %v11625_v36 = vpop.f32.mrb[41].mxu0 }
 0x7da   : > { %v11626_v56 = vadd.f32 %v11625_v36, %v11624_v16  ;;  %v11627_v48 = vpop.f32.mrb[42].mxu0  ;;  %11865 = vmatprep.subr.bf16.mxu1 %v11864_v17  ;;  %v11518_v0 = vpop.f32.mrb[12].mxu1 }
 0x7db   : > { %v11628_v35 = vpop.f32.mrb[43].mxu0  ;;  %11867 = vmatpush3.bf16.msra.mxu1 %v11866_v62  ;;  %v11519_v50 = vpop.f32.mrb[13].mxu1 }
 0x7dc   : > { %v9119_v32 = vadd.f32 %v11626_v56, %v8958_v15  ;;  %v11629_v34 = vadd.f32 %v11628_v35, %v11627_v48  ;;  %v11520_v33 = vadd.f32 %v11519_v50, %v11518_v0  ;;  %v11521_v7 = vpop.f32.mrb[14].mxu1 }
 0x7dd   : > { %v11522_v20 = vpop.f32.mrb[15].mxu1 }
 0x7de   : > { %v9122_v41 = vadd.f32 %v11629_v34, %v8961_v38  ;;  %v8966_v37 = vadd.f32 %v11520_v33, %v16168_v18  ;;  %v11523_v44 = vadd.f32 %v11522_v20, %v11521_v7 }
 0x7e0   : > { %v11630_v47 = vpop.f32.mrb[44].mxu0  ;;  %v8969_v54 = vadd.f32 %v11523_v44, %v16170_v42  ;;  %v11868_v2 = vpack.c.bf16 %v9122_v41, %v9119_v32 }
 0x7e1   : > { %v11631_v3 = vpop.f32.mrb[45].mxu0 }
 0x7e2   : > { %v11632_v43 = vadd.f32 %v11631_v3, %v11630_v47  ;;  %v11633_v52 = vpop.f32.mrb[46].mxu0  ;;  %11869 = vmatprep.subr.bf16.mxu1 %v11868_v2  ;;  %v11524_v24 = vpop.f32.mrb[16].mxu1 }
 0x7e3   : > { %v11634_v59 = vpop.f32.mrb[47].mxu0  ;;  %11871 = vmatpush3.bf16.msra.mxu1 %v11870_v57  ;;  %v11525_v62 = vpop.f32.mrb[17].mxu1 }
 0x7e4   : > { %v9127_v49 = vadd.f32 %v11632_v43, %v8966_v37  ;;  %v11635_v19 = vadd.f32 %v11634_v59, %v11633_v52  ;;  %v11526_v29 = vadd.f32 %v11525_v62, %v11524_v24  ;;  %v11527_v18 = vpop.f32.mrb[18].mxu1 }
 0x7e5   : > { %v11528_v12 = vpop.f32.mrb[19].mxu1 }
 0x7e6   : > { %v9130_v21 = vadd.f32 %v11635_v19, %v8969_v54  ;;  %v8974_v42 = vadd.f32 %v11526_v29, %v16174_v63  ;;  %v11529_v53 = vadd.f32 %v11528_v12, %v11527_v18 }
 0x7e8   : > { %v11636_v8 = vpop.f32.mrb[48].mxu0  ;;  %v8977_v25 = vadd.f32 %v11529_v53, %v16176_v11  ;;  %v11872_v15 = vpack.c.bf16 %v9130_v21, %v9127_v49 }
 0x7e9   : > { %v11637_v51 = vpop.f32.mrb[49].mxu0 }
 0x7ea   : > { %v11638_v16 = vadd.f32 %v11637_v51, %v11636_v8  ;;  %v11639_v38 = vpop.f32.mrb[50].mxu0  ;;  %11873 = vmatprep.subr.bf16.mxu1 %v11872_v15  ;;  %v11530_v23 = vpop.f32.mrb[20].mxu1 }
 0x7eb   : > { %v11640_v60 = vpop.f32.mrb[51].mxu0  ;;  %11875 = vmatpush3.bf16.msra.mxu1 %v11874_v13  ;;  %v11531_v57 = vpop.f32.mrb[21].mxu1 }
 0x7ec   : > { %v9135_v17 = vadd.f32 %v11638_v16, %v8974_v42  ;;  %v11641_v36 = vadd.f32 %v11640_v60, %v11639_v38  ;;  %v11532_v56 = vadd.f32 %v11531_v57, %v11530_v23  ;;  %v11533_v63 = vpop.f32.mrb[22].mxu1  ;;  %v9167_v23 = vld [vmem:[#allocation13 + $0x10] sm:$0xff]  ;;  %v9170_v60 = vld [vmem:[#allocation13 + $0x28] sm:$0xff]  ;;  %v9169_v57 = vld [vmem:[#allocation13 + $0x20] sm:$0xff] }
 0x7ed   : > { %v11534_v48 = vpop.f32.mrb[23].mxu1 }
 0x7ee   : > { %v9138_v0 = vadd.f32 %v11641_v36, %v8977_v25  ;;  %v8982_v11 = vadd.f32 %v11532_v56, %v16180_v6  ;;  %v11535_v35 = vadd.f32 %v11534_v48, %v11533_v63  ;;  %v9177_v36 = vld [vmem:[#allocation13 + $0x60] sm:$0xff]  ;;  %v9180_v56 = vld [vmem:[#allocation13 + $0x78] sm:$0xff]  ;;  %v9179_v63 = vld [vmem:[#allocation13 + $0x70] sm:$0xff] }
 0x7f0   : > { %v11642_v50 = vpop.f32.mrb[52].mxu0  ;;  %v8985_v32 = vadd.f32 %v11535_v35, %v16182_v14  ;;  %v11876_v34 = vpack.c.bf16 %v9138_v0, %v9135_v17  ;;  %v9173_v17 = vld [vmem:[#allocation13 + $0x40] sm:$0xff] }
 0x7f1   : > { %v11643_v33 = vpop.f32.mrb[53].mxu0 }
 0x7f2   : > { %v11644_v7 = vadd.f32 %v11643_v33, %v11642_v50  ;;  %v11645_v20 = vpop.f32.mrb[54].mxu0  ;;  %11877 = vmatprep.subr.bf16.mxu1 %v11876_v34  ;;  %v11536_v30 = vpop.f32.mrb[24].mxu1 }
 0x7f3   : > { %v11646_v39 = vpop.f32.mrb[55].mxu0  ;;  %11879 = vmatpush3.bf16.msra.mxu1 %v11878_v26  ;;  %v11537_v13 = vpop.f32.mrb[25].mxu1 }
 0x7f4   : > { %v9143_v41 = vadd.f32 %v11644_v7, %v8982_v11  ;;  %v11647_v37 = vadd.f32 %v11646_v39, %v11645_v20  ;;  %v11538_v44 = vadd.f32 %v11537_v13, %v11536_v30  ;;  %v11539_v6 = vpop.f32.mrb[26].mxu1 }
 0x7f5   : > { %v11540_v47 = vpop.f32.mrb[27].mxu1 }
 0x7f6   : > { %v9146_v54 = vadd.f32 %v11647_v37, %v8985_v32  ;;  %v8990_v14 = vadd.f32 %v11538_v44, %v16186_v10  ;;  %v11541_v2 = vadd.f32 %v11540_v47, %v11539_v6 }
 0x7f8   : > { %v11648_v3 = vpop.f32.mrb[56].mxu0  ;;  %v8993_v43 = vadd.f32 %v11541_v2, %v16188_v61  ;;  %v11880_v52 = vpack.c.bf16 %v9146_v54, %v9143_v41 }
 0x7f9   : > { %v11649_v24 = vpop.f32.mrb[57].mxu0 }
 0x7fa   : > { %v11650_v59 = vadd.f32 %v11649_v24, %v11648_v3  ;;  %v11651_v62 = vpop.f32.mrb[58].mxu0  ;;  %11881 = vmatprep.subr.bf16.mxu1 %v11880_v52  ;;  %v11542_v27 = vpop.f32.mrb[28].mxu1 }
 0x7fb   : > { %v11652_v22 = vpop.f32.mrb[59].mxu0  ;;  %11883 = vmatpush3.bf16.msra.mxu1 %v11882_v28  ;;  %v11543_v26 = vpop.f32.mrb[29].mxu1 }
 0x7fc   : > { %v9151_v49 = vadd.f32 %v11650_v59, %v8990_v14  ;;  %v11653_v19 = vadd.f32 %v11652_v22, %v11651_v62  ;;  %v11544_v29 = vadd.f32 %v11543_v26, %v11542_v27  ;;  %v11545_v10 = vpop.f32.mrb[30].mxu1 }
 0x7fd   : > { %v11546_v18 = vpop.f32.mrb[31].mxu1 }
 0x7fe   : > { %v9154_v12 = vadd.f32 %v11653_v19, %v8993_v43  ;;  %v8998_v61 = vadd.f32 %v11544_v29, %v16192_v1  ;;  %v11547_v21 = vadd.f32 %v11546_v18, %v11545_v10  ;;  %v9165_v1 = vld [vmem:[#allocation13] sm:$0xff] }
 0x800   : > { %v11654_v42 = vpop.f32.mrb[60].mxu0  ;;  %v9001_v53 = vadd.f32 %v11547_v21, %v16194_v45  ;;  %v11884_v8 = vpack.c.bf16 %v9154_v12, %v9151_v49  ;;  %v9168_v45 = vld [vmem:[#allocation13 + $0x18] sm:$0xff] }
 0x801   : > { %v11655_v25 = vpop.f32.mrb[61].mxu0 }
 0x802   : > { %v11656_v15 = vadd.f32 %v11655_v25, %v11654_v42  ;;  %v11657_v51 = vpop.f32.mrb[62].mxu0  ;;  %11885 = vmatprep.subr.bf16.mxu1 %v11884_v8 }
 0x803   : > { %v11658_v58 = vpop.f32.mrb[63].mxu0  ;;  %11887 = vmatpush3.bf16.msra.mxu1 %v11886_v46  ;;  %v9174_v46 = vld [vmem:[#allocation13 + $0x48] sm:$0xff] }
 0x804   : > { %v9159_v55 = vadd.f32 %v11656_v15, %v8998_v61  ;;  %v11659_v28 = vadd.f32 %v11658_v58, %v11657_v51 }
 0x806   : > { %v9162_v16 = vadd.f32 %v11659_v28, %v9001_v53 }
 0x808   : > { %v11888_v38 = vpack.c.bf16 %v9162_v16, %v9159_v55 }
 0x80a   : > { %11889 = vmatprep.subr.bf16.mxu1 %v11888_v38 }
 0x80b   : > { %11891 = vmatpush3.bf16.msra.mxu1 %v11890_v4  ;;  %v9178_v4 = vld [vmem:[#allocation13 + $0x68] sm:$0xff] }
 0x80e   : > { %9246 = vmatmul.mubr.f32.vlgmr.msra.gmra.mrb[32].mxu1 %v9165_v1 }
 0x80f   : > { %9250 = vmatprep.mubr.f32.mxu1 %v9168_v45 }
 0x812   : > { %9251 = vmatmul.mubr.f32.gmra.mrb[34].mxu1 %v9167_v23 }
 0x813   : > { %9255 = vmatprep.mubr.f32.mxu1 %v9170_v60 }
 0x816   : > { %9256 = vmatmul.mubr.f32.gmra.mrb[36].mxu1 %v9169_v57 }
 0x817   : > { %9260 = vmatprep.mubr.f32.mxu1 %v9172_v31 }
 0x81a   : > { %9261 = vmatmul.mubr.f32.gmra.mrb[38].mxu1 %v9171_v9 }
 0x81b   : > { %9265 = vmatprep.mubr.f32.mxu1 %v9174_v46 }
 0x81e   : > { %9266 = vmatmul.mubr.f32.gmra.mrb[40].mxu1 %v9173_v17 }
 0x81f   : > { %9270 = vmatprep.mubr.f32.mxu1 %v9176_v40 }
 0x822   : > { %9271 = vmatmul.mubr.f32.gmra.mrb[42].mxu1 %v9175_v5 }
 0x823   : > { %9275 = vmatprep.mubr.f32.mxu1 %v9178_v4 }
 0x826   : > { %9276 = vmatmul.mubr.f32.gmra.mrb[44].mxu1 %v9177_v36 }
 0x827   : > { %9280 = vmatprep.mubr.f32.mxu1 %v9180_v56 }
 0x82a   : > { %9281 = vmatmul.mubr.f32.gmra.mrb[46].mxu1 %v9179_v63 }
 0x82b   : > { %12470 = shalt.err (!%p12467_p8)
}
 0x82c   : > { %s12471_s28 = scalar_lea.hbm %s16304_s8, 4096  ;;  %s12475_s11 = scalar_lea.hbm %s16755_s15, 8192 }
 0x82d   : > { %p12472_p6 = scmp.ne.s32.totalorder %s16304_s8, %s12471_s28  ;;  %p12476_p3 = scmp.lt.u32.totalorder %s16304_s8, %s16755_s15 }
 0x82e   : > { %p12477_p5 = scmp.lt.u32.totalorder %s12475_s11, %s12471_s28  ;;  %p12479_p7 = scmp.lt.u32.totalorder %s12471_s28, %s16304_s8 }
 0x82f   : > { %p12473_p10 = pnand %p12472_p6, %p16756_p4 }
 0x830   : > { %p12478_p9 = por %p12477_p5, %p12476_p3 }
 0x831   : > { %p12474_p11 = pneg %p12473_p10 }
 0x832   : > { %p12480_p12 = por %p12479_p7, %p12478_p9 }
 0x834   : > { %p12481_p1 = pnand %p12480_p12, %p12474_p11 }
 0x836   : > { %12484 = shalt.err (!%p12481_p1)
}
 0x837   : > { %s16513_s16 = smov 128   ;;  %s16514_s13 = smov 8  }
 0x838   : > { %11914 = dma.vmem_to_hbm [thread:$0]  (%p16756_p4), %s16307_s14, 4096, %s16304_s8, %s9295_s6, %s16513_s16, %s16513_s16, %s16514_s13  }
 0x839   : > { %s9501_s17 = sshll.u32 %s12895_s30, 6  ;;  %s9795_s14 = sshll.u32 %s12673_s27, 10 }
 0x83a   : > { %s16337_s28 = scalar_lea.vmem [#allocation16], %s9501_s17  ;;  %s16757_s11 = sld [smem:[#allocation77_spill]] }
 0x83b   : > { %s9329_s8 = sshll.u32 %s16337_s28, 4  ;;  %s9300_s26 = scalar_lea.sflag [#allocation17], %s12895_s30  ;;  %s16348_s8 = int_to_ptr.vmem [resolvable:$true] %s9329_s8 }
 0x83c   : > { %s12485_s17 = scalar_lea.vmem %s16348_s8, 1024  ;;  %s12586_s27 = smov [#allocation16]  }
 0x83d   : > { %p12486_p13 = scmp.ne.s32.totalorder %s16348_s8, %s12485_s17  ;;  %s12489_s16 = sshll.u32 %s12586_s27, 4  ;;  %s12490_s16 = int_to_ptr.vmem [resolvable:$false] %s12489_s16 }
 0x83e   : > { %s12491_s13 = scalar_lea.vmem %s12490_s16, 2048  ;;  %p12492_p8 = scmp.lt.s32.totalorder %s16348_s8, %s12490_s16 }
 0x83f   : > { %p12487_p0 = pnand %p12486_p13, %p16756_p4  ;;  %p12493_p6 = scmp.lt.s32.totalorder %s12491_s13, %s12485_s17 }
 0x840   : > { %s16353_s20 = scalar_lea.hbm %s16757_s11, %s9795_s14 }
 0x841   : > { %p12488_p2 = pneg %p12487_p0  ;;  %p12494_p10 = por %p12493_p6, %p12492_p8 }
 0x843   : > { %p12495_p11 = pnand %p12494_p10, %p12488_p2 }
 0x8e1   : > { %v11692_v48 = vpop.f32.mrb[32].mxu1 }
 0x8e2   : > { %v11693_v0 = vpop.f32.mrb[33].mxu1 }
 0x8e3   : > { %v11694_v11 = vadd.f32 %v11693_v0, %v11692_v48 }
 0x8e5   : > { %9286 = vst [vmem:[%s16337_s28] sm:$0xff] %v11694_v11  ;;  %v11695_v35 = vpop.f32.mrb[34].mxu1 }
 0x8e6   : > { %v11696_v50 = vpop.f32.mrb[35].mxu1 }
 0x8e7   : > { %v11697_v32 = vadd.f32 %v11696_v50, %v11695_v35 }
 0x8e9   : > { %9287 = vst [vmem:[%s16337_s28 + $0x8] sm:$0xff] %v11697_v32  ;;  %v11698_v34 = vpop.f32.mrb[36].mxu1 }
 0x8ea   : > { %v11699_v33 = vpop.f32.mrb[37].mxu1 }
 0x8eb   : > { %v11700_v7 = vadd.f32 %v11699_v33, %v11698_v34 }
 0x8ed   : > { %9288 = vst [vmem:[%s16337_s28 + $0x10] sm:$0xff] %v11700_v7  ;;  %v11701_v20 = vpop.f32.mrb[38].mxu1 }
 0x8ee   : > { %v11702_v30 = vpop.f32.mrb[39].mxu1 }
 0x8ef   : > { %v11703_v39 = vadd.f32 %v11702_v30, %v11701_v20 }
 0x8f1   : > { %9289 = vst [vmem:[%s16337_s28 + $0x18] sm:$0xff] %v11703_v39  ;;  %v11704_v13 = vpop.f32.mrb[40].mxu1 }
 0x8f2   : > { %v11705_v41 = vpop.f32.mrb[41].mxu1 }
 0x8f3   : > { %v11706_v37 = vadd.f32 %v11705_v41, %v11704_v13 }
 0x8f5   : > { %9290 = vst [vmem:[%s16337_s28 + $0x20] sm:$0xff] %v11706_v37  ;;  %v11707_v44 = vpop.f32.mrb[42].mxu1 }
 0x8f6   : > { %v11708_v6 = vpop.f32.mrb[43].mxu1 }
 0x8f7   : > { %v11709_v47 = vadd.f32 %v11708_v6, %v11707_v44 }
 0x8f9   : > { %9291 = vst [vmem:[%s16337_s28 + $0x28] sm:$0xff] %v11709_v47  ;;  %v11710_v54 = vpop.f32.mrb[44].mxu1 }
 0x8fa   : > { %v11711_v14 = vpop.f32.mrb[45].mxu1 }
 0x8fb   : > { %v11712_v2 = vadd.f32 %v11711_v14, %v11710_v54 }
 0x8fd   : > { %9292 = vst [vmem:[%s16337_s28 + $0x30] sm:$0xff] %v11712_v2  ;;  %v11713_v3 = vpop.f32.mrb[46].mxu1 }
 0x8fe   : > { %v11714_v43 = vpop.f32.mrb[47].mxu1 }
 0x8ff   : > { %v11715_v52 = vadd.f32 %v11714_v43, %v11713_v3 }
 0x901   : > { %9293 = vst [vmem:[%s16337_s28 + $0x38] sm:$0xff] %v11715_v52 }
 0x902   : > { %12498 = shalt.err (!%p12495_p11)
}
 0x903   : > { %s12499_s28 = scalar_lea.hbm %s16353_s20, 1024  ;;  %s12503_s18 = scalar_lea.hbm %s16757_s11, 2048 }
 0x904   : > { %p12500_p3 = scmp.ne.s32.totalorder %s16353_s20, %s12499_s28  ;;  %p12504_p7 = scmp.lt.u32.totalorder %s16353_s20, %s16757_s11 }
 0x905   : > { %p12505_p12 = scmp.lt.u32.totalorder %s12503_s18, %s12499_s28  ;;  %p12507_p13 = scmp.lt.u32.totalorder %s12499_s28, %s16353_s20 }
 0x906   : > { %p12501_p5 = pnand %p12500_p3, %p16756_p4 }
 0x907   : > { %p12506_p1 = por %p12505_p12, %p12504_p7 }
 0x908   : > { %p12502_p9 = pneg %p12501_p5 }
 0x909   : > { %p12508_p0 = por %p12507_p13, %p12506_p1 }
 0x90b   : > { %p12509_p2 = pnand %p12508_p0, %p12502_p9 }
 0x90d   : > { %12512 = shalt.err (!%p12509_p2)
}
 0x90e   : > { %s16758_s13 = smov 8   ;;  %s16759_s17 = smov 128  }
 0x90f   : > { %11915 = dma.vmem_to_hbm [thread:$0]  (%p16756_p4), %s16348_s8, 1024, %s16353_s20, %s9300_s26, %s16759_s17, %s16759_s17, %s16758_s13  }
 0x910 PF: > { %s9344_s14 = sand.u32 1, %s12555_s21   ;;  %p16760_p8 = scmp.ne.s32.totalorder %s16527_s29, 0 }
 0x911   : > { %p16761_p6 = scmp.ge.s32.totalorder %s12567_s24, 2  ;;  %s9345_s28 = scalar_lea.sflag [#allocation6], %s9344_s14 }
 0x913   : > { %p11939_p10 = pnand %p16761_p6, %p16760_p8 }
 0x915   : > { %12546 = dma.done.wait (!%p11939_p10), %s9345_s28, 4096  }
 0x916   : > { %12548 = vsyncadd (!%p11939_p10), %s9345_s28, 4294963200  ;;  %s9354_s19 = scalar_lea.sflag [#allocation17], %s9344_s14 }
 0x917   : > { %12550 = dma.done.wait (!%p11939_p10), %s9354_s19, 1024  }
 0x918   : > { %12552 = vsyncadd (!%p11939_p10), %s9354_s19, 4294966272  ;;  %p32_p4 = scmp.ge.s32.totalorder %s12822_s1, 4   ;;  %s16762_s21 = smov %s12559_s22 }
 0x919   : > { %s16763_s22 = smov %s12563_s23  ;;  %s16764_s23 = smov %s12834_s12 }
 0x91a   : > { %s16765_s24 = smov %s12822_s1  ;;  %34 = sbr.rel (!%p32_p4) target bundleno = 16 (0x10), region = 147 }
 0x921   :  { %9359 = vsyncpa [#allocation5], 1 }
 0x922   :  { %9361 = vsyncpa [#allocation5 + $0x1], 1 }
 0x923   :  { %9362 = vsyncpa [#allocation8], 1 }
 0x924   :  { %9363 = vsyncpa [#allocation11], 1 }
 0x925   :  { %9364 = vsyncpa [#allocation14], 1 }
 0x926   :  { %9365 = vsyncpa [#allocation6], 1 }
 0x927   :  { %9367 = vsyncpa [#allocation6 + $0x1], 1 }
 0x928   :  { %9368 = vsyncpa [#allocation17], 1 }
 0x929   :  { %9370 = vsyncpa [#allocation17 + $0x1], 1 }

</bundles_post_ra>
